<compile_context>
chip_gen: v6e
topology: v6e:2x2x1
jax: 0.10.0
libtpu: 0.0.40
codegen_flags: <defaults>
</compile_context>

<pallas_src>
import math
from functools import partial

import numpy as np
import jax
import jax.numpy as jnp
from jax.experimental import pallas as pl
from jax.experimental.pallas import tpu as pltpu


# ----------------------- configuration (small shapes) -----------------------
BATCH = 2
RES = 16                  # resolution_vol -> 16x16 feature map
NUM_POINTS = RES * RES    # 256 rays (multiple of 128 -> lane-dense output)
NUM_STEPS = 8             # num_ray_samples (64 in the paper; small here)
Z_DIM = 32                # z_dim        (256 in the paper; small here)
Z_DIM_BG = 16             # z_dim_bg     (128 in the paper; small here)
HIDDEN = 128              # decoder hidden width
FEAT_DIM = 16             # decoder feature output channels
NUM_BOXES = 1
K_DEC = NUM_BOXES + 1     # object decoders + background decoder
C_IN = 8                  # per-decoder channel rows: [p(3), ray(3), 1.0, 0]
CK = K_DEC * C_IN         # block-diag fused input channels (16)
HK = K_DEC * HIDDEN       # block-diag fused hidden rows / contraction (256)
FK = K_DEC * FEAT_DIM     # block-diag fused feature rows (32)
Y_ROWS = HK + 8 * K_DEC   # hidden-2 rows + one 8-row sigma tile per decoder (272)
PADD = 0.1
RANGE_U = (0.0, 0.0)
RANGE_V = (0.25, 0.25)
RANGE_R = (2.732, 2.732)
RANGE_D = (0.5, 6.0)
FOV = 49.13


# ------------------------------- Pallas kernel -------------------------------
def _giraffe_kernel(x_ref, win_ref, zb2_ref, whid_ref, wfeat_ref, bfc_ref,
                    dist_ref, out_ref):
    """Fused (block-diag) decoders + composite operator + volume rendering.

    Channel-major, lane-dense layout (sample axis M = S*N on lanes):
      x_ref    : (1, CK, M)       f32   per-decoder [p; ray; 1; 0] rows, stacked
      win_ref  : (1, HK, CK)      bf16  block-diag input proj, zb1+b1 bias col
      zb2_ref  : (1, Y_ROWS, 1)   f32   rows [kH:(k+1)H) = zb2_k, row HK+8k = bs_k
      whid_ref : (Y_ROWS, HK)     bf16  block-diag Wh^T, sigma row Ws^T at HK+8k
      wfeat_ref: (FK, HK)         bf16  block-diag Wf^T feature heads
      bfc_ref  : (FK, 1)          f32   feature-head bias columns
      dist_ref : (1, 1, M)        f32   delta_j * ||ray||, s-major flattened
      out_ref  : (1, Mf, N)       f32   rendered feature map (channel-major)
    """
    ck = x_ref.shape[1]
    M = x_ref.shape[2]
    hk = win_ref.shape[1]
    fk = wfeat_ref.shape[0]
    Mf = out_ref.shape[1]
    N = out_ref.shape[2]
    S = M // N
    K = fk // Mf
    C = ck // K

    xT = x_ref[0]                                              # (CK, M) f32

    # --- fused block-diag input projection (zb1/b1 folded as bias column) ---
    h = jnp.dot(win_ref[0], xT.astype(jnp.bfloat16),
                preferred_element_type=jnp.float32)            # (HK, M)
    h = jnp.maximum(h, 0.0)

    # --- fused hidden-2 + sigma heads: single contraction-depth-HK matmul ---
    y = jnp.dot(whid_ref[...], h.astype(jnp.bfloat16),
                preferred_element_type=jnp.float32)            # (Y_ROWS, M)
    y = y + zb2_ref[0]

    # --- fused feature heads ---
    h2 = jnp.maximum(y[:hk, :], 0.0)                           # (HK, M)
    feat = jnp.dot(wfeat_ref[...], h2.astype(jnp.bfloat16),
                   preferred_element_type=jnp.float32)         # (FK, M)
    feat = feat + bfc_ref[...]

    # --- per-decoder sigma rows (+ box mask on object decoders) ---
    # (reference `sigma_i == torch.randn_like(sigma_i)` is a no-op: == not =)
    sigmas = []
    for k in range(K):                                         # static unroll
        row = hk + 8 * k                                       # 8-aligned sublane
        sig = jnp.maximum(y[row:row + 1, :], 0.0)              # (1, M)
        if k < K - 1:
            p_absmax = jnp.max(jnp.abs(xT[k * C:k * C + 3, :]),
                               axis=0, keepdims=True)
            sig = jnp.where(p_absmax <= 1.0 + PADD, sig, 0.0)
        sigmas.append(sig)

    # --- composite operator: sigma_sum, sigma-weighted features ---
    sigma_sum = sigmas[0]
    for k in range(1, K):
        sigma_sum = sigma_sum + sigmas[k]
    if K > 1:
        denom = jnp.where(sigma_sum == 0.0, 1e-4, sigma_sum)
        inv_denom = 1.0 / denom
        feat_w = feat[0:Mf, :] * (sigmas[0] * inv_denom)
        for k in range(1, K):
            feat_w = feat_w + feat[k * Mf:(k + 1) * Mf, :] * (sigmas[k] * inv_denom)
    else:
        feat_w = feat[0:Mf, :]

    # --- volume rendering: w_j = alpha_j * prod_{k<j}(1 - alpha_k + 1e-10) ---
    alpha = 1.0 - jnp.exp(-sigma_sum * dist_ref[0])            # (1, M) f32
    one_minus = 1.0 - alpha + 1e-10

    # narrow transmittance chain first (serial, (1,N) wide) ...
    w_steps = []
    running = jnp.ones((1, N), jnp.float32)
    for s in range(S):                                         # static unroll
        lo = s * N                                             # 128-aligned lanes
        w_steps.append(alpha[:, lo:lo + N] * running)
        running = running * one_minus[:, lo:lo + N]
    # ... then the wide (Mf,N) FMAs, no longer serialized behind the chain
    acc = jnp.zeros((Mf, N), jnp.float32)
    for s in range(S):
        lo = s * N
        acc = acc + w_steps[s] * feat_w[:, lo:lo + N]

    out_ref[0] = acc


# ------------------------------ kernel wrapper ------------------------------
def giraffe_volume_render(x_all, win, zb2_aug, whid, wfeat, bfc, dist_flat):
    """Single fused pallas_call over the batch.  Returns (B, Mf, N)."""
    B, _, M = x_all.shape
    Mf = FEAT_DIM
    N = M // NUM_STEPS

    flops = 2 * B * M * (HK * CK + Y_ROWS * HK + FK * HK) + 24 * B * M
    bytes_accessed = int(x_all.size * 4 + win.size * 2 + zb2_aug.size * 4 +
                         whid.size * 2 + wfeat.size * 2 + bfc.size * 4 +
                         dist_flat.size * 4 + B * Mf * N * 4)

    def bspec(shape):                       # batch-blocked operand
        n = len(shape)
        return pl.BlockSpec(shape, lambda b: (b,) + (0,) * (n - 1))

    def wspec(shape):                       # batch-invariant operand (weights)
        n = len(shape)
        return pl.BlockSpec(shape, lambda b: (0,) * n)

    return pl.pallas_call(
        _giraffe_kernel,
        out_shape=jax.ShapeDtypeStruct((B, Mf, N), jnp.float32),
        grid=(B,),
        in_specs=[
            bspec((1, CK, M)),
            bspec((1, HK, CK)),
            bspec((1, Y_ROWS, 1)),
            wspec((Y_ROWS, HK)),
            wspec((FK, HK)),
            wspec((FK, 1)),
            bspec((1, 1, M)),
        ],
        out_specs=pl.BlockSpec((1, Mf, N), lambda b: (b, 0, 0)),
        compiler_params=pltpu.CompilerParams(
            dimension_semantics=("parallel",),
            vmem_limit_bytes=32 * 1024 * 1024),
        cost_estimate=pl.CostEstimate(flops=flops, transcendentals=B * M,
                                      bytes_accessed=bytes_accessed),
    )(x_all, win, zb2_aug, whid, wfeat, bfc, dist_flat)


# --------------------------------- JAX glue ---------------------------------
def init_decoder_params(key, z_dim, hidden, feat_dim):
    ks = jax.random.split(key, 7)

    def w(k, shape, fan_in):
        return jax.random.normal(k, shape, jnp.float32) / np.sqrt(fan_in)

    return dict(
        wp=w(ks[0], (3, hidden), 3.0),
        wr=w(ks[1], (3, hidden), 3.0),
        wzs=w(ks[2], (z_dim, hidden), float(z_dim)),
        b1=jnp.zeros((hidden,), jnp.float32),
        wh=w(ks[3], (hidden, hidden), float(hidden)),
        wza=w(ks[4], (z_dim, hidden), float(z_dim)),
        b2=jnp.zeros((hidden,), jnp.float32),
        ws=w(ks[5], (hidden, 1), float(hidden)),
        bs=jnp.zeros((1, 1), jnp.float32),
        wf=w(ks[6], (hidden, feat_dim), float(hidden)),
        bf=jnp.zeros((1, feat_dim), jnp.float32),
    )


def pack_static_weights(params_list):
    """Block-diagonal fused, transposed, batch-invariant kernel weights."""
    whid = jnp.zeros((Y_ROWS, HK), jnp.float32)
    wfeat = jnp.zeros((FK, HK), jnp.float32)
    bfc = jnp.zeros((FK, 1), jnp.float32)
    for k, p in enumerate(params_list):
        r0, r1 = k * HIDDEN, (k + 1) * HIDDEN
        whid = whid.at[r0:r1, r0:r1].set(p["wh"].T)
        whid = whid.at[HK + 8 * k, r0:r1].set(p["ws"][:, 0])       # sigma head
        wfeat = wfeat.at[k * FEAT_DIM:(k + 1) * FEAT_DIM, r0:r1].set(p["wf"].T)
        bfc = bfc.at[k * FEAT_DIM:(k + 1) * FEAT_DIM, 0].set(p["bf"][0])
    return whid.astype(jnp.bfloat16), wfeat.astype(jnp.bfloat16), bfc


def pack_input_projection(params_list, zb1_list):
    """Per-batch block-diag input projection with zb1 (+b1) folded as bias col."""
    B = zb1_list[0].shape[0]
    win = jnp.zeros((B, HK, CK), jnp.float32)
    for k, p in enumerate(params_list):
        w6 = jnp.concatenate([p["wp"], p["wr"]], axis=0).T           # (H, 6)
        blk = jnp.concatenate(
            [jnp.broadcast_to(w6[None], (B, HIDDEN, 6)),
             zb1_list[k][..., None],                                 # (B, H, 1)
             jnp.zeros((B, HIDDEN, C_IN - 7), jnp.float32)], axis=-1)
        win = win.at[:, k * HIDDEN:(k + 1) * HIDDEN,
                     k * C_IN:(k + 1) * C_IN].set(blk)
    return win.astype(jnp.bfloat16)


def pack_zb2(params_list, zb2_list):
    """Per-batch zb2 (+b2) columns with sigma-head biases at rows HK + 8k."""
    B = zb2_list[0].shape[0]
    zb2_aug = jnp.zeros((B, Y_ROWS, 1), jnp.float32)
    for k, p in enumerate(params_list):
        zb2_aug = zb2_aug.at[:, k * HIDDEN:(k + 1) * HIDDEN, 0].set(zb2_list[k])
        zb2_aug = zb2_aug.at[:, HK + 8 * k, 0].set(
            jnp.broadcast_to(p["bs"][0, 0], (B,)))
    return zb2_aug


def arrange_pixels(res, batch_size):
    # matches arrange_pixels((res, res), B, image_range=(-1, 1), invert_y_axis=False)
    ii, jj = jnp.meshgrid(jnp.arange(res), jnp.arange(res), indexing="ij")
    pix = jnp.stack([jj, ii], axis=-1).reshape(1, -1, 2).astype(jnp.float32)
    pix = 2.0 * pix / (res - 1) - 1.0
    return jnp.tile(pix, (batch_size, 1, 1))


def get_camera_and_pose(batch_size):
    # deterministic: degenerate ranges -> u=0, v=0.25, r=2.732 (GIRAFFE defaults)
    focal = 1.0 / math.tan(0.5 * FOV * math.pi / 180.0)
    u, v, r = RANGE_U[0], RANGE_V[0], RANGE_R[0]
    theta = 2.0 * math.pi * u
    phi = math.acos(1.0 - 2.0 * v)
    loc = np.array([math.sin(phi) * math.cos(theta),
                    math.sin(phi) * math.sin(theta),
                    math.cos(phi)], dtype=np.float32) * r
    z_axis = loc / np.linalg.norm(loc)
    up = np.array([0.0, 0.0, 1.0], dtype=np.float32)
    x_axis = np.cross(up, z_axis)
    x_axis = x_axis / np.linalg.norm(x_axis)
    y_axis = np.cross(z_axis, x_axis)
    y_axis = y_axis / np.linalg.norm(y_axis)
    Rcw = np.stack([x_axis, y_axis, z_axis], axis=-1)        # columns = axes
    Rcw = jnp.tile(jnp.asarray(Rcw, jnp.float32)[None], (batch_size, 1, 1))
    loc = jnp.tile(jnp.asarray(loc, jnp.float32)[None], (batch_size, 1))
    return focal, Rcw, loc


def get_rays(batch_size):
    pixels = arrange_pixels(RES, batch_size)
    pixels = pixels.at[..., -1].multiply(-1.0)               # pixels[..., -1] *= -1
    focal, Rcw, loc = get_camera_and_pose(batch_size)
    # img_points_to_world: image plane at depth -1, inverse intrinsics, cam2world
    pix_cam = jnp.stack([pixels[..., 0] / focal,
                         pixels[..., 1] / focal,
                         -jnp.ones_like(pixels[..., 0])], axis=-1)       # (B, N, 3)
    pixels_world = jnp.einsum("bij,bnj->bni", Rcw, pix_cam) + loc[:, None, :]
    camera_world = jnp.tile(loc[:, None, :], (1, NUM_POINTS, 1))         # origin_to_world
    return pixels_world, camera_world


def transform_points_to_box(p, s, t, R, box_idx=0, scale_factor=1.0):
    s_i, t_i, R_i = s[:, box_idx], t[:, box_idx], R[:, box_idx]
    p_box = jnp.einsum("bij,bnj->bni", R_i, p - t_i[:, None, :])
    return p_box / s_i[:, None, :] * scale_factor


def build_eval_inputs(pixels_world, camera_world, di, transformations=None,
                      box_idx=0, mode="object", bg_rotation=None):
    """Channel-major, s-major sample rows [p; ray; 1; 0], shape (B, C_IN, S*N)."""
    B, N, S = di.shape
    if mode == "object":
        s, t, R = transformations
        pw = transform_points_to_box(pixels_world, s, t, R, box_idx)
        cw = transform_points_to_box(camera_world, s, t, R, box_idx)
    else:
        pw = jnp.einsum("bij,bnj->bni", bg_rotation, pixels_world)
        cw = jnp.einsum("bij,bnj->bni", bg_rotation, camera_world)
    ray = pw - cw                                                       # (B, N, 3)
    p = cw[:, :, None, :] + di[..., None] * ray[:, :, None, :]          # (B, N, S, 3)
    ray_b = jnp.broadcast_to(ray[:, :, None, :], p.shape)
    ones = jnp.ones(p.shape[:-1] + (1,), jnp.float32)                   # zb1 bias row
    pad = jnp.zeros(p.shape[:-1] + (C_IN - 7,), jnp.float32)
    x = jnp.concatenate([p, ray_b, ones, pad], axis=-1)                 # (B, N, S, C)
    return jnp.transpose(x, (0, 3, 2, 1)).reshape(B, C_IN, S * N)       # s-major flat


def add_noise_to_interval(di, key):
    di_mid = 0.5 * (di[..., 1:] + di[..., :-1])
    di_high = jnp.concatenate([di_mid, di[..., -1:]], axis=-1)
    di_low = jnp.concatenate([di[..., :1], di_mid], axis=-1)
    noise = jax.random.uniform(key, di_low.shape, jnp.float32)
    return di_low + (di_high - di_low) * noise


@partial(jax.jit, static_argnames=("batch_size", "mode"))
def generator_forward(key, batch_size=BATCH, mode="training"):
    kz1, kz2, kz3, kz4, knoise, kdec, kbg = jax.random.split(key, 7)

    # latent codes (sample_z)
    z_s_obj = jax.random.normal(kz1, (batch_size, NUM_BOXES, Z_DIM), jnp.float32)
    z_a_obj = jax.random.normal(kz2, (batch_size, NUM_BOXES, Z_DIM), jnp.float32)
    z_s_bg = jax.random.normal(kz3, (batch_size, Z_DIM_BG), jnp.float32)
    z_a_bg = jax.random.normal(kz4, (batch_size, Z_DIM_BG), jnp.float32)

    # deterministic bounding-box transformations (stand-in BoundingBoxGenerator)
    ang = math.pi / 6.0
    Rz = jnp.asarray([[math.cos(ang), -math.sin(ang), 0.0],
                      [math.sin(ang), math.cos(ang), 0.0],
                      [0.0, 0.0, 1.0]], jnp.float32)
    s = jnp.tile(jnp.asarray([0.45, 0.45, 0.45], jnp.float32)[None, None],
                 (batch_size, NUM_BOXES, 1))
    t = jnp.tile(jnp.asarray([0.1, 0.0, 0.0], jnp.float32)[None, None],
                 (batch_size, NUM_BOXES, 1))
    Rb = jnp.tile(Rz[None, None], (batch_size, NUM_BOXES, 1, 1))
    transformations = (s, t, Rb)

    # background rotation: range_bg_rot == (0, 0) -> identity rotation
    bg_rotation = jnp.tile(jnp.eye(3, dtype=jnp.float32)[None], (batch_size, 1, 1))

    # decoder / background-generator parameters (deterministic stand-ins)
    dec_params = init_decoder_params(kdec, Z_DIM, HIDDEN, FEAT_DIM)
    bg_params = init_decoder_params(kbg, Z_DIM_BG, HIDDEN, FEAT_DIM)

    # rays
    pixels_world, camera_world = get_rays(batch_size)
    ray_vector = pixels_world - camera_world

    # depth steps + training-mode interval noise
    di = RANGE_D[0] + jnp.linspace(0.0, 1.0, NUM_STEPS).reshape(1, 1, -1) \
        * (RANGE_D[1] - RANGE_D[0])
    di = jnp.tile(di, (batch_size, NUM_POINTS, 1)).astype(jnp.float32)
    if mode == "training":
        di = add_noise_to_interval(di, knoise)

    # ---- per-decoder kernel inputs (object boxes first, then background) ----
    x_list, zb1_list, zb2_list, params_list = [], [], [], []
    for i in range(NUM_BOXES):
        x_list.append(build_eval_inputs(pixels_world, camera_world, di,
                                        transformations, i, mode="object"))
        zb1_list.append(z_s_obj[:, i] @ dec_params["wzs"] + dec_params["b1"])
        zb2_list.append(z_a_obj[:, i] @ dec_params["wza"] + dec_params["b2"])
        params_list.append(dec_params)
    x_list.append(build_eval_inputs(pixels_world, camera_world, di,
                                    mode="background", bg_rotation=bg_rotation))
    zb1_list.append(z_s_bg @ bg_params["wzs"] + bg_params["b1"])
    zb2_list.append(z_a_bg @ bg_params["wza"] + bg_params["b2"])
    params_list.append(bg_params)

    x_all = jnp.concatenate(x_list, axis=1)                  # (B, K*C_IN, M) f32
    win = pack_input_projection(params_list, zb1_list)       # (B, HK, CK)    bf16
    zb2_aug = pack_zb2(params_list, zb2_list)                 # (B, Y_ROWS, 1) f32
    whid, wfeat, bfc = pack_static_weights(params_list)       # bf16 / bf16 / f32

    # delta_j * ||ray|| in the kernel's s-major flat layout
    dist = jnp.concatenate(
        [di[..., 1:] - di[..., :-1],
         jnp.full((batch_size, NUM_POINTS, 1), 1e10, jnp.float32)], axis=-1)
    ray_norm = jnp.sqrt(jnp.sum(ray_vector * ray_vector, axis=-1, keepdims=True))
    dist = dist * ray_norm                                    # (B, N, S)
    dist_flat = jnp.transpose(dist, (0, 2, 1)).reshape(
        batch_size, 1, NUM_POINTS * NUM_STEPS)                # (B, 1, S*N)

    feat_cn = giraffe_volume_render(x_all, win, zb2_aug, whid, wfeat, bfc,
                                    dist_flat)                # (B, Mf, N)

    # matches: permute(0,2,1).reshape(B,-1,res,res).permute(0,1,3,2) on (B,N,Mf)
    feat_map = feat_cn.reshape(batch_size, FEAT_DIM, RES, RES)
    feat_map = jnp.transpose(feat_map, (0, 1, 3, 2))
    # neural_renderer is None -> rgb = rgb_v
    return feat_map


if __name__ == "__main__":
    key = jax.random.PRNGKey(0)
    out = generator_forward(key, batch_size=BATCH, mode="training")
    out = jax.block_until_ready(out)
    assert out.shape == (BATCH, FEAT_DIM, RES, RES), out.shape
    assert bool(jnp.all(jnp.isfinite(out)))
    print("KERNEL_OK")
</pallas_src>

<mosaic_0001>
module attributes {stable_mosaic.version = 11 : i64} {
  func.func @_giraffe_kernel(%arg0: i32, %arg1: memref<1x16x2048xf32, #tpu.memory_space<vmem>>, %arg2: memref<1x256x16xbf16, #tpu.memory_space<vmem>>, %arg3: memref<1x272x1xf32, #tpu.memory_space<vmem>>, %arg4: memref<272x256xbf16, #tpu.memory_space<vmem>>, %arg5: memref<32x256xbf16, #tpu.memory_space<vmem>>, %arg6: memref<32x1xf32, #tpu.memory_space<vmem>>, %arg7: memref<1x1x2048xf32, #tpu.memory_space<vmem>>, %arg8: memref<1x16x256xf32, #tpu.memory_space<vmem>>) attributes {dimension_semantics = [#tpu.dimension_semantics<parallel>], iteration_bounds = array<i64: 2>, scalar_prefetch = 0 : i64, scratch_operands = 0 : i64, tpu.core_type = #tpu.core_type<tc>, window_params = [{transform_indices = @transform_0, window_bounds = array<i64: 1, 16, 2048>}, {transform_indices = @transform_1, window_bounds = array<i64: 1, 256, 16>}, {transform_indices = @transform_2, window_bounds = array<i64: 1, 272, 1>}, {pipeline_mode = #tpu.pipeline_mode<synchronous>, transform_indices = @transform_3, window_bounds = array<i64: 272, 256>}, {pipeline_mode = #tpu.pipeline_mode<synchronous>, transform_indices = @transform_4, window_bounds = array<i64: 32, 256>}, {pipeline_mode = #tpu.pipeline_mode<synchronous>, transform_indices = @transform_5, window_bounds = array<i64: 32, 1>}, {transform_indices = @transform_6, window_bounds = array<i64: 1, 1, 2048>}, {transform_indices = @transform_7, window_bounds = array<i64: 1, 16, 256>}]} {
    %c0 = arith.constant 0 : index
    %c0_0 = arith.constant 0 : index
    %c0_1 = arith.constant 0 : index
    %0 = vector.load %arg1[%c0, %c0_0, %c0_1] : memref<1x16x2048xf32, #tpu.memory_space<vmem>>, vector<1x16x2048xf32>
    %1 = vector.shape_cast %0 : vector<1x16x2048xf32> to vector<16x2048xf32>
    %c0_2 = arith.constant 0 : index
    %c0_3 = arith.constant 0 : index
    %c0_4 = arith.constant 0 : index
    %2 = vector.load %arg2[%c0_2, %c0_3, %c0_4] : memref<1x256x16xbf16, #tpu.memory_space<vmem>>, vector<1x256x16xbf16>
    %3 = vector.shape_cast %2 : vector<1x256x16xbf16> to vector<256x16xbf16>
    %4 = arith.truncf %1 : vector<16x2048xf32> to vector<16x2048xbf16>
    %cst = arith.constant dense<0.000000e+00> : vector<256x2048xf32>
    %5 = tpu.matmul %3, %4, %cst {dimension_numbers = #tpu.dot_dimension_numbers<[1], [0], [0], [1], [0, 0, 1, 1], [], []>} : vector<256x16xbf16>, vector<16x2048xbf16>, vector<256x2048xf32> -> vector<256x2048xf32>
    %cst_5 = arith.constant 0.000000e+00 : f32
    %6 = vector.broadcast %cst_5 : f32 to vector<256x2048xf32>
    %7 = arith.maximumf %5, %6 : vector<256x2048xf32>
    %c0_6 = arith.constant 0 : index
    %c0_7 = arith.constant 0 : index
    %8 = vector.load %arg4[%c0_6, %c0_7] : memref<272x256xbf16, #tpu.memory_space<vmem>>, vector<272x256xbf16>
    %9 = arith.truncf %7 : vector<256x2048xf32> to vector<256x2048xbf16>
    %cst_8 = arith.constant dense<0.000000e+00> : vector<272x2048xf32>
    %10 = tpu.matmul %8, %9, %cst_8 {dimension_numbers = #tpu.dot_dimension_numbers<[1], [0], [0], [1], [0, 0, 1, 1], [], []>} : vector<272x256xbf16>, vector<256x2048xbf16>, vector<272x2048xf32> -> vector<272x2048xf32>
    %c0_9 = arith.constant 0 : index
    %c0_10 = arith.constant 0 : index
    %c0_11 = arith.constant 0 : index
    %11 = vector.load %arg3[%c0_9, %c0_10, %c0_11] : memref<1x272x1xf32, #tpu.memory_space<vmem>>, vector<1x272x1xf32>
    %12 = vector.shape_cast %11 : vector<1x272x1xf32> to vector<272x1xf32>
    %13 = vector.broadcast %12 : vector<272x1xf32> to vector<272x2048xf32>
    %14 = arith.addf %10, %13 : vector<272x2048xf32>
    %15 = vector.extract_strided_slice %14 {offsets = [0, 0], sizes = [256, 2048], strides = [1, 1]} : vector<272x2048xf32> to vector<256x2048xf32>
    %cst_12 = arith.constant 0.000000e+00 : f32
    %16 = vector.broadcast %cst_12 : f32 to vector<256x2048xf32>
    %17 = arith.maximumf %15, %16 : vector<256x2048xf32>
    %c0_13 = arith.constant 0 : index
    %c0_14 = arith.constant 0 : index
    %18 = vector.load %arg5[%c0_13, %c0_14] : memref<32x256xbf16, #tpu.memory_space<vmem>>, vector<32x256xbf16>
    %19 = arith.truncf %17 : vector<256x2048xf32> to vector<256x2048xbf16>
    %cst_15 = arith.constant dense<0.000000e+00> : vector<32x2048xf32>
    %20 = tpu.matmul %18, %19, %cst_15 {dimension_numbers = #tpu.dot_dimension_numbers<[1], [0], [0], [1], [0, 0, 1, 1], [], []>} : vector<32x256xbf16>, vector<256x2048xbf16>, vector<32x2048xf32> -> vector<32x2048xf32>
    %c0_16 = arith.constant 0 : index
    %c0_17 = arith.constant 0 : index
    %21 = vector.load %arg6[%c0_16, %c0_17] : memref<32x1xf32, #tpu.memory_space<vmem>>, vector<32x1xf32>
    %22 = vector.broadcast %21 : vector<32x1xf32> to vector<32x2048xf32>
    %23 = arith.addf %20, %22 : vector<32x2048xf32>
    %24 = vector.extract_strided_slice %14 {offsets = [256, 0], sizes = [1, 2048], strides = [1, 1]} : vector<272x2048xf32> to vector<1x2048xf32>
    %cst_18 = arith.constant 0.000000e+00 : f32
    %25 = vector.broadcast %cst_18 : f32 to vector<1x2048xf32>
    %26 = arith.maximumf %24, %25 : vector<1x2048xf32>
    %27 = vector.extract_strided_slice %1 {offsets = [0, 0], sizes = [3, 2048], strides = [1, 1]} : vector<16x2048xf32> to vector<3x2048xf32>
    %28 = math.absf %27 : vector<3x2048xf32>
    %cst_19 = arith.constant dense<0xFF800000> : vector<2048xf32>
    %29 = vector.multi_reduction <maximumf>, %28, %cst_19 [0] : vector<3x2048xf32> to vector<2048xf32>
    %30 = vector.shape_cast %29 : vector<2048xf32> to vector<1x2048xf32>
    %cst_20 = arith.constant 1.100000e+00 : f32
    %31 = vector.broadcast %cst_20 : f32 to vector<1x2048xf32>
    %32 = arith.cmpf ole, %30, %31 : vector<1x2048xf32>
    %cst_21 = arith.constant 0.000000e+00 : f32
    %33 = vector.broadcast %cst_21 : f32 to vector<1x2048xf32>
    %34 = arith.select %32, %26, %33 : vector<1x2048xi1>, vector<1x2048xf32>
    %35 = vector.extract_strided_slice %14 {offsets = [264, 0], sizes = [1, 2048], strides = [1, 1]} : vector<272x2048xf32> to vector<1x2048xf32>
    %cst_22 = arith.constant 0.000000e+00 : f32
    %36 = vector.broadcast %cst_22 : f32 to vector<1x2048xf32>
    %37 = arith.maximumf %35, %36 : vector<1x2048xf32>
    %38 = arith.addf %34, %37 : vector<1x2048xf32>
    %cst_23 = arith.constant 0.000000e+00 : f32
    %39 = vector.broadcast %cst_23 : f32 to vector<1x2048xf32>
    %40 = arith.cmpf oeq, %38, %39 : vector<1x2048xf32>
    %cst_24 = arith.constant 9.99999974E-5 : f32
    %41 = vector.broadcast %cst_24 : f32 to vector<1x2048xf32>
    %42 = arith.select %40, %41, %38 : vector<1x2048xi1>, vector<1x2048xf32>
    %cst_25 = arith.constant 1.000000e+00 : f32
    %43 = vector.broadcast %cst_25 : f32 to vector<1x2048xf32>
    %44 = arith.divf %43, %42 : vector<1x2048xf32>
    %45 = vector.extract_strided_slice %23 {offsets = [0, 0], sizes = [16, 2048], strides = [1, 1]} : vector<32x2048xf32> to vector<16x2048xf32>
    %46 = arith.mulf %34, %44 : vector<1x2048xf32>
    %47 = vector.broadcast %46 : vector<1x2048xf32> to vector<16x2048xf32>
    %48 = arith.mulf %45, %47 : vector<16x2048xf32>
    %49 = vector.extract_strided_slice %23 {offsets = [16, 0], sizes = [16, 2048], strides = [1, 1]} : vector<32x2048xf32> to vector<16x2048xf32>
    %50 = arith.mulf %37, %44 : vector<1x2048xf32>
    %51 = vector.broadcast %50 : vector<1x2048xf32> to vector<16x2048xf32>
    %52 = arith.mulf %49, %51 : vector<16x2048xf32>
    %53 = arith.addf %48, %52 : vector<16x2048xf32>
    %cst_26 = arith.constant 0.000000e+00 : f32
    %54 = vector.broadcast %cst_26 : f32 to vector<1x2048xf32>
    %55 = arith.subf %54, %38 : vector<1x2048xf32>
    %c0_27 = arith.constant 0 : index
    %c0_28 = arith.constant 0 : index
    %c0_29 = arith.constant 0 : index
    %56 = vector.load %arg7[%c0_27, %c0_28, %c0_29] : memref<1x1x2048xf32, #tpu.memory_space<vmem>>, vector<1x1x2048xf32>
    %57 = vector.shape_cast %56 : vector<1x1x2048xf32> to vector<1x2048xf32>
    %58 = arith.mulf %55, %57 : vector<1x2048xf32>
    %59 = math.exp %58 : vector<1x2048xf32>
    %cst_30 = arith.constant 1.000000e+00 : f32
    %60 = vector.broadcast %cst_30 : f32 to vector<1x2048xf32>
    %61 = arith.subf %60, %59 : vector<1x2048xf32>
    %cst_31 = arith.constant 1.000000e+00 : f32
    %62 = vector.broadcast %cst_31 : f32 to vector<1x2048xf32>
    %63 = arith.subf %62, %61 : vector<1x2048xf32>
    %cst_32 = arith.constant 1.000000e-10 : f32
    %64 = vector.broadcast %cst_32 : f32 to vector<1x2048xf32>
    %65 = arith.addf %63, %64 : vector<1x2048xf32>
    %cst_33 = arith.constant 1.000000e+00 : f32
    %66 = vector.broadcast %cst_33 : f32 to vector<1x256xf32>
    %67 = vector.extract_strided_slice %61 {offsets = [0, 0], sizes = [1, 256], strides = [1, 1]} : vector<1x2048xf32> to vector<1x256xf32>
    %68 = arith.mulf %67, %66 : vector<1x256xf32>
    %69 = vector.extract_strided_slice %65 {offsets = [0, 0], sizes = [1, 256], strides = [1, 1]} : vector<1x2048xf32> to vector<1x256xf32>
    %70 = arith.mulf %66, %69 : vector<1x256xf32>
    %71 = vector.extract_strided_slice %61 {offsets = [0, 256], sizes = [1, 256], strides = [1, 1]} : vector<1x2048xf32> to vector<1x256xf32>
    %72 = arith.mulf %71, %70 : vector<1x256xf32>
    %73 = vector.extract_strided_slice %65 {offsets = [0, 256], sizes = [1, 256], strides = [1, 1]} : vector<1x2048xf32> to vector<1x256xf32>
    %74 = arith.mulf %70, %73 : vector<1x256xf32>
    %75 = vector.extract_strided_slice %61 {offsets = [0, 512], sizes = [1, 256], strides = [1, 1]} : vector<1x2048xf32> to vector<1x256xf32>
    %76 = arith.mulf %75, %74 : vector<1x256xf32>
    %77 = vector.extract_strided_slice %65 {offsets = [0, 512], sizes = [1, 256], strides = [1, 1]} : vector<1x2048xf32> to vector<1x256xf32>
    %78 = arith.mulf %74, %77 : vector<1x256xf32>
    %79 = vector.extract_strided_slice %61 {offsets = [0, 768], sizes = [1, 256], strides = [1, 1]} : vector<1x2048xf32> to vector<1x256xf32>
    %80 = arith.mulf %79, %78 : vector<1x256xf32>
    %81 = vector.extract_strided_slice %65 {offsets = [0, 768], sizes = [1, 256], strides = [1, 1]} : vector<1x2048xf32> to vector<1x256xf32>
    %82 = arith.mulf %78, %81 : vector<1x256xf32>
    %83 = vector.extract_strided_slice %61 {offsets = [0, 1024], sizes = [1, 256], strides = [1, 1]} : vector<1x2048xf32> to vector<1x256xf32>
    %84 = arith.mulf %83, %82 : vector<1x256xf32>
    %85 = vector.extract_strided_slice %65 {offsets = [0, 1024], sizes = [1, 256], strides = [1, 1]} : vector<1x2048xf32> to vector<1x256xf32>
    %86 = arith.mulf %82, %85 : vector<1x256xf32>
    %87 = vector.extract_strided_slice %61 {offsets = [0, 1280], sizes = [1, 256], strides = [1, 1]} : vector<1x2048xf32> to vector<1x256xf32>
    %88 = arith.mulf %87, %86 : vector<1x256xf32>
    %89 = vector.extract_strided_slice %65 {offsets = [0, 1280], sizes = [1, 256], strides = [1, 1]} : vector<1x2048xf32> to vector<1x256xf32>
    %90 = arith.mulf %86, %89 : vector<1x256xf32>
    %91 = vector.extract_strided_slice %61 {offsets = [0, 1536], sizes = [1, 256], strides = [1, 1]} : vector<1x2048xf32> to vector<1x256xf32>
    %92 = arith.mulf %91, %90 : vector<1x256xf32>
    %93 = vector.extract_strided_slice %65 {offsets = [0, 1536], sizes = [1, 256], strides = [1, 1]} : vector<1x2048xf32> to vector<1x256xf32>
    %94 = arith.mulf %90, %93 : vector<1x256xf32>
    %95 = vector.extract_strided_slice %61 {offsets = [0, 1792], sizes = [1, 256], strides = [1, 1]} : vector<1x2048xf32> to vector<1x256xf32>
    %96 = arith.mulf %95, %94 : vector<1x256xf32>
    %cst_34 = arith.constant 0.000000e+00 : f32
    %97 = vector.broadcast %cst_34 : f32 to vector<16x256xf32>
    %98 = vector.extract_strided_slice %53 {offsets = [0, 0], sizes = [16, 256], strides = [1, 1]} : vector<16x2048xf32> to vector<16x256xf32>
    %99 = vector.broadcast %68 : vector<1x256xf32> to vector<16x256xf32>
    %100 = arith.mulf %99, %98 : vector<16x256xf32>
    %101 = arith.addf %97, %100 : vector<16x256xf32>
    %102 = vector.extract_strided_slice %53 {offsets = [0, 256], sizes = [16, 256], strides = [1, 1]} : vector<16x2048xf32> to vector<16x256xf32>
    %103 = vector.broadcast %72 : vector<1x256xf32> to vector<16x256xf32>
    %104 = arith.mulf %103, %102 : vector<16x256xf32>
    %105 = arith.addf %101, %104 : vector<16x256xf32>
    %106 = vector.extract_strided_slice %53 {offsets = [0, 512], sizes = [16, 256], strides = [1, 1]} : vector<16x2048xf32> to vector<16x256xf32>
    %107 = vector.broadcast %76 : vector<1x256xf32> to vector<16x256xf32>
    %108 = arith.mulf %107, %106 : vector<16x256xf32>
    %109 = arith.addf %105, %108 : vector<16x256xf32>
    %110 = vector.extract_strided_slice %53 {offsets = [0, 768], sizes = [16, 256], strides = [1, 1]} : vector<16x2048xf32> to vector<16x256xf32>
    %111 = vector.broadcast %80 : vector<1x256xf32> to vector<16x256xf32>
    %112 = arith.mulf %111, %110 : vector<16x256xf32>
    %113 = arith.addf %109, %112 : vector<16x256xf32>
    %114 = vector.extract_strided_slice %53 {offsets = [0, 1024], sizes = [16, 256], strides = [1, 1]} : vector<16x2048xf32> to vector<16x256xf32>
    %115 = vector.broadcast %84 : vector<1x256xf32> to vector<16x256xf32>
    %116 = arith.mulf %115, %114 : vector<16x256xf32>
    %117 = arith.addf %113, %116 : vector<16x256xf32>
    %118 = vector.extract_strided_slice %53 {offsets = [0, 1280], sizes = [16, 256], strides = [1, 1]} : vector<16x2048xf32> to vector<16x256xf32>
    %119 = vector.broadcast %88 : vector<1x256xf32> to vector<16x256xf32>
    %120 = arith.mulf %119, %118 : vector<16x256xf32>
    %121 = arith.addf %117, %120 : vector<16x256xf32>
    %122 = vector.extract_strided_slice %53 {offsets = [0, 1536], sizes = [16, 256], strides = [1, 1]} : vector<16x2048xf32> to vector<16x256xf32>
    %123 = vector.broadcast %92 : vector<1x256xf32> to vector<16x256xf32>
    %124 = arith.mulf %123, %122 : vector<16x256xf32>
    %125 = arith.addf %121, %124 : vector<16x256xf32>
    %126 = vector.extract_strided_slice %53 {offsets = [0, 1792], sizes = [16, 256], strides = [1, 1]} : vector<16x2048xf32> to vector<16x256xf32>
    %127 = vector.broadcast %96 : vector<1x256xf32> to vector<16x256xf32>
    %128 = arith.mulf %127, %126 : vector<16x256xf32>
    %129 = arith.addf %125, %128 : vector<16x256xf32>
    %c0_35 = arith.constant 0 : index
    %c0_36 = arith.constant 0 : index
    %c0_37 = arith.constant 0 : index
    %130 = vector.load %arg8[%c0_35, %c0_36, %c0_37] : memref<1x16x256xf32, #tpu.memory_space<vmem>>, vector<1x16x256xf32>
    %131 = vector.shape_cast %130 : vector<1x16x256xf32> to vector<16x256xf32>
    %132 = vector.shape_cast %129 : vector<16x256xf32> to vector<1x16x256xf32>
    tpu.vector_store %arg8[%c0_35, %c0_36, %c0_37], %132 {strides = array<i32>} : memref<1x16x256xf32, #tpu.memory_space<vmem>>, vector<1x16x256xf32>,
    return
  }
  func.func @transform_0(%arg0: i32) -> (i32, i32, i32) {
    %c0_i32 = arith.constant 0 : i32
    %c0_i32_0 = arith.constant 0 : i32
    %c0_i32_1 = arith.constant 0 : i32
    return %arg0, %c0_i32, %c0_i32_0 : i32, i32, i32
  }
  func.func @transform_1(%arg0: i32) -> (i32, i32, i32) {
    %c0_i32 = arith.constant 0 : i32
    %c0_i32_0 = arith.constant 0 : i32
    %c0_i32_1 = arith.constant 0 : i32
    return %arg0, %c0_i32, %c0_i32_0 : i32, i32, i32
  }
  func.func @transform_2(%arg0: i32) -> (i32, i32, i32) {
    %c0_i32 = arith.constant 0 : i32
    %c0_i32_0 = arith.constant 0 : i32
    %c0_i32_1 = arith.constant 0 : i32
    return %arg0, %c0_i32, %c0_i32_0 : i32, i32, i32
  }
  func.func @transform_3(%arg0: i32) -> (i32, i32) {
    %c0_i32 = arith.constant 0 : i32
    %c0_i32_0 = arith.constant 0 : i32
    %c0_i32_1 = arith.constant 0 : i32
    return %c0_i32, %c0_i32_0 : i32, i32
  }
  func.func @transform_4(%arg0: i32) -> (i32, i32) {
    %c0_i32 = arith.constant 0 : i32
    %c0_i32_0 = arith.constant 0 : i32
    %c0_i32_1 = arith.constant 0 : i32
    return %c0_i32, %c0_i32_0 : i32, i32
  }
  func.func @transform_5(%arg0: i32) -> (i32, i32) {
    %c0_i32 = arith.constant 0 : i32
    %c0_i32_0 = arith.constant 0 : i32
    %c0_i32_1 = arith.constant 0 : i32
    return %c0_i32, %c0_i32_0 : i32, i32
  }
  func.func @transform_6(%arg0: i32) -> (i32, i32, i32) {
    %c0_i32 = arith.constant 0 : i32
    %c0_i32_0 = arith.constant 0 : i32
    %c0_i32_1 = arith.constant 0 : i32
    return %arg0, %c0_i32, %c0_i32_0 : i32, i32, i32
  }
  func.func @transform_7(%arg0: i32) -> (i32, i32, i32) {
    %c0_i32 = arith.constant 0 : i32
    %c0_i32_0 = arith.constant 0 : i32
    %c0_i32_1 = arith.constant 0 : i32
    return %arg0, %c0_i32, %c0_i32_0 : i32, i32, i32
  }
}

</mosaic_0001>

<bundles_post_ra>
// kernel: mul.158
= control target key start
LH: loop header
LB: loop body
LE: loop exit
PB: predicated region body
PF: predicated region fallthrough
CT: control target
= control target key end

     0   :  { %s226_s0 = inlined_call_operand.vmem [shape: f32[2,256,3], index: 0, kind: input, shape index: {}]   ;;  %s227_s1 = inlined_call_operand.vmem [shape: f32[2,256,8,3], index: 1, kind: output, shape index: {}]  }
   0x1   :  { %v4_v0 = vld [vmem:[%s226_s0] sm:$0x7]  ;;  %v74_v1 = vld [vmem:[%s226_s0 + $0x8] sm:$0x7]  ;;  %v90_v2 = vld [vmem:[%s226_s0 + $0x4] sm:$0x7] }
   0x2   :  { %5 = vst [vmem:[%s227_s1] sm:$0xf] %v4_v0  ;;  %75 = vst [vmem:[%s227_s1 + $0x40] sm:$0xf] %v74_v1  ;;  %v92_v3 = vld [vmem:[%s226_s0 + $0xc] sm:$0x7] }
   0x3   :  { %76 = vst [vmem:[%s227_s1 + $0x8] sm:$0xf] %v4_v0  ;;  %77 = vst [vmem:[%s227_s1 + $0x48] sm:$0xf] %v74_v1 }
   0x4   :  { %78 = vst [vmem:[%s227_s1 + $0x10] sm:$0xf] %v4_v0  ;;  %79 = vst [vmem:[%s227_s1 + $0x50] sm:$0xf] %v74_v1 }
   0x5   :  { %80 = vst [vmem:[%s227_s1 + $0x18] sm:$0xf] %v4_v0  ;;  %81 = vst [vmem:[%s227_s1 + $0x58] sm:$0xf] %v74_v1 }
   0x6   :  { %82 = vst [vmem:[%s227_s1 + $0x20] sm:$0xf] %v4_v0  ;;  %83 = vst [vmem:[%s227_s1 + $0x60] sm:$0xf] %v74_v1 }
   0x7   :  { %84 = vst [vmem:[%s227_s1 + $0x28] sm:$0xf] %v4_v0  ;;  %85 = vst [vmem:[%s227_s1 + $0x68] sm:$0xf] %v74_v1 }
   0x8   :  { %86 = vst [vmem:[%s227_s1 + $0x30] sm:$0xf] %v4_v0  ;;  %87 = vst [vmem:[%s227_s1 + $0x70] sm:$0xf] %v74_v1 }
   0x9   :  { %88 = vst [vmem:[%s227_s1 + $0x38] sm:$0xf] %v4_v0  ;;  %89 = vst [vmem:[%s227_s1 + $0x78] sm:$0xf] %v74_v1 }
   0xa   :  { %91 = vst [vmem:[%s227_s1 + $0x4] sm:$0xf] %v90_v2  ;;  %94 = vst [vmem:[%s227_s1 + $0xc] sm:$0xf] %v90_v2 }
   0xb   :  { %96 = vst [vmem:[%s227_s1 + $0x14] sm:$0xf] %v90_v2  ;;  %98 = vst [vmem:[%s227_s1 + $0x1c] sm:$0xf] %v90_v2 }
   0xc   :  { %100 = vst [vmem:[%s227_s1 + $0x24] sm:$0xf] %v90_v2  ;;  %102 = vst [vmem:[%s227_s1 + $0x2c] sm:$0xf] %v90_v2 }
   0xd   :  { %104 = vst [vmem:[%s227_s1 + $0x34] sm:$0xf] %v90_v2  ;;  %106 = vst [vmem:[%s227_s1 + $0x3c] sm:$0xf] %v90_v2 }
   0xe   :  { %93 = vst [vmem:[%s227_s1 + $0x44] sm:$0xf] %v92_v3  ;;  %95 = vst [vmem:[%s227_s1 + $0x4c] sm:$0xf] %v92_v3 }
   0xf   :  { %97 = vst [vmem:[%s227_s1 + $0x54] sm:$0xf] %v92_v3  ;;  %99 = vst [vmem:[%s227_s1 + $0x5c] sm:$0xf] %v92_v3 }
  0x10   :  { %101 = vst [vmem:[%s227_s1 + $0x64] sm:$0xf] %v92_v3  ;;  %103 = vst [vmem:[%s227_s1 + $0x6c] sm:$0xf] %v92_v3 }
  0x11   :  { %105 = vst [vmem:[%s227_s1 + $0x74] sm:$0xf] %v92_v3  ;;  %107 = vst [vmem:[%s227_s1 + $0x7c] sm:$0xf] %v92_v3 }

// kernel: generator_forward.1
= control target key start
LH: loop header
LB: loop body
LE: loop exit
PB: predicated region body
PF: predicated region fallthrough
CT: control target
= control target key end

     0   :  { %s7638_s24 = smov 0   ;;  %s12254_s0 = inlined_call_operand.vmem [shape: f32[2,16,2048], index: 0, kind: input, shape index: {}]   ;;  %s12255_s1 = inlined_call_operand.vmem [shape: bf16[2,256,16], index: 1, kind: input, shape index: {}]   ;;  %s12256_s2 = inlined_call_operand.vmem [shape: f32[2,272,1], index: 2, kind: input, shape index: {}]   ;;  %s12257_s3 = inlined_call_operand.vmem [shape: bf16[272,256], index: 3, kind: input, shape index: {}]   ;;  %s12258_s4 = inlined_call_operand.vmem [shape: bf16[32,256], index: 4, kind: input, shape index: {}]   ;;  %s12259_s5 = inlined_call_operand.vmem [shape: f32[32,1], index: 5, kind: input, shape index: {}]   ;;  %s12260_s6 = inlined_call_operand.vmem [shape: f32[2,1,2048], index: 6, kind: input, shape index: {}]   ;;  %s12261_s7 = inlined_call_operand.vmem [shape: f32[2,16,256], index: 7, kind: output, shape index: {}]  }
   0x1 LB: > { %s7100_s25 = sadd.s32 4294967295, %s7595_s24   ;;  %p7104_p0 = scmp.ge.s32.totalorder %s7595_s24, 1  ;;  %s7595_s24 = sphi %s7638_s24, %s17_s24  }
   0x2   : > { %p266_p1 = scmp.lt.s32.totalorder %s7595_s24, 3 }
   0x4   : > { %p267_p2 = pnand %p7104_p0, %p266_p1 }
   0x6   : > { %270 = sbr.rel (%p267_p2) target bundleno = 1526 (0x5f6), region = 48 }
   0xb   : > { %p312_p3 = scmp.lt.s32.totalorder %s7100_s25, 1  ;;  %v12262_v0 = vmov 0   ;;  %vm497_vm0 = vcmask 130048   ;;  %vm6162_vm1 = vcmask 1042432  }
   0xc   : > { %578 = vmatprep.mubr.bf16.mxu0 %v12262_v0  ;;  %771 = vmatprep.mubr.bf16.mxu1 %v12262_v0 }
   0xd   : > { %s13449_s25 = smov (!%p312_p3, %s7100_s25), 1  ;;  %7310 = vset.pattern.permute.xlu0 %v12262_v0  ;;  %7311 = vset.pattern.permute.xlu1 %v12262_v0 }
   0xe   : > { %s7297_s26 = sshll.u32 %s13449_s25, 8  ;;  %s7298_s27 = sshll.u32 %s13449_s25, 7 }
   0xf   : > { %s7657_s30 = scalar_lea.vmem %s12254_s0, %s7297_s26  ;;  %s7665_s10 = scalar_lea.vmem %s12255_s1, %s7298_s27 }
  0x10   : > { %v338_v1 = vld [vmem:[%s7657_s30 + $0x8] sm:$0xff]  ;;  %v340_v3 = vld [vmem:[%s7657_s30 + $0x18] sm:$0xff]  ;;  %v337_v6 = vld [vmem:[%s7657_s30] sm:$0xff]  ;;  %s7300_s11 = smul.u32 272, %s13449_s25  ;;  %s7110_s12 = sshll.u32 %s13449_s25, 4 }
  0x11   : > { %v354_v2 = vld [vmem:[%s7657_s30 + $0x88] sm:$0xff]  ;;  %v356_v5 = vld [vmem:[%s7657_s30 + $0x98] sm:$0xff]  ;;  %v353_v8 = vld [vmem:[%s7657_s30 + $0x80] sm:$0xff]  ;;  %s9611_s18 = scalar_lea.vmem %s12260_s6, %s7110_s12 }
  0x12   : > { %v402_v4 = vpack.c.bf16 %v354_v2, %v338_v1  ;;  %v404_v7 = vpack.c.bf16 %v356_v5, %v340_v3  ;;  %v339_v9 = vld [vmem:[%s7657_s30 + $0x10] sm:$0xff]  ;;  %v401_v11 = vpack.c.bf16 %v353_v8, %v337_v6  ;;  %v7673_v13 = vld [vmem:[%s7665_s10] sm:$0xff]   ;;  %v342_v14 = vld [vmem:[%s7657_s30 + $0x28] sm:$0xff]  ;;  %s8341_s14 = scalar_lea.vmem %s12256_s2, %s7300_s11 }
  0x13   : > { %v355_v10 = vld [vmem:[%s7657_s30 + $0x90] sm:$0xff]  ;;  %v358_v15 = vld [vmem:[%s7657_s30 + $0xa8] sm:$0xff]  ;;  %v341_v16 = vld [vmem:[%s7657_s30 + $0x20] sm:$0xff] }
  0x14   : > { %560 = vmatprep.subr.bf16.mxu0 %v402_v4  ;;  %v403_v12 = vpack.c.bf16 %v355_v10, %v339_v9  ;;  %753 = vmatprep.subr.bf16.mxu1 %v404_v7  ;;  %v406_v17 = vpack.c.bf16 %v358_v15, %v342_v14  ;;  %v357_v18 = vld [vmem:[%s7657_s30 + $0xa0] sm:$0xff]  ;;  %v344_v19 = vld [vmem:[%s7657_s30 + $0x38] sm:$0xff]  ;;  %v343_v22 = vld [vmem:[%s7657_s30 + $0x30] sm:$0xff] }
  0x15   : > { %561 = vmatpush1.bf16.msra.mxu0 %v401_v11  ;;  %v360_v20 = vld [vmem:[%s7657_s30 + $0xb8] sm:$0xff]  ;;  %v405_v21 = vpack.c.bf16 %v357_v18, %v341_v16  ;;  %v359_v23 = vld [vmem:[%s7657_s30 + $0xb0] sm:$0xff]  ;;  %v7690_v26 = vld [vmem:[%s7665_s10 + $0x8] sm:$0xff]  }
  0x16   : > { %754 = vmatpush1.bf16.msra.mxu1 %v403_v12  ;;  %v408_v24 = vpack.c.bf16 %v360_v20, %v344_v19  ;;  %946 = vmatprep.subr.bf16.mxu0 %v406_v17  ;;  %v407_v25 = vpack.c.bf16 %v359_v23, %v343_v22  ;;  %v7699_v27 = vld [vmem:[%s7665_s10 + $0x10] sm:$0xff]   ;;  %v346_v28 = vld [vmem:[%s7657_s30 + $0x48] sm:$0xff]  ;;  %v348_v31 = vld [vmem:[%s7657_s30 + $0x58] sm:$0xff] }
  0x17   : > { %v362_v29 = vld [vmem:[%s7657_s30 + $0xc8] sm:$0xff]  ;;  %v364_v32 = vld [vmem:[%s7657_s30 + $0xd8] sm:$0xff]  ;;  %v7721_v35 = vld [vmem:[%s7665_s10 + $0x20] sm:$0xff]  }
  0x18   : > { %7129 = vmatmul.mubr.msk.bf16.vlgmr.msra.gmra.mxu0 %vm497_vm0, %v7673_v13  ;;  %1139 = vmatprep.subr.bf16.mxu1 %v408_v24  ;;  %v410_v30 = vpack.c.bf16 %v362_v29, %v346_v28  ;;  %v7712_v33 = vld [vmem:[%s7665_s10 + $0x18] sm:$0xff]   ;;  %v412_v34 = vpack.c.bf16 %v364_v32, %v348_v31  ;;  %v7730_v36 = vld [vmem:[%s7665_s10 + $0x28] sm:$0xff]   ;;  %v7739_v37 = vld [vmem:[%s7665_s10 + $0x30] sm:$0xff]  }
  0x19   : > { %7145 = vmatmul.mubr.msk.bf16.vlgmr.msra.gmra.mxu1 %vm497_vm0, %v7673_v13  ;;  %588 = vmatprep.mubr.bf16.mxu0 %v12262_v0  ;;  %v7748_v38 = vld [vmem:[%s7665_s10 + $0x38] sm:$0xff]   ;;  %v7757_v39 = vld [vmem:[%s7665_s10 + $0x40] sm:$0xff]   ;;  %v7766_v40 = vld [vmem:[%s7665_s10 + $0x48] sm:$0xff]  }
  0x1a   : > { %947 = vmatpush1.bf16.msra.mxu0 %v405_v21  ;;  %781 = vmatprep.mubr.bf16.mxu1 %v12262_v0  ;;  %v7775_v41 = vld [vmem:[%s7665_s10 + $0x50] sm:$0xff]   ;;  %v7784_v42 = vld [vmem:[%s7665_s10 + $0x58] sm:$0xff]   ;;  %v7793_v43 = vld [vmem:[%s7665_s10 + $0x60] sm:$0xff]  }
  0x1b   : > { %1140 = vmatpush1.bf16.msra.mxu1 %v407_v25  ;;  %1332 = vmatprep.subr.bf16.mxu0 %v410_v30  ;;  %v7802_v44 = vld [vmem:[%s7665_s10 + $0x68] sm:$0xff]   ;;  %v7811_v45 = vld [vmem:[%s7665_s10 + $0x70] sm:$0xff]   ;;  %v7820_v46 = vld [vmem:[%s7665_s10 + $0x78] sm:$0xff]  }
  0x1c   : > { %1525 = vmatprep.subr.bf16.mxu1 %v412_v34  ;;  %v345_v47 = vld [vmem:[%s7657_s30 + $0x40] sm:$0xff]  ;;  %v347_v49 = vld [vmem:[%s7657_s30 + $0x50] sm:$0xff]  ;;  %v350_v53 = vld [vmem:[%s7657_s30 + $0x68] sm:$0xff] }
  0x1d   : > { %v361_v48 = vld [vmem:[%s7657_s30 + $0xc0] sm:$0xff]  ;;  %v363_v50 = vld [vmem:[%s7657_s30 + $0xd0] sm:$0xff]  ;;  %v366_v54 = vld [vmem:[%s7657_s30 + $0xe8] sm:$0xff] }
  0x1e   : > { %v409_v51 = vpack.c.bf16 %v361_v48, %v345_v47  ;;  %v411_v52 = vpack.c.bf16 %v363_v50, %v347_v49  ;;  %v352_v55 = vld [vmem:[%s7657_s30 + $0x78] sm:$0xff]  ;;  %v414_v56 = vpack.c.bf16 %v366_v54, %v350_v53 }
  0x1f   : > { %v368_v57 = vld [vmem:[%s7657_s30 + $0xf8] sm:$0xff] }
  0x20   : > { %7130 = vmatmul.mubr.msk.bf16.gmra.mxu0 %vm497_vm0, %v7690_v26  ;;  %v416_v58 = vpack.c.bf16 %v368_v57, %v352_v55 }
  0x21   : > { %7146 = vmatmul.mubr.msk.bf16.gmra.mxu1 %vm497_vm0, %v7690_v26  ;;  %598 = vmatprep.mubr.bf16.mxu0 %v12262_v0 }
  0x22   : > { %791 = vmatprep.mubr.bf16.mxu1 %v12262_v0 }
  0x28   : > { %7131 = vmatmul.mubr.msk.bf16.gmra.mxu0 %vm497_vm0, %v7699_v27 }
  0x29   : > { %7147 = vmatmul.mubr.msk.bf16.gmra.mxu1 %vm497_vm0, %v7699_v27  ;;  %608 = vmatprep.mubr.bf16.mxu0 %v12262_v0 }
  0x2a   : > { %801 = vmatprep.mubr.bf16.mxu1 %v12262_v0 }
  0x30   : > { %7132 = vmatmul.mubr.msk.bf16.gmra.mxu0 %vm497_vm0, %v7712_v33 }
  0x31   : > { %7148 = vmatmul.mubr.msk.bf16.gmra.mxu1 %vm497_vm0, %v7712_v33  ;;  %618 = vmatprep.mubr.bf16.mxu0 %v12262_v0 }
  0x32   : > { %811 = vmatprep.mubr.bf16.mxu1 %v12262_v0 }
  0x38   : > { %7133 = vmatmul.mubr.msk.bf16.gmra.mxu0 %vm497_vm0, %v7721_v35 }
  0x39   : > { %7149 = vmatmul.mubr.msk.bf16.gmra.mxu1 %vm497_vm0, %v7721_v35  ;;  %628 = vmatprep.mubr.bf16.mxu0 %v12262_v0 }
  0x3a   : > { %821 = vmatprep.mubr.bf16.mxu1 %v12262_v0 }
  0x40   : > { %7134 = vmatmul.mubr.msk.bf16.gmra.mxu0 %vm497_vm0, %v7730_v36 }
  0x41   : > { %7150 = vmatmul.mubr.msk.bf16.gmra.mxu1 %vm497_vm0, %v7730_v36  ;;  %638 = vmatprep.mubr.bf16.mxu0 %v12262_v0 }
  0x42   : > { %831 = vmatprep.mubr.bf16.mxu1 %v12262_v0 }
  0x48   : > { %7135 = vmatmul.mubr.msk.bf16.gmra.mxu0 %vm497_vm0, %v7739_v37 }
  0x49   : > { %7151 = vmatmul.mubr.msk.bf16.gmra.mxu1 %vm497_vm0, %v7739_v37  ;;  %648 = vmatprep.mubr.bf16.mxu0 %v12262_v0 }
  0x4a   : > { %841 = vmatprep.mubr.bf16.mxu1 %v12262_v0 }
  0x50   : > { %7136 = vmatmul.mubr.msk.bf16.gmra.mxu0 %vm497_vm0, %v7748_v38 }
  0x51   : > { %7152 = vmatmul.mubr.msk.bf16.gmra.mxu1 %vm497_vm0, %v7748_v38  ;;  %658 = vmatprep.mubr.bf16.mxu0 %v12262_v0 }
  0x52   : > { %851 = vmatprep.mubr.bf16.mxu1 %v12262_v0 }
  0x58   : > { %7137 = vmatmul.mubr.msk.bf16.gmra.mxu0 %vm497_vm0, %v7757_v39 }
  0x59   : > { %7153 = vmatmul.mubr.msk.bf16.gmra.mxu1 %vm497_vm0, %v7757_v39  ;;  %668 = vmatprep.mubr.bf16.mxu0 %v12262_v0 }
  0x5a   : > { %861 = vmatprep.mubr.bf16.mxu1 %v12262_v0 }
  0x60   : > { %7138 = vmatmul.mubr.msk.bf16.gmra.mxu0 %vm497_vm0, %v7766_v40 }
  0x61   : > { %7154 = vmatmul.mubr.msk.bf16.gmra.mxu1 %vm497_vm0, %v7766_v40  ;;  %678 = vmatprep.mubr.bf16.mxu0 %v12262_v0 }
  0x62   : > { %871 = vmatprep.mubr.bf16.mxu1 %v12262_v0 }
  0x68   : > { %7139 = vmatmul.mubr.msk.bf16.gmra.mxu0 %vm497_vm0, %v7775_v41 }
  0x69   : > { %7155 = vmatmul.mubr.msk.bf16.gmra.mxu1 %vm497_vm0, %v7775_v41  ;;  %688 = vmatprep.mubr.bf16.mxu0 %v12262_v0 }
  0x6a   : > { %881 = vmatprep.mubr.bf16.mxu1 %v12262_v0 }
  0x70   : > { %7140 = vmatmul.mubr.msk.bf16.gmra.mxu0 %vm497_vm0, %v7784_v42 }
  0x71   : > { %7156 = vmatmul.mubr.msk.bf16.gmra.mxu1 %vm497_vm0, %v7784_v42  ;;  %698 = vmatprep.mubr.bf16.mxu0 %v12262_v0 }
  0x72   : > { %891 = vmatprep.mubr.bf16.mxu1 %v12262_v0 }
  0x78   : > { %7141 = vmatmul.mubr.msk.bf16.gmra.mxu0 %vm497_vm0, %v7793_v43 }
  0x79   : > { %7157 = vmatmul.mubr.msk.bf16.gmra.mxu1 %vm497_vm0, %v7793_v43  ;;  %708 = vmatprep.mubr.bf16.mxu0 %v12262_v0 }
  0x7a   : > { %901 = vmatprep.mubr.bf16.mxu1 %v12262_v0 }
  0x80   : > { %7142 = vmatmul.mubr.msk.bf16.gmra.mxu0 %vm497_vm0, %v7802_v44 }
  0x81   : > { %7158 = vmatmul.mubr.msk.bf16.gmra.mxu1 %vm497_vm0, %v7802_v44  ;;  %718 = vmatprep.mubr.bf16.mxu0 %v12262_v0 }
  0x82   : > { %911 = vmatprep.mubr.bf16.mxu1 %v12262_v0 }
  0x88   : > { %7143 = vmatmul.mubr.msk.bf16.gmra.mxu0 %vm497_vm0, %v7811_v45 }
  0x89   : > { %7159 = vmatmul.mubr.msk.bf16.gmra.mxu1 %vm497_vm0, %v7811_v45  ;;  %728 = vmatprep.mubr.bf16.mxu0 %v12262_v0 }
  0x8a   : > { %921 = vmatprep.mubr.bf16.mxu1 %v12262_v0 }
  0x90   : > { %7144 = vmatmul.mubr.msk.bf16.gmra.mxu0 %vm497_vm0, %v7820_v46 }
  0x91   : > { %7160 = vmatmul.mubr.msk.bf16.gmra.mxu1 %vm497_vm0, %v7820_v46  ;;  %964 = vmatprep.mubr.bf16.mxu0 %v12262_v0 }
  0x92   : > { %1157 = vmatprep.mubr.bf16.mxu1 %v12262_v0 }
  0x98   : > { %7161 = vmatmul.mubr.msk.bf16.vlgmr.msra.gmra.mxu0 %vm497_vm0, %v7673_v13 }
  0x99   : > { %7177 = vmatmul.mubr.msk.bf16.vlgmr.msra.gmra.mxu1 %vm497_vm0, %v7673_v13  ;;  %1333 = vmatpush1.bf16.msra.mxu0 %v409_v51 }
  0x9a   : > { %1526 = vmatpush1.bf16.msra.mxu1 %v411_v52  ;;  %974 = vmatprep.mubr.bf16.mxu0 %v12262_v0 }
  0x9b   : > { %1167 = vmatprep.mubr.bf16.mxu1 %v12262_v0  ;;  %1718 = vmatprep.subr.bf16.mxu0 %v414_v56 }
  0x9c   : > { %1911 = vmatprep.subr.bf16.mxu1 %v416_v58 }
  0xa0   : > { %7162 = vmatmul.mubr.msk.bf16.gmra.mxu0 %vm497_vm0, %v7690_v26 }
  0xa1   : > { %7178 = vmatmul.mubr.msk.bf16.gmra.mxu1 %vm497_vm0, %v7690_v26  ;;  %984 = vmatprep.mubr.bf16.mxu0 %v12262_v0 }
  0xa2   : > { %1177 = vmatprep.mubr.bf16.mxu1 %v12262_v0 }
  0xa8   : > { %7163 = vmatmul.mubr.msk.bf16.gmra.mxu0 %vm497_vm0, %v7699_v27 }
  0xa9   : > { %7179 = vmatmul.mubr.msk.bf16.gmra.mxu1 %vm497_vm0, %v7699_v27  ;;  %994 = vmatprep.mubr.bf16.mxu0 %v12262_v0 }
  0xaa   : > { %1187 = vmatprep.mubr.bf16.mxu1 %v12262_v0 }
  0xb0   : > { %7164 = vmatmul.mubr.msk.bf16.gmra.mxu0 %vm497_vm0, %v7712_v33 }
  0xb1   : > { %7180 = vmatmul.mubr.msk.bf16.gmra.mxu1 %vm497_vm0, %v7712_v33  ;;  %1004 = vmatprep.mubr.bf16.mxu0 %v12262_v0 }
  0xb2   : > { %1197 = vmatprep.mubr.bf16.mxu1 %v12262_v0 }
  0xb8   : > { %7165 = vmatmul.mubr.msk.bf16.gmra.mxu0 %vm497_vm0, %v7721_v35 }
  0xb9   : > { %7181 = vmatmul.mubr.msk.bf16.gmra.mxu1 %vm497_vm0, %v7721_v35  ;;  %1014 = vmatprep.mubr.bf16.mxu0 %v12262_v0 }
  0xba   : > { %1207 = vmatprep.mubr.bf16.mxu1 %v12262_v0 }
  0xc0   : > { %7166 = vmatmul.mubr.msk.bf16.gmra.mxu0 %vm497_vm0, %v7730_v36 }
  0xc1   : > { %7182 = vmatmul.mubr.msk.bf16.gmra.mxu1 %vm497_vm0, %v7730_v36  ;;  %1024 = vmatprep.mubr.bf16.mxu0 %v12262_v0 }
  0xc2   : > { %1217 = vmatprep.mubr.bf16.mxu1 %v12262_v0 }
  0xc8   : > { %7167 = vmatmul.mubr.msk.bf16.gmra.mxu0 %vm497_vm0, %v7739_v37 }
  0xc9   : > { %7183 = vmatmul.mubr.msk.bf16.gmra.mxu1 %vm497_vm0, %v7739_v37  ;;  %1034 = vmatprep.mubr.bf16.mxu0 %v12262_v0 }
  0xca   : > { %1227 = vmatprep.mubr.bf16.mxu1 %v12262_v0 }
  0xd0   : > { %7168 = vmatmul.mubr.msk.bf16.gmra.mxu0 %vm497_vm0, %v7748_v38 }
  0xd1   : > { %7184 = vmatmul.mubr.msk.bf16.gmra.mxu1 %vm497_vm0, %v7748_v38  ;;  %1044 = vmatprep.mubr.bf16.mxu0 %v12262_v0 }
  0xd2   : > { %1237 = vmatprep.mubr.bf16.mxu1 %v12262_v0 }
  0xd8   : > { %v580_v59 = vpop.f32.mrf.mxu0  ;;  %7169 = vmatmul.mubr.msk.bf16.gmra.mxu0 %vm497_vm0, %v7757_v39 }
  0xd9   : > { %v773_v60 = vpop.f32.mrf.mxu1  ;;  %7185 = vmatmul.mubr.msk.bf16.gmra.mxu1 %vm497_vm0, %v7757_v39  ;;  %1054 = vmatprep.mubr.bf16.mxu0 %v12262_v0  ;;  %v2090_v2 = vmax.f32 %v580_v59, 0.0 }
  0xda   : > { %1247 = vmatprep.mubr.bf16.mxu1 %v12262_v0  ;;  %v582_v61 = vpop.f32.mrf.mxu0  ;;  %v2092_v3 = vmax.f32 %v773_v60, 0.0 }
  0xdb   : > { %v775_v62 = vpop.f32.mrf.mxu1  ;;  %v2091_v6 = vmax.f32 %v582_v61, 0.0 }
  0xdc   : > { %v584_v63 = vpop.f32.mrf.mxu0  ;;  %v2093_v7 = vmax.f32 %v775_v62, 0.0 }
  0xdd   : > { %v777_v1 = vpop.f32.mrf.mxu1  ;;  %v2106_v4 = vmax.f32 %v584_v63, 0.0 }
  0xde   : > { %v2108_v5 = vmax.f32 %v777_v1, 0.0  ;;  %v586_v8 = vpop.f32.mrf.mxu0 }
  0xdf   : > { %v779_v9 = vpop.f32.mrf.mxu1  ;;  %v7890_v10 = vpack.c.bf16 %v2106_v4, %v2090_v2  ;;  %v2107_v12 = vmax.f32 %v586_v8, 0.0 }
  0xe0   : > { %v7892_v11 = vpack.c.bf16 %v2108_v5, %v2092_v3  ;;  %v2109_v14 = vmax.f32 %v779_v9, 0.0  ;;  %v590_v15 = vpop.f32.mrf.mxu0  ;;  %7170 = vmatmul.mubr.msk.bf16.gmra.mxu0 %vm497_vm0, %v7766_v40 }
  0xe1   : > { %v783_v16 = vpop.f32.mrf.mxu1  ;;  %7186 = vmatmul.mubr.msk.bf16.gmra.mxu1 %vm497_vm0, %v7766_v40  ;;  %v7898_v17 = vpack.c.bf16 %v2107_v12, %v2091_v6  ;;  %1064 = vmatprep.mubr.bf16.mxu0 %v12262_v0  ;;  %v2122_v23 = vmax.f32 %v590_v15, 0.0 }
  0xe2   : > { %v7900_v18 = vpack.c.bf16 %v2109_v14, %v2093_v7  ;;  %1257 = vmatprep.mubr.bf16.mxu1 %v12262_v0  ;;  %v592_v19 = vpop.f32.mrf.mxu0  ;;  %v2124_v24 = vmax.f32 %v783_v16, 0.0 }
  0xe3   : > { %v785_v20 = vpop.f32.mrf.mxu1  ;;  %v2123_v29 = vmax.f32 %v592_v19, 0.0 }
  0xe4   : > { %v594_v21 = vpop.f32.mrf.mxu0  ;;  %v2125_v30 = vmax.f32 %v785_v20, 0.0 }
  0xe5   : > { %v787_v22 = vpop.f32.mrf.mxu1  ;;  %v2138_v25 = vmax.f32 %v594_v21, 0.0 }
  0xe6   : > { %v2140_v28 = vmax.f32 %v787_v22, 0.0  ;;  %v596_v31 = vpop.f32.mrf.mxu0 }
  0xe7   : > { %v789_v32 = vpop.f32.mrf.mxu1  ;;  %v7904_v34 = vpack.c.bf16 %v2138_v25, %v2122_v23  ;;  %v2139_v48 = vmax.f32 %v596_v31, 0.0 }
  0xe8   : > { %v7906_v47 = vpack.c.bf16 %v2140_v28, %v2124_v24  ;;  %v2141_v49 = vmax.f32 %v789_v32, 0.0  ;;  %v600_v50 = vpop.f32.mrf.mxu0  ;;  %7171 = vmatmul.mubr.msk.bf16.gmra.mxu0 %vm497_vm0, %v7775_v41 }
  0xe9   : > { %v793_v51 = vpop.f32.mrf.mxu1  ;;  %7187 = vmatmul.mubr.msk.bf16.gmra.mxu1 %vm497_vm0, %v7775_v41  ;;  %v7912_v52 = vpack.c.bf16 %v2139_v48, %v2123_v29  ;;  %1074 = vmatprep.mubr.bf16.mxu0 %v12262_v0  ;;  %v2154_v58 = vmax.f32 %v600_v50, 0.0 }
  0xea   : > { %v7914_v53 = vpack.c.bf16 %v2141_v49, %v2125_v30  ;;  %1267 = vmatprep.mubr.bf16.mxu1 %v12262_v0  ;;  %v602_v54 = vpop.f32.mrf.mxu0  ;;  %v2156_v59 = vmax.f32 %v793_v51, 0.0 }
  0xeb   : > { %v795_v55 = vpop.f32.mrf.mxu1  ;;  %v2155_v62 = vmax.f32 %v602_v54, 0.0 }
  0xec   : > { %v604_v56 = vpop.f32.mrf.mxu0  ;;  %v2157_v63 = vmax.f32 %v795_v55, 0.0 }
  0xed   : > { %v797_v57 = vpop.f32.mrf.mxu1  ;;  %v2170_v60 = vmax.f32 %v604_v56, 0.0 }
  0xee   : > { %v2172_v61 = vmax.f32 %v797_v57, 0.0  ;;  %v606_v1 = vpop.f32.mrf.mxu0 }
  0xef   : > { %v799_v41 = vpop.f32.mrf.mxu1  ;;  %v7918_v2 = vpack.c.bf16 %v2170_v60, %v2154_v58  ;;  %v2171_v4 = vmax.f32 %v606_v1, 0.0 }
  0xf0   : > { %v7920_v3 = vpack.c.bf16 %v2172_v61, %v2156_v59  ;;  %v2173_v5 = vmax.f32 %v799_v41, 0.0  ;;  %v610_v6 = vpop.f32.mrf.mxu0  ;;  %7172 = vmatmul.mubr.msk.bf16.gmra.mxu0 %vm497_vm0, %v7784_v42 }
  0xf1   : > { %v803_v7 = vpop.f32.mrf.mxu1  ;;  %7188 = vmatmul.mubr.msk.bf16.gmra.mxu1 %vm497_vm0, %v7784_v42  ;;  %v7926_v8 = vpack.c.bf16 %v2171_v4, %v2155_v62  ;;  %1084 = vmatprep.mubr.bf16.mxu0 %v12262_v0  ;;  %v2186_v19 = vmax.f32 %v610_v6, 0.0 }
  0xf2   : > { %v7928_v9 = vpack.c.bf16 %v2173_v5, %v2157_v63  ;;  %1277 = vmatprep.mubr.bf16.mxu1 %v12262_v0  ;;  %v612_v12 = vpop.f32.mrf.mxu0  ;;  %v2188_v20 = vmax.f32 %v803_v7, 0.0 }
  0xf3   : > { %v805_v14 = vpop.f32.mrf.mxu1  ;;  %v2187_v23 = vmax.f32 %v612_v12, 0.0 }
  0xf4   : > { %v614_v15 = vpop.f32.mrf.mxu0  ;;  %v2189_v24 = vmax.f32 %v805_v14, 0.0 }
  0xf5   : > { %v807_v16 = vpop.f32.mrf.mxu1  ;;  %v2202_v21 = vmax.f32 %v614_v15, 0.0 }
  0xf6   : > { %v2204_v22 = vmax.f32 %v807_v16, 0.0  ;;  %v616_v25 = vpop.f32.mrf.mxu0 }
  0xf7   : > { %v809_v42 = vpop.f32.mrf.mxu1  ;;  %v7932_v28 = vpack.c.bf16 %v2202_v21, %v2186_v19  ;;  %v2203_v30 = vmax.f32 %v616_v25, 0.0 }
  0xf8   : > { %v7934_v29 = vpack.c.bf16 %v2204_v22, %v2188_v20  ;;  %v2205_v31 = vmax.f32 %v809_v42, 0.0  ;;  %v620_v32 = vpop.f32.mrf.mxu0  ;;  %7173 = vmatmul.mubr.msk.bf16.gmra.mxu0 %vm497_vm0, %v7793_v43 }
  0xf9   : > { %v813_v48 = vpop.f32.mrf.mxu1  ;;  %7189 = vmatmul.mubr.msk.bf16.gmra.mxu1 %vm497_vm0, %v7793_v43  ;;  %v7940_v49 = vpack.c.bf16 %v2203_v30, %v2187_v23  ;;  %1094 = vmatprep.mubr.bf16.mxu0 %v12262_v0  ;;  %v2218_v57 = vmax.f32 %v620_v32, 0.0 }
  0xfa   : > { %v7942_v50 = vpack.c.bf16 %v2205_v31, %v2189_v24  ;;  %1287 = vmatprep.mubr.bf16.mxu1 %v12262_v0  ;;  %v622_v51 = vpop.f32.mrf.mxu0  ;;  %v2220_v58 = vmax.f32 %v813_v48, 0.0 }
  0xfb   : > { %v815_v54 = vpop.f32.mrf.mxu1  ;;  %v2219_v61 = vmax.f32 %v622_v51, 0.0 }
  0xfc   : > { %v624_v55 = vpop.f32.mrf.mxu0  ;;  %v2221_v62 = vmax.f32 %v815_v54, 0.0 }
  0xfd   : > { %v817_v56 = vpop.f32.mrf.mxu1  ;;  %v2234_v59 = vmax.f32 %v624_v55, 0.0 }
  0xfe   : > { %v2236_v60 = vmax.f32 %v817_v56, 0.0  ;;  %v626_v63 = vpop.f32.mrf.mxu0 }
  0xff   : > { %v819_v43 = vpop.f32.mrf.mxu1  ;;  %v7946_v1 = vpack.c.bf16 %v2234_v59, %v2218_v57  ;;  %v2235_v4 = vmax.f32 %v626_v63, 0.0 }
 0x100   : > { %v7948_v41 = vpack.c.bf16 %v2236_v60, %v2220_v58  ;;  %v2237_v5 = vmax.f32 %v819_v43, 0.0  ;;  %v630_v6 = vpop.f32.mrf.mxu0  ;;  %7174 = vmatmul.mubr.msk.bf16.gmra.mxu0 %vm497_vm0, %v7802_v44 }
 0x101   : > { %v823_v7 = vpop.f32.mrf.mxu1  ;;  %7190 = vmatmul.mubr.msk.bf16.gmra.mxu1 %vm497_vm0, %v7802_v44  ;;  %v7954_v12 = vpack.c.bf16 %v2235_v4, %v2219_v61  ;;  %1104 = vmatprep.mubr.bf16.mxu0 %v12262_v0  ;;  %v2250_v21 = vmax.f32 %v630_v6, 0.0 }
 0x102   : > { %v7956_v14 = vpack.c.bf16 %v2237_v5, %v2221_v62  ;;  %1297 = vmatprep.mubr.bf16.mxu1 %v12262_v0  ;;  %v632_v15 = vpop.f32.mrf.mxu0  ;;  %v2252_v22 = vmax.f32 %v823_v7, 0.0 }
 0x103   : > { %v825_v16 = vpop.f32.mrf.mxu1  ;;  %v2251_v25 = vmax.f32 %v632_v15, 0.0 }
 0x104   : > { %v634_v19 = vpop.f32.mrf.mxu0  ;;  %v2253_v42 = vmax.f32 %v825_v16, 0.0 }
 0x105   : > { %v827_v20 = vpop.f32.mrf.mxu1  ;;  %v2266_v23 = vmax.f32 %v634_v19, 0.0 }
 0x106   : > { %v2268_v24 = vmax.f32 %v827_v20, 0.0  ;;  %v636_v30 = vpop.f32.mrf.mxu0 }
 0x107   : > { %v829_v44 = vpop.f32.mrf.mxu1  ;;  %v7960_v31 = vpack.c.bf16 %v2266_v23, %v2250_v21  ;;  %v2267_v48 = vmax.f32 %v636_v30, 0.0  ;;  %v349_v23 = vld [vmem:[%s7657_s30 + $0x60] sm:$0xff]  ;;  %v351_v30 = vld [vmem:[%s7657_s30 + $0x70] sm:$0xff] }
 0x108   : > { %v7962_v32 = vpack.c.bf16 %v2268_v24, %v2252_v22  ;;  %v2269_v51 = vmax.f32 %v829_v44, 0.0  ;;  %v640_v54 = vpop.f32.mrf.mxu0  ;;  %7175 = vmatmul.mubr.msk.bf16.gmra.mxu0 %vm497_vm0, %v7811_v45  ;;  %v367_v44 = vld [vmem:[%s7657_s30 + $0xf0] sm:$0xff] }
 0x109   : > { %v833_v55 = vpop.f32.mrf.mxu1  ;;  %7191 = vmatmul.mubr.msk.bf16.gmra.mxu1 %vm497_vm0, %v7811_v45  ;;  %v7968_v56 = vpack.c.bf16 %v2267_v48, %v2251_v25  ;;  %1114 = vmatprep.mubr.bf16.mxu0 %v12262_v0  ;;  %v2282_v62 = vmax.f32 %v640_v54, 0.0 }
 0x10a   : > { %v7970_v57 = vpack.c.bf16 %v2269_v51, %v2253_v42  ;;  %1307 = vmatprep.mubr.bf16.mxu1 %v12262_v0  ;;  %v642_v58 = vpop.f32.mrf.mxu0  ;;  %v2284_v63 = vmax.f32 %v833_v55, 0.0  ;;  %v365_v42 = vld [vmem:[%s7657_s30 + $0xe0] sm:$0xff] }
 0x10b   : > { %v835_v59 = vpop.f32.mrf.mxu1  ;;  %v2283_v5 = vmax.f32 %v642_v58, 0.0  ;;  %v413_v58 = vpack.c.bf16 %v365_v42, %v349_v23 }
 0x10c   : > { %v644_v60 = vpop.f32.mrf.mxu0  ;;  %v2285_v6 = vmax.f32 %v835_v59, 0.0  ;;  %v415_v59 = vpack.c.bf16 %v367_v44, %v351_v30  ;;  %v12443_v30 = vmov 0  }
 0x10d   : > { %v837_v61 = vpop.f32.mrf.mxu1  ;;  %v2298_v43 = vmax.f32 %v644_v60, 0.0 }
 0x10e   : > { %v2300_v4 = vmax.f32 %v837_v61, 0.0  ;;  %v646_v45 = vpop.f32.mrf.mxu0 }
 0x10f   : > { %v839_v7 = vpop.f32.mrf.mxu1  ;;  %v7974_v15 = vpack.c.bf16 %v2298_v43, %v2282_v62  ;;  %v2299_v19 = vmax.f32 %v646_v45, 0.0 }
 0x110   : > { %v7976_v16 = vpack.c.bf16 %v2300_v4, %v2284_v63  ;;  %v2301_v20 = vmax.f32 %v839_v7, 0.0  ;;  %v650_v21 = vpop.f32.mrf.mxu0  ;;  %7176 = vmatmul.mubr.msk.bf16.gmra.mxu0 %vm497_vm0, %v7820_v46 }
 0x111   : > { %v843_v22 = vpop.f32.mrf.mxu1  ;;  %7192 = vmatmul.mubr.msk.bf16.gmra.mxu1 %vm497_vm0, %v7820_v46  ;;  %v7983_v24 = vpack.c.bf16 %v2299_v19, %v2283_v5  ;;  %1350 = vmatprep.mubr.bf16.mxu0 %v12262_v0  ;;  %v2314_v60 = vmax.f32 %v650_v21, 0.0 }
 0x112   : > { %v7985_v25 = vpack.c.bf16 %v2301_v20, %v2285_v6  ;;  %1543 = vmatprep.mubr.bf16.mxu1 %v12262_v0  ;;  %v652_v48 = vpop.f32.mrf.mxu0  ;;  %v2316_v46 = vmax.f32 %v843_v22, 0.0 }
 0x113   : > { %v845_v51 = vpop.f32.mrf.mxu1  ;;  %v2315_v63 = vmax.f32 %v652_v48, 0.0 }
 0x114   : > { %v654_v54 = vpop.f32.mrf.mxu0  ;;  %v2317_v43 = vmax.f32 %v845_v51, 0.0 }
 0x115   : > { %v847_v55 = vpop.f32.mrf.mxu1  ;;  %v2330_v61 = vmax.f32 %v654_v54, 0.0 }
 0x116   : > { %v2332_v62 = vmax.f32 %v847_v55, 0.0  ;;  %v656_v4 = vpop.f32.mrf.mxu0 }
 0x117   : > { %v849_v5 = vpop.f32.mrf.mxu1  ;;  %v7992_v6 = vpack.c.bf16 %v2330_v61, %v2314_v60  ;;  %v2331_v7 = vmax.f32 %v656_v4, 0.0 }
 0x118   : > { %v7994_v45 = vpack.c.bf16 %v2332_v62, %v2316_v46  ;;  %v2333_v19 = vmax.f32 %v849_v5, 0.0  ;;  %v660_v20 = vpop.f32.mrf.mxu0  ;;  %7193 = vmatmul.mubr.msk.bf16.vlgmr.msra.gmra.mxu0 %vm497_vm0, %v7673_v13 }
 0x119   : > { %v853_v0 = vpop.f32.mrf.mxu1  ;;  %7209 = vmatmul.mubr.msk.bf16.vlgmr.msra.gmra.mxu1 %vm497_vm0, %v7673_v13  ;;  %v2749_v21 = vpack.c.bf16 %v2331_v7, %v2315_v63  ;;  %1719 = vmatpush1.bf16.msra.mxu0 %v413_v58  ;;  %v2346_v51 = vmax.f32 %v660_v20, 0.0 }
 0x11a   : > { %v2751_v22 = vpack.c.bf16 %v2333_v19, %v2317_v43  ;;  %1912 = vmatpush1.bf16.msra.mxu1 %v415_v59  ;;  %v662_v23 = vpop.f32.mrf.mxu0  ;;  %1360 = vmatprep.mubr.bf16.mxu0 %v12443_v30  ;;  %v2348_v54 = vmax.f32 %v853_v0, 0.0 }
 0x11b   : > { %v855_v42 = vpop.f32.mrf.mxu1  ;;  %1553 = vmatprep.mubr.bf16.mxu1 %v12443_v30  ;;  %3266 = vmatprep.subr.bf16.mxu0 %v2749_v21  ;;  %v2347_v46 = vmax.f32 %v662_v23, 0.0 }
 0x11c   : > { %3469 = vmatprep.subr.bf16.mxu1 %v2751_v22  ;;  %v664_v44 = vpop.f32.mrf.mxu0  ;;  %v2349_v13 = vmax.f32 %v855_v42, 0.0 }
 0x11d   : > { %v857_v48 = vpop.f32.mrf.mxu1  ;;  %v2362_v55 = vmax.f32 %v664_v44, 0.0 }
 0x11e   : > { %v2364_v60 = vmax.f32 %v857_v48, 0.0  ;;  %v666_v61 = vpop.f32.mrf.mxu0 }
 0x11f   : > { %v859_v62 = vpop.f32.mrf.mxu1  ;;  %v8002_v58 = vpack.c.bf16 %v2362_v55, %v2346_v51  ;;  %v2363_v63 = vmax.f32 %v666_v61, 0.0 }
 0x120   : > { %v8004_v59 = vpack.c.bf16 %v2364_v60, %v2348_v54  ;;  %v2365_v43 = vmax.f32 %v859_v62, 0.0  ;;  %v670_v4 = vpop.f32.mrf.mxu0  ;;  %7194 = vmatmul.mubr.msk.bf16.gmra.mxu0 %vm497_vm0, %v7690_v26 }
 0x121   : > { %12444 = vst [vmem:[#allocation2_spill] sm:$0xff] %v8002_v58  ;;  %v863_v5 = vpop.f32.mrf.mxu1  ;;  %7210 = vmatmul.mubr.msk.bf16.gmra.mxu1 %vm497_vm0, %v7690_v26  ;;  %v8010_v0 = vpack.c.bf16 %v2363_v63, %v2347_v46  ;;  %1370 = vmatprep.mubr.bf16.mxu0 %v12443_v30  ;;  %v2378_v23 = vmax.f32 %v670_v4, 0.0 }
 0x122   : > { %12445 = vst [vmem:[#allocation3_spill] sm:$0xff] %v8004_v59  ;;  %v8012_v7 = vpack.c.bf16 %v2365_v43, %v2349_v13  ;;  %1563 = vmatprep.mubr.bf16.mxu1 %v12443_v30  ;;  %v672_v19 = vpop.f32.mrf.mxu0  ;;  %v2380_v42 = vmax.f32 %v863_v5, 0.0 }
 0x123   : > { %12446 = vst [vmem:[#allocation4_spill] sm:$0xff] %v8010_v0  ;;  %v865_v20 = vpop.f32.mrf.mxu1  ;;  %v2379_v51 = vmax.f32 %v672_v19, 0.0 }
 0x124   : > { %12447 = vst [vmem:[#allocation5_spill] sm:$0xff] %v8012_v7  ;;  %v674_v21 = vpop.f32.mrf.mxu0  ;;  %v2381_v54 = vmax.f32 %v865_v20, 0.0 }
 0x125   : > { %v867_v22 = vpop.f32.mrf.mxu1  ;;  %v2394_v44 = vmax.f32 %v674_v21, 0.0 }
 0x126   : > { %v2396_v48 = vmax.f32 %v867_v22, 0.0  ;;  %v676_v55 = vpop.f32.mrf.mxu0 }
 0x127   : > { %v869_v26 = vpop.f32.mrf.mxu1  ;;  %v8016_v60 = vpack.c.bf16 %v2394_v44, %v2378_v23  ;;  %v2395_v13 = vmax.f32 %v676_v55, 0.0 }
 0x128   : > { %v8018_v46 = vpack.c.bf16 %v2396_v48, %v2380_v42  ;;  %v2397_v61 = vmax.f32 %v869_v26, 0.0  ;;  %v680_v62 = vpop.f32.mrf.mxu0  ;;  %7195 = vmatmul.mubr.msk.bf16.gmra.mxu0 %vm497_vm0, %v7699_v27 }
 0x129   : > { %12448 = vst [vmem:[#allocation6_spill] sm:$0xff] %v8016_v60  ;;  %v873_v63 = vpop.f32.mrf.mxu1  ;;  %7211 = vmatmul.mubr.msk.bf16.gmra.mxu1 %vm497_vm0, %v7699_v27  ;;  %v8024_v43 = vpack.c.bf16 %v2395_v13, %v2379_v51  ;;  %1380 = vmatprep.mubr.bf16.mxu0 %v12443_v30  ;;  %v2410_v22 = vmax.f32 %v680_v62, 0.0 }
 0x12a   : > { %12449 = vst [vmem:[#allocation7_spill] sm:$0xff] %v8018_v46  ;;  %v8026_v4 = vpack.c.bf16 %v2397_v61, %v2381_v54  ;;  %1573 = vmatprep.mubr.bf16.mxu1 %v12443_v30  ;;  %v682_v5 = vpop.f32.mrf.mxu0  ;;  %v2412_v23 = vmax.f32 %v873_v63, 0.0 }
 0x12b   : > { %12450 = vst [vmem:[#allocation8_spill] sm:$0xff] %v8024_v43  ;;  %v875_v19 = vpop.f32.mrf.mxu1  ;;  %v2411_v48 = vmax.f32 %v682_v5, 0.0 }
 0x12c   : > { %12451 = vst [vmem:[#allocation9_spill] sm:$0xff] %v8026_v4  ;;  %v684_v20 = vpop.f32.mrf.mxu0  ;;  %v2413_v55 = vmax.f32 %v875_v19, 0.0 }
 0x12d   : > { %v877_v21 = vpop.f32.mrf.mxu1  ;;  %v2426_v42 = vmax.f32 %v684_v20, 0.0 }
 0x12e   : > { %v2428_v44 = vmax.f32 %v877_v21, 0.0  ;;  %v686_v26 = vpop.f32.mrf.mxu0 }
 0x12f   : > { %v879_v27 = vpop.f32.mrf.mxu1  ;;  %v8030_v51 = vpack.c.bf16 %v2426_v42, %v2410_v22  ;;  %v2427_v13 = vmax.f32 %v686_v26, 0.0 }
 0x130   : > { %v8032_v54 = vpack.c.bf16 %v2428_v44, %v2412_v23  ;;  %v2429_v61 = vmax.f32 %v879_v27, 0.0  ;;  %v690_v59 = vpop.f32.mrf.mxu0  ;;  %7196 = vmatmul.mubr.msk.bf16.gmra.mxu0 %vm497_vm0, %v7712_v33 }
 0x131   : > { %12452 = vst [vmem:[#allocation10_spill] sm:$0xff] %v8030_v51  ;;  %v883_v58 = vpop.f32.mrf.mxu1  ;;  %7212 = vmatmul.mubr.msk.bf16.gmra.mxu1 %vm497_vm0, %v7712_v33  ;;  %v8038_v62 = vpack.c.bf16 %v2427_v13, %v2411_v48  ;;  %1390 = vmatprep.mubr.bf16.mxu0 %v12443_v30  ;;  %v2442_v22 = vmax.f32 %v690_v59, 0.0 }
 0x132   : > { %12453 = vst [vmem:[#allocation11_spill] sm:$0xff] %v8032_v54  ;;  %v8040_v63 = vpack.c.bf16 %v2429_v61, %v2413_v55  ;;  %1583 = vmatprep.mubr.bf16.mxu1 %v12443_v30  ;;  %v692_v5 = vpop.f32.mrf.mxu0  ;;  %v2444_v23 = vmax.f32 %v883_v58, 0.0 }
 0x133   : > { %12454 = vst [vmem:[#allocation12_spill] sm:$0xff] %v8038_v62  ;;  %v885_v19 = vpop.f32.mrf.mxu1  ;;  %v2443_v26 = vmax.f32 %v692_v5, 0.0 }
 0x134   : > { %12455 = vst [vmem:[#allocation13_spill] sm:$0xff] %v8040_v63  ;;  %v694_v20 = vpop.f32.mrf.mxu0  ;;  %v2445_v27 = vmax.f32 %v885_v19, 0.0 }
 0x135   : > { %v887_v21 = vpop.f32.mrf.mxu1  ;;  %v2458_v42 = vmax.f32 %v694_v20, 0.0 }
 0x136   : > { %v2460_v44 = vmax.f32 %v887_v21, 0.0  ;;  %v696_v7 = vpop.f32.mrf.mxu0 }
 0x137   : > { %v889_v33 = vpop.f32.mrf.mxu1  ;;  %v8044_v48 = vpack.c.bf16 %v2458_v42, %v2442_v22  ;;  %v2459_v13 = vmax.f32 %v696_v7, 0.0 }
 0x138   : > { %v8046_v55 = vpack.c.bf16 %v2460_v44, %v2444_v23  ;;  %v2461_v61 = vmax.f32 %v889_v33, 0.0  ;;  %v700_v0 = vpop.f32.mrf.mxu0  ;;  %7197 = vmatmul.mubr.msk.bf16.gmra.mxu0 %vm497_vm0, %v7721_v35 }
 0x139   : > { %12456 = vst [vmem:[#allocation14_spill] sm:$0xff] %v8044_v48  ;;  %v893_v46 = vpop.f32.mrf.mxu1  ;;  %7213 = vmatmul.mubr.msk.bf16.gmra.mxu1 %vm497_vm0, %v7721_v35  ;;  %v8052_v58 = vpack.c.bf16 %v2459_v13, %v2443_v26  ;;  %1400 = vmatprep.mubr.bf16.mxu0 %v12443_v30  ;;  %v2474_v21 = vmax.f32 %v700_v0, 0.0 }
 0x13a   : > { %12457 = vst [vmem:[#allocation15_spill] sm:$0xff] %v8046_v55  ;;  %v8054_v59 = vpack.c.bf16 %v2461_v61, %v2445_v27  ;;  %1593 = vmatprep.mubr.bf16.mxu1 %v12443_v30  ;;  %v702_v5 = vpop.f32.mrf.mxu0  ;;  %v2476_v22 = vmax.f32 %v893_v46, 0.0 }
 0x13b   : > { %12458 = vst [vmem:[#allocation16_spill] sm:$0xff] %v8052_v58  ;;  %v895_v19 = vpop.f32.mrf.mxu1  ;;  %v2475_v44 = vmax.f32 %v702_v5, 0.0 }
 0x13c   : > { %12459 = vst [vmem:[#allocation17_spill] sm:$0xff] %v8054_v59  ;;  %v704_v7 = vpop.f32.mrf.mxu0  ;;  %v2477_v33 = vmax.f32 %v895_v19, 0.0 }
 0x13d   : > { %v897_v20 = vpop.f32.mrf.mxu1  ;;  %v2490_v23 = vmax.f32 %v704_v7, 0.0 }
 0x13e   : > { %v2492_v42 = vmax.f32 %v897_v20, 0.0  ;;  %v706_v60 = vpop.f32.mrf.mxu0 }
 0x13f   : > { %v899_v35 = vpop.f32.mrf.mxu1  ;;  %v8058_v26 = vpack.c.bf16 %v2490_v23, %v2474_v21  ;;  %v2491_v13 = vmax.f32 %v706_v60, 0.0 }
 0x140   : > { %v8060_v27 = vpack.c.bf16 %v2492_v42, %v2476_v22  ;;  %v2493_v61 = vmax.f32 %v899_v35, 0.0  ;;  %v710_v4 = vpop.f32.mrf.mxu0  ;;  %7198 = vmatmul.mubr.msk.bf16.gmra.mxu0 %vm497_vm0, %v7730_v36 }
 0x141   : > { %12460 = vst [vmem:[#allocation18_spill] sm:$0xff] %v8058_v26  ;;  %v903_v43 = vpop.f32.mrf.mxu1  ;;  %7214 = vmatmul.mubr.msk.bf16.gmra.mxu1 %vm497_vm0, %v7730_v36  ;;  %v8066_v0 = vpack.c.bf16 %v2491_v13, %v2475_v44  ;;  %1410 = vmatprep.mubr.bf16.mxu0 %v12443_v30  ;;  %v2506_v20 = vmax.f32 %v710_v4, 0.0 }
 0x142   : > { %12461 = vst [vmem:[#allocation19_spill] sm:$0xff] %v8060_v27  ;;  %v8068_v46 = vpack.c.bf16 %v2493_v61, %v2477_v33  ;;  %1603 = vmatprep.mubr.bf16.mxu1 %v12443_v30  ;;  %v712_v5 = vpop.f32.mrf.mxu0  ;;  %v2508_v21 = vmax.f32 %v903_v43, 0.0 }
 0x143   : > { %12462 = vst [vmem:[#allocation20_spill] sm:$0xff] %v8066_v0  ;;  %v905_v19 = vpop.f32.mrf.mxu1  ;;  %v2507_v42 = vmax.f32 %v712_v5, 0.0 }
 0x144   : > { %12463 = vst [vmem:[#allocation21_spill] sm:$0xff] %v8068_v46  ;;  %v714_v60 = vpop.f32.mrf.mxu0  ;;  %v2509_v35 = vmax.f32 %v905_v19, 0.0 }
 0x145   : > { %v907_v7 = vpop.f32.mrf.mxu1  ;;  %v2522_v22 = vmax.f32 %v714_v60, 0.0 }
 0x146   : > { %v2524_v23 = vmax.f32 %v907_v7, 0.0  ;;  %v716_v54 = vpop.f32.mrf.mxu0 }
 0x147   : > { %v909_v36 = vpop.f32.mrf.mxu1  ;;  %v8072_v44 = vpack.c.bf16 %v2522_v22, %v2506_v20  ;;  %v2523_v13 = vmax.f32 %v716_v54, 0.0 }
 0x148   : > { %v8074_v33 = vpack.c.bf16 %v2524_v23, %v2508_v21  ;;  %v2525_v61 = vmax.f32 %v909_v36, 0.0  ;;  %v720_v51 = vpop.f32.mrf.mxu0  ;;  %7199 = vmatmul.mubr.msk.bf16.gmra.mxu0 %vm497_vm0, %v7739_v37 }
 0x149   : > { %v913_v63 = vpop.f32.mrf.mxu1  ;;  %7215 = vmatmul.mubr.msk.bf16.gmra.mxu1 %vm497_vm0, %v7739_v37  ;;  %v8080_v43 = vpack.c.bf16 %v2523_v13, %v2507_v42  ;;  %1420 = vmatprep.mubr.bf16.mxu0 %v12443_v30  ;;  %v2538_v7 = vmax.f32 %v720_v51, 0.0 }
 0x14a   : > { %v8082_v4 = vpack.c.bf16 %v2525_v61, %v2509_v35  ;;  %1613 = vmatprep.mubr.bf16.mxu1 %v12443_v30  ;;  %v722_v5 = vpop.f32.mrf.mxu0  ;;  %v2540_v20 = vmax.f32 %v913_v63, 0.0 }
 0x14b   : > { %v915_v19 = vpop.f32.mrf.mxu1  ;;  %v2539_v23 = vmax.f32 %v722_v5, 0.0 }
 0x14c   : > { %v724_v54 = vpop.f32.mrf.mxu0  ;;  %v2541_v36 = vmax.f32 %v915_v19, 0.0 }
 0x14d   : > { %v917_v60 = vpop.f32.mrf.mxu1  ;;  %v2554_v21 = vmax.f32 %v724_v54, 0.0 }
 0x14e   : > { %v2556_v22 = vmax.f32 %v917_v60, 0.0  ;;  %v726_v62 = vpop.f32.mrf.mxu0 }
 0x14f   : > { %v919_v37 = vpop.f32.mrf.mxu1  ;;  %v8086_v42 = vpack.c.bf16 %v2554_v21, %v2538_v7  ;;  %v2555_v13 = vmax.f32 %v726_v62, 0.0 }
 0x150   : > { %v8088_v35 = vpack.c.bf16 %v2556_v22, %v2540_v20  ;;  %v2557_v61 = vmax.f32 %v919_v37, 0.0  ;;  %v730_v55 = vpop.f32.mrf.mxu0  ;;  %7200 = vmatmul.mubr.msk.bf16.gmra.mxu0 %vm497_vm0, %v7748_v38 }
 0x151   : > { %v923_v48 = vpop.f32.mrf.mxu1  ;;  %7216 = vmatmul.mubr.msk.bf16.gmra.mxu1 %vm497_vm0, %v7748_v38  ;;  %v8094_v51 = vpack.c.bf16 %v2555_v13, %v2539_v23  ;;  %1430 = vmatprep.mubr.bf16.mxu0 %v12443_v30  ;;  %v2570_v60 = vmax.f32 %v730_v55, 0.0 }
 0x152   : > { %v8096_v63 = vpack.c.bf16 %v2557_v61, %v2541_v36  ;;  %1623 = vmatprep.mubr.bf16.mxu1 %v12443_v30  ;;  %v732_v5 = vpop.f32.mrf.mxu0  ;;  %v2572_v7 = vmax.f32 %v923_v48, 0.0 }
 0x153   : > { %v925_v19 = vpop.f32.mrf.mxu1  ;;  %v2571_v22 = vmax.f32 %v732_v5, 0.0 }
 0x154   : > { %v734_v62 = vpop.f32.mrf.mxu0  ;;  %v2573_v37 = vmax.f32 %v925_v19, 0.0 }
 0x155   : > { %v927_v54 = vpop.f32.mrf.mxu1  ;;  %v2586_v20 = vmax.f32 %v734_v62, 0.0 }
 0x156   : > { %v2588_v21 = vmax.f32 %v927_v54, 0.0  ;;  %v736_v59 = vpop.f32.mrf.mxu0 }
 0x157   : > { %v929_v38 = vpop.f32.mrf.mxu1  ;;  %v8100_v23 = vpack.c.bf16 %v2586_v20, %v2570_v60  ;;  %v2587_v13 = vmax.f32 %v736_v59, 0.0 }
 0x158   : > { %v8102_v36 = vpack.c.bf16 %v2588_v21, %v2572_v7  ;;  %v2589_v61 = vmax.f32 %v929_v38, 0.0  ;;  %v966_v58 = vpop.f32.mrf.mxu0  ;;  %7201 = vmatmul.mubr.msk.bf16.gmra.mxu0 %vm497_vm0, %v7757_v39 }
 0x159   : > { %v1159_v27 = vpop.f32.mrf.mxu1  ;;  %7217 = vmatmul.mubr.msk.bf16.gmra.mxu1 %vm497_vm0, %v7757_v39  ;;  %v8108_v48 = vpack.c.bf16 %v2587_v13, %v2571_v22  ;;  %1440 = vmatprep.mubr.bf16.mxu0 %v12443_v30  ;;  %v2094_v54 = vmax.f32 %v966_v58, 0.0 }
 0x15a   : > { %v8110_v55 = vpack.c.bf16 %v2589_v61, %v2573_v37  ;;  %1633 = vmatprep.mubr.bf16.mxu1 %v12443_v30  ;;  %v968_v5 = vpop.f32.mrf.mxu0  ;;  %v2096_v60 = vmax.f32 %v1159_v27, 0.0 }
 0x15b   : > { %v1161_v19 = vpop.f32.mrf.mxu1  ;;  %v2095_v21 = vmax.f32 %v968_v5, 0.0 }
 0x15c   : > { %v970_v59 = vpop.f32.mrf.mxu0  ;;  %v2097_v38 = vmax.f32 %v1161_v19, 0.0 }
 0x15d   : > { %v1163_v62 = vpop.f32.mrf.mxu1  ;;  %v2110_v7 = vmax.f32 %v970_v59, 0.0 }
 0x15e   : > { %v2112_v20 = vmax.f32 %v1163_v62, 0.0  ;;  %v972_v26 = vpop.f32.mrf.mxu0 }
 0x15f   : > { %v1165_v39 = vpop.f32.mrf.mxu1  ;;  %v8114_v22 = vpack.c.bf16 %v2110_v7, %v2094_v54  ;;  %v2111_v13 = vmax.f32 %v972_v26, 0.0 }
 0x160   : > { %v8116_v37 = vpack.c.bf16 %v2112_v20, %v2096_v60  ;;  %v2113_v61 = vmax.f32 %v1165_v39, 0.0  ;;  %v976_v46 = vpop.f32.mrf.mxu0  ;;  %7202 = vmatmul.mubr.msk.bf16.gmra.mxu0 %vm497_vm0, %v7766_v40 }
 0x161   : > { %12464 = vst [vmem:[#allocation22_spill] sm:$0xff] %v8114_v22  ;;  %v1169_v0 = vpop.f32.mrf.mxu1  ;;  %7218 = vmatmul.mubr.msk.bf16.gmra.mxu1 %vm497_vm0, %v7766_v40  ;;  %v8122_v58 = vpack.c.bf16 %v2111_v13, %v2095_v21  ;;  %1450 = vmatprep.mubr.bf16.mxu0 %v12443_v30  ;;  %v2126_v62 = vmax.f32 %v976_v46, 0.0 }
 0x162   : > { %12465 = vst [vmem:[#allocation23_spill] sm:$0xff] %v8116_v37  ;;  %v8124_v27 = vpack.c.bf16 %v2113_v61, %v2097_v38  ;;  %1643 = vmatprep.mubr.bf16.mxu1 %v12443_v30  ;;  %v978_v5 = vpop.f32.mrf.mxu0  ;;  %v2128_v54 = vmax.f32 %v1169_v0, 0.0 }
 0x163   : > { %12466 = vst [vmem:[#allocation24_spill] sm:$0xff] %v8122_v58  ;;  %v1171_v19 = vpop.f32.mrf.mxu1  ;;  %v2127_v20 = vmax.f32 %v978_v5, 0.0  ;;  %v8133_v58 = vld [vmem:[%s7665_s10 + $0x50] sm:$0xff]  }
 0x164   : > { %12467 = vst [vmem:[#allocation25_spill] sm:$0xff] %v8124_v27  ;;  %v980_v26 = vpop.f32.mrf.mxu0  ;;  %v2129_v39 = vmax.f32 %v1171_v19, 0.0  ;;  %12470 = vst [vmem:[#allocation28_spill] sm:$0xff] %v8133_v58 }
 0x165   : > { %v1173_v59 = vpop.f32.mrf.mxu1  ;;  %v2142_v60 = vmax.f32 %v980_v26, 0.0 }
 0x166   : > { %v2144_v7 = vmax.f32 %v1173_v59, 0.0  ;;  %v982_v40 = vpop.f32.mrf.mxu0 }
 0x167   : > { %v1175_v21 = vpop.f32.mrf.mxu1  ;;  %v8128_v13 = vpack.c.bf16 %v2142_v60, %v2126_v62  ;;  %v2143_v61 = vmax.f32 %v982_v40, 0.0 }
 0x168   : > { %v8130_v38 = vpack.c.bf16 %v2144_v7, %v2128_v54  ;;  %v2145_v37 = vmax.f32 %v1175_v21, 0.0  ;;  %v986_v22 = vpop.f32.mrf.mxu0  ;;  %7203 = vmatmul.mubr.msk.bf16.gmra.mxu0 %vm497_vm0, %v8133_v58 }
 0x169   : > { %12468 = vst [vmem:[#allocation26_spill] sm:$0xff] %v8128_v13  ;;  %v1179_v27 = vpop.f32.mrf.mxu1  ;;  %7219 = vmatmul.mubr.msk.bf16.gmra.mxu1 %vm497_vm0, %v8133_v58  ;;  %v8139_v0 = vpack.c.bf16 %v2143_v61, %v2127_v20  ;;  %1460 = vmatprep.mubr.bf16.mxu0 %v12443_v30  ;;  %v2158_v62 = vmax.f32 %v986_v22, 0.0  ;;  %v8150_v58 = vld [vmem:[%s7665_s10 + $0x58] sm:$0xff]  }
 0x16a   : > { %12469 = vst [vmem:[#allocation27_spill] sm:$0xff] %v8130_v38  ;;  %v8141_v46 = vpack.c.bf16 %v2145_v37, %v2129_v39  ;;  %1653 = vmatprep.mubr.bf16.mxu1 %v12443_v30  ;;  %v988_v5 = vpop.f32.mrf.mxu0  ;;  %v2160_v54 = vmax.f32 %v1179_v27, 0.0  ;;  %12475 = vst [vmem:[#allocation33_spill] sm:$0xff] %v8150_v58 }
 0x16b   : > { %12471 = vst [vmem:[#allocation29_spill] sm:$0xff] %v8139_v0  ;;  %v1181_v19 = vpop.f32.mrf.mxu1  ;;  %v2159_v40 = vmax.f32 %v988_v5, 0.0 }
 0x16c   : > { %12472 = vst [vmem:[#allocation30_spill] sm:$0xff] %v8141_v46  ;;  %v990_v26 = vpop.f32.mrf.mxu0  ;;  %v2161_v21 = vmax.f32 %v1181_v19, 0.0 }
 0x16d   : > { %v1183_v59 = vpop.f32.mrf.mxu1  ;;  %v2174_v60 = vmax.f32 %v990_v26, 0.0 }
 0x16e   : > { %v2176_v7 = vmax.f32 %v1183_v59, 0.0  ;;  %v992_v38 = vpop.f32.mrf.mxu0 }
 0x16f   : > { %v1185_v20 = vpop.f32.mrf.mxu1  ;;  %v8145_v61 = vpack.c.bf16 %v2174_v60, %v2158_v62  ;;  %v2175_v39 = vmax.f32 %v992_v38, 0.0 }
 0x170   : > { %v8147_v37 = vpack.c.bf16 %v2176_v7, %v2160_v54  ;;  %v2177_v13 = vmax.f32 %v1185_v20, 0.0  ;;  %v996_v46 = vpop.f32.mrf.mxu0  ;;  %7204 = vmatmul.mubr.msk.bf16.gmra.mxu0 %vm497_vm0, %v8150_v58 }
 0x171   : > { %12473 = vst [vmem:[#allocation31_spill] sm:$0xff] %v8145_v61  ;;  %v1189_v0 = vpop.f32.mrf.mxu1  ;;  %7220 = vmatmul.mubr.msk.bf16.gmra.mxu1 %vm497_vm0, %v8150_v58  ;;  %v8156_v22 = vpack.c.bf16 %v2175_v39, %v2159_v40  ;;  %1470 = vmatprep.mubr.bf16.mxu0 %v12443_v30  ;;  %v2190_v59 = vmax.f32 %v996_v46, 0.0  ;;  %v8167_v58 = vld [vmem:[%s7665_s10 + $0x60] sm:$0xff]  }
 0x172   : > { %12474 = vst [vmem:[#allocation32_spill] sm:$0xff] %v8147_v37  ;;  %v8158_v27 = vpack.c.bf16 %v2177_v13, %v2161_v21  ;;  %1663 = vmatprep.mubr.bf16.mxu1 %v12443_v30  ;;  %v998_v38 = vpop.f32.mrf.mxu0  ;;  %v2192_v62 = vmax.f32 %v1189_v0, 0.0  ;;  %12480 = vst [vmem:[#allocation38_spill] sm:$0xff] %v8167_v58 }
 0x173   : > { %12476 = vst [vmem:[#allocation34_spill] sm:$0xff] %v8156_v22  ;;  %v1191_v5 = vpop.f32.mrf.mxu1  ;;  %v2191_v7 = vmax.f32 %v998_v38, 0.0 }
 0x174   : > { %12477 = vst [vmem:[#allocation35_spill] sm:$0xff] %v8158_v27  ;;  %v1000_v19 = vpop.f32.mrf.mxu0  ;;  %v2193_v20 = vmax.f32 %v1191_v5, 0.0 }
 0x175   : > { %v1193_v26 = vpop.f32.mrf.mxu1  ;;  %v2206_v54 = vmax.f32 %v1000_v19, 0.0 }
 0x176   : > { %v2208_v60 = vmax.f32 %v1193_v26, 0.0  ;;  %v1002_v37 = vpop.f32.mrf.mxu0 }
 0x177   : > { %v1195_v40 = vpop.f32.mrf.mxu1  ;;  %v8162_v39 = vpack.c.bf16 %v2206_v54, %v2190_v59  ;;  %v2207_v21 = vmax.f32 %v1002_v37, 0.0 }
 0x178   : > { %v8164_v13 = vpack.c.bf16 %v2208_v60, %v2192_v62  ;;  %v2209_v61 = vmax.f32 %v1195_v40, 0.0  ;;  %v1006_v27 = vpop.f32.mrf.mxu0  ;;  %7205 = vmatmul.mubr.msk.bf16.gmra.mxu0 %vm497_vm0, %v8167_v58 }
 0x179   : > { %12478 = vst [vmem:[#allocation36_spill] sm:$0xff] %v8162_v39  ;;  %v1199_v22 = vpop.f32.mrf.mxu1  ;;  %7221 = vmatmul.mubr.msk.bf16.gmra.mxu1 %vm497_vm0, %v8167_v58  ;;  %v8173_v0 = vpack.c.bf16 %v2207_v21, %v2191_v7  ;;  %1480 = vmatprep.mubr.bf16.mxu0 %v12443_v30  ;;  %v2222_v26 = vmax.f32 %v1006_v27, 0.0  ;;  %v8184_v58 = vld [vmem:[%s7665_s10 + $0x68] sm:$0xff]  }
 0x17a   : > { %12479 = vst [vmem:[#allocation37_spill] sm:$0xff] %v8164_v13  ;;  %v8175_v46 = vpack.c.bf16 %v2209_v61, %v2193_v20  ;;  %1673 = vmatprep.mubr.bf16.mxu1 %v12443_v30  ;;  %v1008_v37 = vpop.f32.mrf.mxu0  ;;  %v2224_v59 = vmax.f32 %v1199_v22, 0.0  ;;  %12485 = vst [vmem:[#allocation43_spill] sm:$0xff] %v8184_v58 }
 0x17b   : > { %12481 = vst [vmem:[#allocation39_spill] sm:$0xff] %v8173_v0  ;;  %v1201_v38 = vpop.f32.mrf.mxu1  ;;  %v2223_v60 = vmax.f32 %v1008_v37, 0.0 }
 0x17c   : > { %12482 = vst [vmem:[#allocation40_spill] sm:$0xff] %v8175_v46  ;;  %v1010_v5 = vpop.f32.mrf.mxu0  ;;  %v2225_v40 = vmax.f32 %v1201_v38, 0.0 }
 0x17d   : > { %v1203_v19 = vpop.f32.mrf.mxu1  ;;  %v2238_v62 = vmax.f32 %v1010_v5, 0.0 }
 0x17e   : > { %v2240_v54 = vmax.f32 %v1203_v19, 0.0  ;;  %v1012_v13 = vpop.f32.mrf.mxu0 }
 0x17f   : > { %v1205_v7 = vpop.f32.mrf.mxu1  ;;  %v8179_v21 = vpack.c.bf16 %v2238_v62, %v2222_v26  ;;  %v2239_v20 = vmax.f32 %v1012_v13, 0.0 }
 0x180   : > { %v8181_v61 = vpack.c.bf16 %v2240_v54, %v2224_v59  ;;  %v2241_v39 = vmax.f32 %v1205_v7, 0.0  ;;  %v1016_v46 = vpop.f32.mrf.mxu0  ;;  %7206 = vmatmul.mubr.msk.bf16.gmra.mxu0 %vm497_vm0, %v8184_v58 }
 0x181   : > { %12483 = vst [vmem:[#allocation41_spill] sm:$0xff] %v8179_v21  ;;  %v1209_v0 = vpop.f32.mrf.mxu1  ;;  %7222 = vmatmul.mubr.msk.bf16.gmra.mxu1 %vm497_vm0, %v8184_v58  ;;  %v8190_v22 = vpack.c.bf16 %v2239_v20, %v2223_v60  ;;  %1490 = vmatprep.mubr.bf16.mxu0 %v12443_v30  ;;  %v2254_v19 = vmax.f32 %v1016_v46, 0.0  ;;  %v8201_v58 = vld [vmem:[%s7665_s10 + $0x70] sm:$0xff]  }
 0x182   : > { %12484 = vst [vmem:[#allocation42_spill] sm:$0xff] %v8181_v61  ;;  %v8192_v27 = vpack.c.bf16 %v2241_v39, %v2225_v40  ;;  %1683 = vmatprep.mubr.bf16.mxu1 %v12443_v30  ;;  %v1018_v13 = vpop.f32.mrf.mxu0  ;;  %v2256_v26 = vmax.f32 %v1209_v0, 0.0  ;;  %12490 = vst [vmem:[#allocation48_spill] sm:$0xff] %v8201_v58 }
 0x183   : > { %12486 = vst [vmem:[#allocation44_spill] sm:$0xff] %v8190_v22  ;;  %v1211_v37 = vpop.f32.mrf.mxu1  ;;  %v2255_v54 = vmax.f32 %v1018_v13, 0.0 }
 0x184   : > { %12487 = vst [vmem:[#allocation45_spill] sm:$0xff] %v8192_v27  ;;  %v1020_v38 = vpop.f32.mrf.mxu0  ;;  %v2257_v7 = vmax.f32 %v1211_v37, 0.0 }
 0x185   : > { %v1213_v5 = vpop.f32.mrf.mxu1  ;;  %v2270_v59 = vmax.f32 %v1020_v38, 0.0 }
 0x186   : > { %v2272_v62 = vmax.f32 %v1213_v5, 0.0  ;;  %v1022_v61 = vpop.f32.mrf.mxu0 }
 0x187   : > { %v1215_v60 = vpop.f32.mrf.mxu1  ;;  %v8196_v20 = vpack.c.bf16 %v2270_v59, %v2254_v19  ;;  %v2271_v40 = vmax.f32 %v1022_v61, 0.0 }
 0x188   : > { %v8198_v39 = vpack.c.bf16 %v2272_v62, %v2256_v26  ;;  %v2273_v21 = vmax.f32 %v1215_v60, 0.0  ;;  %v1026_v27 = vpop.f32.mrf.mxu0  ;;  %7207 = vmatmul.mubr.msk.bf16.gmra.mxu0 %vm497_vm0, %v8201_v58 }
 0x189   : > { %12488 = vst [vmem:[#allocation46_spill] sm:$0xff] %v8196_v20  ;;  %v1219_v22 = vpop.f32.mrf.mxu1  ;;  %7223 = vmatmul.mubr.msk.bf16.gmra.mxu1 %vm497_vm0, %v8201_v58  ;;  %v8207_v0 = vpack.c.bf16 %v2271_v40, %v2255_v54  ;;  %1500 = vmatprep.mubr.bf16.mxu0 %v12443_v30  ;;  %v2286_v5 = vmax.f32 %v1026_v27, 0.0  ;;  %v8218_v58 = vld [vmem:[%s7665_s10 + $0x78] sm:$0xff]  }
 0x18a   : > { %12489 = vst [vmem:[#allocation47_spill] sm:$0xff] %v8198_v39  ;;  %v8209_v46 = vpack.c.bf16 %v2273_v21, %v2257_v7  ;;  %1693 = vmatprep.mubr.bf16.mxu1 %v12443_v30  ;;  %v1028_v61 = vpop.f32.mrf.mxu0  ;;  %v2288_v19 = vmax.f32 %v1219_v22, 0.0 }
 0x18b   : > { %12491 = vst [vmem:[#allocation49_spill] sm:$0xff] %v8207_v0  ;;  %v1221_v13 = vpop.f32.mrf.mxu1  ;;  %v2287_v62 = vmax.f32 %v1028_v61, 0.0 }
 0x18c   : > { %12492 = vst [vmem:[#allocation50_spill] sm:$0xff] %v8209_v46  ;;  %v1030_v37 = vpop.f32.mrf.mxu0  ;;  %v2289_v60 = vmax.f32 %v1221_v13, 0.0 }
 0x18d   : > { %v1223_v38 = vpop.f32.mrf.mxu1  ;;  %v2302_v26 = vmax.f32 %v1030_v37, 0.0 }
 0x18e   : > { %v2304_v59 = vmax.f32 %v1223_v38, 0.0  ;;  %v1032_v39 = vpop.f32.mrf.mxu0 }
 0x18f   : > { %v1225_v54 = vpop.f32.mrf.mxu1  ;;  %v8213_v40 = vpack.c.bf16 %v2302_v26, %v2286_v5  ;;  %v2303_v7 = vmax.f32 %v1032_v39, 0.0 }
 0x190   : > { %v8215_v21 = vpack.c.bf16 %v2304_v59, %v2288_v19  ;;  %v2305_v20 = vmax.f32 %v1225_v54, 0.0  ;;  %v1036_v46 = vpop.f32.mrf.mxu0  ;;  %7208 = vmatmul.mubr.msk.bf16.gmra.mxu0 %vm497_vm0, %v8218_v58 }
 0x191   : > { %12493 = vst [vmem:[#allocation51_spill] sm:$0xff] %v8213_v40  ;;  %v1229_v0 = vpop.f32.mrf.mxu1  ;;  %7224 = vmatmul.mubr.msk.bf16.gmra.mxu1 %vm497_vm0, %v8218_v58  ;;  %v8224_v22 = vpack.c.bf16 %v2303_v7, %v2287_v62  ;;  %1736 = vmatprep.mubr.bf16.mxu0 %v12443_v30  ;;  %v2318_v38 = vmax.f32 %v1036_v46, 0.0 }
 0x192   : > { %12494 = vst [vmem:[#allocation52_spill] sm:$0xff] %v8215_v21  ;;  %v8226_v27 = vpack.c.bf16 %v2305_v20, %v2289_v60  ;;  %1929 = vmatprep.mubr.bf16.mxu1 %v12443_v30  ;;  %v8230_v39 = vpop.f32.mrf.mxu0  ;;  %v2320_v5 = vmax.f32 %v1229_v0, 0.0  ;;  %v7455_v21 = vld [vmem:[%s7665_s10] sm:$0xff]  }
 0x193   : > { %v8232_v61 = vpop.f32.mrf.mxu1 }
 0x194   : > { %12495 = vst [vmem:[#allocation53_spill] sm:$0xff] %v8226_v27  ;;  %v1040_v13 = vpop.f32.mrf.mxu0  ;;  %v7456_v27 = vld [vmem:[%s7665_s10 + $0x8] sm:$0xff]  }
 0x195   : > { %v1233_v37 = vpop.f32.mrf.mxu1  ;;  %v2334_v19 = vmax.f32 %v1040_v13, 0.0 }
 0x196   : > { %v2336_v26 = vmax.f32 %v1233_v37, 0.0  ;;  %v8234_v59 = vpop.f32.mrf.mxu0 }
 0x197   : > { %v8236_v62 = vpop.f32.mrf.mxu1  ;;  %v8238_v20 = vpack.c.bf16 %v2334_v19, %v2318_v38 }
 0x198   : > { %v8240_v60 = vpack.c.bf16 %v2336_v26, %v2320_v5  ;;  %v1046_v54 = vpop.f32.mrf.mxu0  ;;  %7225 = vmatmul.mubr.msk.bf16.vlgmr.msra.gmra.mxu0 %vm497_vm0, %v7455_v21 }
 0x199   : > { %v1239_v7 = vpop.f32.mrf.mxu1  ;;  %7241 = vmatmul.mubr.msk.bf16.vlgmr.msra.gmra.mxu1 %vm497_vm0, %v7455_v21  ;;  %3267 = vmatpush1.bf16.msra.mxu0 %v7992_v6  ;;  %v2350_v38 = vmax.f32 %v1046_v54, 0.0 }
 0x19a   : > { %3470 = vmatpush1.bf16.msra.mxu1 %v7994_v45  ;;  %3268 = vmatprep.subr.bf16.mxu0 %v7983_v24  ;;  %v1048_v0 = vpop.f32.mrf.mxu0  ;;  %v2352_v5 = vmax.f32 %v1239_v7, 0.0 }
 0x19b   : > { %3471 = vmatprep.subr.bf16.mxu1 %v7985_v25  ;;  %v1241_v46 = vpop.f32.mrf.mxu1  ;;  %1746 = vmatprep.mubr.bf16.mxu0 %v12443_v30  ;;  %v2351_v24 = vmax.f32 %v1048_v0, 0.0 }
 0x19c   : > { %1939 = vmatprep.mubr.bf16.mxu1 %v12443_v30  ;;  %v1050_v13 = vpop.f32.mrf.mxu0  ;;  %v2353_v6 = vmax.f32 %v1241_v46, 0.0 }
 0x19d   : > { %v1243_v37 = vpop.f32.mrf.mxu1  ;;  %v2366_v19 = vmax.f32 %v1050_v13, 0.0  ;;  %3269 = vmatpush1.bf16.msra.mxu0 %v7974_v15 }
 0x19e   : > { %v2368_v21 = vmax.f32 %v1243_v37, 0.0  ;;  %3472 = vmatpush1.bf16.msra.mxu1 %v7976_v16  ;;  %3270 = vmatprep.subr.bf16.mxu0 %v7968_v56  ;;  %v1052_v25 = vpop.f32.mrf.mxu0 }
 0x19f   : > { %3473 = vmatprep.subr.bf16.mxu1 %v7970_v57  ;;  %v1245_v45 = vpop.f32.mrf.mxu1  ;;  %v8255_v26 = vpack.c.bf16 %v2366_v19, %v2350_v38  ;;  %v2367_v54 = vmax.f32 %v1052_v25, 0.0 }
 0x1a0   : > { %v8257_v40 = vpack.c.bf16 %v2368_v21, %v2352_v5  ;;  %v2369_v7 = vmax.f32 %v1245_v45, 0.0  ;;  %v1056_v13 = vpop.f32.mrf.mxu0  ;;  %7226 = vmatmul.mubr.msk.bf16.gmra.mxu0 %vm497_vm0, %v7456_v27 }
 0x1a1   : > { %v1249_v37 = vpop.f32.mrf.mxu1  ;;  %7242 = vmatmul.mubr.msk.bf16.gmra.mxu1 %vm497_vm0, %v7456_v27  ;;  %v8262_v15 = vpack.c.bf16 %v2367_v54, %v2351_v24  ;;  %3271 = vmatpush1.bf16.msra.mxu0 %v7960_v31  ;;  %v2382_v46 = vmax.f32 %v1056_v13, 0.0 }
 0x1a2   : > { %v8264_v56 = vpack.c.bf16 %v2369_v7, %v2353_v6  ;;  %3474 = vmatpush1.bf16.msra.mxu1 %v7962_v32  ;;  %3272 = vmatprep.subr.bf16.mxu0 %v7954_v12  ;;  %v1058_v57 = vpop.f32.mrf.mxu0  ;;  %v2384_v38 = vmax.f32 %v1249_v37, 0.0  ;;  %v7457_v7 = vld [vmem:[%s7665_s10 + $0x10] sm:$0xff]  }
 0x1a3   : > { %3475 = vmatprep.subr.bf16.mxu1 %v7956_v14  ;;  %v1251_v16 = vpop.f32.mrf.mxu1  ;;  %1756 = vmatprep.mubr.bf16.mxu0 %v12443_v30  ;;  %v2383_v12 = vmax.f32 %v1058_v57, 0.0 }
 0x1a4   : > { %1949 = vmatprep.mubr.bf16.mxu1 %v12443_v30  ;;  %v1060_v0 = vpop.f32.mrf.mxu0  ;;  %v2385_v31 = vmax.f32 %v1251_v16, 0.0 }
 0x1a5   : > { %v1253_v27 = vpop.f32.mrf.mxu1  ;;  %v2398_v5 = vmax.f32 %v1060_v0, 0.0  ;;  %3273 = vmatpush1.bf16.msra.mxu0 %v7946_v1 }
 0x1a6   : > { %v2400_v19 = vmax.f32 %v1253_v27, 0.0  ;;  %3476 = vmatpush1.bf16.msra.mxu1 %v7948_v41  ;;  %3274 = vmatprep.subr.bf16.mxu0 %v7940_v49  ;;  %v1062_v14 = vpop.f32.mrf.mxu0 }
 0x1a7   : > { %3477 = vmatprep.subr.bf16.mxu1 %v7942_v50  ;;  %v1255_v32 = vpop.f32.mrf.mxu1  ;;  %v8276_v21 = vpack.c.bf16 %v2398_v5, %v2382_v46  ;;  %v2399_v6 = vmax.f32 %v1062_v14, 0.0  ;;  %v7458_v14 = vld [vmem:[%s7665_s10 + $0x18] sm:$0xff]  }
 0x1a8   : > { %v8278_v24 = vpack.c.bf16 %v2400_v19, %v2384_v38  ;;  %v2401_v25 = vmax.f32 %v1255_v32, 0.0  ;;  %v1066_v45 = vpop.f32.mrf.mxu0  ;;  %7227 = vmatmul.mubr.msk.bf16.gmra.mxu0 %vm497_vm0, %v7457_v7 }
 0x1a9   : > { %v1259_v54 = vpop.f32.mrf.mxu1  ;;  %7243 = vmatmul.mubr.msk.bf16.gmra.mxu1 %vm497_vm0, %v7457_v7  ;;  %v8283_v1 = vpack.c.bf16 %v2399_v6, %v2383_v12  ;;  %3275 = vmatpush1.bf16.msra.mxu0 %v7932_v28  ;;  %v2414_v57 = vmax.f32 %v1066_v45, 0.0 }
 0x1aa   : > { %v8285_v49 = vpack.c.bf16 %v2401_v25, %v2385_v31  ;;  %3478 = vmatpush1.bf16.msra.mxu1 %v7934_v29  ;;  %3276 = vmatprep.subr.bf16.mxu0 %v7926_v8  ;;  %v1068_v50 = vpop.f32.mrf.mxu0  ;;  %v2416_v16 = vmax.f32 %v1259_v54, 0.0 }
 0x1ab   : > { %3479 = vmatprep.subr.bf16.mxu1 %v7928_v9  ;;  %v1261_v41 = vpop.f32.mrf.mxu1  ;;  %1766 = vmatprep.mubr.bf16.mxu0 %v12443_v30  ;;  %v2415_v8 = vmax.f32 %v1068_v50, 0.0 }
 0x1ac   : > { %1959 = vmatprep.mubr.bf16.mxu1 %v12443_v30  ;;  %v1070_v13 = vpop.f32.mrf.mxu0  ;;  %v2417_v28 = vmax.f32 %v1261_v41, 0.0 }
 0x1ad   : > { %v1263_v37 = vpop.f32.mrf.mxu1  ;;  %v2430_v0 = vmax.f32 %v1070_v13, 0.0  ;;  %3277 = vmatpush1.bf16.msra.mxu0 %v7918_v2 }
 0x1ae   : > { %v2432_v27 = vmax.f32 %v1263_v37, 0.0  ;;  %3480 = vmatpush1.bf16.msra.mxu1 %v7920_v3  ;;  %3278 = vmatprep.subr.bf16.mxu0 %v7912_v52  ;;  %v1072_v9 = vpop.f32.mrf.mxu0 }
 0x1af   : > { %3481 = vmatprep.subr.bf16.mxu1 %v7914_v53  ;;  %v1265_v29 = vpop.f32.mrf.mxu1  ;;  %v8297_v46 = vpack.c.bf16 %v2430_v0, %v2414_v57  ;;  %v2431_v5 = vmax.f32 %v1072_v9, 0.0 }
 0x1b0   : > { %v8299_v38 = vpack.c.bf16 %v2432_v27, %v2416_v16  ;;  %v2433_v19 = vmax.f32 %v1265_v29, 0.0  ;;  %v1076_v12 = vpop.f32.mrf.mxu0  ;;  %7228 = vmatmul.mubr.msk.bf16.gmra.mxu0 %vm497_vm0, %v7458_v14 }
 0x1b1   : > { %v1269_v31 = vpop.f32.mrf.mxu1  ;;  %7244 = vmatmul.mubr.msk.bf16.gmra.mxu1 %vm497_vm0, %v7458_v14  ;;  %v8304_v2 = vpack.c.bf16 %v2431_v5, %v2415_v8  ;;  %3279 = vmatpush1.bf16.msra.mxu0 %v7904_v34  ;;  %v2446_v25 = vmax.f32 %v1076_v12, 0.0 }
 0x1b2   : > { %v8306_v52 = vpack.c.bf16 %v2433_v19, %v2417_v28  ;;  %3482 = vmatpush1.bf16.msra.mxu1 %v7906_v47  ;;  %3280 = vmatprep.subr.bf16.mxu0 %v7898_v17  ;;  %v1078_v53 = vpop.f32.mrf.mxu0  ;;  %v2448_v45 = vmax.f32 %v1269_v31, 0.0 }
 0x1b3   : > { %3483 = vmatprep.subr.bf16.mxu1 %v7900_v18  ;;  %v1271_v3 = vpop.f32.mrf.mxu1  ;;  %1776 = vmatprep.mubr.bf16.mxu0 %v12443_v30  ;;  %v2447_v17 = vmax.f32 %v1078_v53, 0.0  ;;  %v7460_v53 = vld [vmem:[%s7665_s10 + $0x28] sm:$0xff]  }
 0x1b4   : > { %1969 = vmatprep.mubr.bf16.mxu1 %v12443_v30  ;;  %v1080_v32 = vpop.f32.mrf.mxu0  ;;  %v2449_v34 = vmax.f32 %v1271_v3, 0.0 }
 0x1b5   : > { %v1273_v6 = vpop.f32.mrf.mxu1  ;;  %v2462_v54 = vmax.f32 %v1080_v32, 0.0  ;;  %3281 = vmatpush1.bf16.msra.mxu0 %v7890_v10  ;;  %v7459_v10 = vld [vmem:[%s7665_s10 + $0x20] sm:$0xff]   ;;  %v12496_v32 = vld [vmem:[#allocation20_spill] sm:$0xff] }
 0x1b6   : > { %v2464_v7 = vmax.f32 %v1273_v6, 0.0  ;;  %3484 = vmatpush1.bf16.msra.mxu1 %v7892_v11  ;;  %3282 = vmatprep.subr.bf16.mxu0 %v8108_v48  ;;  %v1082_v18 = vpop.f32.mrf.mxu0  ;;  %v12497_v6 = vld [vmem:[#allocation21_spill] sm:$0xff] }
 0x1b7   : > { %3485 = vmatprep.subr.bf16.mxu1 %v8110_v55  ;;  %v1275_v47 = vpop.f32.mrf.mxu1  ;;  %v8318_v50 = vpack.c.bf16 %v2462_v54, %v2446_v25  ;;  %v2463_v13 = vmax.f32 %v1082_v18, 0.0 }
 0x1b8   : > { %v8320_v41 = vpack.c.bf16 %v2464_v7, %v2448_v45  ;;  %v2465_v37 = vmax.f32 %v1275_v47, 0.0  ;;  %v1086_v57 = vpop.f32.mrf.mxu0  ;;  %7229 = vmatmul.mubr.msk.bf16.gmra.mxu0 %vm497_vm0, %v7459_v10  ;;  %v12499_v47 = vld [vmem:[#allocation19_spill] sm:$0xff] }
 0x1b9   : > { %v1279_v16 = vpop.f32.mrf.mxu1  ;;  %7245 = vmatmul.mubr.msk.bf16.gmra.mxu1 %vm497_vm0, %v7459_v10  ;;  %v8325_v11 = vpack.c.bf16 %v2463_v13, %v2447_v17  ;;  %3283 = vmatpush2.bf16.msra.mxu0 %v8100_v23  ;;  %v2478_v28 = vmax.f32 %v1086_v57, 0.0  ;;  %v2904_v13 = vld [vmem:[%s8341_s14 + $0x60] sm:$0xff]  ;;  %v12501_v10 = vld [vmem:[#allocation17_spill] sm:$0xff] }
 0x1ba   : > { %v8327_v48 = vpack.c.bf16 %v2465_v37, %v2449_v34  ;;  %3486 = vmatpush2.bf16.msra.mxu1 %v8102_v36  ;;  %3284 = vmatprep.subr.bf16.mxu0 %v8094_v51  ;;  %v1088_v55 = vpop.f32.mrf.mxu0  ;;  %v2480_v9 = vmax.f32 %v1279_v16, 0.0  ;;  %v12500_v16 = vld [vmem:[#allocation16_spill] sm:$0xff] }
 0x1bb   : > { %3487 = vmatprep.subr.bf16.mxu1 %v8096_v63  ;;  %v1281_v0 = vpop.f32.mrf.mxu1  ;;  %1786 = vmatprep.mubr.bf16.mxu0 %v12443_v30  ;;  %v2479_v51 = vmax.f32 %v1088_v55, 0.0 }
 0x1bc   : > { %1979 = vmatprep.mubr.bf16.mxu1 %v12443_v30  ;;  %v1090_v27 = vpop.f32.mrf.mxu0  ;;  %v2481_v63 = vmax.f32 %v1281_v0, 0.0  ;;  %2988 = vperm.xlu1 %7311, %v2904_v13   ;;  %v12509_v13 = vld [vmem:[#allocation9_spill] sm:$0xff] }
 0x1bd   : > { %v1283_v8 = vpop.f32.mrf.mxu1  ;;  %v2494_v29 = vmax.f32 %v1090_v27, 0.0  ;;  %3285 = vmatpush2.bf16.msra.mxu0 %v8086_v42 }
 0x1be   : > { %v2496_v5 = vmax.f32 %v1283_v8, 0.0  ;;  %3488 = vmatpush2.bf16.msra.mxu1 %v8088_v35  ;;  %3286 = vmatprep.subr.bf16.mxu0 %v8080_v43  ;;  %v1092_v23 = vpop.f32.mrf.mxu0 }
 0x1bf   : > { %3489 = vmatprep.subr.bf16.mxu1 %v8082_v4  ;;  %v1285_v36 = vpop.f32.mrf.mxu1  ;;  %v8345_v19 = vpack.c.bf16 %v2494_v29, %v2478_v28  ;;  %v2495_v42 = vmax.f32 %v1092_v23, 0.0  ;;  %v2906_v4 = vld [vmem:[%s8341_s14 + $0x70] sm:$0xff] }
 0x1c0   : > { %v8347_v12 = vpack.c.bf16 %v2496_v5, %v2480_v9  ;;  %v2497_v35 = vmax.f32 %v1285_v36, 0.0  ;;  %v1096_v31 = vpop.f32.mrf.mxu0  ;;  %7230 = vmatmul.mubr.msk.bf16.gmra.mxu0 %vm497_vm0, %v7460_v53  ;;  %2998 = vperm.xlu0 %7310, %v2906_v4   ;;  %v12502_v36 = vld [vmem:[#allocation14_spill] sm:$0xff] }
 0x1c1   : > { %v1289_v14 = vpop.f32.mrf.mxu1  ;;  %7246 = vmatmul.mubr.msk.bf16.gmra.mxu1 %vm497_vm0, %v7460_v53  ;;  %v8352_v3 = vpack.c.bf16 %v2495_v42, %v2479_v51  ;;  %3287 = vmatpush2.bf16.msra.mxu0 %v8072_v44  ;;  %v2510_v17 = vmax.f32 %v1096_v31, 0.0  ;;  %v7461_v51 = vld [vmem:[%s7665_s10 + $0x30] sm:$0xff]   ;;  %v12503_v42 = vld [vmem:[#allocation15_spill] sm:$0xff]  ;;  %v12505_v53 = vld [vmem:[#allocation13_spill] sm:$0xff] }
 0x1c2   : > { %v8354_v43 = vpack.c.bf16 %v2497_v35, %v2481_v63  ;;  %3490 = vmatpush2.bf16.msra.mxu1 %v8074_v33  ;;  %3288 = vmatprep.subr.bf16.mxu0 %v12496_v32  ;;  %v1098_v25 = vpop.f32.mrf.mxu0  ;;  %v2512_v34 = vmax.f32 %v1289_v14, 0.0  ;;  %v12498_v33 = vld [vmem:[#allocation18_spill] sm:$0xff]  ;;  %v2907_v35 = vld [vmem:[%s8341_s14 + $0x78] sm:$0xff]  ;;  %v2905_v31 = vld [vmem:[%s8341_s14 + $0x68] sm:$0xff] }
 0x1c3   : > { %3491 = vmatprep.subr.bf16.mxu1 %v12497_v6  ;;  %v1291_v45 = vpop.f32.mrf.mxu1  ;;  %1796 = vmatprep.mubr.bf16.mxu0 %v12443_v30  ;;  %v2511_v37 = vmax.f32 %v1098_v25, 0.0  ;;  %v12504_v14 = vld [vmem:[#allocation12_spill] sm:$0xff] }
 0x1c4   : > { %1989 = vmatprep.mubr.bf16.mxu1 %v12443_v30  ;;  %v1100_v54 = vpop.f32.mrf.mxu0  ;;  %v2513_v57 = vmax.f32 %v1291_v45, 0.0  ;;  %3003 = vperm.xlu0 %7310, %v2907_v35   ;;  %v12510_v35 = vld [vmem:[#allocation6_spill] sm:$0xff] }
 0x1c5   : > { %v1293_v7 = vpop.f32.mrf.mxu1  ;;  %v2526_v44 = vmax.f32 %v1100_v54, 0.0  ;;  %3289 = vmatpush2.bf16.msra.mxu0 %v12498_v33  ;;  %2993 = vperm.xlu1 %7311, %v2905_v31   ;;  %v12511_v31 = vld [vmem:[#allocation7_spill] sm:$0xff] }
 0x1c6   : > { %v2528_v18 = vmax.f32 %v1293_v7, 0.0  ;;  %3492 = vmatpush2.bf16.msra.mxu1 %v12499_v47  ;;  %3290 = vmatprep.subr.bf16.mxu0 %v12500_v16  ;;  %v1102_v55 = vpop.f32.mrf.mxu0  ;;  %v12508_v47 = vld [vmem:[#allocation8_spill] sm:$0xff] }
 0x1c7   : > { %3493 = vmatprep.subr.bf16.mxu1 %v12501_v10  ;;  %v1295_v0 = vpop.f32.mrf.mxu1  ;;  %v8368_v27 = vpack.c.bf16 %v2526_v44, %v2510_v17  ;;  %v2527_v28 = vmax.f32 %v1102_v55, 0.0  ;;  %v12507_v44 = vld [vmem:[#allocation11_spill] sm:$0xff] }
 0x1c8   : > { %v8370_v8 = vpack.c.bf16 %v2528_v18, %v2512_v34  ;;  %v2529_v9 = vmax.f32 %v1295_v0, 0.0  ;;  %v1106_v29 = vpop.f32.mrf.mxu0  ;;  %7231 = vmatmul.mubr.msk.bf16.gmra.mxu0 %vm497_vm0, %v7461_v51  ;;  %v12506_v34 = vld [vmem:[#allocation10_spill] sm:$0xff] }
 0x1c9   : > { %v1299_v5 = vpop.f32.mrf.mxu1  ;;  %7247 = vmatmul.mubr.msk.bf16.gmra.mxu1 %vm497_vm0, %v7461_v51  ;;  %v8375_v63 = vpack.c.bf16 %v2527_v28, %v2511_v37  ;;  %3291 = vmatpush2.bf16.msra.mxu0 %v12502_v36  ;;  %v2542_v45 = vmax.f32 %v1106_v29, 0.0  ;;  %v2335_v28 = vmax.f32 %v8234_v59, 0.0  ;;  %v7462_v51 = vld [vmem:[%s7665_s10 + $0x38] sm:$0xff]   ;;  %v2319_v59 = vmax.f32 %v8230_v39, 0.0 }
 0x1ca   : > { %v8377_v23 = vpack.c.bf16 %v2529_v9, %v2513_v57  ;;  %3494 = vmatpush2.bf16.msra.mxu1 %v12503_v42  ;;  %3292 = vmatprep.subr.bf16.mxu0 %v12504_v14  ;;  %v1108_v4 = vpop.f32.mrf.mxu0  ;;  %v2544_v54 = vmax.f32 %v1299_v5, 0.0  ;;  %v2337_v9 = vmax.f32 %v8236_v62, 0.0  ;;  %v2902_v14 = vld [vmem:[%s8341_s14 + $0x50] sm:$0xff]  ;;  %v2321_v62 = vmax.f32 %v8232_v61, 0.0 }
 0x1cb   : > { %3495 = vmatprep.subr.bf16.mxu1 %v12505_v53  ;;  %v1301_v32 = vpop.f32.mrf.mxu1  ;;  %1806 = vmatprep.mubr.bf16.mxu0 %v12443_v30  ;;  %v2543_v18 = vmax.f32 %v1108_v4, 0.0  ;;  %v2903_v53 = vld [vmem:[%s8341_s14 + $0x58] sm:$0xff]  ;;  %v12512_v4 = vld [vmem:[#allocation4_spill] sm:$0xff] }
 0x1cc   : > { %1999 = vmatprep.mubr.bf16.mxu1 %v12443_v30  ;;  %v1110_v6 = vpop.f32.mrf.mxu0  ;;  %v2545_v33 = vmax.f32 %v1301_v32, 0.0  ;;  %v12513_v32 = vld [vmem:[#allocation5_spill] sm:$0xff]  ;;  %2978 = vperm.xlu0 %7310, %v2902_v14  }
 0x1cd   : > { %v1303_v25 = vpop.f32.mrf.mxu1  ;;  %v2558_v7 = vmax.f32 %v1110_v6, 0.0  ;;  %3293 = vmatpush2.bf16.msra.mxu0 %v12506_v34  ;;  %2983 = vperm.xlu1 %7311, %v2903_v53  }
 0x1ce   : > { %v2560_v17 = vmax.f32 %v1303_v25, 0.0  ;;  %3496 = vmatpush2.bf16.msra.mxu1 %v12507_v44  ;;  %3294 = vmatprep.subr.bf16.mxu0 %v12508_v47  ;;  %v1112_v37 = vpop.f32.mrf.mxu0 }
 0x1cf   : > { %3497 = vmatprep.subr.bf16.mxu1 %v12509_v13  ;;  %v1305_v57 = vpop.f32.mrf.mxu1  ;;  %v8391_v16 = vpack.c.bf16 %v2558_v7, %v2542_v45  ;;  %v2559_v55 = vmax.f32 %v1112_v37, 0.0  ;;  %v2753_v45 = vpack.c.bf16 %v2335_v28, %v2319_v59 }
 0x1d0   : > { %v8393_v10 = vpack.c.bf16 %v2560_v17, %v2544_v54  ;;  %v2561_v0 = vmax.f32 %v1305_v57, 0.0  ;;  %v1116_v29 = vpop.f32.mrf.mxu0  ;;  %7232 = vmatmul.mubr.msk.bf16.gmra.mxu0 %vm497_vm0, %v7462_v51  ;;  %v2755_v54 = vpack.c.bf16 %v2337_v9, %v2321_v62 }
 0x1d1   : > { %v1309_v5 = vpop.f32.mrf.mxu1  ;;  %7248 = vmatmul.mubr.msk.bf16.gmra.mxu1 %vm497_vm0, %v7462_v51  ;;  %v8400_v36 = vpack.c.bf16 %v2559_v55, %v2543_v18  ;;  %3295 = vmatpush2.bf16.msra.mxu0 %v12510_v35  ;;  %v2574_v34 = vmax.f32 %v1116_v29, 0.0  ;;  %v12514_v18 = vld [vmem:[#allocation2_spill] sm:$0xff] }
 0x1d2   : > { %v8402_v42 = vpack.c.bf16 %v2561_v0, %v2545_v33  ;;  %3498 = vmatpush2.bf16.msra.mxu1 %v12511_v31  ;;  %3296 = vmatprep.subr.bf16.mxu0 %v12512_v4  ;;  %v1118_v6 = vpop.f32.mrf.mxu0  ;;  %v2576_v39 = vmax.f32 %v1309_v5, 0.0  ;;  %v12515_v33 = vld [vmem:[#allocation3_spill] sm:$0xff]  ;;  %v2900_v29 = vld [vmem:[%s8341_s14 + $0x40] sm:$0xff]  ;;  %v2898_v4 = vld [vmem:[%s8341_s14 + $0x30] sm:$0xff] }
 0x1d3   : > { %3499 = vmatprep.subr.bf16.mxu1 %v12513_v32  ;;  %v1311_v25 = vpop.f32.mrf.mxu1  ;;  %1816 = vmatprep.mubr.bf16.mxu0 %v12443_v30  ;;  %v2575_v47 = vmax.f32 %v1118_v6, 0.0  ;;  %v2901_v5 = vld [vmem:[%s8341_s14 + $0x48] sm:$0xff]  ;;  %v7463_v31 = vld [vmem:[%s7665_s10 + $0x40] sm:$0xff]   ;;  %v2899_v32 = vld [vmem:[%s8341_s14 + $0x38] sm:$0xff] }
 0x1d4   : > { %2009 = vmatprep.mubr.bf16.mxu1 %v12443_v30  ;;  %v1120_v7 = vpop.f32.mrf.mxu0  ;;  %v2577_v13 = vmax.f32 %v1311_v25, 0.0  ;;  %2968 = vperm.xlu0 %7310, %v2900_v29   ;;  %v7464_v29 = vld [vmem:[%s7665_s10 + $0x48] sm:$0xff]  }
 0x1d5   : > { %v1313_v17 = vpop.f32.mrf.mxu1  ;;  %v2590_v61 = vmax.f32 %v1120_v7, 0.0  ;;  %3297 = vmatpush2.bf16.msra.mxu0 %v12514_v18  ;;  %2973 = vperm.xlu1 %7311, %v2901_v5  }
 0x1d6   : > { %v2592_v44 = vmax.f32 %v1313_v17, 0.0  ;;  %3500 = vmatpush2.bf16.msra.mxu1 %v12515_v33  ;;  %3672 = vmatprep.subr.bf16.mxu0 %v2753_v45  ;;  %v1122_v37 = vpop.f32.mrf.mxu0 }
 0x1d7   : > { %3875 = vmatprep.subr.bf16.mxu1 %v2755_v54  ;;  %v1315_v57 = vpop.f32.mrf.mxu1  ;;  %v8416_v55 = vpack.c.bf16 %v2590_v61, %v2574_v34  ;;  %v2591_v28 = vmax.f32 %v1122_v37, 0.0  ;;  %v2896_v37 = vld [vmem:[%s8341_s14 + $0x20] sm:$0xff] }
 0x1d8   : > { %v8418_v0 = vpack.c.bf16 %v2592_v44, %v2576_v39  ;;  %v2593_v9 = vmax.f32 %v1315_v57, 0.0  ;;  %v1352_v51 = vpop.f32.mrf.mxu0  ;;  %7233 = vmatmul.mubr.msk.bf16.gmra.mxu0 %vm497_vm0, %v7463_v31  ;;  %2958 = vperm.xlu0 %7310, %v2898_v4   ;;  %v2897_v57 = vld [vmem:[%s8341_s14 + $0x28] sm:$0xff] }
 0x1d9   : > { %v1545_v35 = vpop.f32.mrf.mxu1  ;;  %7249 = vmatmul.mubr.msk.bf16.gmra.mxu1 %vm497_vm0, %v7463_v31  ;;  %v8425_v14 = vpack.c.bf16 %v2591_v28, %v2575_v47  ;;  %1826 = vmatprep.mubr.bf16.mxu0 %v12443_v30  ;;  %v2098_v45 = vmax.f32 %v1352_v51, 0.0 }
 0x1da   : > { %v8427_v53 = vpack.c.bf16 %v2593_v9, %v2577_v13  ;;  %2019 = vmatprep.mubr.bf16.mxu1 %v12443_v30  ;;  %v1354_v59 = vpop.f32.mrf.mxu0  ;;  %v2100_v54 = vmax.f32 %v1545_v35, 0.0  ;;  %2963 = vperm.xlu1 %7311, %v2899_v32  }
 0x1db   : > { %v1547_v62 = vpop.f32.mrf.mxu1  ;;  %v2099_v34 = vmax.f32 %v1354_v59, 0.0  ;;  %v2894_v59 = vld [vmem:[%s8341_s14 + $0x10] sm:$0xff] }
 0x1dc   : > { %v1356_v6 = vpop.f32.mrf.mxu0  ;;  %v2101_v39 = vmax.f32 %v1547_v62, 0.0  ;;  %2948 = vperm.xlu0 %7310, %v2896_v37   ;;  %v2895_v62 = vld [vmem:[%s8341_s14 + $0x18] sm:$0xff]  ;;  %v2892_v37 = vld [vmem:[%s8341_s14] sm:$0xff] }
 0x1dd   : > { %v1549_v25 = vpop.f32.mrf.mxu1  ;;  %v2114_v7 = vmax.f32 %v1356_v6, 0.0 }
 0x1de   : > { %v2116_v17 = vmax.f32 %v1549_v25, 0.0  ;;  %v1358_v61 = vpop.f32.mrf.mxu0  ;;  %2953 = vperm.xlu1 %7311, %v2897_v57   ;;  %v2893_v57 = vld [vmem:[%s8341_s14 + $0x8] sm:$0xff] }
 0x1df   : > { %v1551_v44 = vpop.f32.mrf.mxu1  ;;  %v8433_v18 = vpack.c.bf16 %v2114_v7, %v2098_v45  ;;  %v2115_v47 = vmax.f32 %v1358_v61, 0.0 }
 0x1e0   : > { %v8435_v33 = vpack.c.bf16 %v2116_v17, %v2100_v54  ;;  %v2117_v13 = vmax.f32 %v1551_v44, 0.0  ;;  %v1362_v28 = vpop.f32.mrf.mxu0  ;;  %7234 = vmatmul.mubr.msk.bf16.gmra.mxu0 %vm497_vm0, %v7464_v29  ;;  %2938 = vperm.xlu0 %7310, %v2894_v59  }
 0x1e1   : > { %12516 = vst [vmem:[#allocation20_spill] sm:$0xff] %v8433_v18  ;;  %v1555_v9 = vpop.f32.mrf.mxu1  ;;  %7250 = vmatmul.mubr.msk.bf16.gmra.mxu1 %vm497_vm0, %v7464_v29  ;;  %v8442_v5 = vpack.c.bf16 %v2115_v47, %v2099_v34  ;;  %1836 = vmatprep.mubr.bf16.mxu0 %v12443_v30  ;;  %v2130_v6 = vmax.f32 %v1362_v28, 0.0  ;;  %v12522_v28 = vld [vmem:[#allocation28_spill] sm:$0xff] }
 0x1e2   : > { %12517 = vst [vmem:[#allocation21_spill] sm:$0xff] %v8435_v33  ;;  %v8444_v51 = vpack.c.bf16 %v2117_v13, %v2101_v39  ;;  %2029 = vmatprep.mubr.bf16.mxu1 %v12443_v30  ;;  %v1364_v35 = vpop.f32.mrf.mxu0  ;;  %v2132_v25 = vmax.f32 %v1555_v9, 0.0  ;;  %2943 = vperm.xlu1 %7311, %v2895_v62  }
 0x1e3   : > { %12518 = vst [vmem:[#allocation18_spill] sm:$0xff] %v8442_v5  ;;  %v1557_v31 = vpop.f32.mrf.mxu1  ;;  %v2131_v7 = vmax.f32 %v1364_v35, 0.0 }
 0x1e4   : > { %12519 = vst [vmem:[#allocation19_spill] sm:$0xff] %v8444_v51  ;;  %v1366_v4 = vpop.f32.mrf.mxu0  ;;  %v2133_v17 = vmax.f32 %v1557_v31, 0.0  ;;  %2928 = vperm.xlu0 %7310, %v2892_v37   ;;  %v12527_v37 = vld [vmem:[#allocation33_spill] sm:$0xff] }
 0x1e5   : > { %v1559_v32 = vpop.f32.mrf.mxu1  ;;  %v2146_v45 = vmax.f32 %v1366_v4, 0.0 }
 0x1e6   : > { %v2148_v54 = vmax.f32 %v1559_v32, 0.0  ;;  %v1368_v34 = vpop.f32.mrf.mxu0  ;;  %2933 = vperm.xlu1 %7311, %v2893_v57  }
 0x1e7   : > { %v1561_v39 = vpop.f32.mrf.mxu1  ;;  %v8450_v61 = vpack.c.bf16 %v2146_v45, %v2130_v6  ;;  %v2147_v47 = vmax.f32 %v1368_v34, 0.0 }
 0x1e8   : > { %v8452_v44 = vpack.c.bf16 %v2148_v54, %v2132_v25  ;;  %v2149_v13 = vmax.f32 %v1561_v39, 0.0  ;;  %v1372_v29 = vpop.f32.mrf.mxu0  ;;  %7235 = vmatmul.mubr.msk.bf16.gmra.mxu0 %vm497_vm0, %v12522_v28 }
 0x1e9   : > { %12520 = vst [vmem:[#allocation16_spill] sm:$0xff] %v8450_v61  ;;  %v1565_v33 = vpop.f32.mrf.mxu1  ;;  %7251 = vmatmul.mubr.msk.bf16.gmra.mxu1 %vm497_vm0, %v12522_v28  ;;  %v8460_v9 = vpack.c.bf16 %v2147_v47, %v2131_v7  ;;  %1846 = vmatprep.mubr.bf16.mxu0 %v12443_v30  ;;  %v2162_v32 = vmax.f32 %v1372_v29, 0.0  ;;  %v12532_v61 = vld [vmem:[#allocation38_spill] sm:$0xff] }
 0x1ea   : > { %12521 = vst [vmem:[#allocation17_spill] sm:$0xff] %v8452_v44  ;;  %v8462_v35 = vpack.c.bf16 %v2149_v13, %v2133_v17  ;;  %2039 = vmatprep.mubr.bf16.mxu1 %v12443_v30  ;;  %v1374_v31 = vpop.f32.mrf.mxu0  ;;  %v2164_v6 = vmax.f32 %v1565_v33, 0.0 }
 0x1eb   : > { %12523 = vst [vmem:[#allocation14_spill] sm:$0xff] %v8460_v9  ;;  %v1567_v59 = vpop.f32.mrf.mxu1  ;;  %v2163_v54 = vmax.f32 %v1374_v31, 0.0 }
 0x1ec   : > { %12524 = vst [vmem:[#allocation15_spill] sm:$0xff] %v8462_v35  ;;  %v1376_v62 = vpop.f32.mrf.mxu0  ;;  %v2165_v34 = vmax.f32 %v1567_v59, 0.0 }
 0x1ed   : > { %v1569_v4 = vpop.f32.mrf.mxu1  ;;  %v2178_v25 = vmax.f32 %v1376_v62, 0.0 }
 0x1ee   : > { %v2180_v45 = vmax.f32 %v1569_v4, 0.0  ;;  %v1378_v7 = vpop.f32.mrf.mxu0 }
 0x1ef   : > { %v1571_v39 = vpop.f32.mrf.mxu1  ;;  %v8466_v17 = vpack.c.bf16 %v2178_v25, %v2162_v32  ;;  %v2179_v13 = vmax.f32 %v1378_v7, 0.0 }
 0x1f0   : > { %v8468_v47 = vpack.c.bf16 %v2180_v45, %v2164_v6  ;;  %v2181_v28 = vmax.f32 %v1571_v39, 0.0  ;;  %v1382_v18 = vpop.f32.mrf.mxu0  ;;  %7236 = vmatmul.mubr.msk.bf16.gmra.mxu0 %vm497_vm0, %v12527_v37 }
 0x1f1   : > { %12525 = vst [vmem:[#allocation12_spill] sm:$0xff] %v8466_v17  ;;  %v1575_v51 = vpop.f32.mrf.mxu1  ;;  %7252 = vmatmul.mubr.msk.bf16.gmra.mxu1 %vm497_vm0, %v12527_v37  ;;  %v8474_v33 = vpack.c.bf16 %v2179_v13, %v2163_v54  ;;  %1856 = vmatprep.mubr.bf16.mxu0 %v12443_v30  ;;  %v2194_v4 = vmax.f32 %v1382_v18, 0.0  ;;  %v12537_v17 = vld [vmem:[#allocation43_spill] sm:$0xff] }
 0x1f2   : > { %12526 = vst [vmem:[#allocation13_spill] sm:$0xff] %v8468_v47  ;;  %v8476_v57 = vpack.c.bf16 %v2181_v28, %v2165_v34  ;;  %2049 = vmatprep.mubr.bf16.mxu1 %v12443_v30  ;;  %v1384_v29 = vpop.f32.mrf.mxu0  ;;  %v2196_v32 = vmax.f32 %v1575_v51, 0.0 }
 0x1f3   : > { %12528 = vst [vmem:[#allocation10_spill] sm:$0xff] %v8474_v33  ;;  %v1577_v31 = vpop.f32.mrf.mxu1  ;;  %v2195_v45 = vmax.f32 %v1384_v29, 0.0 }
 0x1f4   : > { %12529 = vst [vmem:[#allocation11_spill] sm:$0xff] %v8476_v57  ;;  %v1386_v59 = vpop.f32.mrf.mxu0  ;;  %v2197_v7 = vmax.f32 %v1577_v31, 0.0 }
 0x1f5   : > { %v1579_v62 = vpop.f32.mrf.mxu1  ;;  %v2210_v6 = vmax.f32 %v1386_v59, 0.0 }
 0x1f6   : > { %v2212_v25 = vmax.f32 %v1579_v62, 0.0  ;;  %v1388_v39 = vpop.f32.mrf.mxu0 }
 0x1f7   : > { %v1581_v37 = vpop.f32.mrf.mxu1  ;;  %v8480_v54 = vpack.c.bf16 %v2210_v6, %v2194_v4  ;;  %v2211_v13 = vmax.f32 %v1388_v39, 0.0 }
 0x1f8   : > { %v8482_v34 = vpack.c.bf16 %v2212_v25, %v2196_v32  ;;  %v2213_v28 = vmax.f32 %v1581_v37, 0.0  ;;  %v1392_v5 = vpop.f32.mrf.mxu0  ;;  %7237 = vmatmul.mubr.msk.bf16.gmra.mxu0 %vm497_vm0, %v12532_v61 }
 0x1f9   : > { %12530 = vst [vmem:[#allocation8_spill] sm:$0xff] %v8480_v54  ;;  %v1585_v44 = vpop.f32.mrf.mxu1  ;;  %7253 = vmatmul.mubr.msk.bf16.gmra.mxu1 %vm497_vm0, %v12532_v61  ;;  %v8488_v18 = vpack.c.bf16 %v2211_v13, %v2195_v45  ;;  %1866 = vmatprep.mubr.bf16.mxu0 %v12443_v30  ;;  %v2226_v4 = vmax.f32 %v1392_v5, 0.0 }
 0x1fa   : > { %12531 = vst [vmem:[#allocation9_spill] sm:$0xff] %v8482_v34  ;;  %v8490_v51 = vpack.c.bf16 %v2213_v28, %v2197_v7  ;;  %2059 = vmatprep.mubr.bf16.mxu1 %v12443_v30  ;;  %v1394_v29 = vpop.f32.mrf.mxu0  ;;  %v2228_v32 = vmax.f32 %v1585_v44, 0.0 }
 0x1fb   : > { %12533 = vst [vmem:[#allocation6_spill] sm:$0xff] %v8488_v18  ;;  %v1587_v31 = vpop.f32.mrf.mxu1  ;;  %v2227_v39 = vmax.f32 %v1394_v29, 0.0  ;;  %v2922_v29 = vld [vmem:[%s8341_s14 + $0xf0] sm:$0xff] }
 0x1fc   : > { %12534 = vst [vmem:[#allocation7_spill] sm:$0xff] %v8490_v51  ;;  %v1396_v59 = vpop.f32.mrf.mxu0  ;;  %v2229_v37 = vmax.f32 %v1587_v31, 0.0  ;;  %3078 = vperm.xlu0 %7310, %v2922_v29  }
 0x1fd   : > { %v1589_v62 = vpop.f32.mrf.mxu1  ;;  %v2242_v6 = vmax.f32 %v1396_v59, 0.0 }
 0x1fe   : > { %v2244_v25 = vmax.f32 %v1589_v62, 0.0  ;;  %v1398_v61 = vpop.f32.mrf.mxu0 }
 0x1ff   : > { %v1591_v45 = vpop.f32.mrf.mxu1  ;;  %v8494_v13 = vpack.c.bf16 %v2242_v6, %v2226_v4  ;;  %v2243_v28 = vmax.f32 %v1398_v61, 0.0 }
 0x200   : > { %v8496_v7 = vpack.c.bf16 %v2244_v25, %v2228_v32  ;;  %v2245_v35 = vmax.f32 %v1591_v45, 0.0  ;;  %v1402_v9 = vpop.f32.mrf.mxu0  ;;  %7238 = vmatmul.mubr.msk.bf16.gmra.mxu0 %vm497_vm0, %v12537_v17  ;;  %v2920_v45 = vld [vmem:[%s8341_s14 + $0xe0] sm:$0xff] }
 0x201   : > { %12535 = vst [vmem:[#allocation4_spill] sm:$0xff] %v8494_v13  ;;  %v1595_v47 = vpop.f32.mrf.mxu1  ;;  %7254 = vmatmul.mubr.msk.bf16.gmra.mxu1 %vm497_vm0, %v12537_v17  ;;  %v8502_v5 = vpack.c.bf16 %v2243_v28, %v2227_v39  ;;  %1876 = vmatprep.mubr.bf16.mxu0 %v12443_v30  ;;  %v2258_v32 = vmax.f32 %v1402_v9, 0.0  ;;  %v2923_v17 = vld [vmem:[%s8341_s14 + $0xf8] sm:$0xff] }
 0x202   : > { %12536 = vst [vmem:[#allocation5_spill] sm:$0xff] %v8496_v7  ;;  %v8504_v44 = vpack.c.bf16 %v2245_v35, %v2229_v37  ;;  %2069 = vmatprep.mubr.bf16.mxu1 %v12443_v30  ;;  %v1404_v31 = vpop.f32.mrf.mxu0  ;;  %v2260_v6 = vmax.f32 %v1595_v47, 0.0  ;;  %3083 = vperm.xlu1 %7311, %v2923_v17  }
 0x203   : > { %12538 = vst [vmem:[#allocation2_spill] sm:$0xff] %v8502_v5  ;;  %v1597_v59 = vpop.f32.mrf.mxu1  ;;  %v2259_v39 = vmax.f32 %v1404_v31, 0.0  ;;  %3068 = vperm.xlu0 %7310, %v2920_v45   ;;  %v7328_v45 = vld [vmem:[%s12257_s3 + $0x4] ss:$8 sps:$4 sm:$0xff]  }
 0x204   : > { %12539 = vst [vmem:[#allocation3_spill] sm:$0xff] %v8504_v44  ;;  %v1406_v62 = vpop.f32.mrf.mxu0  ;;  %v2261_v28 = vmax.f32 %v1597_v59, 0.0  ;;  %v12546_v44 = vld [vmem:[#allocation51_spill] sm:$0xff] }
 0x205   : > { %v1599_v4 = vpop.f32.mrf.mxu1  ;;  %v2274_v25 = vmax.f32 %v1406_v62, 0.0  ;;  %v12542_v62 = vld [vmem:[#allocation48_spill] sm:$0xff] }
 0x206   : > { %v2276_v61 = vmax.f32 %v1599_v4, 0.0  ;;  %v1408_v35 = vpop.f32.mrf.mxu0  ;;  %v2921_v4 = vld [vmem:[%s8341_s14 + $0xe8] sm:$0xff] }
 0x207   : > { %v1601_v37 = vpop.f32.mrf.mxu1  ;;  %v8511_v57 = vpack.c.bf16 %v2274_v25, %v2258_v32  ;;  %v2275_v29 = vmax.f32 %v1408_v35, 0.0  ;;  %v2918_v32 = vld [vmem:[%s8341_s14 + $0xd0] sm:$0xff]  ;;  %3073 = vperm.xlu1 %7311, %v2921_v4  }
 0x208   : > { %v8513_v33 = vpack.c.bf16 %v2276_v61, %v2260_v6  ;;  %v2277_v34 = vmax.f32 %v1601_v37, 0.0  ;;  %v1412_v9 = vpop.f32.mrf.mxu0  ;;  %7239 = vmatmul.mubr.msk.bf16.gmra.mxu0 %vm497_vm0, %v12542_v62  ;;  %3058 = vperm.xlu0 %7310, %v2918_v32   ;;  %v2919_v37 = vld [vmem:[%s8341_s14 + $0xd8] sm:$0xff] }
 0x209   : > { %12540 = vst [vmem:[#allocation28_spill] sm:$0xff] %v8511_v57  ;;  %v1605_v47 = vpop.f32.mrf.mxu1  ;;  %7255 = vmatmul.mubr.msk.bf16.gmra.mxu1 %vm497_vm0, %v12542_v62  ;;  %v8519_v31 = vpack.c.bf16 %v2275_v29, %v2259_v39  ;;  %1886 = vmatprep.mubr.bf16.mxu0 %v12443_v30  ;;  %v2916_v29 = vld [vmem:[%s8341_s14 + $0xc0] sm:$0xff] }
 0x20a   : > { %12541 = vst [vmem:[#allocation33_spill] sm:$0xff] %v8513_v33  ;;  %v8521_v59 = vpack.c.bf16 %v2277_v34, %v2261_v28  ;;  %2079 = vmatprep.mubr.bf16.mxu1 %v12443_v30  ;;  %v1414_v6 = vpop.f32.mrf.mxu0  ;;  %v2290_v34 = vmax.f32 %v1412_v9, 0.0  ;;  %v2292_v39 = vmax.f32 %v1605_v47, 0.0  ;;  %v12548_v33 = vld [vmem:[#allocation49_spill] sm:$0xff] }
 0x20b   : > { %12543 = vst [vmem:[#allocation38_spill] sm:$0xff] %v8519_v31  ;;  %v1607_v25 = vpop.f32.mrf.mxu1  ;;  %v2291_v62 = vmax.f32 %v1414_v6, 0.0  ;;  %3063 = vperm.xlu1 %7311, %v2919_v37   ;;  %v2912_v37 = vld [vmem:[%s8341_s14 + $0xa0] sm:$0xff] }
 0x20c   : > { %12544 = vst [vmem:[#allocation43_spill] sm:$0xff] %v8521_v59  ;;  %v1416_v61 = vpop.f32.mrf.mxu0  ;;  %v2293_v30 = vmax.f32 %v1607_v25, 0.0  ;;  %3048 = vperm.xlu0 %7310, %v2916_v29  }
 0x20d   : > { %v1609_v17 = vpop.f32.mrf.mxu1  ;;  %v2306_v28 = vmax.f32 %v1416_v61, 0.0  ;;  %v2917_v61 = vld [vmem:[%s8341_s14 + $0xc8] sm:$0xff] }
 0x20e   : > { %v2308_v35 = vmax.f32 %v1609_v17, 0.0  ;;  %v1418_v54 = vpop.f32.mrf.mxu0  ;;  %v2914_v17 = vld [vmem:[%s8341_s14 + $0xb0] sm:$0xff] }
 0x20f   : > { %v1611_v51 = vpop.f32.mrf.mxu1  ;;  %v8532_v4 = vpack.c.bf16 %v2306_v28, %v2290_v34  ;;  %v2307_v18 = vmax.f32 %v1418_v54, 0.0  ;;  %3053 = vperm.xlu1 %7311, %v2917_v61  }
 0x210   : > { %v8534_v32 = vpack.c.bf16 %v2308_v35, %v2292_v39  ;;  %v2309_v7 = vmax.f32 %v1611_v51, 0.0  ;;  %v1422_v9 = vpop.f32.mrf.mxu0  ;;  %7240 = vmatmul.mubr.msk.bf16.gmra.mxu0 %vm497_vm0, %v8218_v58  ;;  %3038 = vperm.xlu0 %7310, %v2914_v17  }
 0x211   : > { %v1615_v47 = vpop.f32.mrf.mxu1  ;;  %7256 = vmatmul.mubr.msk.bf16.gmra.mxu1 %vm497_vm0, %v8218_v58  ;;  %v8540_v6 = vpack.c.bf16 %v2307_v18, %v2291_v62  ;;  %3298 = vmatprep.mubr.bf16.mxu0 %v7328_v45  ;;  %v7330_v58 = vld [vmem:[%s12257_s3] ss:$8 sps:$4 sm:$0xff]   ;;  %v2322_v18 = vmax.f32 %v1422_v9, 0.0  ;;  %v7331_v9 = vld [vmem:[%s12257_s3 + $0x14] ss:$8 sps:$4 sm:$0xff]  }
 0x212   : > { %v8542_v25 = vpack.c.bf16 %v2309_v7, %v2293_v30  ;;  %3501 = vmatprep.mubr.bf16.mxu1 %v7328_v45  ;;  %v8546_v54 = vpop.f32.mrf.mxu0  ;;  %v2324_v7 = vmax.f32 %v1615_v47, 0.0  ;;  %v2915_v45 = vld [vmem:[%s8341_s14 + $0xb8] sm:$0xff] }
 0x213   : > { %v8548_v51 = vpop.f32.mrf.mxu1  ;;  %3043 = vperm.xlu1 %7311, %v2915_v45  }
 0x214   : > { %v1426_v34 = vpop.f32.mrf.mxu0  ;;  %3028 = vperm.xlu0 %7310, %v2912_v37  }
 0x215   : > { %v1619_v39 = vpop.f32.mrf.mxu1  ;;  %v2338_v28 = vmax.f32 %v1426_v34, 0.0  ;;  %v2913_v34 = vld [vmem:[%s8341_s14 + $0xa8] sm:$0xff] }
 0x216   : > { %v2340_v35 = vmax.f32 %v1619_v39, 0.0  ;;  %v8555_v29 = vpop.f32.mrf.mxu0  ;;  %v2910_v39 = vld [vmem:[%s8341_s14 + $0x90] sm:$0xff] }
 0x217   : > { %v8557_v62 = vpop.f32.mrf.mxu1  ;;  %v8559_v30 = vpack.c.bf16 %v2338_v28, %v2322_v18  ;;  %v12545_v18 = vld [vmem:[#allocation53_spill] sm:$0xff]  ;;  %3033 = vperm.xlu1 %7311, %v2913_v34  }
 0x218   : > { %v8561_v61 = vpack.c.bf16 %v2340_v35, %v2324_v7  ;;  %v1432_v47 = vpop.f32.mrf.mxu0  ;;  %3299 = vmatmul.mubr.bf16.vlgmr.msra.gmra.mxu0 %v7330_v58  ;;  %3018 = vperm.xlu0 %7310, %v2910_v39  }
 0x219   : > { %v1625_v17 = vpop.f32.mrf.mxu1  ;;  %3502 = vmatmul.mubr.bf16.vlgmr.msra.gmra.mxu1 %v7330_v58  ;;  %3673 = vmatpush1.bf16.msra.mxu0 %v8238_v20  ;;  %v7333_v58 = vld [vmem:[%s12257_s3 + $0x10] ss:$8 sps:$4 sm:$0xff]   ;;  %v2354_v20 = vmax.f32 %v1432_v47, 0.0 }
 0x21a   : > { %3876 = vmatpush1.bf16.msra.mxu1 %v8240_v60  ;;  %3674 = vmatprep.subr.bf16.mxu0 %v8224_v22  ;;  %v1434_v7 = vpop.f32.mrf.mxu0  ;;  %v2356_v60 = vmax.f32 %v1625_v17, 0.0  ;;  %v12547_v22 = vld [vmem:[#allocation52_spill] sm:$0xff] }
 0x21b   : > { %3877 = vmatprep.subr.bf16.mxu1 %v12545_v18  ;;  %v1627_v28 = vpop.f32.mrf.mxu1  ;;  %3308 = vmatprep.mubr.bf16.mxu0 %v7331_v9  ;;  %v2355_v18 = vmax.f32 %v1434_v7, 0.0 }
 0x21c   : > { %3511 = vmatprep.mubr.bf16.mxu1 %v7331_v9  ;;  %v1436_v35 = vpop.f32.mrf.mxu0  ;;  %v2357_v5 = vmax.f32 %v1627_v28, 0.0  ;;  %v12549_v9 = vld [vmem:[#allocation50_spill] sm:$0xff] }
 0x21d   : > { %v1629_v45 = vpop.f32.mrf.mxu1  ;;  %v2370_v37 = vmax.f32 %v1436_v35, 0.0  ;;  %3675 = vmatpush1.bf16.msra.mxu0 %v12546_v44  ;;  %v7334_v44 = vld [vmem:[%s12257_s3 + $0x24] ss:$8 sps:$4 sm:$0xff]  }
 0x21e   : > { %v2372_v13 = vmax.f32 %v1629_v45, 0.0  ;;  %3878 = vmatpush1.bf16.msra.mxu1 %v12547_v22  ;;  %3676 = vmatprep.subr.bf16.mxu0 %v12548_v33  ;;  %v1438_v57 = vpop.f32.mrf.mxu0  ;;  %v12554_v45 = vld [vmem:[#allocation46_spill] sm:$0xff] }
 0x21f   : > { %3879 = vmatprep.subr.bf16.mxu1 %v12549_v9  ;;  %v1631_v59 = vpop.f32.mrf.mxu1  ;;  %v8579_v34 = vpack.c.bf16 %v2370_v37, %v2354_v20  ;;  %v2371_v17 = vmax.f32 %v1438_v57, 0.0  ;;  %v12555_v20 = vld [vmem:[#allocation47_spill] sm:$0xff]  ;;  %v12556_v57 = vld [vmem:[#allocation44_spill] sm:$0xff] }
 0x220   : > { %v8581_v47 = vpack.c.bf16 %v2372_v13, %v2356_v60  ;;  %v2373_v39 = vmax.f32 %v1631_v59, 0.0  ;;  %v1442_v7 = vpop.f32.mrf.mxu0  ;;  %3309 = vmatmul.mubr.bf16.gmra.mxu0 %v7333_v58  ;;  %v2911_v13 = vld [vmem:[%s8341_s14 + $0x98] sm:$0xff]  ;;  %v2908_v60 = vld [vmem:[%s8341_s14 + $0x80] sm:$0xff] }
 0x221   : > { %12550 = vst [vmem:[#allocation48_spill] sm:$0xff] %v8579_v34  ;;  %v1635_v28 = vpop.f32.mrf.mxu1  ;;  %3512 = vmatmul.mubr.bf16.gmra.mxu1 %v7333_v58  ;;  %v8586_v33 = vpack.c.bf16 %v2371_v17, %v2355_v18  ;;  %3677 = vmatpush1.bf16.msra.mxu0 %v12554_v45  ;;  %v12557_v59 = vld [vmem:[#allocation45_spill] sm:$0xff]  ;;  %v2386_v18 = vmax.f32 %v1442_v7, 0.0  ;;  %v12560_v34 = vld [vmem:[#allocation39_spill] sm:$0xff] }
 0x222   : > { %12551 = vst [vmem:[#allocation53_spill] sm:$0xff] %v8581_v47  ;;  %v8588_v35 = vpack.c.bf16 %v2373_v39, %v2357_v5  ;;  %3880 = vmatpush1.bf16.msra.mxu1 %v12555_v20  ;;  %3678 = vmatprep.subr.bf16.mxu0 %v12556_v57  ;;  %v1444_v37 = vpop.f32.mrf.mxu0  ;;  %v7336_v5 = vld [vmem:[%s12257_s3 + $0x20] ss:$8 sps:$4 sm:$0xff]   ;;  %v2388_v17 = vmax.f32 %v1635_v28, 0.0  ;;  %v12558_v20 = vld [vmem:[#allocation41_spill] sm:$0xff] }
 0x223   : > { %12552 = vst [vmem:[#allocation51_spill] sm:$0xff] %v8586_v33  ;;  %3881 = vmatprep.subr.bf16.mxu1 %v12557_v59  ;;  %v1637_v22 = vpop.f32.mrf.mxu1  ;;  %3318 = vmatprep.mubr.bf16.mxu0 %v7334_v44  ;;  %v12559_v57 = vld [vmem:[#allocation42_spill] sm:$0xff]  ;;  %v2387_v59 = vmax.f32 %v1444_v37, 0.0 }
 0x224   : > { %12553 = vst [vmem:[#allocation52_spill] sm:$0xff] %v8588_v35  ;;  %3521 = vmatprep.mubr.bf16.mxu1 %v7334_v44  ;;  %v1446_v9 = vpop.f32.mrf.mxu0  ;;  %3023 = vperm.xlu1 %7311, %v2911_v13   ;;  %v2389_v47 = vmax.f32 %v1637_v22, 0.0  ;;  %v12561_v44 = vld [vmem:[#allocation40_spill] sm:$0xff] }
 0x225   : > { %v1639_v58 = vpop.f32.mrf.mxu1  ;;  %3008 = vperm.xlu0 %7310, %v2908_v60   ;;  %v2402_v39 = vmax.f32 %v1446_v9, 0.0  ;;  %3679 = vmatpush1.bf16.msra.mxu0 %v12558_v20  ;;  %v7337_v60 = vld [vmem:[%s12257_s3 + $0x34] ss:$8 sps:$4 sm:$0xff]  }
 0x226   : > { %v2404_v45 = vmax.f32 %v1639_v58, 0.0  ;;  %3882 = vmatpush1.bf16.msra.mxu1 %v12559_v57  ;;  %3680 = vmatprep.subr.bf16.mxu0 %v12560_v34  ;;  %v1448_v35 = vpop.f32.mrf.mxu0  ;;  %v12566_v58 = vld [vmem:[#allocation36_spill] sm:$0xff] }
 0x227   : > { %3883 = vmatprep.subr.bf16.mxu1 %v12561_v44  ;;  %v1641_v33 = vpop.f32.mrf.mxu1  ;;  %v8603_v31 = vpack.c.bf16 %v2402_v39, %v2386_v18  ;;  %v2403_v7 = vmax.f32 %v1448_v35, 0.0  ;;  %v12567_v18 = vld [vmem:[#allocation37_spill] sm:$0xff]  ;;  %v12568_v39 = vld [vmem:[#allocation34_spill] sm:$0xff] }
 0x228   : > { %v8605_v13 = vpack.c.bf16 %v2404_v45, %v2388_v17  ;;  %v2405_v28 = vmax.f32 %v1641_v33, 0.0  ;;  %v1452_v9 = vpop.f32.mrf.mxu0  ;;  %3319 = vmatmul.mubr.bf16.gmra.mxu0 %v7336_v5  ;;  %v2909_v17 = vld [vmem:[%s8341_s14 + $0x88] sm:$0xff] }
 0x229   : > { %12562 = vst [vmem:[#allocation49_spill] sm:$0xff] %v8603_v31  ;;  %v1645_v37 = vpop.f32.mrf.mxu1  ;;  %3522 = vmatmul.mubr.bf16.gmra.mxu1 %v7336_v5  ;;  %v8610_v34 = vpack.c.bf16 %v2403_v7, %v2387_v59  ;;  %3681 = vmatpush1.bf16.msra.mxu0 %v12566_v58  ;;  %v12569_v33 = vld [vmem:[#allocation35_spill] sm:$0xff]  ;;  %v2418_v5 = vmax.f32 %v1452_v9, 0.0  ;;  %v12571_v58 = vld [vmem:[#allocation32_spill] sm:$0xff] }
 0x22a   : > { %12563 = vst [vmem:[#allocation50_spill] sm:$0xff] %v8605_v13  ;;  %v8612_v22 = vpack.c.bf16 %v2405_v28, %v2389_v47  ;;  %3884 = vmatpush1.bf16.msra.mxu1 %v12567_v18  ;;  %3682 = vmatprep.subr.bf16.mxu0 %v12568_v39  ;;  %v1454_v35 = vpop.f32.mrf.mxu0  ;;  %v7339_v47 = vld [vmem:[%s12257_s3 + $0x30] ss:$8 sps:$4 sm:$0xff]   ;;  %v2420_v59 = vmax.f32 %v1645_v37, 0.0  ;;  %v12570_v28 = vld [vmem:[#allocation31_spill] sm:$0xff] }
 0x22b   : > { %12564 = vst [vmem:[#allocation46_spill] sm:$0xff] %v8610_v34  ;;  %3885 = vmatprep.subr.bf16.mxu1 %v12569_v33  ;;  %v1647_v45 = vpop.f32.mrf.mxu1  ;;  %3328 = vmatprep.mubr.bf16.mxu0 %v7337_v60  ;;  %v2419_v18 = vmax.f32 %v1454_v35, 0.0  ;;  %v12572_v33 = vld [vmem:[#allocation29_spill] sm:$0xff] }
 0x22c   : > { %12565 = vst [vmem:[#allocation47_spill] sm:$0xff] %v8612_v22  ;;  %3531 = vmatprep.mubr.bf16.mxu1 %v7337_v60  ;;  %v1456_v20 = vpop.f32.mrf.mxu0  ;;  %3013 = vperm.xlu1 %7311, %v2909_v17   ;;  %v2421_v39 = vmax.f32 %v1647_v45, 0.0  ;;  %v12573_v60 = vld [vmem:[#allocation30_spill] sm:$0xff] }
 0x22d   : > { %v1649_v57 = vpop.f32.mrf.mxu1  ;;  %v2434_v44 = vmax.f32 %v1456_v20, 0.0  ;;  %3683 = vmatpush1.bf16.msra.mxu0 %v12570_v28  ;;  %v7340_v17 = vld [vmem:[%s12257_s3 + $0x44] ss:$8 sps:$4 sm:$0xff]  }
 0x22e   : > { %v2436_v7 = vmax.f32 %v1649_v57, 0.0  ;;  %3886 = vmatpush1.bf16.msra.mxu1 %v12571_v58  ;;  %3684 = vmatprep.subr.bf16.mxu0 %v12572_v33  ;;  %v1458_v13 = vpop.f32.mrf.mxu0  ;;  %v12575_v28 = vld [vmem:[#allocation26_spill] sm:$0xff] }
 0x22f   : > { %3887 = vmatprep.subr.bf16.mxu1 %v12573_v60  ;;  %v1651_v31 = vpop.f32.mrf.mxu1  ;;  %v8626_v22 = vpack.c.bf16 %v2434_v44, %v2418_v5  ;;  %v2435_v9 = vmax.f32 %v1458_v13, 0.0  ;;  %v12576_v5 = vld [vmem:[#allocation27_spill] sm:$0xff]  ;;  %v12578_v13 = vld [vmem:[#allocation25_spill] sm:$0xff] }
 0x230   : > { %v8628_v34 = vpack.c.bf16 %v2436_v7, %v2420_v59  ;;  %v2437_v37 = vmax.f32 %v1651_v31, 0.0  ;;  %v1462_v20 = vpop.f32.mrf.mxu0  ;;  %3329 = vmatmul.mubr.bf16.gmra.mxu0 %v7339_v47  ;;  %v12577_v59 = vld [vmem:[#allocation24_spill] sm:$0xff] }
 0x231   : > { %v1655_v57 = vpop.f32.mrf.mxu1  ;;  %3532 = vmatmul.mubr.bf16.gmra.mxu1 %v7339_v47  ;;  %v8633_v35 = vpack.c.bf16 %v2435_v9, %v2419_v18  ;;  %3685 = vmatpush1.bf16.msra.mxu0 %v12575_v28  ;;  %v7342_v47 = vld [vmem:[%s12257_s3 + $0x40] ss:$8 sps:$4 sm:$0xff]   ;;  %v2450_v18 = vmax.f32 %v1462_v20, 0.0 }
 0x232   : > { %12574 = vst [vmem:[#allocation44_spill] sm:$0xff] %v8628_v34  ;;  %v8635_v45 = vpack.c.bf16 %v2437_v37, %v2421_v39  ;;  %3888 = vmatpush1.bf16.msra.mxu1 %v12576_v5  ;;  %3686 = vmatprep.subr.bf16.mxu0 %v12577_v59  ;;  %v1464_v31 = vpop.f32.mrf.mxu0  ;;  %v2452_v39 = vmax.f32 %v1655_v57, 0.0  ;;  %v12579_v9 = vld [vmem:[#allocation22_spill] sm:$0xff]  ;;  %v12580_v37 = vld [vmem:[#allocation23_spill] sm:$0xff] }
 0x233   : > { %3889 = vmatprep.subr.bf16.mxu1 %v12578_v13  ;;  %v1657_v44 = vpop.f32.mrf.mxu1  ;;  %3338 = vmatprep.mubr.bf16.mxu0 %v7340_v17  ;;  %v2451_v28 = vmax.f32 %v1464_v31, 0.0 }
 0x234   : > { %3541 = vmatprep.mubr.bf16.mxu1 %v7340_v17  ;;  %v1466_v7 = vpop.f32.mrf.mxu0  ;;  %v2453_v5 = vmax.f32 %v1657_v44, 0.0 }
 0x235   : > { %v1659_v58 = vpop.f32.mrf.mxu1  ;;  %v2466_v33 = vmax.f32 %v1466_v7, 0.0  ;;  %3687 = vmatpush1.bf16.msra.mxu0 %v12579_v9  ;;  %v7343_v7 = vld [vmem:[%s12257_s3 + $0x54] ss:$8 sps:$4 sm:$0xff]  }
 0x236   : > { %v2468_v60 = vmax.f32 %v1659_v58, 0.0  ;;  %3890 = vmatpush1.bf16.msra.mxu1 %v12580_v37  ;;  %3688 = vmatprep.subr.bf16.mxu0 %v8425_v14  ;;  %v1468_v17 = vpop.f32.mrf.mxu0 }
 0x237   : > { %3891 = vmatprep.subr.bf16.mxu1 %v8427_v53  ;;  %v1661_v59 = vpop.f32.mrf.mxu1  ;;  %v8648_v13 = vpack.c.bf16 %v2466_v33, %v2450_v18  ;;  %v2467_v20 = vmax.f32 %v1468_v17, 0.0 }
 0x238   : > { %v8650_v34 = vpack.c.bf16 %v2468_v60, %v2452_v39  ;;  %v2469_v57 = vmax.f32 %v1661_v59, 0.0  ;;  %v1472_v58 = vpop.f32.mrf.mxu0  ;;  %3339 = vmatmul.mubr.bf16.gmra.mxu0 %v7342_v47 }
 0x239   : > { %v1665_v9 = vpop.f32.mrf.mxu1  ;;  %3542 = vmatmul.mubr.bf16.gmra.mxu1 %v7342_v47  ;;  %v8655_v31 = vpack.c.bf16 %v2467_v20, %v2451_v28  ;;  %3689 = vmatpush2.bf16.msra.mxu0 %v8416_v55  ;;  %v7345_v47 = vld [vmem:[%s12257_s3 + $0x50] ss:$8 sps:$4 sm:$0xff]   ;;  %v2482_v33 = vmax.f32 %v1472_v58, 0.0 }
 0x23a   : > { %v8657_v14 = vpack.c.bf16 %v2469_v57, %v2453_v5  ;;  %3892 = vmatpush2.bf16.msra.mxu1 %v8418_v0  ;;  %3690 = vmatprep.subr.bf16.mxu0 %v8400_v36  ;;  %v1474_v53 = vpop.f32.mrf.mxu0  ;;  %v2484_v60 = vmax.f32 %v1665_v9, 0.0 }
 0x23b   : > { %3893 = vmatprep.subr.bf16.mxu1 %v8402_v42  ;;  %v1667_v44 = vpop.f32.mrf.mxu1  ;;  %3348 = vmatprep.mubr.bf16.mxu0 %v7343_v7  ;;  %v2483_v36 = vmax.f32 %v1474_v53, 0.0 }
 0x23c   : > { %3551 = vmatprep.mubr.bf16.mxu1 %v7343_v7  ;;  %v1476_v18 = vpop.f32.mrf.mxu0  ;;  %v2485_v42 = vmax.f32 %v1667_v44, 0.0  ;;  %v7348_v44 = vld [vmem:[%s12257_s3 + $0x60] ss:$8 sps:$4 sm:$0xff]  }
 0x23d   : > { %v1669_v39 = vpop.f32.mrf.mxu1  ;;  %v2498_v37 = vmax.f32 %v1476_v18, 0.0  ;;  %3691 = vmatpush2.bf16.msra.mxu0 %v8391_v16  ;;  %v7346_v16 = vld [vmem:[%s12257_s3 + $0x64] ss:$8 sps:$4 sm:$0xff]  }
 0x23e   : > { %v2500_v55 = vmax.f32 %v1669_v39, 0.0  ;;  %3894 = vmatpush2.bf16.msra.mxu1 %v8393_v10  ;;  %3692 = vmatprep.subr.bf16.mxu0 %v8375_v63  ;;  %v1478_v0 = vpop.f32.mrf.mxu0 }
 0x23f   : > { %3895 = vmatprep.subr.bf16.mxu1 %v8377_v23  ;;  %v1671_v28 = vpop.f32.mrf.mxu1  ;;  %v8670_v5 = vpack.c.bf16 %v2498_v37, %v2482_v33  ;;  %v2499_v59 = vmax.f32 %v1478_v0, 0.0 }
 0x240   : > { %v8672_v17 = vpack.c.bf16 %v2500_v55, %v2484_v60  ;;  %v2501_v20 = vmax.f32 %v1671_v28, 0.0  ;;  %v1482_v57 = vpop.f32.mrf.mxu0  ;;  %3349 = vmatmul.mubr.bf16.gmra.mxu0 %v7345_v47 }
 0x241   : > { %v1675_v10 = vpop.f32.mrf.mxu1  ;;  %3552 = vmatmul.mubr.bf16.gmra.mxu1 %v7345_v47  ;;  %v8677_v7 = vpack.c.bf16 %v2499_v59, %v2483_v36  ;;  %3693 = vmatpush2.bf16.msra.mxu0 %v8368_v27  ;;  %v2514_v18 = vmax.f32 %v1482_v57, 0.0 }
 0x242   : > { %v8679_v63 = vpack.c.bf16 %v2501_v20, %v2485_v42  ;;  %3896 = vmatpush2.bf16.msra.mxu1 %v8370_v8  ;;  %3694 = vmatprep.subr.bf16.mxu0 %v8352_v3  ;;  %v1484_v23 = vpop.f32.mrf.mxu0  ;;  %v2516_v39 = vmax.f32 %v1675_v10, 0.0 }
 0x243   : > { %3897 = vmatprep.subr.bf16.mxu1 %v8354_v43  ;;  %v1677_v58 = vpop.f32.mrf.mxu1  ;;  %3358 = vmatprep.mubr.bf16.mxu0 %v7346_v16  ;;  %v2515_v3 = vmax.f32 %v1484_v23, 0.0 }
 0x244   : > { %3561 = vmatprep.mubr.bf16.mxu1 %v7346_v16  ;;  %v1486_v9 = vpop.f32.mrf.mxu0  ;;  %v2517_v43 = vmax.f32 %v1677_v58, 0.0  ;;  %v7351_v16 = vld [vmem:[%s12257_s3 + $0x70] ss:$8 sps:$4 sm:$0xff]  }
 0x245   : > { %v1679_v53 = vpop.f32.mrf.mxu1  ;;  %v2530_v47 = vmax.f32 %v1486_v9, 0.0  ;;  %3695 = vmatpush2.bf16.msra.mxu0 %v8345_v19  ;;  %v7349_v19 = vld [vmem:[%s12257_s3 + $0x74] ss:$8 sps:$4 sm:$0xff]  }
 0x246   : > { %v2532_v27 = vmax.f32 %v1679_v53, 0.0  ;;  %3898 = vmatpush2.bf16.msra.mxu1 %v8347_v12  ;;  %3696 = vmatprep.subr.bf16.mxu0 %v8325_v11  ;;  %v1488_v8 = vpop.f32.mrf.mxu0 }
 0x247   : > { %3899 = vmatprep.subr.bf16.mxu1 %v8327_v48  ;;  %v1681_v33 = vpop.f32.mrf.mxu1  ;;  %v8692_v60 = vpack.c.bf16 %v2530_v47, %v2514_v18  ;;  %v2531_v55 = vmax.f32 %v1488_v8, 0.0 }
 0x248   : > { %v8694_v37 = vpack.c.bf16 %v2532_v27, %v2516_v39  ;;  %v2533_v36 = vmax.f32 %v1681_v33, 0.0  ;;  %v1492_v42 = vpop.f32.mrf.mxu0  ;;  %3359 = vmatmul.mubr.bf16.gmra.mxu0 %v7348_v44  ;;  %v2341_v39 = vmax.f32 %v8557_v62, 0.0 }
 0x249   : > { %v1685_v12 = vpop.f32.mrf.mxu1  ;;  %3562 = vmatmul.mubr.bf16.gmra.mxu1 %v7348_v44  ;;  %v8699_v0 = vpack.c.bf16 %v2531_v55, %v2515_v3  ;;  %3697 = vmatpush2.bf16.msra.mxu0 %v8318_v50  ;;  %v2546_v57 = vmax.f32 %v1492_v42, 0.0  ;;  %v2323_v3 = vmax.f32 %v8546_v54, 0.0 }
 0x24a   : > { %v8701_v11 = vpack.c.bf16 %v2533_v36, %v2517_v43  ;;  %3900 = vmatpush2.bf16.msra.mxu1 %v8320_v41  ;;  %3698 = vmatprep.subr.bf16.mxu0 %v8304_v2  ;;  %v1494_v48 = vpop.f32.mrf.mxu0  ;;  %v2548_v10 = vmax.f32 %v1685_v12, 0.0  ;;  %v2325_v43 = vmax.f32 %v8548_v51, 0.0 }
 0x24b   : > { %3901 = vmatprep.subr.bf16.mxu1 %v8306_v52  ;;  %v1687_v28 = vpop.f32.mrf.mxu1  ;;  %3368 = vmatprep.mubr.bf16.mxu0 %v7349_v19  ;;  %v2547_v2 = vmax.f32 %v1494_v48, 0.0 }
 0x24c   : > { %3571 = vmatprep.mubr.bf16.mxu1 %v7349_v19  ;;  %v1496_v59 = vpop.f32.mrf.mxu0  ;;  %v2549_v52 = vmax.f32 %v1687_v28, 0.0  ;;  %v2759_v33 = vpack.c.bf16 %v2341_v39, %v2325_v43  ;;  %v2924_v39 = vld [vmem:[%s8341_s14 + $0x100] sm:$0xff] }
 0x24d   : > { %v1689_v20 = vpop.f32.mrf.mxu1  ;;  %v2562_v23 = vmax.f32 %v1496_v59, 0.0  ;;  %3699 = vmatpush2.bf16.msra.mxu0 %v8297_v46  ;;  %v7352_v46 = vld [vmem:[%s12257_s3 + $0x84] ss:$8 sps:$4 sm:$0xff]   ;;  %3088 = vperm.xlu0 %7310, %v2924_v39  }
 0x24e   : > { %v2564_v50 = vmax.f32 %v1689_v20, 0.0  ;;  %3902 = vmatpush2.bf16.msra.mxu1 %v8299_v38  ;;  %3700 = vmatprep.subr.bf16.mxu0 %v8283_v1  ;;  %v1498_v41 = vpop.f32.mrf.mxu0  ;;  %v2339_v38 = vmax.f32 %v8555_v29, 0.0 }
 0x24f   : > { %3903 = vmatprep.subr.bf16.mxu1 %v8285_v49  ;;  %v1691_v58 = vpop.f32.mrf.mxu1  ;;  %v8714_v9 = vpack.c.bf16 %v2562_v23, %v2546_v57  ;;  %v2563_v44 = vmax.f32 %v1498_v41, 0.0  ;;  %v7357_v41 = vld [vmem:[%s12257_s3 + $0x90] ss:$8 sps:$4 sm:$0xff]  }
 0x250   : > { %v8716_v53 = vpack.c.bf16 %v2564_v50, %v2548_v10  ;;  %v2565_v18 = vmax.f32 %v1691_v58, 0.0  ;;  %v1502_v47 = vpop.f32.mrf.mxu0  ;;  %3369 = vmatmul.mubr.bf16.gmra.mxu0 %v7351_v16  ;;  %v2757_v8 = vpack.c.bf16 %v2339_v38, %v2323_v3  ;;  %v7358_v58 = vld [vmem:[%s12257_s3 + $0xa4] ss:$8 sps:$4 sm:$0xff]  }
 0x251   : > { %v1695_v1 = vpop.f32.mrf.mxu1  ;;  %3572 = vmatmul.mubr.bf16.gmra.mxu1 %v7351_v16  ;;  %v8723_v49 = vpack.c.bf16 %v2563_v44, %v2547_v2  ;;  %3701 = vmatpush2.bf16.msra.mxu0 %v8276_v21  ;;  %v7354_v21 = vld [vmem:[%s12257_s3 + $0x80] ss:$8 sps:$4 sm:$0xff]  }
 0x252   : > { %v8725_v27 = vpack.c.bf16 %v2565_v18, %v2549_v52  ;;  %3904 = vmatpush2.bf16.msra.mxu1 %v8278_v24  ;;  %3702 = vmatprep.subr.bf16.mxu0 %v8262_v15  ;;  %v1504_v29 = vpop.f32.mrf.mxu0  ;;  %v2578_v24 = vmax.f32 %v1502_v47, 0.0  ;;  %v2580_v54 = vmax.f32 %v1695_v1, 0.0  ;;  %v7355_v15 = vld [vmem:[%s12257_s3 + $0x94] ss:$8 sps:$4 sm:$0xff]  }
 0x253   : > { %3905 = vmatprep.subr.bf16.mxu1 %v8264_v56  ;;  %v1697_v62 = vpop.f32.mrf.mxu1  ;;  %3378 = vmatprep.mubr.bf16.mxu0 %v7352_v46  ;;  %v2579_v56 = vmax.f32 %v1504_v29, 0.0 }
 0x254   : > { %3581 = vmatprep.mubr.bf16.mxu1 %v7352_v46  ;;  %v1506_v55 = vpop.f32.mrf.mxu0  ;;  %v2581_v42 = vmax.f32 %v1697_v62, 0.0 }
 0x255   : > { %v1699_v36 = vpop.f32.mrf.mxu1  ;;  %v2594_v19 = vmax.f32 %v1506_v55, 0.0  ;;  %3703 = vmatpush2.bf16.msra.mxu0 %v8255_v26 }
 0x256   : > { %v2596_v51 = vmax.f32 %v1699_v36, 0.0  ;;  %3906 = vmatpush2.bf16.msra.mxu1 %v8257_v40  ;;  %4078 = vmatprep.subr.bf16.mxu0 %v2757_v8  ;;  %v1508_v12 = vpop.f32.mrf.mxu0 }
 0x257   : > { %4281 = vmatprep.subr.bf16.mxu1 %v2759_v33  ;;  %v1701_v48 = vpop.f32.mrf.mxu1  ;;  %v8741_v28 = vpack.c.bf16 %v2594_v19, %v2578_v24  ;;  %v2595_v20 = vmax.f32 %v1508_v12, 0.0 }
 0x258   : > { %v8743_v59 = vpack.c.bf16 %v2596_v51, %v2580_v54  ;;  %v2597_v16 = vmax.f32 %v1701_v48, 0.0  ;;  %v1738_v57 = vpop.f32.mrf.mxu0  ;;  %3379 = vmatmul.mubr.bf16.gmra.mxu0 %v7354_v21  ;;  %v2925_v54 = vld [vmem:[%s8341_s14 + $0x108] sm:$0xff] }
 0x259   : > { %v1931_v26 = vpop.f32.mrf.mxu1  ;;  %3582 = vmatmul.mubr.bf16.gmra.mxu1 %v7354_v21  ;;  %v8745_v40 = vpack.c.bf16 %v2595_v20, %v2579_v56  ;;  %3388 = vmatprep.mubr.bf16.mxu0 %v7355_v15  ;;  %v2102_v44 = vmax.f32 %v1738_v57, 0.0  ;;  %v7361_v57 = vld [vmem:[%s12257_s3 + $0xb4] ss:$8 sps:$4 sm:$0xff]  }
 0x25a   : > { %v8747_v10 = vpack.c.bf16 %v2597_v16, %v2581_v42  ;;  %3591 = vmatprep.mubr.bf16.mxu1 %v7355_v15  ;;  %v1740_v23 = vpop.f32.mrf.mxu0  ;;  %v2104_v18 = vmax.f32 %v1931_v26, 0.0  ;;  %3093 = vperm.xlu1 %7311, %v2925_v54   ;;  %v7360_v42 = vld [vmem:[%s12257_s3 + $0xa0] ss:$8 sps:$4 sm:$0xff]  }
 0x25b   : > { %v1933_v50 = vpop.f32.mrf.mxu1  ;;  %v2103_v47 = vmax.f32 %v1740_v23, 0.0 }
 0x25c   : > { %v1742_v2 = vpop.f32.mrf.mxu0  ;;  %v2105_v1 = vmax.f32 %v1933_v50, 0.0 }
 0x25d   : > { %v1935_v52 = vpop.f32.mrf.mxu1  ;;  %v2118_v46 = vmax.f32 %v1742_v2, 0.0 }
 0x25e   : > { %v2120_v38 = vmax.f32 %v1935_v52, 0.0  ;;  %v1744_v3 = vpop.f32.mrf.mxu0 }
 0x25f   : > { %v1937_v43 = vpop.f32.mrf.mxu1  ;;  %v8756_v29 = vpack.c.bf16 %v2118_v46, %v2102_v44  ;;  %v2119_v8 = vmax.f32 %v1744_v3, 0.0 }
 0x260   : > { %v8758_v62 = vpack.c.bf16 %v2120_v38, %v2104_v18  ;;  %v2121_v33 = vmax.f32 %v1937_v43, 0.0  ;;  %v1748_v55 = vpop.f32.mrf.mxu0  ;;  %3389 = vmatmul.mubr.bf16.gmra.mxu0 %v7357_v41 }
 0x261   : > { %12581 = vst [vmem:[#allocation45_spill] sm:$0xff] %v8756_v29  ;;  %v1941_v36 = vpop.f32.mrf.mxu1  ;;  %3592 = vmatmul.mubr.bf16.gmra.mxu1 %v7357_v41  ;;  %v8760_v21 = vpack.c.bf16 %v2119_v8, %v2103_v47  ;;  %3398 = vmatprep.mubr.bf16.mxu0 %v7358_v58  ;;  %v2134_v12 = vmax.f32 %v1748_v55, 0.0  ;;  %v7363_v8 = vld [vmem:[%s12257_s3 + $0xb0] ss:$8 sps:$4 sm:$0xff]  }
 0x262   : > { %12582 = vst [vmem:[#allocation41_spill] sm:$0xff] %v8758_v62  ;;  %v8762_v24 = vpack.c.bf16 %v2121_v33, %v2105_v1  ;;  %3601 = vmatprep.mubr.bf16.mxu1 %v7358_v58  ;;  %v1750_v19 = vpop.f32.mrf.mxu0  ;;  %v2136_v48 = vmax.f32 %v1941_v36, 0.0 }
 0x263   : > { %12583 = vst [vmem:[#allocation42_spill] sm:$0xff] %v8760_v21  ;;  %v1943_v51 = vpop.f32.mrf.mxu1  ;;  %v2135_v26 = vmax.f32 %v1750_v19, 0.0  ;;  %v7364_v19 = vld [vmem:[%s12257_s3 + $0xc4] ss:$8 sps:$4 sm:$0xff]  }
 0x264   : > { %12584 = vst [vmem:[#allocation39_spill] sm:$0xff] %v8762_v24  ;;  %v1752_v15 = vpop.f32.mrf.mxu0  ;;  %v2137_v23 = vmax.f32 %v1943_v51, 0.0 }
 0x265   : > { %v1945_v56 = vpop.f32.mrf.mxu1  ;;  %v2150_v20 = vmax.f32 %v1752_v15, 0.0 }
 0x266   : > { %v2152_v16 = vmax.f32 %v1945_v56, 0.0  ;;  %v1754_v50 = vpop.f32.mrf.mxu0 }
 0x267   : > { %v1947_v2 = vpop.f32.mrf.mxu1  ;;  %v8771_v52 = vpack.c.bf16 %v2150_v20, %v2134_v12  ;;  %v2151_v58 = vmax.f32 %v1754_v50, 0.0 }
 0x268   : > { %v8773_v41 = vpack.c.bf16 %v2152_v16, %v2136_v48  ;;  %v2153_v44 = vmax.f32 %v1947_v2, 0.0  ;;  %v1758_v18 = vpop.f32.mrf.mxu0  ;;  %3399 = vmatmul.mubr.bf16.gmra.mxu0 %v7360_v42 }
 0x269   : > { %12585 = vst [vmem:[#allocation40_spill] sm:$0xff] %v8771_v52  ;;  %v1951_v46 = vpop.f32.mrf.mxu1  ;;  %3602 = vmatmul.mubr.bf16.gmra.mxu1 %v7360_v42  ;;  %v8775_v38 = vpack.c.bf16 %v2151_v58, %v2135_v26  ;;  %3408 = vmatprep.mubr.bf16.mxu0 %v7361_v57  ;;  %v2166_v33 = vmax.f32 %v1758_v18, 0.0 }
 0x26a   : > { %12586 = vst [vmem:[#allocation36_spill] sm:$0xff] %v8773_v41  ;;  %v8777_v39 = vpack.c.bf16 %v2153_v44, %v2137_v23  ;;  %3611 = vmatprep.mubr.bf16.mxu1 %v7361_v57  ;;  %v1760_v47 = vpop.f32.mrf.mxu0  ;;  %v2168_v55 = vmax.f32 %v1951_v46, 0.0  ;;  %v7366_v46 = vld [vmem:[%s12257_s3 + $0xc0] ss:$8 sps:$4 sm:$0xff]  }
 0x26b   : > { %12587 = vst [vmem:[#allocation37_spill] sm:$0xff] %v8775_v38  ;;  %v1953_v1 = vpop.f32.mrf.mxu1  ;;  %v2167_v51 = vmax.f32 %v1760_v47, 0.0 }
 0x26c   : > { %12588 = vst [vmem:[#allocation34_spill] sm:$0xff] %v8777_v39  ;;  %v1762_v3 = vpop.f32.mrf.mxu0  ;;  %v2169_v15 = vmax.f32 %v1953_v1, 0.0 }
 0x26d   : > { %v1955_v43 = vpop.f32.mrf.mxu1  ;;  %v2182_v36 = vmax.f32 %v1762_v3, 0.0 }
 0x26e   : > { %v2184_v54 = vmax.f32 %v1955_v43, 0.0  ;;  %v1764_v56 = vpop.f32.mrf.mxu0 }
 0x26f   : > { %v1957_v42 = vpop.f32.mrf.mxu1  ;;  %v8785_v12 = vpack.c.bf16 %v2182_v36, %v2166_v33  ;;  %v2183_v20 = vmax.f32 %v1764_v56, 0.0 }
 0x270   : > { %v8787_v48 = vpack.c.bf16 %v2184_v54, %v2168_v55  ;;  %v2185_v16 = vmax.f32 %v1957_v42, 0.0  ;;  %v1768_v57 = vpop.f32.mrf.mxu0  ;;  %3409 = vmatmul.mubr.bf16.gmra.mxu0 %v7363_v8 }
 0x271   : > { %12589 = vst [vmem:[#allocation35_spill] sm:$0xff] %v8785_v12  ;;  %v1961_v26 = vpop.f32.mrf.mxu1  ;;  %3612 = vmatmul.mubr.bf16.gmra.mxu1 %v7363_v8  ;;  %v8789_v23 = vpack.c.bf16 %v2183_v20, %v2167_v51  ;;  %3418 = vmatprep.mubr.bf16.mxu0 %v7364_v19  ;;  %v2198_v47 = vmax.f32 %v1768_v57, 0.0  ;;  %v7367_v8 = vld [vmem:[%s12257_s3 + $0xd4] ss:$8 sps:$4 sm:$0xff]  }
 0x272   : > { %12590 = vst [vmem:[#allocation31_spill] sm:$0xff] %v8787_v48  ;;  %v8791_v50 = vpack.c.bf16 %v2185_v16, %v2169_v15  ;;  %3621 = vmatprep.mubr.bf16.mxu1 %v7364_v19  ;;  %v1770_v2 = vpop.f32.mrf.mxu0  ;;  %v2200_v1 = vmax.f32 %v1961_v26, 0.0 }
 0x273   : > { %12591 = vst [vmem:[#allocation32_spill] sm:$0xff] %v8789_v23  ;;  %v1963_v58 = vpop.f32.mrf.mxu1  ;;  %v2199_v33 = vmax.f32 %v1770_v2, 0.0 }
 0x274   : > { %12592 = vst [vmem:[#allocation29_spill] sm:$0xff] %v8791_v50  ;;  %v1772_v44 = vpop.f32.mrf.mxu0  ;;  %v2201_v55 = vmax.f32 %v1963_v58, 0.0 }
 0x275   : > { %v1965_v18 = vpop.f32.mrf.mxu1  ;;  %v2214_v3 = vmax.f32 %v1772_v44, 0.0 }
 0x276   : > { %v2216_v43 = vmax.f32 %v1965_v18, 0.0  ;;  %v1774_v36 = vpop.f32.mrf.mxu0  ;;  %v7369_v18 = vld [vmem:[%s12257_s3 + $0xd0] ss:$8 sps:$4 sm:$0xff]  }
 0x277   : > { %v1967_v54 = vpop.f32.mrf.mxu1  ;;  %v8799_v19 = vpack.c.bf16 %v2214_v3, %v2198_v47  ;;  %v2215_v15 = vmax.f32 %v1774_v36, 0.0 }
 0x278   : > { %v8801_v51 = vpack.c.bf16 %v2216_v43, %v2200_v1  ;;  %v2217_v56 = vmax.f32 %v1967_v54, 0.0  ;;  %v1778_v42 = vpop.f32.mrf.mxu0  ;;  %3419 = vmatmul.mubr.bf16.gmra.mxu0 %v7366_v46 }
 0x279   : > { %12593 = vst [vmem:[#allocation30_spill] sm:$0xff] %v8799_v19  ;;  %v1971_v20 = vpop.f32.mrf.mxu1  ;;  %3622 = vmatmul.mubr.bf16.gmra.mxu1 %v7366_v46  ;;  %v8803_v16 = vpack.c.bf16 %v2215_v15, %v2199_v33  ;;  %3428 = vmatprep.mubr.bf16.mxu0 %v7367_v8  ;;  %v2230_v47 = vmax.f32 %v1778_v42, 0.0  ;;  %v7370_v46 = vld [vmem:[%s12257_s3 + $0xe4] ss:$8 sps:$4 sm:$0xff]  }
 0x27a   : > { %12594 = vst [vmem:[#allocation26_spill] sm:$0xff] %v8801_v51  ;;  %v8805_v57 = vpack.c.bf16 %v2217_v56, %v2201_v55  ;;  %3631 = vmatprep.mubr.bf16.mxu1 %v7367_v8  ;;  %v1780_v26 = vpop.f32.mrf.mxu0  ;;  %v2232_v1 = vmax.f32 %v1971_v20, 0.0 }
 0x27b   : > { %12595 = vst [vmem:[#allocation27_spill] sm:$0xff] %v8803_v16  ;;  %v1973_v2 = vpop.f32.mrf.mxu1  ;;  %v2231_v33 = vmax.f32 %v1780_v26, 0.0 }
 0x27c   : > { %12596 = vst [vmem:[#allocation24_spill] sm:$0xff] %v8805_v57  ;;  %v1782_v58 = vpop.f32.mrf.mxu0  ;;  %v2233_v55 = vmax.f32 %v1973_v2, 0.0 }
 0x27d   : > { %v1975_v44 = vpop.f32.mrf.mxu1  ;;  %v2246_v3 = vmax.f32 %v1782_v58, 0.0 }
 0x27e   : > { %v2248_v43 = vmax.f32 %v1975_v44, 0.0  ;;  %v1784_v36 = vpop.f32.mrf.mxu0 }
 0x27f   : > { %v1977_v8 = vpop.f32.mrf.mxu1  ;;  %v8813_v54 = vpack.c.bf16 %v2246_v3, %v2230_v47  ;;  %v2247_v56 = vmax.f32 %v1784_v36, 0.0  ;;  %v7372_v47 = vld [vmem:[%s12257_s3 + $0xe0] ss:$8 sps:$4 sm:$0xff]  }
 0x280   : > { %v8815_v15 = vpack.c.bf16 %v2248_v43, %v2232_v1  ;;  %v2249_v62 = vmax.f32 %v1977_v8, 0.0  ;;  %v1788_v29 = vpop.f32.mrf.mxu0  ;;  %3429 = vmatmul.mubr.bf16.gmra.mxu0 %v7369_v18 }
 0x281   : > { %12597 = vst [vmem:[#allocation25_spill] sm:$0xff] %v8813_v54  ;;  %v1981_v24 = vpop.f32.mrf.mxu1  ;;  %3632 = vmatmul.mubr.bf16.gmra.mxu1 %v7369_v18  ;;  %v8817_v42 = vpack.c.bf16 %v2247_v56, %v2231_v33  ;;  %3438 = vmatprep.mubr.bf16.mxu0 %v7370_v46  ;;  %v2262_v1 = vmax.f32 %v1788_v29, 0.0  ;;  %v7373_v18 = vld [vmem:[%s12257_s3 + $0xf4] ss:$8 sps:$4 sm:$0xff]   ;;  %v7466_v54 = vld [vmem:[%s12257_s3] ss:$8 sps:$4 sm:$0xff]  }
 0x282   : > { %12598 = vst [vmem:[#allocation22_spill] sm:$0xff] %v8815_v15  ;;  %v8819_v20 = vpack.c.bf16 %v2249_v62, %v2233_v55  ;;  %3641 = vmatprep.mubr.bf16.mxu1 %v7370_v46  ;;  %v1790_v26 = vpop.f32.mrf.mxu0  ;;  %v2264_v3 = vmax.f32 %v1981_v24, 0.0 }
 0x283   : > { %v1983_v2 = vpop.f32.mrf.mxu1  ;;  %v2263_v62 = vmax.f32 %v1790_v26, 0.0 }
 0x284   : > { %v1792_v58 = vpop.f32.mrf.mxu0  ;;  %v2265_v33 = vmax.f32 %v1983_v2, 0.0 }
 0x285   : > { %v1985_v44 = vpop.f32.mrf.mxu1  ;;  %v2278_v43 = vmax.f32 %v1792_v58, 0.0 }
 0x286   : > { %v2280_v36 = vmax.f32 %v1985_v44, 0.0  ;;  %v1794_v55 = vpop.f32.mrf.mxu0 }
 0x287   : > { %v1987_v46 = vpop.f32.mrf.mxu1  ;;  %v8827_v8 = vpack.c.bf16 %v2278_v43, %v2262_v1  ;;  %v2279_v21 = vmax.f32 %v1794_v55, 0.0  ;;  %v7375_v1 = vld [vmem:[%s12257_s3 + $0xf0] ss:$8 sps:$4 sm:$0xff]  }
 0x288   : > { %v8829_v56 = vpack.c.bf16 %v2280_v36, %v2264_v3  ;;  %v2281_v41 = vmax.f32 %v1987_v46, 0.0  ;;  %v1798_v52 = vpop.f32.mrf.mxu0  ;;  %3439 = vmatmul.mubr.bf16.gmra.mxu0 %v7372_v47 }
 0x289   : > { %v1991_v39 = vpop.f32.mrf.mxu1  ;;  %3642 = vmatmul.mubr.bf16.gmra.mxu1 %v7372_v47  ;;  %v8831_v29 = vpack.c.bf16 %v2279_v21, %v2263_v62  ;;  %3448 = vmatprep.mubr.bf16.mxu0 %v7373_v18  ;;  %v2294_v3 = vmax.f32 %v1798_v52, 0.0  ;;  %v7376_v21 = vld [vmem:[%s12257_s3 + $0x104] ss:$8 sps:$4 sm:$0xff]  }
 0x28a   : > { %v8833_v24 = vpack.c.bf16 %v2281_v41, %v2265_v33  ;;  %3651 = vmatprep.mubr.bf16.mxu1 %v7373_v18  ;;  %v1800_v26 = vpop.f32.mrf.mxu0  ;;  %v2296_v43 = vmax.f32 %v1991_v39, 0.0 }
 0x28b   : > { %v1993_v2 = vpop.f32.mrf.mxu1  ;;  %v2295_v41 = vmax.f32 %v1800_v26, 0.0 }
 0x28c   : > { %v1802_v58 = vpop.f32.mrf.mxu0  ;;  %v2297_v47 = vmax.f32 %v1993_v2, 0.0 }
 0x28d   : > { %v1995_v44 = vpop.f32.mrf.mxu1  ;;  %v2310_v36 = vmax.f32 %v1802_v58, 0.0 }
 0x28e   : > { %v2312_v55 = vmax.f32 %v1995_v44, 0.0  ;;  %v1804_v62 = vpop.f32.mrf.mxu0 }
 0x28f   : > { %v1997_v18 = vpop.f32.mrf.mxu1  ;;  %v8841_v33 = vpack.c.bf16 %v2310_v36, %v2294_v3  ;;  %v2311_v38 = vmax.f32 %v1804_v62, 0.0  ;;  %v7378_v3 = vld [vmem:[%s12257_s3 + $0x100] ss:$8 sps:$4 sm:$0xff]  }
 0x290   : > { %v8843_v46 = vpack.c.bf16 %v2312_v55, %v2296_v43  ;;  %v2313_v48 = vmax.f32 %v1997_v18, 0.0  ;;  %v1808_v12 = vpop.f32.mrf.mxu0  ;;  %3449 = vmatmul.mubr.bf16.gmra.mxu0 %v7375_v1 }
 0x291   : > { %v2001_v50 = vpop.f32.mrf.mxu1  ;;  %3652 = vmatmul.mubr.bf16.gmra.mxu1 %v7375_v1  ;;  %v8845_v52 = vpack.c.bf16 %v2311_v38, %v2295_v41  ;;  %3458 = vmatprep.mubr.bf16.mxu0 %v7376_v21  ;;  %v2326_v43 = vmax.f32 %v1808_v12, 0.0 }
 0x292   : > { %v8847_v39 = vpack.c.bf16 %v2313_v48, %v2297_v47  ;;  %3661 = vmatprep.mubr.bf16.mxu1 %v7376_v21  ;;  %v1810_v26 = vpop.f32.mrf.mxu0  ;;  %v2328_v36 = vmax.f32 %v2001_v50, 0.0  ;;  %v7465_v50 = vld [vmem:[%s12257_s3 + $0x4] ss:$8 sps:$4 sm:$0xff]  }
 0x293   : > { %v2003_v2 = vpop.f32.mrf.mxu1  ;;  %v2327_v18 = vmax.f32 %v1810_v26, 0.0 }
 0x294   : > { %v1812_v58 = vpop.f32.mrf.mxu0  ;;  %v2329_v1 = vmax.f32 %v2003_v2, 0.0 }
 0x295   : > { %v2005_v44 = vpop.f32.mrf.mxu1  ;;  %v2342_v55 = vmax.f32 %v1812_v58, 0.0 }
 0x296   : > { %v2344_v62 = vmax.f32 %v2005_v44, 0.0  ;;  %v1814_v38 = vpop.f32.mrf.mxu0 }
 0x297   : > { %v2007_v41 = vpop.f32.mrf.mxu1  ;;  %v8852_v48 = vpack.c.bf16 %v2342_v55, %v2326_v43  ;;  %v2343_v21 = vmax.f32 %v1814_v38, 0.0 }
 0x298   : > { %v8854_v47 = vpack.c.bf16 %v2344_v62, %v2328_v36  ;;  %v2345_v23 = vmax.f32 %v2007_v41, 0.0  ;;  %v1818_v51 = vpop.f32.mrf.mxu0  ;;  %3459 = vmatmul.mubr.bf16.gmra.mxu0 %v7378_v3 }
 0x299   : > { %v2011_v19 = vpop.f32.mrf.mxu1  ;;  %3662 = vmatmul.mubr.bf16.gmra.mxu1 %v7378_v3  ;;  %v8856_v57 = vpack.c.bf16 %v2343_v21, %v2327_v18  ;;  %3704 = vmatprep.mubr.bf16.mxu0 %v7465_v50  ;;  %v2358_v43 = vmax.f32 %v1818_v51, 0.0 }
 0x29a   : > { %v8858_v12 = vpack.c.bf16 %v2345_v23, %v2329_v1  ;;  %3907 = vmatprep.mubr.bf16.mxu1 %v7465_v50  ;;  %v1820_v26 = vpop.f32.mrf.mxu0  ;;  %v2360_v36 = vmax.f32 %v2011_v19, 0.0 }
 0x29b   : > { %v2013_v2 = vpop.f32.mrf.mxu1  ;;  %v2359_v38 = vmax.f32 %v1820_v26, 0.0 }
 0x29c   : > { %v1822_v58 = vpop.f32.mrf.mxu0  ;;  %v2361_v3 = vmax.f32 %v2013_v2, 0.0 }
 0x29d   : > { %v2015_v44 = vpop.f32.mrf.mxu1  ;;  %v2374_v55 = vmax.f32 %v1822_v58, 0.0  ;;  %v7467_v58 = vld [vmem:[%s12257_s3 + $0x14] ss:$8 sps:$4 sm:$0xff]  }
 0x29e   : > { %v2376_v62 = vmax.f32 %v2015_v44, 0.0  ;;  %v1824_v18 = vpop.f32.mrf.mxu0 }
 0x29f   : > { %v2017_v41 = vpop.f32.mrf.mxu1  ;;  %v8863_v23 = vpack.c.bf16 %v2374_v55, %v2358_v43  ;;  %v2375_v21 = vmax.f32 %v1824_v18, 0.0  ;;  %v12604_v55 = vld [vmem:[#allocation43_spill] sm:$0xff] }
 0x2a0   : > { %v8865_v1 = vpack.c.bf16 %v2376_v62, %v2360_v36  ;;  %v2377_v16 = vmax.f32 %v2017_v41, 0.0  ;;  %v1828_v15 = vpop.f32.mrf.mxu0  ;;  %3705 = vmatmul.mubr.bf16.vlgmr.msra.gmra.mxu0 %v7466_v54 }
 0x2a1   : > { %12599 = vst [vmem:[#allocation23_spill] sm:$0xff] %v8863_v23  ;;  %v2021_v50 = vpop.f32.mrf.mxu1  ;;  %3908 = vmatmul.mubr.bf16.vlgmr.msra.gmra.mxu1 %v7466_v54  ;;  %v8870_v19 = vpack.c.bf16 %v2375_v21, %v2359_v38  ;;  %4079 = vmatpush1.bf16.msra.mxu0 %v8559_v30  ;;  %v12628_v23 = vld [vmem:[#allocation12_spill] sm:$0xff] }
 0x2a2   : > { %12600 = vst [vmem:[#allocation54_spill] sm:$0xff] %v8865_v1  ;;  %v8872_v51 = vpack.c.bf16 %v2377_v16, %v2361_v3  ;;  %4282 = vmatpush1.bf16.msra.mxu1 %v8561_v61  ;;  %4080 = vmatprep.subr.bf16.mxu0 %v8540_v6  ;;  %v1830_v26 = vpop.f32.mrf.mxu0  ;;  %v2390_v16 = vmax.f32 %v1828_v15, 0.0  ;;  %v2392_v43 = vmax.f32 %v2021_v50, 0.0  ;;  %v12603_v61 = vld [vmem:[#allocation38_spill] sm:$0xff] }
 0x2a3   : > { %12601 = vst [vmem:[#allocation55_spill] sm:$0xff] %v8870_v19  ;;  %4283 = vmatprep.subr.bf16.mxu1 %v8542_v25  ;;  %v2023_v2 = vpop.f32.mrf.mxu1  ;;  %3714 = vmatprep.mubr.bf16.mxu0 %v7467_v58  ;;  %v2391_v6 = vmax.f32 %v1830_v26, 0.0 }
 0x2a4   : > { %12602 = vst [vmem:[#allocation56_spill] sm:$0xff] %v8872_v51  ;;  %3917 = vmatprep.mubr.bf16.mxu1 %v7467_v58  ;;  %v1832_v54 = vpop.f32.mrf.mxu0  ;;  %v2393_v25 = vmax.f32 %v2023_v2, 0.0  ;;  %v12609_v2 = vld [vmem:[#allocation28_spill] sm:$0xff]  ;;  %v12610_v58 = vld [vmem:[#allocation33_spill] sm:$0xff] }
 0x2a5   : > { %v2025_v44 = vpop.f32.mrf.mxu1  ;;  %v2406_v36 = vmax.f32 %v1832_v54, 0.0  ;;  %4081 = vmatpush1.bf16.msra.mxu0 %v8532_v4  ;;  %v7468_v4 = vld [vmem:[%s12257_s3 + $0x10] ss:$8 sps:$4 sm:$0xff]   ;;  %v12611_v54 = vld [vmem:[#allocation2_spill] sm:$0xff] }
 0x2a6   : > { %v2408_v30 = vmax.f32 %v2025_v44, 0.0  ;;  %4284 = vmatpush1.bf16.msra.mxu1 %v8534_v32  ;;  %4082 = vmatprep.subr.bf16.mxu0 %v12603_v61  ;;  %v1834_v62 = vpop.f32.mrf.mxu0  ;;  %v12612_v44 = vld [vmem:[#allocation3_spill] sm:$0xff] }
 0x2a7   : > { %4285 = vmatprep.subr.bf16.mxu1 %v12604_v55  ;;  %v2027_v38 = vpop.f32.mrf.mxu1  ;;  %v8885_v3 = vpack.c.bf16 %v2406_v36, %v2390_v16  ;;  %v2407_v15 = vmax.f32 %v1834_v62, 0.0  ;;  %v7469_v36 = vld [vmem:[%s12257_s3 + $0x24] ss:$8 sps:$4 sm:$0xff]  }
 0x2a8   : > { %v8887_v18 = vpack.c.bf16 %v2408_v30, %v2392_v43  ;;  %v2409_v41 = vmax.f32 %v2027_v38, 0.0  ;;  %v1838_v21 = vpop.f32.mrf.mxu0  ;;  %3715 = vmatmul.mubr.bf16.gmra.mxu0 %v7468_v4  ;;  %v12613_v38 = vld [vmem:[#allocation4_spill] sm:$0xff] }
 0x2a9   : > { %12605 = vst [vmem:[#allocation38_spill] sm:$0xff] %v8885_v3  ;;  %v2031_v50 = vpop.f32.mrf.mxu1  ;;  %3918 = vmatmul.mubr.bf16.gmra.mxu1 %v7468_v4  ;;  %v8892_v32 = vpack.c.bf16 %v2407_v15, %v2391_v6  ;;  %4083 = vmatpush1.bf16.msra.mxu0 %v12609_v2  ;;  %v12614_v15 = vld [vmem:[#allocation5_spill] sm:$0xff]  ;;  %v12632_v3 = vld [vmem:[#allocation15_spill] sm:$0xff] }
 0x2aa   : > { %12606 = vst [vmem:[#allocation43_spill] sm:$0xff] %v8887_v18  ;;  %v8894_v26 = vpack.c.bf16 %v2409_v41, %v2393_v25  ;;  %4286 = vmatpush1.bf16.msra.mxu1 %v12610_v58  ;;  %4084 = vmatprep.subr.bf16.mxu0 %v12611_v54  ;;  %v1840_v16 = vpop.f32.mrf.mxu0  ;;  %v2422_v25 = vmax.f32 %v1838_v21, 0.0  ;;  %v2424_v61 = vmax.f32 %v2031_v50, 0.0  ;;  %v8905_v41 = vpop.permute.xlu0 %2998  ;;  %v12616_v58 = vld [vmem:[#allocation6_spill] sm:$0xff]  ;;  %v12617_v54 = vld [vmem:[#allocation7_spill] sm:$0xff] }
 0x2ab   : > { %12607 = vst [vmem:[#allocation57_spill] sm:$0xff] %v8892_v32  ;;  %4287 = vmatprep.subr.bf16.mxu1 %v12612_v44  ;;  %v2033_v43 = vpop.f32.mrf.mxu1  ;;  %3724 = vmatprep.mubr.bf16.mxu0 %v7469_v36  ;;  %12615 = vst [vmem:[#allocation28_spill] sm:$0xff] %v8905_v41  ;;  %v2423_v4 = vmax.f32 %v1840_v16, 0.0  ;;  %v7470_v16 = vld [vmem:[%s12257_s3 + $0x20] ss:$8 sps:$4 sm:$0xff]  }
 0x2ac   : > { %12608 = vst [vmem:[#allocation58_spill] sm:$0xff] %v8894_v26  ;;  %3927 = vmatprep.mubr.bf16.mxu1 %v7469_v36  ;;  %v1842_v30 = vpop.f32.mrf.mxu0  ;;  %v2425_v2 = vmax.f32 %v2033_v43, 0.0  ;;  %v12631_v18 = vld [vmem:[#allocation14_spill] sm:$0xff] }
 0x2ad   : > { %v2035_v6 = vpop.f32.mrf.mxu1  ;;  %v2438_v55 = vmax.f32 %v1842_v30, 0.0  ;;  %4085 = vmatpush1.bf16.msra.mxu0 %v12613_v38 }
 0x2ae   : > { %v2440_v62 = vmax.f32 %v2035_v6, 0.0  ;;  %4288 = vmatpush1.bf16.msra.mxu1 %v12614_v15  ;;  %4086 = vmatprep.subr.bf16.mxu0 %v12616_v58  ;;  %v1844_v44 = vpop.f32.mrf.mxu0  ;;  %v8913_v6 = vpop.permute.xlu1 %2988 }
 0x2af   : > { %4289 = vmatprep.subr.bf16.mxu1 %v12617_v54  ;;  %v2037_v36 = vpop.f32.mrf.mxu1  ;;  %v8909_v1 = vpack.c.bf16 %v2438_v55, %v2422_v25  ;;  %v2439_v50 = vmax.f32 %v1844_v44, 0.0  ;;  %12620 = vst [vmem:[#allocation3_spill] sm:$0xff] %v8913_v6  ;;  %v12623_v25 = vld [vmem:[#allocation8_spill] sm:$0xff]  ;;  %v12625_v55 = vld [vmem:[#allocation10_spill] sm:$0xff] }
 0x2b0   : > { %v8911_v21 = vpack.c.bf16 %v2440_v62, %v2424_v61  ;;  %v2441_v30 = vmax.f32 %v2037_v36, 0.0  ;;  %v1848_v38 = vpop.f32.mrf.mxu0  ;;  %3725 = vmatmul.mubr.bf16.gmra.mxu0 %v7470_v16  ;;  %v12624_v61 = vld [vmem:[#allocation9_spill] sm:$0xff]  ;;  %v12626_v62 = vld [vmem:[#allocation11_spill] sm:$0xff] }
 0x2b1   : > { %12618 = vst [vmem:[#allocation33_spill] sm:$0xff] %v8909_v1  ;;  %v2041_v15 = vpop.f32.mrf.mxu1  ;;  %3928 = vmatmul.mubr.bf16.gmra.mxu1 %v7470_v16  ;;  %v8918_v43 = vpack.c.bf16 %v2439_v50, %v2423_v4  ;;  %4087 = vmatpush1.bf16.msra.mxu0 %v12623_v25  ;;  %v7471_v36 = vld [vmem:[%s12257_s3 + $0x34] ss:$8 sps:$4 sm:$0xff]   ;;  %v8929_v4 = vpop.permute.xlu0 %3003 }
 0x2b2   : > { %12619 = vst [vmem:[#allocation2_spill] sm:$0xff] %v8911_v21  ;;  %v8920_v58 = vpack.c.bf16 %v2441_v30, %v2425_v2  ;;  %4290 = vmatpush1.bf16.msra.mxu1 %v12624_v61  ;;  %4088 = vmatprep.subr.bf16.mxu0 %v12625_v55  ;;  %v1850_v54 = vpop.f32.mrf.mxu0  ;;  %12627 = vst [vmem:[#allocation6_spill] sm:$0xff] %v8929_v4  ;;  %v2454_v30 = vmax.f32 %v1848_v38, 0.0  ;;  %v2456_v16 = vmax.f32 %v2041_v15, 0.0  ;;  %v12629_v55 = vld [vmem:[#allocation13_spill] sm:$0xff]  ;;  %v12643_v21 = vld [vmem:[#allocation20_spill] sm:$0xff] }
 0x2b3   : > { %12621 = vst [vmem:[#allocation4_spill] sm:$0xff] %v8918_v43  ;;  %4291 = vmatprep.subr.bf16.mxu1 %v12626_v62  ;;  %v2043_v44 = vpop.f32.mrf.mxu1  ;;  %3734 = vmatprep.mubr.bf16.mxu0 %v7471_v36  ;;  %v8933_v62 = vpop.permute.xlu1 %2993  ;;  %v2455_v51 = vmax.f32 %v1850_v54, 0.0 }
 0x2b4   : > { %12622 = vst [vmem:[#allocation5_spill] sm:$0xff] %v8920_v58  ;;  %3937 = vmatprep.mubr.bf16.mxu1 %v7471_v36  ;;  %v1852_v2 = vpop.f32.mrf.mxu0  ;;  %12630 = vst [vmem:[#allocation7_spill] sm:$0xff] %v8933_v62  ;;  %v2457_v19 = vmax.f32 %v2043_v44, 0.0  ;;  %v12638_v44 = vld [vmem:[#allocation17_spill] sm:$0xff] }
 0x2b5   : > { %v2045_v50 = vpop.f32.mrf.mxu1  ;;  %v2470_v25 = vmax.f32 %v1852_v2, 0.0  ;;  %4089 = vmatpush1.bf16.msra.mxu0 %v12628_v23 }
 0x2b6   : > { %v2472_v61 = vmax.f32 %v2045_v50, 0.0  ;;  %4292 = vmatpush1.bf16.msra.mxu1 %v12629_v55  ;;  %4090 = vmatprep.subr.bf16.mxu0 %v12631_v18  ;;  %v1854_v36 = vpop.f32.mrf.mxu0  ;;  %v7472_v55 = vld [vmem:[%s12257_s3 + $0x30] ss:$8 sps:$4 sm:$0xff]  }
 0x2b7   : > { %4293 = vmatprep.subr.bf16.mxu1 %v12632_v3  ;;  %v2047_v26 = vpop.f32.mrf.mxu1  ;;  %v8937_v32 = vpack.c.bf16 %v2470_v25, %v2454_v30  ;;  %v2471_v15 = vmax.f32 %v1854_v36, 0.0  ;;  %v12637_v3 = vld [vmem:[#allocation16_spill] sm:$0xff]  ;;  %v8950_v30 = vpop.permute.xlu0 %2978  ;;  %v7473_v36 = vld [vmem:[%s12257_s3 + $0x44] ss:$8 sps:$4 sm:$0xff]  }
 0x2b8   : > { %v8939_v38 = vpack.c.bf16 %v2472_v61, %v2456_v16  ;;  %v2473_v2 = vmax.f32 %v2047_v26, 0.0  ;;  %v1858_v50 = vpop.f32.mrf.mxu0  ;;  %3735 = vmatmul.mubr.bf16.gmra.mxu0 %v7472_v55  ;;  %12639 = vst [vmem:[#allocation12_spill] sm:$0xff] %v8950_v30  ;;  %v12640_v16 = vld [vmem:[#allocation18_spill] sm:$0xff]  ;;  %v12641_v26 = vld [vmem:[#allocation19_spill] sm:$0xff] }
 0x2b9   : > { %12633 = vst [vmem:[#allocation8_spill] sm:$0xff] %v8937_v32  ;;  %v2051_v23 = vpop.f32.mrf.mxu1  ;;  %3938 = vmatmul.mubr.bf16.gmra.mxu1 %v7472_v55  ;;  %v8944_v54 = vpack.c.bf16 %v2471_v15, %v2455_v51  ;;  %4091 = vmatpush1.bf16.msra.mxu0 %v12637_v3 }
 0x2ba   : > { %12634 = vst [vmem:[#allocation9_spill] sm:$0xff] %v8939_v38  ;;  %v8946_v18 = vpack.c.bf16 %v2473_v2, %v2457_v19  ;;  %4294 = vmatpush1.bf16.msra.mxu1 %v12638_v44  ;;  %4092 = vmatprep.subr.bf16.mxu0 %v12640_v16  ;;  %v1860_v25 = vpop.f32.mrf.mxu0  ;;  %v8957_v19 = vpop.permute.xlu1 %2983  ;;  %v2486_v2 = vmax.f32 %v1858_v50, 0.0  ;;  %v2488_v55 = vmax.f32 %v2051_v23, 0.0  ;;  %v12644_v16 = vld [vmem:[#allocation21_spill] sm:$0xff] }
 0x2bb   : > { %12635 = vst [vmem:[#allocation10_spill] sm:$0xff] %v8944_v54  ;;  %4295 = vmatprep.subr.bf16.mxu1 %v12641_v26  ;;  %v2053_v61 = vpop.f32.mrf.mxu1  ;;  %3744 = vmatprep.mubr.bf16.mxu0 %v7473_v36  ;;  %12642 = vst [vmem:[#allocation13_spill] sm:$0xff] %v8957_v19  ;;  %v2487_v26 = vmax.f32 %v1860_v25, 0.0  ;;  %v7474_v25 = vld [vmem:[%s12257_s3 + $0x40] ss:$8 sps:$4 sm:$0xff]  }
 0x2bc   : > { %12636 = vst [vmem:[#allocation11_spill] sm:$0xff] %v8946_v18  ;;  %3947 = vmatprep.mubr.bf16.mxu1 %v7473_v36  ;;  %v1862_v51 = vpop.f32.mrf.mxu0  ;;  %v2489_v1 = vmax.f32 %v2053_v61, 0.0 }
 0x2bd   : > { %v2055_v15 = vpop.f32.mrf.mxu1  ;;  %v2502_v3 = vmax.f32 %v1862_v51, 0.0  ;;  %4093 = vmatpush1.bf16.msra.mxu0 %v12643_v21  ;;  %v8967_v51 = vpop.permute.xlu0 %2968 }
 0x2be   : > { %v2504_v44 = vmax.f32 %v2055_v15, 0.0  ;;  %4296 = vmatpush1.bf16.msra.mxu1 %v12644_v16  ;;  %4094 = vmatprep.subr.bf16.mxu0 %v8745_v40  ;;  %v1864_v58 = vpop.f32.mrf.mxu0  ;;  %12647 = vst [vmem:[#allocation16_spill] sm:$0xff] %v8967_v51 }
 0x2bf   : > { %4297 = vmatprep.subr.bf16.mxu1 %v8747_v10  ;;  %v2057_v36 = vpop.f32.mrf.mxu1  ;;  %v8963_v43 = vpack.c.bf16 %v2502_v3, %v2486_v2  ;;  %v2503_v50 = vmax.f32 %v1864_v58, 0.0  ;;  %v8978_v58 = vpop.permute.xlu1 %2973 }
 0x2c0   : > { %v8965_v38 = vpack.c.bf16 %v2504_v44, %v2488_v55  ;;  %v2505_v23 = vmax.f32 %v2057_v36, 0.0  ;;  %v1868_v15 = vpop.f32.mrf.mxu0  ;;  %3745 = vmatmul.mubr.bf16.gmra.mxu0 %v7474_v25  ;;  %12648 = vst [vmem:[#allocation17_spill] sm:$0xff] %v8978_v58  ;;  %v7475_v55 = vld [vmem:[%s12257_s3 + $0x54] ss:$8 sps:$4 sm:$0xff]  }
 0x2c1   : > { %12645 = vst [vmem:[#allocation14_spill] sm:$0xff] %v8963_v43  ;;  %v2061_v21 = vpop.f32.mrf.mxu1  ;;  %3948 = vmatmul.mubr.bf16.gmra.mxu1 %v7474_v25  ;;  %v8972_v40 = vpack.c.bf16 %v2503_v50, %v2487_v26  ;;  %4095 = vmatpush2.bf16.msra.mxu0 %v8741_v28  ;;  %v2518_v44 = vmax.f32 %v1868_v15, 0.0 }
 0x2c2   : > { %12646 = vst [vmem:[#allocation15_spill] sm:$0xff] %v8965_v38  ;;  %v8974_v10 = vpack.c.bf16 %v2505_v23, %v2489_v1  ;;  %4298 = vmatpush2.bf16.msra.mxu1 %v8743_v59  ;;  %4096 = vmatprep.subr.bf16.mxu0 %v8723_v49  ;;  %v1870_v61 = vpop.f32.mrf.mxu0  ;;  %v2520_v28 = vmax.f32 %v2061_v21, 0.0  ;;  %v8987_v49 = vpop.permute.xlu0 %2958 }
 0x2c3   : > { %4299 = vmatprep.subr.bf16.mxu1 %v8725_v27  ;;  %v2063_v2 = vpop.f32.mrf.mxu1  ;;  %3754 = vmatprep.mubr.bf16.mxu0 %v7475_v55  ;;  %12649 = vst [vmem:[#allocation18_spill] sm:$0xff] %v8987_v49  ;;  %v5662_v27 = vld [vmem:[%s12259_s5] sm:$0xff]  ;;  %v2519_v26 = vmax.f32 %v1870_v61, 0.0  ;;  %v8998_v25 = vpop.permute.xlu1 %2963  ;;  %v7476_v61 = vld [vmem:[%s12257_s3 + $0x50] ss:$8 sps:$4 sm:$0xff]  }
 0x2c4   : > { %3957 = vmatprep.mubr.bf16.mxu1 %v7475_v55  ;;  %v1872_v1 = vpop.f32.mrf.mxu0  ;;  %v2521_v36 = vmax.f32 %v2063_v2, 0.0  ;;  %12650 = vst [vmem:[#allocation19_spill] sm:$0xff] %v8998_v25  ;;  %5668 = vperm.xlu0 %7310, %v5662_v27   ;;  %v5664_v2 = vld [vmem:[%s12259_s5 + $0x10] sm:$0xff] }
 0x2c5   : > { %v2065_v3 = vpop.f32.mrf.mxu1  ;;  %v2534_v16 = vmax.f32 %v1872_v1, 0.0  ;;  %4097 = vmatpush2.bf16.msra.mxu0 %v8714_v9 }
 0x2c6   : > { %v2536_v59 = vmax.f32 %v2065_v3, 0.0  ;;  %4300 = vmatpush2.bf16.msra.mxu1 %v8716_v53  ;;  %4098 = vmatprep.subr.bf16.mxu0 %v8699_v0  ;;  %v1874_v50 = vpop.f32.mrf.mxu0 }
 0x2c7   : > { %4301 = vmatprep.subr.bf16.mxu1 %v8701_v11  ;;  %v2067_v23 = vpop.f32.mrf.mxu1  ;;  %v8994_v15 = vpack.c.bf16 %v2534_v16, %v2518_v44  ;;  %v2535_v9 = vmax.f32 %v1874_v50, 0.0  ;;  %v9017_v16 = vpop.permute.xlu0 %2948 }
 0x2c8   : > { %v8996_v21 = vpack.c.bf16 %v2536_v59, %v2520_v28  ;;  %v2537_v53 = vmax.f32 %v2067_v23, 0.0  ;;  %v1878_v55 = vpop.f32.mrf.mxu0  ;;  %3755 = vmatmul.mubr.bf16.gmra.mxu0 %v7476_v61  ;;  %v7477_v28 = vld [vmem:[%s12257_s3 + $0x64] ss:$8 sps:$4 sm:$0xff]   ;;  %12651 = vst [vmem:[#allocation20_spill] sm:$0xff] %v9017_v16  ;;  %5678 = vperm.xlu0 %7310, %v5664_v2  }
 0x2c9   : > { %v2071_v1 = vpop.f32.mrf.mxu1  ;;  %3958 = vmatmul.mubr.bf16.gmra.mxu1 %v7476_v61  ;;  %v9003_v0 = vpack.c.bf16 %v2535_v9, %v2519_v26  ;;  %4099 = vmatpush2.bf16.msra.mxu0 %v8692_v60  ;;  %v2550_v59 = vmax.f32 %v1878_v55, 0.0 }
 0x2ca   : > { %v9005_v11 = vpack.c.bf16 %v2537_v53, %v2521_v36  ;;  %4302 = vmatpush2.bf16.msra.mxu1 %v8694_v37  ;;  %4100 = vmatprep.subr.bf16.mxu0 %v8677_v7  ;;  %v1880_v3 = vpop.f32.mrf.mxu0  ;;  %v2552_v27 = vmax.f32 %v2071_v1, 0.0  ;;  %v9021_v7 = vpop.permute.xlu1 %2953 }
 0x2cb   : > { %4303 = vmatprep.subr.bf16.mxu1 %v8679_v63  ;;  %v2073_v44 = vpop.f32.mrf.mxu1  ;;  %3764 = vmatprep.mubr.bf16.mxu0 %v7477_v28  ;;  %12652 = vst [vmem:[#allocation21_spill] sm:$0xff] %v9021_v7  ;;  %v2551_v63 = vmax.f32 %v1880_v3, 0.0 }
 0x2cc   : > { %3967 = vmatprep.mubr.bf16.mxu1 %v7477_v28  ;;  %v1882_v60 = vpop.f32.mrf.mxu0  ;;  %v2553_v50 = vmax.f32 %v2073_v44, 0.0  ;;  %v5663_v44 = vld [vmem:[%s12259_s5 + $0x8] sm:$0xff] }
 0x2cd   : > { %v2075_v37 = vpop.f32.mrf.mxu1  ;;  %v2566_v26 = vmax.f32 %v1882_v60, 0.0  ;;  %4101 = vmatpush2.bf16.msra.mxu0 %v8670_v5  ;;  %5673 = vperm.xlu1 %7311, %v5663_v44  }
 0x2ce   : > { %v2568_v36 = vmax.f32 %v2075_v37, 0.0  ;;  %4304 = vmatpush2.bf16.msra.mxu1 %v8672_v17  ;;  %4102 = vmatprep.subr.bf16.mxu0 %v8655_v31  ;;  %v1884_v23 = vpop.f32.mrf.mxu0  ;;  %v7478_v17 = vld [vmem:[%s12257_s3 + $0x60] ss:$8 sps:$4 sm:$0xff]   ;;  %v7479_v37 = vld [vmem:[%s12257_s3 + $0x74] ss:$8 sps:$4 sm:$0xff]  }
 0x2cf   : > { %4305 = vmatprep.subr.bf16.mxu1 %v8657_v14  ;;  %v2077_v9 = vpop.f32.mrf.mxu1  ;;  %v9025_v53 = vpack.c.bf16 %v2566_v26, %v2550_v59  ;;  %v2567_v1 = vmax.f32 %v1884_v23, 0.0  ;;  %v9038_v14 = vpop.permute.xlu0 %2938  ;;  %v12656_v23 = vld [vmem:[#allocation46_spill] sm:$0xff] }
 0x2d0   : > { %v9027_v55 = vpack.c.bf16 %v2568_v36, %v2552_v27  ;;  %v2569_v61 = vmax.f32 %v2077_v9, 0.0  ;;  %v1888_v2 = vpop.f32.mrf.mxu0  ;;  %3765 = vmatmul.mubr.bf16.gmra.mxu0 %v7478_v17  ;;  %12653 = vst [vmem:[#allocation59_spill] sm:$0xff] %v9038_v14  ;;  %v12657_v9 = vld [vmem:[#allocation47_spill] sm:$0xff] }
 0x2d1   : > { %v2081_v5 = vpop.f32.mrf.mxu1  ;;  %3968 = vmatmul.mubr.bf16.gmra.mxu1 %v7478_v17  ;;  %v9032_v3 = vpack.c.bf16 %v2567_v1, %v2551_v63  ;;  %4103 = vmatpush2.bf16.msra.mxu0 %v8648_v13  ;;  %v9048_v13 = vpop.permute.xlu1 %2943  ;;  %v2582_v27 = vmax.f32 %v1888_v2, 0.0 }
 0x2d2   : > { %v9034_v31 = vpack.c.bf16 %v2569_v61, %v2553_v50  ;;  %4306 = vmatpush2.bf16.msra.mxu1 %v8650_v34  ;;  %4104 = vmatprep.subr.bf16.mxu0 %v8633_v35  ;;  %v1890_v28 = vpop.f32.mrf.mxu0  ;;  %12654 = vst [vmem:[#allocation60_spill] sm:$0xff] %v9048_v13  ;;  %v2584_v26 = vmax.f32 %v2081_v5, 0.0  ;;  %v12655_v35 = vld [vmem:[#allocation44_spill] sm:$0xff] }
 0x2d3   : > { %4307 = vmatprep.subr.bf16.mxu1 %v8635_v45  ;;  %v2083_v60 = vpop.f32.mrf.mxu1  ;;  %3774 = vmatprep.mubr.bf16.mxu0 %v7479_v37  ;;  %v2583_v45 = vmax.f32 %v1890_v28, 0.0  ;;  %v9058_v44 = vpop.permute.xlu0 %2928  ;;  %v7480_v28 = vld [vmem:[%s12257_s3 + $0x70] ss:$8 sps:$4 sm:$0xff]  }
 0x2d4   : > { %3977 = vmatprep.mubr.bf16.mxu1 %v7479_v37  ;;  %v1892_v34 = vpop.f32.mrf.mxu0  ;;  %v2585_v50 = vmax.f32 %v2083_v60, 0.0  ;;  %12658 = vst [vmem:[#allocation44_spill] sm:$0xff] %v9058_v44 }
 0x2d5   : > { %v2085_v59 = vpop.f32.mrf.mxu1  ;;  %v2598_v36 = vmax.f32 %v1892_v34, 0.0  ;;  %4105 = vmatpush2.bf16.msra.mxu0 %v8626_v22 }
 0x2d6   : > { %v2600_v63 = vmax.f32 %v2085_v59, 0.0  ;;  %4308 = vmatpush2.bf16.msra.mxu1 %v12655_v35  ;;  %4106 = vmatprep.subr.bf16.mxu0 %v12656_v23  ;;  %v1894_v1 = vpop.f32.mrf.mxu0  ;;  %v12662_v35 = vld [vmem:[#allocation51_spill] sm:$0xff]  ;;  %v12663_v23 = vld [vmem:[#allocation52_spill] sm:$0xff] }
 0x2d7   : > { %4309 = vmatprep.subr.bf16.mxu1 %v12657_v9  ;;  %v2087_v61 = vpop.f32.mrf.mxu1  ;;  %v9054_v17 = vpack.c.bf16 %v2598_v36, %v2582_v27  ;;  %v2599_v2 = vmax.f32 %v1894_v1, 0.0  ;;  %v12659_v27 = vld [vmem:[#allocation49_spill] sm:$0xff]  ;;  %v9069_v36 = vpop.permute.xlu1 %2933 }
 0x2d8   : > { %v9056_v37 = vpack.c.bf16 %v2600_v63, %v2584_v26  ;;  %v2601_v5 = vmax.f32 %v2087_v61, 0.0  ;;  %v3300_v34 = vpop.f32.mrf.mxu0  ;;  %3775 = vmatmul.mubr.bf16.gmra.mxu0 %v7480_v28  ;;  %v12660_v26 = vld [vmem:[#allocation50_spill] sm:$0xff]  ;;  %12661 = vst [vmem:[#allocation46_spill] sm:$0xff] %v9069_v36  ;;  %v5665_v63 = vld [vmem:[%s12259_s5 + $0x18] sm:$0xff] }
 0x2d9   : > { %v3503_v22 = vpop.f32.mrf.mxu1  ;;  %3978 = vmatmul.mubr.bf16.gmra.mxu1 %v7480_v28  ;;  %v9063_v60 = vpack.c.bf16 %v2599_v2, %v2583_v45  ;;  %4107 = vmatpush2.bf16.msra.mxu0 %v12659_v27  ;;  %v3301_v45 = vadd.f32 %v3300_v34, %v9058_v44  ;;  %v7481_v61 = vld [vmem:[%s12257_s3 + $0x84] ss:$8 sps:$4 sm:$0xff]   ;;  %v12665_v34 = vld [vmem:[#allocation53_spill] sm:$0xff] }
 0x2da   : > { %v9065_v59 = vpack.c.bf16 %v2601_v5, %v2585_v50  ;;  %4310 = vmatpush2.bf16.msra.mxu1 %v12660_v26  ;;  %4108 = vmatprep.subr.bf16.mxu0 %v12662_v35  ;;  %v3302_v9 = vpop.f32.mrf.mxu0  ;;  %v3504_v50 = vadd.f32 %v3503_v22, %v9058_v44  ;;  %v12664_v35 = vld [vmem:[#allocation48_spill] sm:$0xff] }
 0x2db   : > { %4311 = vmatprep.subr.bf16.mxu1 %v12663_v23  ;;  %v3505_v1 = vpop.f32.mrf.mxu1  ;;  %3784 = vmatprep.mubr.bf16.mxu0 %v7481_v61  ;;  %v3303_v28 = vadd.f32 %v3302_v9, %v9058_v44  ;;  %v4890_v22 = vmax.f32 %v3301_v45, 0.0  ;;  %v7482_v45 = vld [vmem:[%s12257_s3 + $0x80] ss:$8 sps:$4 sm:$0xff]  }
 0x2dc   : > { %3987 = vmatprep.mubr.bf16.mxu1 %v7481_v61  ;;  %v3304_v2 = vpop.f32.mrf.mxu0  ;;  %5683 = vperm.xlu1 %7311, %v5665_v63   ;;  %v4892_v23 = vmax.f32 %v3504_v50, 0.0 }
 0x2dd   : > { %v3507_v5 = vpop.f32.mrf.mxu1  ;;  %v3305_v27 = vadd.f32 %v3304_v2, %v9069_v36  ;;  %4109 = vmatpush2.bf16.msra.mxu0 %v12664_v35 }
 0x2de   : > { %v3508_v26 = vadd.f32 %v3507_v5, %v9069_v36  ;;  %4312 = vmatpush2.bf16.msra.mxu1 %v12665_v34  ;;  %4484 = vmatprep.subr.bf16.mxu0 %v8856_v57  ;;  %v3306_v61 = vpop.f32.mrf.mxu0  ;;  %v3506_v5 = vadd.f32 %v3505_v1, %v9058_v44  ;;  %v4891_v57 = vmax.f32 %v3303_v28, 0.0 }
 0x2df   : > { %4687 = vmatprep.subr.bf16.mxu1 %v8858_v12  ;;  %v3509_v32 = vpop.f32.mrf.mxu1  ;;  %v4906_v18 = vmax.f32 %v3305_v27, 0.0  ;;  %v3307_v9 = vadd.f32 %v3306_v61, %v9069_v36 }
 0x2e0   : > { %v4908_v63 = vmax.f32 %v3508_v26, 0.0  ;;  %v3510_v2 = vadd.f32 %v3509_v32, %v9069_v36  ;;  %v3310_v54 = vpop.f32.mrf.mxu0  ;;  %3785 = vmatmul.mubr.bf16.gmra.mxu0 %v7482_v45  ;;  %v7483_v32 = vld [vmem:[%s12257_s3 + $0x94] ss:$8 sps:$4 sm:$0xff]  }
 0x2e1   : > { %v3513_v35 = vpop.f32.mrf.mxu1  ;;  %3988 = vmatmul.mubr.bf16.gmra.mxu1 %v7482_v45  ;;  %v9094_v12 = vpack.c.bf16 %v4906_v18, %v4890_v22  ;;  %v4907_v27 = vmax.f32 %v3307_v9, 0.0  ;;  %3794 = vmatprep.mubr.bf16.mxu0 %v7483_v32  ;;  %v3311_v26 = vadd.f32 %v3310_v54, %v9038_v14  ;;  %v4893_v18 = vmax.f32 %v3506_v5, 0.0 }
 0x2e2   : > { %v9096_v50 = vpack.c.bf16 %v4908_v63, %v4892_v23  ;;  %3997 = vmatprep.mubr.bf16.mxu1 %v7483_v32  ;;  %v4909_v1 = vmax.f32 %v3510_v2, 0.0  ;;  %v3514_v34 = vadd.f32 %v3513_v35, %v9038_v14  ;;  %v3312_v61 = vpop.f32.mrf.mxu0 }
 0x2e3   : > { %12666 = vst [vmem:[#allocation47_spill] sm:$0xff] %v9094_v12  ;;  %v3515_v36 = vpop.f32.mrf.mxu1  ;;  %v9103_v45 = vpack.c.bf16 %v4907_v27, %v4891_v57  ;;  %v3313_v28 = vadd.f32 %v3312_v61, %v9038_v14  ;;  %v4922_v2 = vmax.f32 %v3311_v26, 0.0 }
 0x2e4   : > { %12667 = vst [vmem:[#allocation49_spill] sm:$0xff] %v9096_v50  ;;  %v3516_v22 = vadd.f32 %v3515_v36, %v9038_v14  ;;  %v3314_v23 = vpop.f32.mrf.mxu0  ;;  %v4924_v50 = vmax.f32 %v3514_v34, 0.0  ;;  %v9109_v35 = vpack.c.bf16 %v4909_v1, %v4893_v18 }
 0x2e5   : > { %12668 = vst [vmem:[#allocation50_spill] sm:$0xff] %v9103_v45  ;;  %v3517_v63 = vpop.f32.mrf.mxu1  ;;  %v3315_v9 = vadd.f32 %v3314_v23, %v9048_v13  ;;  %v4923_v61 = vmax.f32 %v3313_v28, 0.0  ;;  %v7484_v23 = vld [vmem:[%s12257_s3 + $0x90] ss:$8 sps:$4 sm:$0xff]  }
 0x2e6   : > { %v3518_v32 = vadd.f32 %v3517_v63, %v9048_v13  ;;  %v3316_v54 = vpop.f32.mrf.mxu0  ;;  %12669 = vst [vmem:[#allocation51_spill] sm:$0xff] %v9109_v35  ;;  %v4925_v36 = vmax.f32 %v3516_v22, 0.0 }
 0x2e7   : > { %v3519_v12 = vpop.f32.mrf.mxu1  ;;  %v4938_v44 = vmax.f32 %v3315_v9, 0.0  ;;  %v3317_v5 = vadd.f32 %v3316_v54, %v9048_v13 }
 0x2e8   : > { %v4940_v57 = vmax.f32 %v3518_v32, 0.0  ;;  %v3520_v27 = vadd.f32 %v3519_v12, %v9048_v13  ;;  %v3320_v45 = vpop.f32.mrf.mxu0  ;;  %3795 = vmatmul.mubr.bf16.gmra.mxu0 %v7484_v23  ;;  %v7485_v12 = vld [vmem:[%s12257_s3 + $0xa4] ss:$8 sps:$4 sm:$0xff]  }
 0x2e9   : > { %v3523_v14 = vpop.f32.mrf.mxu1  ;;  %3998 = vmatmul.mubr.bf16.gmra.mxu1 %v7484_v23  ;;  %v9116_v26 = vpack.c.bf16 %v4938_v44, %v4922_v2  ;;  %v4939_v34 = vmax.f32 %v3317_v5, 0.0  ;;  %3804 = vmatprep.mubr.bf16.mxu0 %v7485_v12  ;;  %v3321_v28 = vadd.f32 %v3320_v45, %v9017_v16  ;;  %v9133_v23 = vpop.permute.xlu0 %3078 }
 0x2ea   : > { %v9118_v1 = vpack.c.bf16 %v4940_v57, %v4924_v50  ;;  %v4941_v18 = vmax.f32 %v3520_v27, 0.0  ;;  %4007 = vmatprep.mubr.bf16.mxu1 %v7485_v12  ;;  %v3524_v22 = vadd.f32 %v3523_v14, %v9017_v16  ;;  %v3322_v63 = vpop.f32.mrf.mxu0  ;;  %12674 = vst [vmem:[#allocation62_spill] sm:$0xff] %v9133_v23 }
 0x2eb   : > { %12670 = vst [vmem:[#allocation52_spill] sm:$0xff] %v9116_v26  ;;  %v3525_v9 = vpop.f32.mrf.mxu1  ;;  %v9125_v32 = vpack.c.bf16 %v4939_v34, %v4923_v61  ;;  %v3323_v50 = vadd.f32 %v3322_v63, %v9017_v16  ;;  %v4954_v45 = vmax.f32 %v3321_v28, 0.0  ;;  %v9137_v63 = vpop.permute.xlu1 %3083 }
 0x2ec   : > { %12671 = vst [vmem:[#allocation48_spill] sm:$0xff] %v9118_v1  ;;  %v9127_v44 = vpack.c.bf16 %v4941_v18, %v4925_v36  ;;  %v3526_v2 = vadd.f32 %v3525_v9, %v9017_v16  ;;  %v3324_v54 = vpop.f32.mrf.mxu0  ;;  %v4956_v14 = vmax.f32 %v3524_v22, 0.0  ;;  %12675 = vst [vmem:[#allocation63_spill] sm:$0xff] %v9137_v63 }
 0x2ed   : > { %12672 = vst [vmem:[#allocation53_spill] sm:$0xff] %v9125_v32  ;;  %v3527_v57 = vpop.f32.mrf.mxu1  ;;  %v3325_v5 = vadd.f32 %v3324_v54, %v9021_v7  ;;  %v4955_v9 = vmax.f32 %v3323_v50, 0.0  ;;  %v9151_v32 = vpop.permute.xlu0 %3068 }
 0x2ee   : > { %12673 = vst [vmem:[#allocation61_spill] sm:$0xff] %v9127_v44  ;;  %v3528_v27 = vadd.f32 %v3527_v57, %v9021_v7  ;;  %v3326_v12 = vpop.f32.mrf.mxu0  ;;  %v4957_v1 = vmax.f32 %v3526_v2, 0.0  ;;  %v7486_v57 = vld [vmem:[%s12257_s3 + $0xa0] ss:$8 sps:$4 sm:$0xff]   ;;  %12678 = vst [vmem:[#allocation66_spill] sm:$0xff] %v9151_v32 }
 0x2ef   : > { %v3529_v35 = vpop.f32.mrf.mxu1  ;;  %v4970_v61 = vmax.f32 %v3325_v5, 0.0  ;;  %v3327_v36 = vadd.f32 %v3326_v12, %v9021_v7 }
 0x2f0   : > { %v4972_v34 = vmax.f32 %v3528_v27, 0.0  ;;  %v3530_v18 = vadd.f32 %v3529_v35, %v9021_v7  ;;  %v3330_v26 = vpop.f32.mrf.mxu0  ;;  %3805 = vmatmul.mubr.bf16.gmra.mxu0 %v7486_v57  ;;  %v7487_v35 = vld [vmem:[%s12257_s3 + $0xb4] ss:$8 sps:$4 sm:$0xff]  }
 0x2f1   : > { %v3533_v54 = vpop.f32.mrf.mxu1  ;;  %4008 = vmatmul.mubr.bf16.gmra.mxu1 %v7486_v57  ;;  %v9142_v28 = vpack.c.bf16 %v4970_v61, %v4954_v45  ;;  %v4971_v5 = vmax.f32 %v3327_v36, 0.0  ;;  %3814 = vmatprep.mubr.bf16.mxu0 %v7487_v35  ;;  %v3331_v50 = vadd.f32 %v3330_v26, %v8987_v49 }
 0x2f2   : > { %v9144_v22 = vpack.c.bf16 %v4972_v34, %v4956_v14  ;;  %v4973_v27 = vmax.f32 %v3530_v18, 0.0  ;;  %4017 = vmatprep.mubr.bf16.mxu1 %v7487_v35  ;;  %v3534_v2 = vadd.f32 %v3533_v54, %v8987_v49  ;;  %v3332_v12 = vpop.f32.mrf.mxu0  ;;  %v9161_v35 = vpop.permute.xlu1 %3073 }
 0x2f3   : > { %12676 = vst [vmem:[#allocation64_spill] sm:$0xff] %v9142_v28  ;;  %v3535_v44 = vpop.f32.mrf.mxu1  ;;  %v9153_v45 = vpack.c.bf16 %v4971_v5, %v4955_v9  ;;  %v3333_v61 = vadd.f32 %v3332_v12, %v8987_v49  ;;  %12681 = vst [vmem:[#allocation69_spill] sm:$0xff] %v9161_v35  ;;  %v4986_v54 = vmax.f32 %v3331_v50, 0.0 }
 0x2f4   : > { %12677 = vst [vmem:[#allocation65_spill] sm:$0xff] %v9144_v22  ;;  %v9155_v14 = vpack.c.bf16 %v4973_v27, %v4957_v1  ;;  %v3536_v34 = vadd.f32 %v3535_v44, %v8987_v49  ;;  %v3334_v36 = vpop.f32.mrf.mxu0  ;;  %v4988_v22 = vmax.f32 %v3534_v2, 0.0 }
 0x2f5   : > { %12679 = vst [vmem:[#allocation67_spill] sm:$0xff] %v9153_v45  ;;  %v3537_v18 = vpop.f32.mrf.mxu1  ;;  %v3335_v57 = vadd.f32 %v3334_v36, %v8998_v25  ;;  %v4987_v12 = vmax.f32 %v3333_v61, 0.0  ;;  %v7488_v36 = vld [vmem:[%s12257_s3 + $0xb0] ss:$8 sps:$4 sm:$0xff]  }
 0x2f6   : > { %12680 = vst [vmem:[#allocation68_spill] sm:$0xff] %v9155_v14  ;;  %v3538_v26 = vadd.f32 %v3537_v18, %v8998_v25  ;;  %v3336_v28 = vpop.f32.mrf.mxu0  ;;  %v4989_v44 = vmax.f32 %v3536_v34, 0.0 }
 0x2f7   : > { %v3539_v7 = vpop.f32.mrf.mxu1  ;;  %v5002_v9 = vmax.f32 %v3335_v57, 0.0  ;;  %v3337_v1 = vadd.f32 %v3336_v28, %v8998_v25  ;;  %v9175_v28 = vpop.permute.xlu0 %3058 }
 0x2f8   : > { %v5004_v5 = vmax.f32 %v3538_v26, 0.0  ;;  %v3540_v27 = vadd.f32 %v3539_v7, %v8998_v25  ;;  %v3340_v14 = vpop.f32.mrf.mxu0  ;;  %3815 = vmatmul.mubr.bf16.gmra.mxu0 %v7488_v36  ;;  %v7489_v7 = vld [vmem:[%s12257_s3 + $0xc4] ss:$8 sps:$4 sm:$0xff]   ;;  %12684 = vst [vmem:[#allocation72_spill] sm:$0xff] %v9175_v28 }
 0x2f9   : > { %v3543_v45 = vpop.f32.mrf.mxu1  ;;  %4018 = vmatmul.mubr.bf16.gmra.mxu1 %v7488_v36  ;;  %v9168_v50 = vpack.c.bf16 %v5002_v9, %v4986_v54  ;;  %v5003_v18 = vmax.f32 %v3337_v1, 0.0  ;;  %3824 = vmatprep.mubr.bf16.mxu0 %v7489_v7  ;;  %v3341_v61 = vadd.f32 %v3340_v14, %v8967_v51  ;;  %v9179_v54 = vpop.permute.xlu1 %3063 }
 0x2fa   : > { %v9170_v2 = vpack.c.bf16 %v5004_v5, %v4988_v22  ;;  %v5005_v57 = vmax.f32 %v3540_v27, 0.0  ;;  %4027 = vmatprep.mubr.bf16.mxu1 %v7489_v7  ;;  %v3544_v34 = vadd.f32 %v3543_v45, %v8967_v51  ;;  %v3342_v26 = vpop.f32.mrf.mxu0  ;;  %12685 = vst [vmem:[#allocation73_spill] sm:$0xff] %v9179_v54 }
 0x2fb   : > { %12682 = vst [vmem:[#allocation70_spill] sm:$0xff] %v9168_v50  ;;  %v3545_v36 = vpop.f32.mrf.mxu1  ;;  %v9181_v22 = vpack.c.bf16 %v5003_v18, %v4987_v12  ;;  %v3343_v5 = vadd.f32 %v3342_v26, %v8967_v51  ;;  %v5018_v50 = vmax.f32 %v3341_v61, 0.0  ;;  %v9191_v18 = vpop.permute.xlu0 %3048 }
 0x2fc   : > { %12683 = vst [vmem:[#allocation71_spill] sm:$0xff] %v9170_v2  ;;  %v9183_v9 = vpack.c.bf16 %v5005_v57, %v4989_v44  ;;  %v3546_v1 = vadd.f32 %v3545_v36, %v8967_v51  ;;  %v3344_v27 = vpop.f32.mrf.mxu0  ;;  %v5020_v45 = vmax.f32 %v3544_v34, 0.0  ;;  %12688 = vst [vmem:[#allocation76_spill] sm:$0xff] %v9191_v18 }
 0x2fd   : > { %12686 = vst [vmem:[#allocation74_spill] sm:$0xff] %v9181_v22  ;;  %v3547_v7 = vpop.f32.mrf.mxu1  ;;  %v3345_v2 = vadd.f32 %v3344_v27, %v8978_v58  ;;  %v5019_v57 = vmax.f32 %v3343_v5, 0.0  ;;  %v7490_v27 = vld [vmem:[%s12257_s3 + $0xc0] ss:$8 sps:$4 sm:$0xff]   ;;  %v9203_v5 = vpop.permute.xlu1 %3053 }
 0x2fe   : > { %12687 = vst [vmem:[#allocation75_spill] sm:$0xff] %v9183_v9  ;;  %v3548_v14 = vadd.f32 %v3547_v7, %v8978_v58  ;;  %v3346_v25 = vpop.f32.mrf.mxu0  ;;  %v5021_v26 = vmax.f32 %v3546_v1, 0.0  ;;  %12691 = vst [vmem:[#allocation79_spill] sm:$0xff] %v9203_v5 }
 0x2ff   : > { %v3549_v49 = vpop.f32.mrf.mxu1  ;;  %v5034_v16 = vmax.f32 %v3345_v2, 0.0  ;;  %v3347_v12 = vadd.f32 %v3346_v25, %v8978_v58 }
 0x300   : > { %v5036_v13 = vmax.f32 %v3548_v14, 0.0  ;;  %v3550_v44 = vadd.f32 %v3549_v49, %v8978_v58  ;;  %v3350_v36 = vpop.f32.mrf.mxu0  ;;  %3825 = vmatmul.mubr.bf16.gmra.mxu0 %v7490_v27  ;;  %v7491_v49 = vld [vmem:[%s12257_s3 + $0xd4] ss:$8 sps:$4 sm:$0xff]  }
 0x301   : > { %v3553_v9 = vpop.f32.mrf.mxu1  ;;  %4028 = vmatmul.mubr.bf16.gmra.mxu1 %v7490_v27  ;;  %v9196_v61 = vpack.c.bf16 %v5034_v16, %v5018_v50  ;;  %v5035_v34 = vmax.f32 %v3347_v12, 0.0  ;;  %3834 = vmatprep.mubr.bf16.mxu0 %v7491_v49  ;;  %v3351_v1 = vadd.f32 %v3350_v36, %v8950_v30 }
 0x302   : > { %v9198_v2 = vpack.c.bf16 %v5036_v13, %v5020_v45  ;;  %v5037_v25 = vmax.f32 %v3550_v44, 0.0  ;;  %4037 = vmatprep.mubr.bf16.mxu1 %v7491_v49  ;;  %v3554_v7 = vadd.f32 %v3553_v9, %v8950_v30  ;;  %v3352_v14 = vpop.f32.mrf.mxu0 }
 0x303   : > { %12689 = vst [vmem:[#allocation77_spill] sm:$0xff] %v9196_v61  ;;  %v3555_v27 = vpop.f32.mrf.mxu1  ;;  %v9207_v16 = vpack.c.bf16 %v5035_v34, %v5019_v57  ;;  %v3353_v50 = vadd.f32 %v3352_v14, %v8950_v30  ;;  %v5050_v36 = vmax.f32 %v3351_v1, 0.0  ;;  %v9219_v14 = vpop.permute.xlu1 %3043 }
 0x304   : > { %12690 = vst [vmem:[#allocation78_spill] sm:$0xff] %v9198_v2  ;;  %v9209_v13 = vpack.c.bf16 %v5037_v25, %v5021_v26  ;;  %v3556_v45 = vadd.f32 %v3555_v27, %v8950_v30  ;;  %v3354_v12 = vpop.f32.mrf.mxu0  ;;  %v9215_v2 = vpop.permute.xlu0 %3038  ;;  %v5052_v9 = vmax.f32 %v3554_v7, 0.0  ;;  %12695 = vst [vmem:[#allocation83_spill] sm:$0xff] %v9219_v14 }
 0x305   : > { %12692 = vst [vmem:[#allocation80_spill] sm:$0xff] %v9207_v16  ;;  %v3557_v44 = vpop.f32.mrf.mxu1  ;;  %v3355_v49 = vadd.f32 %v3354_v12, %v8957_v19  ;;  %12694 = vst [vmem:[#allocation82_spill] sm:$0xff] %v9215_v2  ;;  %v5051_v27 = vmax.f32 %v3353_v50, 0.0 }
 0x306   : > { %12693 = vst [vmem:[#allocation81_spill] sm:$0xff] %v9209_v13  ;;  %v3558_v22 = vadd.f32 %v3557_v44, %v8957_v19  ;;  %v3356_v61 = vpop.f32.mrf.mxu0  ;;  %v5053_v13 = vmax.f32 %v3556_v45, 0.0  ;;  %v7492_v44 = vld [vmem:[%s12257_s3 + $0xd0] ss:$8 sps:$4 sm:$0xff]  }
 0x307   : > { %v3559_v58 = vpop.f32.mrf.mxu1  ;;  %v5066_v57 = vmax.f32 %v3355_v49, 0.0  ;;  %v3357_v26 = vadd.f32 %v3356_v61, %v8957_v19 }
 0x308   : > { %v5068_v34 = vmax.f32 %v3558_v22, 0.0  ;;  %v3560_v25 = vadd.f32 %v3559_v58, %v8957_v19  ;;  %v3360_v16 = vpop.f32.mrf.mxu0  ;;  %3835 = vmatmul.mubr.bf16.gmra.mxu0 %v7492_v44  ;;  %v7493_v58 = vld [vmem:[%s12257_s3 + $0xe4] ss:$8 sps:$4 sm:$0xff]   ;;  %v9233_v30 = vpop.permute.xlu0 %3028 }
 0x309   : > { %v3563_v12 = vpop.f32.mrf.mxu1  ;;  %4038 = vmatmul.mubr.bf16.gmra.mxu1 %v7492_v44  ;;  %v9224_v1 = vpack.c.bf16 %v5066_v57, %v5050_v36  ;;  %v5067_v22 = vmax.f32 %v3357_v26, 0.0  ;;  %3844 = vmatprep.mubr.bf16.mxu0 %v7493_v58  ;;  %v3361_v50 = vadd.f32 %v3360_v16, %v8913_v6  ;;  %12698 = vst [vmem:[#allocation86_spill] sm:$0xff] %v9233_v30 }
 0x30a   : > { %v9226_v7 = vpack.c.bf16 %v5068_v34, %v5052_v9  ;;  %v5069_v61 = vmax.f32 %v3560_v25, 0.0  ;;  %4047 = vmatprep.mubr.bf16.mxu1 %v7493_v58  ;;  %v3564_v45 = vadd.f32 %v3563_v12, %v8913_v6  ;;  %v3362_v49 = vpop.f32.mrf.mxu0  ;;  %v9243_v58 = vpop.permute.xlu1 %3033 }
 0x30b   : > { %12696 = vst [vmem:[#allocation84_spill] sm:$0xff] %v9224_v1  ;;  %v3565_v19 = vpop.f32.mrf.mxu1  ;;  %v9235_v36 = vpack.c.bf16 %v5067_v22, %v5051_v27  ;;  %v3363_v57 = vadd.f32 %v3362_v49, %v8913_v6  ;;  %12701 = vst [vmem:[#allocation89_spill] sm:$0xff] %v9243_v58  ;;  %v5082_v12 = vmax.f32 %v3361_v50, 0.0 }
 0x30c   : > { %12697 = vst [vmem:[#allocation85_spill] sm:$0xff] %v9226_v7  ;;  %v9237_v9 = vpack.c.bf16 %v5069_v61, %v5053_v13  ;;  %v3566_v34 = vadd.f32 %v3565_v19, %v8913_v6  ;;  %v3364_v26 = vpop.f32.mrf.mxu0  ;;  %v5084_v7 = vmax.f32 %v3564_v45, 0.0 }
 0x30d   : > { %12699 = vst [vmem:[#allocation87_spill] sm:$0xff] %v9235_v36  ;;  %v3567_v25 = vpop.f32.mrf.mxu1  ;;  %v3365_v44 = vadd.f32 %v3364_v26, %v8933_v62  ;;  %v5083_v49 = vmax.f32 %v3363_v57, 0.0  ;;  %v7494_v26 = vld [vmem:[%s12257_s3 + $0xe0] ss:$8 sps:$4 sm:$0xff]  }
 0x30e   : > { %12700 = vst [vmem:[#allocation88_spill] sm:$0xff] %v9237_v9  ;;  %v3568_v16 = vadd.f32 %v3567_v25, %v8933_v62  ;;  %v3366_v1 = vpop.f32.mrf.mxu0  ;;  %v5085_v19 = vmax.f32 %v3566_v34, 0.0 }
 0x30f   : > { %v3569_v51 = vpop.f32.mrf.mxu1  ;;  %v5098_v27 = vmax.f32 %v3365_v44, 0.0  ;;  %v3367_v13 = vadd.f32 %v3366_v1, %v8933_v62 }
 0x310   : > { %v5100_v22 = vmax.f32 %v3568_v16, 0.0  ;;  %v3570_v61 = vadd.f32 %v3569_v51, %v8933_v62  ;;  %v3370_v9 = vpop.f32.mrf.mxu0  ;;  %3845 = vmatmul.mubr.bf16.gmra.mxu0 %v7494_v26  ;;  %v9254_v16 = vpop.permute.xlu0 %3018  ;;  %v7495_v51 = vld [vmem:[%s12257_s3 + $0xf4] ss:$8 sps:$4 sm:$0xff]  }
 0x311   : > { %v3573_v36 = vpop.f32.mrf.mxu1  ;;  %4048 = vmatmul.mubr.bf16.gmra.mxu1 %v7494_v26  ;;  %v9250_v50 = vpack.c.bf16 %v5098_v27, %v5082_v12  ;;  %v5099_v25 = vmax.f32 %v3367_v13, 0.0  ;;  %12704 = vst [vmem:[#allocation92_spill] sm:$0xff] %v9254_v16  ;;  %3854 = vmatprep.mubr.bf16.mxu0 %v7495_v51  ;;  %v3371_v1 = vadd.f32 %v3370_v9, %v8905_v41  ;;  %v9261_v12 = vpop.permute.xlu1 %3023 }
 0x312   : > { %v9252_v45 = vpack.c.bf16 %v5100_v22, %v5084_v7  ;;  %v5101_v44 = vmax.f32 %v3570_v61, 0.0  ;;  %4057 = vmatprep.mubr.bf16.mxu1 %v7495_v51  ;;  %v3574_v57 = vadd.f32 %v3573_v36, %v8905_v41  ;;  %v3372_v34 = vpop.f32.mrf.mxu0  ;;  %12705 = vst [vmem:[#allocation93_spill] sm:$0xff] %v9261_v12 }
 0x313   : > { %12702 = vst [vmem:[#allocation90_spill] sm:$0xff] %v9250_v50  ;;  %v3575_v26 = vpop.f32.mrf.mxu1  ;;  %v9263_v7 = vpack.c.bf16 %v5099_v25, %v5083_v49  ;;  %v3373_v22 = vadd.f32 %v3372_v34, %v8905_v41  ;;  %v5114_v50 = vmax.f32 %v3371_v1, 0.0 }
 0x314   : > { %12703 = vst [vmem:[#allocation91_spill] sm:$0xff] %v9252_v45  ;;  %v9265_v27 = vpack.c.bf16 %v5101_v44, %v5085_v19  ;;  %v3576_v13 = vadd.f32 %v3575_v26, %v8905_v41  ;;  %v3374_v61 = vpop.f32.mrf.mxu0  ;;  %v5116_v36 = vmax.f32 %v3574_v57, 0.0  ;;  %v9273_v25 = vpop.permute.xlu0 %3008 }
 0x315   : > { %12706 = vst [vmem:[#allocation94_spill] sm:$0xff] %v9263_v7  ;;  %v3577_v45 = vpop.f32.mrf.mxu1  ;;  %v3375_v51 = vadd.f32 %v3374_v61, %v8929_v4  ;;  %12708 = vst [vmem:[#allocation96_spill] sm:$0xff] %v9273_v25  ;;  %v5115_v44 = vmax.f32 %v3373_v22, 0.0 }
 0x316   : > { %12707 = vst [vmem:[#allocation95_spill] sm:$0xff] %v9265_v27  ;;  %v3578_v9 = vadd.f32 %v3577_v45, %v8929_v4  ;;  %v3376_v62 = vpop.f32.mrf.mxu0  ;;  %v5117_v34 = vmax.f32 %v3576_v13, 0.0  ;;  %v7496_v45 = vld [vmem:[%s12257_s3 + $0xf0] ss:$8 sps:$4 sm:$0xff]  }
 0x317   : > { %v3579_v6 = vpop.f32.mrf.mxu1  ;;  %v5130_v38 = vmax.f32 %v3375_v51, 0.0  ;;  %v3377_v49 = vadd.f32 %v3376_v62, %v8929_v4  ;;  %v9282_v51 = vpop.permute.xlu1 %3013 }
 0x318   : > { %v5132_v43 = vmax.f32 %v3578_v9, 0.0  ;;  %v3580_v19 = vadd.f32 %v3579_v6, %v8929_v4  ;;  %v3380_v26 = vpop.f32.mrf.mxu0  ;;  %3855 = vmatmul.mubr.bf16.gmra.mxu0 %v7496_v45  ;;  %12711 = vst [vmem:[#allocation99_spill] sm:$0xff] %v9282_v51  ;;  %v7497_v6 = vld [vmem:[%s12257_s3 + $0x104] ss:$8 sps:$4 sm:$0xff]  }
 0x319   : > { %v3583_v27 = vpop.f32.mrf.mxu1  ;;  %4058 = vmatmul.mubr.bf16.gmra.mxu1 %v7496_v45  ;;  %v9278_v1 = vpack.c.bf16 %v5130_v38, %v5114_v50  ;;  %v5131_v61 = vmax.f32 %v3377_v49, 0.0  ;;  %3864 = vmatprep.mubr.bf16.mxu0 %v7497_v6  ;;  %v3381_v9 = vadd.f32 %v3380_v26, %v9273_v25 }
 0x31a   : > { %v9280_v57 = vpack.c.bf16 %v5132_v43, %v5116_v36  ;;  %v5133_v62 = vmax.f32 %v3580_v19, 0.0  ;;  %4067 = vmatprep.mubr.bf16.mxu1 %v7497_v6  ;;  %v3382_v22 = vpop.f32.mrf.mxu0  ;;  %v3584_v45 = vadd.f32 %v3583_v27, %v9273_v25 }
 0x31b   : > { %12709 = vst [vmem:[#allocation97_spill] sm:$0xff] %v9278_v1  ;;  %v3585_v13 = vpop.f32.mrf.mxu1  ;;  %v9289_v38 = vpack.c.bf16 %v5131_v61, %v5115_v44  ;;  %v3383_v50 = vadd.f32 %v3382_v22, %v9273_v25 }
 0x31c   : > { %12710 = vst [vmem:[#allocation98_spill] sm:$0xff] %v9280_v57  ;;  %v9291_v43 = vpack.c.bf16 %v5133_v62, %v5117_v34  ;;  %v3586_v36 = vadd.f32 %v3585_v13, %v9273_v25  ;;  %v3384_v49 = vpop.f32.mrf.mxu0  ;;  %v5146_v57 = vmax.f32 %v3381_v9, 0.0  ;;  %v5148_v1 = vmax.f32 %v3584_v45, 0.0 }
 0x31d   : > { %v3587_v19 = vpop.f32.mrf.mxu1  ;;  %v3385_v7 = vadd.f32 %v3384_v49, %v9282_v51  ;;  %v5147_v61 = vmax.f32 %v3383_v50, 0.0  ;;  %v7498_v49 = vld [vmem:[%s12257_s3 + $0x100] ss:$8 sps:$4 sm:$0xff]  }
 0x31e   : > { %v3588_v6 = vadd.f32 %v3587_v19, %v9282_v51  ;;  %v3386_v4 = vpop.f32.mrf.mxu0  ;;  %v5149_v62 = vmax.f32 %v3586_v36, 0.0 }
 0x31f   : > { %v3589_v26 = vpop.f32.mrf.mxu1  ;;  %v5162_v41 = vmax.f32 %v3385_v7, 0.0  ;;  %v3387_v44 = vadd.f32 %v3386_v4, %v9282_v51  ;;  %v7499_v4 = vld [vmem:[%s12257_s3 + $0x4] ss:$8 sps:$4 sm:$0xff]  }
 0x320   : > { %v5164_v27 = vmax.f32 %v3588_v6, 0.0  ;;  %v3590_v34 = vadd.f32 %v3589_v26, %v9282_v51  ;;  %v3390_v22 = vpop.f32.mrf.mxu0  ;;  %3865 = vmatmul.mubr.bf16.gmra.mxu0 %v7498_v49 }
 0x321   : > { %v3593_v13 = vpop.f32.mrf.mxu1  ;;  %4068 = vmatmul.mubr.bf16.gmra.mxu1 %v7498_v49  ;;  %v9302_v9 = vpack.c.bf16 %v5162_v41, %v5146_v57  ;;  %v5163_v7 = vmax.f32 %v3387_v44, 0.0  ;;  %4110 = vmatprep.mubr.bf16.mxu0 %v7499_v4  ;;  %v3391_v50 = vadd.f32 %v3390_v22, %v9254_v16 }
 0x322   : > { %v9304_v45 = vpack.c.bf16 %v5164_v27, %v5148_v1  ;;  %v5165_v19 = vmax.f32 %v3590_v34, 0.0  ;;  %4313 = vmatprep.mubr.bf16.mxu1 %v7499_v4  ;;  %v3594_v36 = vadd.f32 %v3593_v13, %v9254_v16  ;;  %v3392_v6 = vpop.f32.mrf.mxu0 }
 0x323   : > { %12712 = vst [vmem:[#allocation100_spill] sm:$0xff] %v9302_v9  ;;  %v3595_v26 = vpop.f32.mrf.mxu1  ;;  %v9311_v51 = vpack.c.bf16 %v5163_v7, %v5147_v61  ;;  %v3393_v1 = vadd.f32 %v3392_v6, %v9254_v16  ;;  %v5178_v49 = vmax.f32 %v3391_v50, 0.0 }
 0x324   : > { %12713 = vst [vmem:[#allocation101_spill] sm:$0xff] %v9304_v45  ;;  %v9313_v41 = vpack.c.bf16 %v5165_v19, %v5149_v62  ;;  %v3394_v57 = vpop.f32.mrf.mxu0  ;;  %v5180_v4 = vmax.f32 %v3594_v36, 0.0  ;;  %v3596_v22 = vadd.f32 %v3595_v26, %v9254_v16 }
 0x325   : > { %12714 = vst [vmem:[#allocation102_spill] sm:$0xff] %v9311_v51  ;;  %v3597_v27 = vpop.f32.mrf.mxu1  ;;  %v3395_v44 = vadd.f32 %v3394_v57, %v9261_v12  ;;  %v5179_v7 = vmax.f32 %v3393_v1, 0.0  ;;  %v7500_v57 = vld [vmem:[%s12257_s3] ss:$8 sps:$4 sm:$0xff]   ;;  %v12732_v51 = vld [vmem:[#allocation32_spill] sm:$0xff] }
 0x326   : > { %12715 = vst [vmem:[#allocation103_spill] sm:$0xff] %v9313_v41  ;;  %v3598_v34 = vadd.f32 %v3597_v27, %v9261_v12  ;;  %v3396_v45 = vpop.f32.mrf.mxu0 }
 0x327   : > { %v3599_v13 = vpop.f32.mrf.mxu1  ;;  %v5194_v9 = vmax.f32 %v3395_v44, 0.0  ;;  %v3397_v61 = vadd.f32 %v3396_v45, %v9261_v12  ;;  %v5181_v45 = vmax.f32 %v3596_v22, 0.0 }
 0x328   : > { %v5196_v25 = vmax.f32 %v3598_v34, 0.0  ;;  %v3600_v62 = vadd.f32 %v3599_v13, %v9261_v12  ;;  %v3400_v19 = vpop.f32.mrf.mxu0  ;;  %4111 = vmatmul.mubr.bf16.vlgmr.msra.gmra.mxu0 %v7500_v57 }
 0x329   : > { %v3603_v6 = vpop.f32.mrf.mxu1  ;;  %4314 = vmatmul.mubr.bf16.vlgmr.msra.gmra.mxu1 %v7500_v57  ;;  %v9324_v50 = vpack.c.bf16 %v5194_v9, %v5178_v49  ;;  %v5195_v26 = vmax.f32 %v3397_v61, 0.0  ;;  %4485 = vmatpush1.bf16.msra.mxu0 %v8852_v48  ;;  %v3401_v1 = vadd.f32 %v3400_v19, %v9233_v30 }
 0x32a   : > { %v9326_v36 = vpack.c.bf16 %v5196_v25, %v5180_v4  ;;  %v5197_v27 = vmax.f32 %v3600_v62, 0.0  ;;  %4688 = vmatpush1.bf16.msra.mxu1 %v8854_v47  ;;  %v3604_v44 = vadd.f32 %v3603_v6, %v9233_v30  ;;  %4486 = vmatprep.subr.bf16.mxu0 %v8845_v52  ;;  %v3402_v34 = vpop.f32.mrf.mxu0  ;;  %v7501_v25 = vld [vmem:[%s12257_s3 + $0x14] ss:$8 sps:$4 sm:$0xff]  }
 0x32b   : > { %12716 = vst [vmem:[#allocation104_spill] sm:$0xff] %v9324_v50  ;;  %4689 = vmatprep.subr.bf16.mxu1 %v8847_v39  ;;  %v3605_v9 = vpop.f32.mrf.mxu1  ;;  %4120 = vmatprep.mubr.bf16.mxu0 %v7501_v25  ;;  %v9337_v48 = vpack.c.bf16 %v5195_v26, %v5179_v7  ;;  %v3403_v47 = vadd.f32 %v3402_v34, %v9233_v30  ;;  %v5210_v13 = vmax.f32 %v3401_v1, 0.0 }
 0x32c   : > { %12717 = vst [vmem:[#allocation105_spill] sm:$0xff] %v9326_v36  ;;  %4323 = vmatprep.mubr.bf16.mxu1 %v7501_v25  ;;  %v3404_v49 = vpop.f32.mrf.mxu0  ;;  %v9340_v22 = vpack.c.bf16 %v5197_v27, %v5181_v45  ;;  %v5212_v61 = vmax.f32 %v3604_v44, 0.0  ;;  %v3606_v62 = vadd.f32 %v3605_v9, %v9233_v30 }
 0x32d   : > { %12718 = vst [vmem:[#allocation106_spill] sm:$0xff] %v9337_v48  ;;  %v3607_v4 = vpop.f32.mrf.mxu1  ;;  %v3405_v52 = vadd.f32 %v3404_v49, %v9243_v58  ;;  %4487 = vmatpush1.bf16.msra.mxu0 %v8841_v33  ;;  %v5211_v45 = vmax.f32 %v3403_v47, 0.0 }
 0x32e   : > { %12719 = vst [vmem:[#allocation107_spill] sm:$0xff] %v9340_v22  ;;  %v3608_v39 = vadd.f32 %v3607_v4, %v9243_v58  ;;  %4690 = vmatpush1.bf16.msra.mxu1 %v8843_v46  ;;  %4488 = vmatprep.subr.bf16.mxu0 %v8831_v29  ;;  %v3406_v7 = vpop.f32.mrf.mxu0  ;;  %v7502_v46 = vld [vmem:[%s12257_s3 + $0x10] ss:$8 sps:$4 sm:$0xff]   ;;  %v5213_v9 = vmax.f32 %v3606_v62, 0.0 }
 0x32f   : > { %4691 = vmatprep.subr.bf16.mxu1 %v8833_v24  ;;  %v3609_v19 = vpop.f32.mrf.mxu1  ;;  %v5226_v6 = vmax.f32 %v3405_v52, 0.0  ;;  %v3407_v26 = vadd.f32 %v3406_v7, %v9243_v58  ;;  %v7503_v52 = vld [vmem:[%s12257_s3 + $0x24] ss:$8 sps:$4 sm:$0xff]   ;;  %v12724_v62 = vld [vmem:[#allocation25_spill] sm:$0xff] }
 0x330   : > { %v5228_v57 = vmax.f32 %v3608_v39, 0.0  ;;  %v3610_v27 = vadd.f32 %v3609_v19, %v9243_v58  ;;  %v3410_v33 = vpop.f32.mrf.mxu0  ;;  %4121 = vmatmul.mubr.bf16.gmra.mxu0 %v7502_v46  ;;  %v12725_v7 = vld [vmem:[#allocation22_spill] sm:$0xff]  ;;  %v7504_v19 = vld [vmem:[%s7657_s30 + $0x8] sm:$0xff] }
 0x331   : > { %v3613_v34 = vpop.f32.mrf.mxu1  ;;  %4324 = vmatmul.mubr.bf16.gmra.mxu1 %v7502_v46  ;;  %v9354_v29 = vpack.c.bf16 %v5226_v6, %v5210_v13  ;;  %v5227_v1 = vmax.f32 %v3407_v26, 0.0  ;;  %4489 = vmatpush1.bf16.msra.mxu0 %v8827_v8  ;;  %v3411_v25 = vadd.f32 %v3410_v33, %v9215_v2  ;;  %v6147_v6 = vand.u32 2147483647, %v7504_v19  ;;  %v12727_v33 = vld [vmem:[#allocation24_spill] sm:$0xff] }
 0x332   : > { %v9356_v24 = vpack.c.bf16 %v5228_v57, %v5212_v61  ;;  %v5229_v44 = vmax.f32 %v3610_v27, 0.0  ;;  %4692 = vmatpush1.bf16.msra.mxu1 %v8829_v56  ;;  %v3614_v47 = vadd.f32 %v3613_v34, %v9215_v2  ;;  %4490 = vmatprep.subr.bf16.mxu0 %v8817_v42  ;;  %v3412_v49 = vpop.f32.mrf.mxu0 }
 0x333   : > { %12720 = vst [vmem:[#allocation108_spill] sm:$0xff] %v9354_v29  ;;  %4693 = vmatprep.subr.bf16.mxu1 %v8819_v20  ;;  %v3615_v4 = vpop.f32.mrf.mxu1  ;;  %4130 = vmatprep.mubr.bf16.mxu0 %v7503_v52  ;;  %v9367_v8 = vpack.c.bf16 %v5227_v1, %v5211_v45  ;;  %v3413_v56 = vadd.f32 %v3412_v49, %v9215_v2  ;;  %v5242_v57 = vmax.f32 %v3411_v25, 0.0  ;;  %v12726_v45 = vld [vmem:[#allocation27_spill] sm:$0xff]  ;;  %v7506_v25 = vld [vmem:[%s7657_s30] sm:$0xff] }
 0x334   : > { %12721 = vst [vmem:[#allocation109_spill] sm:$0xff] %v9356_v24  ;;  %4333 = vmatprep.mubr.bf16.mxu1 %v7503_v52  ;;  %v3414_v39 = vpop.f32.mrf.mxu0  ;;  %v9370_v61 = vpack.c.bf16 %v5229_v44, %v5213_v9  ;;  %v5244_v26 = vmax.f32 %v3614_v47, 0.0  ;;  %v3616_v27 = vadd.f32 %v3615_v4, %v9215_v2  ;;  %v7505_v52 = vld [vmem:[%s7657_s30 + $0x18] sm:$0xff]  ;;  %v6146_v47 = vand.u32 2147483647, %v7506_v25 }
 0x335   : > { %12722 = vst [vmem:[#allocation110_spill] sm:$0xff] %v9367_v8  ;;  %v3617_v13 = vpop.f32.mrf.mxu1  ;;  %v3415_v42 = vadd.f32 %v3414_v39, %v9219_v14  ;;  %4491 = vmatpush1.bf16.msra.mxu0 %v12724_v62  ;;  %v6149_v39 = vand.u32 2147483647, %v7505_v52  ;;  %v12745_v8 = vld [vmem:[#allocation39_spill] sm:$0xff] }
 0x336   : > { %12723 = vst [vmem:[#allocation111_spill] sm:$0xff] %v9370_v61  ;;  %v3618_v20 = vadd.f32 %v3617_v13, %v9219_v14  ;;  %4694 = vmatpush1.bf16.msra.mxu1 %v12725_v7  ;;  %4492 = vmatprep.subr.bf16.mxu0 %v12726_v45  ;;  %v3416_v34 = vpop.f32.mrf.mxu0  ;;  %v5243_v13 = vmax.f32 %v3413_v56, 0.0  ;;  %v7507_v7 = vld [vmem:[%s12257_s3 + $0x20] ss:$8 sps:$4 sm:$0xff]   ;;  %v5245_v52 = vmax.f32 %v3616_v27, 0.0  ;;  %v6170_v27 = vsel %vm6162_vm1, %v6147_v6, -inf }
 0x337   : > { %4695 = vmatprep.subr.bf16.mxu1 %v12727_v33  ;;  %v3619_v46 = vpop.f32.mrf.mxu1  ;;  %v5258_v1 = vmax.f32 %v3415_v42, 0.0  ;;  %v3417_v9 = vadd.f32 %v3416_v34, %v9219_v14  ;;  %v12730_v33 = vld [vmem:[#allocation30_spill] sm:$0xff]  ;;  %v6171_v50 = vrot.slane %v6170_v27, 4 }
 0x338   : > { %v5260_v44 = vmax.f32 %v3618_v20, 0.0  ;;  %v3620_v49 = vadd.f32 %v3619_v46, %v9219_v14  ;;  %v3420_v4 = vpop.f32.mrf.mxu0  ;;  %4131 = vmatmul.mubr.bf16.gmra.mxu0 %v7507_v7  ;;  %v12731_v34 = vld [vmem:[#allocation26_spill] sm:$0xff]  ;;  %v7508_v46 = vld [vmem:[%s7657_s30 + $0x10] sm:$0xff] }
 0x339   : > { %v3623_v62 = vpop.f32.mrf.mxu1  ;;  %4334 = vmatmul.mubr.bf16.gmra.mxu1 %v7507_v7  ;;  %v9387_v42 = vpack.c.bf16 %v5258_v1, %v5242_v57  ;;  %v5259_v19 = vmax.f32 %v3417_v9, 0.0  ;;  %4493 = vmatpush1.bf16.msra.mxu0 %v12730_v33  ;;  %v6148_v56 = vand.u32 2147483647, %v7508_v46  ;;  %v3421_v25 = vadd.f32 %v3420_v4, %v9191_v18  ;;  %v12733_v7 = vld [vmem:[#allocation29_spill] sm:$0xff]  ;;  %v12744_v61 = vld [vmem:[#allocation42_spill] sm:$0xff] }
 0x33a   : > { %v9389_v20 = vpack.c.bf16 %v5260_v44, %v5244_v26  ;;  %v5261_v45 = vmax.f32 %v3620_v49, 0.0  ;;  %4696 = vmatpush1.bf16.msra.mxu1 %v12731_v34  ;;  %v3624_v41 = vadd.f32 %v3623_v62, %v9191_v18  ;;  %4494 = vmatprep.subr.bf16.mxu0 %v12732_v51  ;;  %v3422_v57 = vpop.f32.mrf.mxu0  ;;  %v7509_v1 = vld [vmem:[%s12257_s3 + $0x34] ss:$8 sps:$4 sm:$0xff]   ;;  %v6184_v51 = vsel %vm6162_vm1, %v6149_v39, -inf }
 0x33b   : > { %12728 = vst [vmem:[#allocation25_spill] sm:$0xff] %v9387_v42  ;;  %4697 = vmatprep.subr.bf16.mxu1 %v12733_v7  ;;  %v3625_v26 = vpop.f32.mrf.mxu1  ;;  %4140 = vmatprep.mubr.bf16.mxu0 %v7509_v1  ;;  %v9401_v44 = vpack.c.bf16 %v5259_v19, %v5243_v13  ;;  %v3423_v9 = vadd.f32 %v3422_v57, %v9191_v18  ;;  %v6163_v33 = vsel %vm6162_vm1, %v6146_v47, -inf  ;;  %v12736_v7 = vld [vmem:[#allocation35_spill] sm:$0xff]  ;;  %v6177_v6 = vsel %vm6162_vm1, %v6148_v56, -inf }
 0x33c   : > { %12729 = vst [vmem:[#allocation22_spill] sm:$0xff] %v9389_v20  ;;  %4343 = vmatprep.mubr.bf16.mxu1 %v7509_v1  ;;  %v3424_v49 = vpop.f32.mrf.mxu0  ;;  %v9405_v62 = vpack.c.bf16 %v5261_v45, %v5245_v52  ;;  %v12737_v13 = vld [vmem:[#allocation31_spill] sm:$0xff]  ;;  %v5274_v19 = vmax.f32 %v3421_v25, 0.0  ;;  %v5276_v57 = vmax.f32 %v3624_v41, 0.0  ;;  %v3626_v1 = vadd.f32 %v3625_v26, %v9191_v18  ;;  %v12738_v45 = vld [vmem:[#allocation37_spill] sm:$0xff]  ;;  %v12739_v52 = vld [vmem:[#allocation34_spill] sm:$0xff] }
 0x33d   : > { %12734 = vst [vmem:[#allocation27_spill] sm:$0xff] %v9401_v44  ;;  %v3627_v4 = vpop.f32.mrf.mxu1  ;;  %v3425_v34 = vadd.f32 %v3424_v49, %v9203_v5  ;;  %4495 = vmatpush1.bf16.msra.mxu0 %v12736_v7  ;;  %v6164_v22 = vrot.slane %v6163_v33, 4  ;;  %v5275_v56 = vmax.f32 %v3423_v9, 0.0  ;;  %v7510_v26 = vld [vmem:[%s12257_s3 + $0x30] ss:$8 sps:$4 sm:$0xff]   ;;  %v6178_v48 = vrot.slane %v6177_v6, 4 }
 0x33e   : > { %12735 = vst [vmem:[#allocation24_spill] sm:$0xff] %v9405_v62  ;;  %v3628_v46 = vadd.f32 %v3627_v4, %v9203_v5  ;;  %4698 = vmatpush1.bf16.msra.mxu1 %v12737_v13  ;;  %4496 = vmatprep.subr.bf16.mxu0 %v12738_v45  ;;  %v3426_v39 = vpop.f32.mrf.mxu0  ;;  %v6185_v13 = vrot.slane %v6184_v51, 4  ;;  %v5277_v9 = vmax.f32 %v3626_v1, 0.0  ;;  %v12749_v20 = vld [vmem:[#allocation41_spill] sm:$0xff]  ;;  %v7520_v62 = vld [vmem:[%s12257_s3 + $0x80] ss:$8 sps:$4 sm:$0xff]  }
 0x33f   : > { %4699 = vmatprep.subr.bf16.mxu1 %v12739_v52  ;;  %v3629_v47 = vpop.f32.mrf.mxu1  ;;  %v5290_v36 = vmax.f32 %v3425_v34, 0.0  ;;  %v3427_v4 = vadd.f32 %v3426_v39, %v9203_v5  ;;  %v12742_v39 = vld [vmem:[#allocation40_spill] sm:$0xff]  ;;  %v6165_v1 = vmax.f32 %v6163_v33, %v6164_v22 }
 0x340   : > { %v5292_v49 = vmax.f32 %v3628_v46, 0.0  ;;  %v3630_v7 = vadd.f32 %v3629_v47, %v9203_v5  ;;  %v3430_v25 = vpop.f32.mrf.mxu0  ;;  %4141 = vmatmul.mubr.bf16.gmra.mxu0 %v7510_v26  ;;  %v12743_v47 = vld [vmem:[#allocation36_spill] sm:$0xff] }
 0x341   : > { %v3633_v41 = vpop.f32.mrf.mxu1  ;;  %4344 = vmatmul.mubr.bf16.gmra.mxu1 %v7510_v26  ;;  %v9422_v45 = vpack.c.bf16 %v5290_v36, %v5274_v19  ;;  %v5291_v46 = vmax.f32 %v3427_v4, 0.0  ;;  %4497 = vmatpush1.bf16.msra.mxu0 %v12742_v39  ;;  %v3431_v24 = vadd.f32 %v3430_v25, %v9175_v28  ;;  %v6172_v4 = vmax.f32 %v6170_v27, %v6171_v50 }
 0x342   : > { %v9424_v34 = vpack.c.bf16 %v5292_v49, %v5276_v57  ;;  %v5293_v52 = vmax.f32 %v3630_v7, 0.0  ;;  %4700 = vmatpush1.bf16.msra.mxu1 %v12743_v47  ;;  %v3634_v29 = vadd.f32 %v3633_v41, %v9175_v28  ;;  %4498 = vmatprep.subr.bf16.mxu0 %v12744_v61  ;;  %v3432_v36 = vpop.f32.mrf.mxu0  ;;  %v7511_v57 = vld [vmem:[%s12257_s3 + $0x44] ss:$8 sps:$4 sm:$0xff]   ;;  %v9440_v61 = vmax.f32 %v6184_v51, %v6185_v13  ;;  %v12748_v47 = vld [vmem:[#allocation45_spill] sm:$0xff] }
 0x343   : > { %12740 = vst [vmem:[#allocation30_spill] sm:$0xff] %v9422_v45  ;;  %4701 = vmatprep.subr.bf16.mxu1 %v12745_v8  ;;  %v3635_v19 = vpop.f32.mrf.mxu1  ;;  %4150 = vmatprep.mubr.bf16.mxu0 %v7511_v57  ;;  %v9435_v49 = vpack.c.bf16 %v5291_v46, %v5275_v56  ;;  %v3433_v7 = vadd.f32 %v3432_v36, %v9175_v28  ;;  %v5306_v46 = vmax.f32 %v3431_v24, 0.0  ;;  %v6173_v36 = vrot.slane %v6172_v4, 2 }
 0x344   : > { %12741 = vst [vmem:[#allocation26_spill] sm:$0xff] %v9424_v34  ;;  %4353 = vmatprep.mubr.bf16.mxu1 %v7511_v57  ;;  %v3434_v25 = vpop.f32.mrf.mxu0  ;;  %v9438_v26 = vpack.c.bf16 %v5293_v52, %v5277_v9  ;;  %v6179_v56 = vmax.f32 %v6177_v6, %v6178_v48  ;;  %v5308_v50 = vmax.f32 %v3634_v29, 0.0  ;;  %v3636_v22 = vadd.f32 %v3635_v19, %v9175_v28  ;;  %v7512_v29 = vld [vmem:[%s12257_s3 + $0x40] ss:$8 sps:$4 sm:$0xff]  }
 0x345   : > { %12746 = vst [vmem:[#allocation32_spill] sm:$0xff] %v9435_v49  ;;  %v3637_v41 = vpop.f32.mrf.mxu1  ;;  %v3435_v8 = vadd.f32 %v3434_v25, %v9179_v54  ;;  %4499 = vmatpush1.bf16.msra.mxu0 %v12748_v47  ;;  %v6166_v57 = vrot.slane %v6165_v1, 2 }
 0x346   : > { %12747 = vst [vmem:[#allocation29_spill] sm:$0xff] %v9438_v26  ;;  %v3638_v39 = vadd.f32 %v3637_v41, %v9179_v54  ;;  %4702 = vmatpush1.bf16.msra.mxu1 %v12749_v20  ;;  %4500 = vmatprep.subr.bf16.mxu0 %v9063_v60  ;;  %v3436_v27 = vpop.f32.mrf.mxu0  ;;  %v5307_v20 = vmax.f32 %v3433_v7, 0.0  ;;  %v6180_v25 = vrot.slane %v6179_v56, 2  ;;  %v5309_v7 = vmax.f32 %v3636_v22, 0.0 }
 0x347   : > { %4703 = vmatprep.subr.bf16.mxu1 %v9065_v59  ;;  %v3639_v51 = vpop.f32.mrf.mxu1  ;;  %v5322_v33 = vmax.f32 %v3435_v8, 0.0  ;;  %v3437_v52 = vadd.f32 %v3436_v27, %v9179_v54 }
 0x348   : > { %v5324_v13 = vmax.f32 %v3638_v39, 0.0  ;;  %v3640_v9 = vadd.f32 %v3639_v51, %v9179_v54  ;;  %v3440_v48 = vpop.f32.mrf.mxu0  ;;  %4151 = vmatmul.mubr.bf16.gmra.mxu0 %v7512_v29  ;;  %v6174_v51 = vmax.f32 %v6172_v4, %v6173_v36  ;;  %v6181_v36 = vmax.f32 %v6179_v56, %v6180_v25 }
 0x349   : > { %v3643_v24 = vpop.f32.mrf.mxu1  ;;  %4354 = vmatmul.mubr.bf16.gmra.mxu1 %v7512_v29  ;;  %v9454_v60 = vpack.c.bf16 %v5322_v33, %v5306_v46  ;;  %v5323_v6 = vmax.f32 %v3437_v52, 0.0  ;;  %4501 = vmatpush2.bf16.msra.mxu0 %v9054_v17  ;;  %v3441_v41 = vadd.f32 %v3440_v48, %v9151_v32  ;;  %v6187_v46 = vrot.slane %v9440_v61, 2  ;;  %v7513_v17 = vld [vmem:[%s12257_s3 + $0x54] ss:$8 sps:$4 sm:$0xff]  }
 0x34a   : > { %v9456_v59 = vpack.c.bf16 %v5324_v13, %v5308_v50  ;;  %v5325_v19 = vmax.f32 %v3640_v9, 0.0  ;;  %4704 = vmatpush2.bf16.msra.mxu1 %v9056_v37  ;;  %v3644_v8 = vadd.f32 %v3643_v24, %v9151_v32  ;;  %4502 = vmatprep.subr.bf16.mxu0 %v9032_v3  ;;  %v3442_v39 = vpop.f32.mrf.mxu0  ;;  %v6167_v3 = vmax.f32 %v6165_v1, %v6166_v57 }
 0x34b   : > { %12750 = vst [vmem:[#allocation35_spill] sm:$0xff] %v9454_v60  ;;  %4705 = vmatprep.subr.bf16.mxu1 %v9034_v31  ;;  %v3645_v47 = vpop.f32.mrf.mxu1  ;;  %4160 = vmatprep.mubr.bf16.mxu0 %v7513_v17  ;;  %v9468_v37 = vpack.c.bf16 %v5323_v6, %v5307_v20  ;;  %v3443_v50 = vadd.f32 %v3442_v39, %v9151_v32  ;;  %v5338_v52 = vmax.f32 %v3441_v41, 0.0 }
 0x34c   : > { %12751 = vst [vmem:[#allocation31_spill] sm:$0xff] %v9456_v59  ;;  %4363 = vmatprep.mubr.bf16.mxu1 %v7513_v17  ;;  %v3444_v22 = vpop.f32.mrf.mxu0  ;;  %v9471_v33 = vpack.c.bf16 %v5325_v19, %v5309_v7  ;;  %v5340_v9 = vmax.f32 %v3644_v8, 0.0  ;;  %v3646_v20 = vadd.f32 %v3645_v47, %v9151_v32  ;;  %v7514_v19 = vld [vmem:[%s12257_s3 + $0x50] ss:$8 sps:$4 sm:$0xff]   ;;  %v6168_v7 = vrot.slane %v6167_v3, 1 }
 0x34d   : > { %12752 = vst [vmem:[#allocation37_spill] sm:$0xff] %v9468_v37  ;;  %v3647_v27 = vpop.f32.mrf.mxu1  ;;  %v3445_v31 = vadd.f32 %v3444_v22, %v9161_v35  ;;  %4503 = vmatpush2.bf16.msra.mxu0 %v9025_v53  ;;  %v5339_v53 = vmax.f32 %v3443_v50, 0.0  ;;  %v6182_v50 = vrot.slane %v6181_v36, 1  ;;  %v7515_v22 = vld [vmem:[%s12257_s3 + $0x64] ss:$8 sps:$4 sm:$0xff]  }
 0x34e   : > { %12753 = vst [vmem:[#allocation34_spill] sm:$0xff] %v9471_v33  ;;  %v3648_v13 = vadd.f32 %v3647_v27, %v9161_v35  ;;  %4706 = vmatpush2.bf16.msra.mxu1 %v9027_v55  ;;  %4504 = vmatprep.subr.bf16.mxu0 %v9003_v0  ;;  %v3446_v4 = vpop.f32.mrf.mxu0  ;;  %v6175_v0 = vrot.slane %v6174_v51, 1  ;;  %v5341_v39 = vmax.f32 %v3646_v20, 0.0  ;;  %v12757_v20 = vld [vmem:[#allocation14_spill] sm:$0xff] }
 0x34f   : > { %4707 = vmatprep.subr.bf16.mxu1 %v9005_v11  ;;  %v3649_v1 = vpop.f32.mrf.mxu1  ;;  %v5354_v57 = vmax.f32 %v3445_v31, 0.0  ;;  %v3447_v24 = vadd.f32 %v3446_v4, %v9161_v35  ;;  %v6188_v11 = vmax.f32 %v9440_v61, %v6187_v46  ;;  %v12758_v4 = vld [vmem:[#allocation15_spill] sm:$0xff] }
 0x350   : > { %v5356_v48 = vmax.f32 %v3648_v13, 0.0  ;;  %v3650_v29 = vadd.f32 %v3649_v1, %v9161_v35  ;;  %v3450_v6 = vpop.f32.mrf.mxu0  ;;  %4161 = vmatmul.mubr.bf16.gmra.mxu0 %v7514_v19  ;;  %v9510_v1 = vmax.f32 %v6174_v51, %v6175_v0 }
 0x351   : > { %v3653_v55 = vpop.f32.mrf.mxu1  ;;  %4364 = vmatmul.mubr.bf16.gmra.mxu1 %v7514_v19  ;;  %v9486_v56 = vpack.c.bf16 %v5354_v57, %v5338_v52  ;;  %v5355_v41 = vmax.f32 %v3447_v24, 0.0  ;;  %4505 = vmatpush2.bf16.msra.mxu0 %v8994_v15  ;;  %v3451_v47 = vadd.f32 %v3450_v6, %v9133_v23  ;;  %v6189_v13 = vrot.slane %v6188_v11, 1 }
 0x352   : > { %v9488_v25 = vpack.c.bf16 %v5356_v48, %v5340_v9  ;;  %v5357_v8 = vmax.f32 %v3650_v29, 0.0  ;;  %4708 = vmatpush2.bf16.msra.mxu1 %v8996_v21  ;;  %v3654_v17 = vadd.f32 %v3653_v55, %v9133_v23  ;;  %4506 = vmatprep.subr.bf16.mxu0 %v8972_v40  ;;  %v3452_v61 = vpop.f32.mrf.mxu0  ;;  %v9502_v52 = vmax.f32 %v6167_v3, %v6168_v7  ;;  %v12759_v29 = vld [vmem:[#allocation10_spill] sm:$0xff]  ;;  %v12760_v3 = vld [vmem:[#allocation11_spill] sm:$0xff] }
 0x353   : > { %12754 = vst [vmem:[#allocation40_spill] sm:$0xff] %v9486_v56  ;;  %4709 = vmatprep.subr.bf16.mxu1 %v8974_v10  ;;  %v3655_v46 = vpop.f32.mrf.mxu1  ;;  %4170 = vmatprep.mubr.bf16.mxu0 %v7515_v22  ;;  %v9499_v15 = vpack.c.bf16 %v5355_v41, %v5339_v53  ;;  %v3453_v21 = vadd.f32 %v3452_v61, %v9133_v23  ;;  %v5370_v57 = vmax.f32 %v3451_v47, 0.0  ;;  %vm6276_vm3 = vcmp.le.f32.partialorder %v9510_v1, 1.1  ;;  %v7518_v1 = vld [vmem:[%s12257_s3 + $0x70] ss:$8 sps:$4 sm:$0xff]  }
 0x354   : > { %12755 = vst [vmem:[#allocation36_spill] sm:$0xff] %v9488_v25  ;;  %4373 = vmatprep.mubr.bf16.mxu1 %v7515_v22  ;;  %v3454_v27 = vpop.f32.mrf.mxu0  ;;  %v9504_v40 = vpack.c.bf16 %v5357_v8, %v5341_v39  ;;  %v5372_v48 = vmax.f32 %v3654_v17, 0.0  ;;  %v3656_v24 = vadd.f32 %v3655_v46, %v9133_v23  ;;  %v6183_v55 = vmax.f32 %v6181_v36, %v6182_v50  ;;  %v9517_v39 = vpop.permute.xlu0 %3088  ;;  %v7516_v17 = vld [vmem:[%s12257_s3 + $0x60] ss:$8 sps:$4 sm:$0xff]  }
 0x355   : > { %v3657_v31 = vpop.f32.mrf.mxu1  ;;  %v3455_v10 = vadd.f32 %v3454_v27, %v9137_v63  ;;  %4507 = vmatpush2.bf16.msra.mxu0 %v12757_v20  ;;  %12761 = vst [vmem:[#allocation39_spill] sm:$0xff] %v9517_v39  ;;  %v5371_v51 = vmax.f32 %v3453_v21, 0.0  ;;  %v6190_v61 = vmax.f32 %v6188_v11, %v6189_v13  ;;  %vm6275_vm2 = vcmp.le.f32.partialorder %v9502_v52, 1.1  ;;  %v12762_v27 = vld [vmem:[#allocation8_spill] sm:$0xff]  ;;  %v12763_v21 = vld [vmem:[#allocation9_spill] sm:$0xff] }
 0x356   : > { %12756 = vst [vmem:[#allocation42_spill] sm:$0xff] %v9504_v40  ;;  %v3658_v9 = vadd.f32 %v3657_v31, %v9137_v63  ;;  %4710 = vmatpush2.bf16.msra.mxu1 %v12758_v4  ;;  %4508 = vmatprep.subr.bf16.mxu0 %v12759_v29  ;;  %v3456_v53 = vpop.f32.mrf.mxu0  ;;  %v9529_v31 = vpop.permute.xlu1 %3093  ;;  %v12766_v20 = vld [vmem:[#allocation5_spill] sm:$0xff]  ;;  %vm6277_vm4 = vcmp.le.f32.partialorder %v6183_v55, 1.1 }
 0x357   : > { %4711 = vmatprep.subr.bf16.mxu1 %v12760_v3  ;;  %v3659_v6 = vpop.f32.mrf.mxu1  ;;  %v5386_v19 = vmax.f32 %v3455_v10, 0.0  ;;  %v3457_v41 = vadd.f32 %v3456_v53, %v9137_v63  ;;  %12764 = vst [vmem:[#allocation45_spill] sm:$0xff] %v9529_v31  ;;  %v5373_v10 = vmax.f32 %v3656_v24, 0.0  ;;  %v7517_v24 = vld [vmem:[%s12257_s3 + $0x74] ss:$8 sps:$4 sm:$0xff]  }
 0x358   : > { %v5388_v7 = vmax.f32 %v3658_v9, 0.0  ;;  %v3660_v8 = vadd.f32 %v3659_v6, %v9137_v63  ;;  %v3460_v0 = vpop.f32.mrf.mxu0  ;;  %4171 = vmatmul.mubr.bf16.gmra.mxu0 %v7516_v17  ;;  %v12765_v9 = vld [vmem:[#allocation4_spill] sm:$0xff]  ;;  %vm6278_vm5 = vcmp.le.f32.partialorder %v6190_v61, 1.1 }
 0x359   : > { %v3663_v47 = vpop.f32.mrf.mxu1  ;;  %4374 = vmatmul.mubr.bf16.gmra.mxu1 %v7516_v17  ;;  %v9523_v36 = vpack.c.bf16 %v5386_v19, %v5370_v57  ;;  %v5387_v50 = vmax.f32 %v3457_v41, 0.0  ;;  %4509 = vmatpush2.bf16.msra.mxu0 %v12762_v27  ;;  %v3461_v4 = vadd.f32 %v3460_v0, %v9517_v39  ;;  %v12767_v27 = vld [vmem:[#allocation33_spill] sm:$0xff] }
 0x35a   : > { %v9525_v46 = vpack.c.bf16 %v5388_v7, %v5372_v48  ;;  %v5389_v22 = vmax.f32 %v3660_v8, 0.0  ;;  %4712 = vmatpush2.bf16.msra.mxu1 %v12763_v21  ;;  %4510 = vmatprep.subr.bf16.mxu0 %v12765_v9  ;;  %v3462_v11 = vpop.f32.mrf.mxu0  ;;  %v3664_v57 = vadd.f32 %v3663_v47, %v9517_v39  ;;  %v12768_v21 = vld [vmem:[#allocation2_spill] sm:$0xff] }
 0x35b   : > { %4713 = vmatprep.subr.bf16.mxu1 %v12766_v20  ;;  %v3665_v13 = vpop.f32.mrf.mxu1  ;;  %v3463_v48 = vadd.f32 %v3462_v11, %v9517_v39  ;;  %4180 = vmatprep.mubr.bf16.mxu0 %v7517_v24  ;;  %v9541_v3 = vpack.c.bf16 %v5387_v50, %v5371_v51  ;;  %v6130_v6 = vmax.f32 %v3461_v4, 0.0  ;;  %v6419_v50 = vlaneseq  ;;  %v12770_v9 = vld [vmem:[#allocation58_spill] sm:$0xff] }
 0x35c   : > { %v3666_v29 = vadd.f32 %v3665_v13, %v9517_v39  ;;  %4383 = vmatprep.mubr.bf16.mxu1 %v7517_v24  ;;  %v3464_v53 = vpop.f32.mrf.mxu0  ;;  %v6132_v7 = vmax.f32 %v3664_v57, 0.0  ;;  %v9543_v41 = vpack.c.bf16 %v5389_v22, %v5373_v10  ;;  %v12769_v10 = vld [vmem:[#allocation57_spill] sm:$0xff]  ;;  %v12779_v39 = vld [vmem:[#allocation44_spill] sm:$0xff] }
 0x35d   : > { %v3667_v19 = vpop.f32.mrf.mxu1  ;;  %v6131_v8 = vmax.f32 %v3463_v48, 0.0  ;;  %v9546_v47 = vadd.f32 %v3464_v53, %v9529_v31  ;;  %4511 = vmatpush2.bf16.msra.mxu0 %v12767_v27  ;;  %v9555_v51 = vsel %vm6275_vm2, %v6130_v6, 0.0  ;;  %v12771_v6 = vld [vmem:[#allocation38_spill] sm:$0xff]  ;;  %v12774_v27 = vld [vmem:[#allocation55_spill] sm:$0xff] }
 0x35e   : > { %v6133_v0 = vmax.f32 %v3666_v29, 0.0  ;;  %v9549_v17 = vadd.f32 %v3667_v19, %v9529_v31  ;;  %4714 = vmatpush2.bf16.msra.mxu1 %v12768_v21  ;;  %v9558_v22 = vsel %vm6277_vm4, %v6132_v7, 0.0  ;;  %4512 = vmatprep.subr.bf16.mxu0 %v12769_v10  ;;  %v3466_v20 = vpop.f32.mrf.mxu0  ;;  %v9592_v19 = vshrl.u32 %v6419_v50, 7  ;;  %v7519_v50 = vld [vmem:[%s12257_s3 + $0x84] ss:$8 sps:$4 sm:$0xff]  }
 0x35f   : > { %4715 = vmatprep.subr.bf16.mxu1 %v12770_v9  ;;  %v3669_v11 = vpop.f32.mrf.mxu1  ;;  %v9564_v13 = vsel %vm6276_vm3, %v6131_v8, 0.0  ;;  %v12313_v52 = vmax.f32 %v9546_v47, 0.0  ;;  %v9572_v57 = vadd.f32 %v3466_v20, %v9529_v31  ;;  %v12775_v9 = vld [vmem:[#allocation56_spill] sm:$0xff] }
 0x360   : > { %v9567_v4 = vsel %vm6278_vm5, %v6133_v0, 0.0  ;;  %v12310_v55 = vmax.f32 %v9549_v17, 0.0  ;;  %v9575_v48 = vadd.f32 %v3669_v11, %v9529_v31  ;;  %v3706_v29 = vpop.f32.mrf.mxu0  ;;  %4181 = vmatmul.mubr.bf16.gmra.mxu0 %v7518_v1  ;;  %12772 = vst [vmem:[#allocation41_spill] sm:$0xff] %v9592_v19  ;;  %v12773_v0 = vld [vmem:[#allocation43_spill] sm:$0xff]  ;;  %v7521_v31 = vld [vmem:[%s12257_s3 + $0x94] ss:$8 sps:$4 sm:$0xff]  }
 0x361   : > { %v3909_v24 = vpop.f32.mrf.mxu1  ;;  %4384 = vmatmul.mubr.bf16.gmra.mxu1 %v7518_v1  ;;  %v9584_v61 = vadd.f32 %v12313_v52, %v9555_v51  ;;  %4513 = vmatpush2.bf16.msra.mxu0 %v12771_v6  ;;  %v12311_v7 = vmax.f32 %v9572_v57, 0.0  ;;  %v12781_v45 = vsub.s32 2, %v9592_v19 }
 0x362   : > { %v9589_v53 = vadd.f32 %v12310_v55, %v9558_v22  ;;  %v12312_v8 = vmax.f32 %v9575_v48, 0.0  ;;  %4716 = vmatpush2.bf16.msra.mxu1 %v12773_v0  ;;  %4514 = vmatprep.subr.bf16.mxu0 %v12774_v27  ;;  %v9598_v21 = vpop.f32.mrf.mxu0  ;;  %v9627_v55 = vsub.s32 0, %v9592_v19 }
 0x363   : > { %v9600_v10 = vpop.f32.mrf.mxu1  ;;  %vm6339_vm6 = vcmp.eq.f32.partialorder %v9584_v61, 0.0  ;;  %4717 = vmatprep.subr.bf16.mxu1 %v12775_v9  ;;  %4190 = vmatprep.mubr.bf16.mxu0 %v7519_v50  ;;  %v9618_v1 = vadd.f32 %v12311_v7, %v9564_v13  ;;  %v12776_v9 = vld [vmem:[#allocation23_spill] sm:$0xff]  ;;  %v12778_v7 = vld [vmem:[#allocation54_spill] sm:$0xff]  ;;  %v6659_v49 = vsub.f32 0.0, %v9584_v61 }
 0x364   : > { %vm6341_vm7 = vcmp.eq.f32.partialorder %v9589_v53, 0.0  ;;  %v6355_v20 = vsel %vm6339_vm6, 0.0001, %v9584_v61  ;;  %v9623_v6 = vadd.f32 %v12312_v8, %v9567_v4  ;;  %v3710_v0 = vpop.f32.mrf.mxu0  ;;  %4393 = vmatprep.mubr.bf16.mxu1 %v7519_v50  ;;  %12777 = vst [vmem:[#allocation14_spill] sm:$0xff] %v9627_v55  ;;  %v6675_v50 = vld [vmem:[%s9611_s18] sm:$0xff]  ;;  %v6661_v60 = vsub.f32 0.0, %v9589_v53 }
 0x365   : > { %v6357_v11 = vsel %vm6341_vm7, 0.0001, %v9589_v53  ;;  %v3913_v27 = vpop.f32.mrf.mxu1  ;;  %7385 = vrcp.f32 %v6355_v20  ;;  %4515 = vmatpush2.bf16.msra.mxu0 %v12776_v9  ;;  %vm6340_vm8 = vcmp.eq.f32.partialorder %v9618_v1, 0.0  ;;  %v3910_v20 = vadd.f32 %v3909_v24, %v12779_v39  ;;  %v12786_v53 = vld [vmem:[#allocation60_spill] sm:$0xff] }
 0x366   : > { %7387 = vrcp.f32 %v6357_v11  ;;  %vm6342_vm9 = vcmp.eq.f32.partialorder %v9623_v6, 0.0  ;;  %4718 = vmatpush2.bf16.msra.mxu1 %v12778_v7  ;;  %5706 = vmatprep.subr.bf16.mxu0 %v9289_v38  ;;  %v9633_v8 = vpop.f32.mrf.mxu0  ;;  %v6356_v9 = vsel %vm6340_vm8, 0.0001, %v9618_v1  ;;  %v3707_v7 = vadd.f32 %v3706_v29, %v12779_v39 }
 0x367   : > { %v9635_v52 = vpop.f32.mrf.mxu1  ;;  %5759 = vmatprep.subr.bf16.mxu1 %v9291_v43  ;;  %7389 = vrcp.f32 %v6356_v9  ;;  %v6358_v11 = vsel %vm6342_vm9, 0.0001, %v9623_v6  ;;  %v6682_v43 = vrot.slane %v6675_v50, %v9627_v55  ;;  %v12780_v9 = vld [vmem:[#allocation46_spill] sm:$0xff]  ;;  %v6690_v63 = vrot.slane %v6675_v50, %v12781_v45 }
 0x368   : > { %v3716_v42 = vpop.f32.mrf.mxu0  ;;  %4191 = vmatmul.mubr.bf16.gmra.mxu0 %v7520_v62  ;;  %v3711_v29 = vadd.f32 %v3710_v0, %v12780_v9  ;;  %7391 = vrcp.f32 %v6358_v11  ;;  %v3914_v26 = vadd.f32 %v3913_v27, %v12780_v9  ;;  %v4894_v55 = vmax.f32 %v3707_v7, 0.0 }
 0x369   : > { %v3919_v38 = vpop.f32.mrf.mxu1  ;;  %4394 = vmatmul.mubr.bf16.gmra.mxu1 %v7520_v62  ;;  %4200 = vmatprep.mubr.bf16.mxu0 %v7521_v31  ;;  %v12782_v62 = vsub.s32 1, %v9592_v19  ;;  %v6660_v33 = vsub.f32 0.0, %v9618_v1  ;;  %v4896_v37 = vmax.f32 %v3910_v20, 0.0  ;;  %v6761_v20 = vmul.f32 %v6690_v63, %v6661_v60 }
 0x36a   : > { %4403 = vmatprep.mubr.bf16.mxu1 %v7521_v31  ;;  %v9653_v44 = vpop.f32.mrf.mxu0  ;;  %v12326_v31 = vsub.s32 3, %v9592_v19  ;;  %v4910_v23 = vmax.f32 %v3711_v29, 0.0  ;;  %v4912_v45 = vmax.f32 %v3914_v26, 0.0  ;;  %v12788_v63 = vmax.f32 %v9546_v47, 0.0 }
 0x36b   : > { %v9655_v34 = vpop.f32.mrf.mxu1  ;;  %v6686_v24 = vrot.slane %v6675_v50, %v12782_v62  ;;  %v12784_v62 = vld [vmem:[#allocation59_spill] sm:$0xff] }
 0x36c   : > { %v3720_v0 = vpop.f32.mrf.mxu0  ;;  %v9666_v25 = vpack.c.bf16 %v4910_v23, %v4894_v55  ;;  %v3717_v11 = vadd.f32 %v3716_v42, %v12784_v62  ;;  %v3920_v27 = vadd.f32 %v3919_v38, %v12784_v62  ;;  %v9674_v7 = vpack.c.bf16 %v4912_v45, %v4896_v37  ;;  %v7522_v42 = vld [vmem:[%s12257_s3 + $0x90] ss:$8 sps:$4 sm:$0xff]  }
 0x36d   : > { %v3923_v59 = vpop.f32.mrf.mxu1  ;;  %v6694_v29 = vrot.slane %v6675_v50, %v12326_v31  ;;  %v3721_v35 = vadd.f32 %v3720_v0, %v12786_v53  ;;  %v6759_v55 = vmul.f32 %v6682_v43, %v6659_v49  ;;  %v6760_v38 = vmul.f32 %v6686_v24, %v6660_v33  ;;  %v7523_v50 = vld [vmem:[%s12257_s3 + $0xa4] ss:$8 sps:$4 sm:$0xff]   ;;  %v12790_v33 = vld [vmem:[#allocation20_spill] sm:$0xff] }
 0x36e   : > { %12783 = vst [vmem:[#allocation15_spill] sm:$0xff] %v9666_v25  ;;  %v9670_v56 = vpop.f32.mrf.mxu0  ;;  %12785 = vst [vmem:[#allocation10_spill] sm:$0xff] %v9674_v7  ;;  %v3924_v1 = vadd.f32 %v3923_v59, %v12786_v53  ;;  %v6662_v37 = vsub.f32 0.0, %v9623_v6  ;;  %v4926_v0 = vmax.f32 %v3717_v11, 0.0  ;;  %v4928_v45 = vmax.f32 %v3920_v27, 0.0 }
 0x36f   : > { %v9672_v61 = vpop.f32.mrf.mxu1  ;;  %v4942_v31 = vmax.f32 %v3721_v35, 0.0  ;;  %v12792_v35 = vmax.f32 %v9549_v17, 0.0 }
 0x370   : > { %v3726_v26 = vpop.f32.mrf.mxu0  ;;  %4201 = vmatmul.mubr.bf16.gmra.mxu0 %v7522_v42  ;;  %v4944_v7 = vmax.f32 %v3924_v1, 0.0 }
 0x371   : > { %v3929_v23 = vpop.f32.mrf.mxu1  ;;  %4404 = vmatmul.mubr.bf16.gmra.mxu1 %v7522_v42  ;;  %4210 = vmatprep.mubr.bf16.mxu0 %v7523_v50  ;;  %v3727_v6 = vadd.f32 %v3726_v26, %v12790_v33  ;;  %v9703_v27 = vpack.c.bf16 %v4942_v31, %v4926_v0  ;;  %v6775_v26 = vmul.f32 1.442695, %v6759_v55  ;;  %v9722_v0 = vadd.f32 %v9600_v10, %v12779_v39 }
 0x372   : > { %4413 = vmatprep.mubr.bf16.mxu1 %v7523_v50  ;;  %v7386_v59 = vpop.eup %7385  ;;  %v3728_v25 = vpop.f32.mrf.mxu0  ;;  %v3930_v43 = vadd.f32 %v3929_v23, %v12790_v33  ;;  %v9705_v1 = vpack.c.bf16 %v4944_v7, %v4928_v45  ;;  %v12796_v50 = vld [vmem:[#allocation21_spill] sm:$0xff]  ;;  %v12797_v23 = vmax.f32 %v9572_v57, 0.0  ;;  %v9718_v7 = vadd.f32 %v9598_v21, %v12779_v39 }
 0x373   : > { %v3931_v19 = vpop.f32.mrf.mxu1  ;;  %v7388_v40 = vpop.eup %7387  ;;  %v9688_v49 = vmul.f32 %v7386_v59, %v9555_v51  ;;  %v9692_v60 = vmul.f32 %v7386_v59, %v12788_v63  ;;  %12794 = vst [vmem:[#allocation5_spill] sm:$0xff] %v9703_v27  ;;  %v6779_v63 = vmul.f32 1.442695, %v6761_v20  ;;  %v4958_v45 = vmax.f32 %v3727_v6, 0.0 }
 0x374   : > { %v9697_v24 = vmul.f32 %v7388_v40, %v9558_v22  ;;  %v9701_v11 = vmul.f32 %v7388_v40, %v12792_v35  ;;  %12795 = vst [vmem:[#allocation33_spill] sm:$0xff] %v9705_v1  ;;  %v3730_v51 = vpop.f32.mrf.mxu0  ;;  %v9707_v47 = vpop.eup %7389  ;;  %v6777_v57 = vmul.f32 1.442695, %v6760_v38  ;;  %v6762_v35 = vmul.f32 %v6694_v29, %v6662_v37  ;;  %v7525_v38 = vld [vmem:[%s12257_s3 + $0xb4] ss:$8 sps:$4 sm:$0xff]  }
 0x375   : > { %12787 = vst [vmem:[#allocation11_spill] sm:$0xff] %v9688_v49  ;;  %12789 = vst [vmem:[#allocation8_spill] sm:$0xff] %v9692_v60  ;;  %v3933_v42 = vpop.f32.mrf.mxu1  ;;  %v3731_v59 = vadd.f32 %v3730_v51, %v12796_v50  ;;  %v9713_v22 = vmul.f32 %v9707_v47, %v12797_v23  ;;  %v9724_v20 = vpop.eup %7391  ;;  %v4960_v51 = vmax.f32 %v3930_v43, 0.0  ;;  %v12799_v21 = vmax.f32 %v9575_v48, 0.0 }
 0x376   : > { %12791 = vst [vmem:[#allocation9_spill] sm:$0xff] %v9697_v24  ;;  %12793 = vst [vmem:[#allocation4_spill] sm:$0xff] %v9701_v11  ;;  %v3934_v40 = vadd.f32 %v3933_v42, %v12796_v50  ;;  %v3732_v17 = vpop.f32.mrf.mxu0  ;;  %v7524_v11 = vld [vmem:[%s12257_s3 + $0xa0] ss:$8 sps:$4 sm:$0xff]   ;;  %v9736_v6 = vadd.f32 %v9633_v8, %v12780_v9  ;;  %7393 = vpow2.f32 %v6775_v26 }
 0x377   : > { %12798 = vst [vmem:[#allocation2_spill] sm:$0xff] %v9713_v22  ;;  %v3935_v31 = vpop.f32.mrf.mxu1  ;;  %v4974_v55 = vmax.f32 %v3731_v59, 0.0  ;;  %v9732_v10 = vmul.f32 %v9724_v20, %v12799_v21  ;;  %7395 = vpow2.f32 %v6779_v63  ;;  %v12803_v59 = vld [vmem:[#allocation18_spill] sm:$0xff]  ;;  %v9753_v21 = vadd.f32 %v9635_v52, %v12780_v9 }
 0x378   : > { %v4976_v23 = vmax.f32 %v3934_v40, 0.0  ;;  %v3736_v22 = vpop.f32.mrf.mxu0  ;;  %4211 = vmatmul.mubr.bf16.gmra.mxu0 %v7524_v11  ;;  %7397 = vpow2.f32 %v6777_v57  ;;  %v9758_v63 = vadd.f32 %v9653_v44, %v12784_v62  ;;  %v9768_v52 = vadd.f32 %v9672_v61, %v12786_v53 }
 0x379   : > { %v3939_v42 = vpop.f32.mrf.mxu1  ;;  %4414 = vmatmul.mubr.bf16.gmra.mxu1 %v7524_v11  ;;  %12800 = vst [vmem:[#allocation57_spill] sm:$0xff] %v9732_v10  ;;  %v9738_v29 = vpack.c.bf16 %v4974_v55, %v4958_v45  ;;  %4220 = vmatprep.mubr.bf16.mxu0 %v7525_v38  ;;  %v3737_v40 = vadd.f32 %v3736_v22, %v12803_v59  ;;  %v9748_v45 = vmul.f32 1.442695, %v6762_v35  ;;  %v12804_v22 = vld [vmem:[#allocation19_spill] sm:$0xff] }
 0x37a   : > { %4423 = vmatprep.mubr.bf16.mxu1 %v7525_v38  ;;  %v9743_v37 = vpack.c.bf16 %v4976_v23, %v4960_v51  ;;  %v3738_v43 = vpop.f32.mrf.mxu0  ;;  %v3940_v8 = vadd.f32 %v3939_v42, %v12803_v59  ;;  %v9764_v35 = vadd.f32 %v9670_v56, %v12786_v53  ;;  %v9771_v42 = vadd.f32 %v3728_v25, %v12790_v33 }
 0x37b   : > { %12801 = vst [vmem:[#allocation58_spill] sm:$0xff] %v9738_v29  ;;  %v3941_v48 = vpop.f32.mrf.mxu1  ;;  %v9774_v55 = vadd.f32 %v3931_v19, %v12790_v33  ;;  %v4990_v11 = vmax.f32 %v3737_v40, 0.0  ;;  %v9779_v56 = vadd.f32 %v9655_v34, %v12784_v62  ;;  %v9782_v61 = vadd.f32 %v3732_v17, %v12796_v50  ;;  %v7526_v40 = vld [vmem:[%s12257_s3 + $0xb0] ss:$8 sps:$4 sm:$0xff]   ;;  %v7527_v17 = vld [vmem:[%s12257_s3 + $0xc4] ss:$8 sps:$4 sm:$0xff]  }
 0x37c   : > { %12802 = vst [vmem:[#allocation38_spill] sm:$0xff] %v9743_v37  ;;  %v3740_v26 = vpop.f32.mrf.mxu0  ;;  %7399 = vpow2.f32 %v9748_v45 }
 0x37d   : > { %v3943_v51 = vpop.f32.mrf.mxu1  ;;  %v3741_v38 = vadd.f32 %v3740_v26, %v12804_v22  ;;  %v4992_v26 = vmax.f32 %v3940_v8, 0.0 }
 0x37e   : > { %v3944_v57 = vadd.f32 %v3943_v51, %v12804_v22  ;;  %v3742_v44 = vpop.f32.mrf.mxu0 }
 0x37f   : > { %v3945_v23 = vpop.f32.mrf.mxu1  ;;  %v5006_v10 = vmax.f32 %v3741_v38, 0.0  ;;  %v3743_v25 = vadd.f32 %v3742_v44, %v12804_v22  ;;  %v9790_v38 = vadd.f32 %v3935_v31, %v12796_v50  ;;  %v3739_v44 = vadd.f32 %v3738_v43, %v12803_v59 }
 0x380   : > { %v5008_v51 = vmax.f32 %v3944_v57, 0.0  ;;  %v3746_v24 = vpop.f32.mrf.mxu0  ;;  %4221 = vmatmul.mubr.bf16.gmra.mxu0 %v7526_v40  ;;  %v3946_v60 = vadd.f32 %v3945_v23, %v12804_v22 }
 0x381   : > { %v3949_v19 = vpop.f32.mrf.mxu1  ;;  %4424 = vmatmul.mubr.bf16.gmra.mxu1 %v7526_v40  ;;  %v9792_v34 = vpack.c.bf16 %v5006_v10, %v4990_v11  ;;  %4230 = vmatprep.mubr.bf16.mxu0 %v7527_v17  ;;  %v12807_v40 = vld [vmem:[#allocation16_spill] sm:$0xff]  ;;  %v4943_v10 = vmax.f32 %v9764_v35, 0.0  ;;  %v5007_v27 = vmax.f32 %v3743_v25, 0.0  ;;  %v4977_v29 = vmax.f32 %v9790_v38, 0.0  ;;  %v12808_v35 = vld [vmem:[#allocation17_spill] sm:$0xff] }
 0x382   : > { %v9794_v57 = vpack.c.bf16 %v5008_v51, %v4992_v26  ;;  %4433 = vmatprep.mubr.bf16.mxu1 %v7527_v17  ;;  %v3747_v49 = vadd.f32 %v3746_v24, %v12807_v40  ;;  %v3950_v8 = vadd.f32 %v3949_v19, %v12807_v40  ;;  %v3748_v31 = vpop.f32.mrf.mxu0  ;;  %v4959_v26 = vmax.f32 %v9771_v42, 0.0 }
 0x383   : > { %12805 = vst [vmem:[#allocation43_spill] sm:$0xff] %v9792_v34  ;;  %v3951_v1 = vpop.f32.mrf.mxu1  ;;  %v4961_v51 = vmax.f32 %v9774_v55, 0.0  ;;  %v3942_v17 = vadd.f32 %v3941_v48, %v12803_v59  ;;  %v3749_v43 = vadd.f32 %v3748_v31, %v12807_v40  ;;  %v4975_v19 = vmax.f32 %v9782_v61, 0.0  ;;  %v9814_v59 = vpop.eup %7393 }
 0x384   : > { %12806 = vst [vmem:[#allocation55_spill] sm:$0xff] %v9794_v57  ;;  %v3952_v23 = vadd.f32 %v3951_v1, %v12807_v40  ;;  %v3750_v24 = vpop.f32.mrf.mxu0  ;;  %v4991_v42 = vmax.f32 %v3739_v44, 0.0  ;;  %v5009_v34 = vmax.f32 %v3946_v60, 0.0  ;;  %v5022_v55 = vmax.f32 %v3747_v49, 0.0  ;;  %12809 = vst [vmem:[#allocation56_spill] sm:$0xff] %v9814_v59  ;;  %v9818_v50 = vpop.eup %7395 }
 0x385   : > { %v3953_v37 = vpop.f32.mrf.mxu1  ;;  %v3751_v57 = vadd.f32 %v3750_v24, %v12808_v35  ;;  %v5024_v22 = vmax.f32 %v3950_v8, 0.0  ;;  %v4993_v38 = vmax.f32 %v3942_v17, 0.0  ;;  %v5023_v24 = vmax.f32 %v3749_v43, 0.0  ;;  %v7528_v49 = vld [vmem:[%s12257_s3 + $0xc0] ss:$8 sps:$4 sm:$0xff]   ;;  %v9825_v8 = vpop.eup %7397 }
 0x386   : > { %v3954_v11 = vadd.f32 %v3953_v37, %v12808_v35  ;;  %v3752_v48 = vpop.f32.mrf.mxu0  ;;  %v5025_v33 = vmax.f32 %v3952_v23, 0.0  ;;  %v9823_v60 = vpack.c.bf16 %v5007_v27, %v4991_v42  ;;  %12811 = vst [vmem:[#allocation54_spill] sm:$0xff] %v9825_v8  ;;  %v7529_v43 = vld [vmem:[%s12257_s3 + $0xd4] ss:$8 sps:$4 sm:$0xff]  }
 0x387   : > { %v3955_v25 = vpop.f32.mrf.mxu1  ;;  %v5038_v31 = vmax.f32 %v3751_v57, 0.0  ;;  %v3753_v40 = vadd.f32 %v3752_v48, %v12808_v35  ;;  %v12814_v23 = vld [vmem:[#allocation12_spill] sm:$0xff] }
 0x388   : > { %v5040_v1 = vmax.f32 %v3954_v11, 0.0  ;;  %v3956_v61 = vadd.f32 %v3955_v25, %v12808_v35  ;;  %v3756_v37 = vpop.f32.mrf.mxu0  ;;  %4231 = vmatmul.mubr.bf16.gmra.mxu0 %v7528_v49  ;;  %12810 = vst [vmem:[#allocation23_spill] sm:$0xff] %v9823_v60  ;;  %v9836_v60 = vpack.c.bf16 %v5009_v34, %v4993_v38  ;;  %v12820_v34 = vmax.f32 %v9758_v63, 0.0  ;;  %v12822_v38 = vld [vmem:[#allocation13_spill] sm:$0xff] }
 0x389   : > { %v3959_v44 = vpop.f32.mrf.mxu1  ;;  %4434 = vmatmul.mubr.bf16.gmra.mxu1 %v7528_v49  ;;  %v9827_v57 = vpack.c.bf16 %v5038_v31, %v5022_v55  ;;  %v5039_v48 = vmax.f32 %v3753_v40, 0.0  ;;  %4240 = vmatprep.mubr.bf16.mxu0 %v7529_v43  ;;  %v3757_v25 = vadd.f32 %v3756_v37, %v12814_v23  ;;  %v9838_v55 = vpack.c.bf16 %v4975_v19, %v4959_v26 }
 0x38a   : > { %v9829_v11 = vpack.c.bf16 %v5040_v1, %v5024_v22  ;;  %v5041_v17 = vmax.f32 %v3956_v61, 0.0  ;;  %4443 = vmatprep.mubr.bf16.mxu1 %v7529_v43  ;;  %v3960_v49 = vadd.f32 %v3959_v44, %v12814_v23  ;;  %v3758_v27 = vpop.f32.mrf.mxu0  ;;  %12815 = vst [vmem:[#allocation59_spill] sm:$0xff] %v9836_v60  ;;  %v4929_v1 = vmax.f32 %v9779_v56, 0.0 }
 0x38b   : > { %12812 = vst [vmem:[#allocation44_spill] sm:$0xff] %v9827_v57  ;;  %v3961_v42 = vpop.f32.mrf.mxu1  ;;  %12816 = vst [vmem:[#allocation112_spill] sm:$0xff] %v9838_v55  ;;  %v3759_v22 = vadd.f32 %v3758_v27, %v12814_v23  ;;  %v9842_v40 = vpack.c.bf16 %v5039_v48, %v5023_v24  ;;  %v9848_v43 = vpack.c.bf16 %v4977_v29, %v4961_v51  ;;  %v5054_v19 = vmax.f32 %v3757_v25, 0.0 }
 0x38c   : > { %12813 = vst [vmem:[#allocation46_spill] sm:$0xff] %v9829_v11  ;;  %v9844_v31 = vpack.c.bf16 %v5041_v17, %v5025_v33  ;;  %v3962_v61 = vadd.f32 %v3961_v42, %v12814_v23  ;;  %v3760_v37 = vpop.f32.mrf.mxu0  ;;  %v9852_v26 = vpack.c.bf16 %v4943_v10, %v12820_v34  ;;  %v5056_v45 = vmax.f32 %v3960_v49, 0.0 }
 0x38d   : > { %12817 = vst [vmem:[#allocation113_spill] sm:$0xff] %v9842_v40  ;;  %v3963_v44 = vpop.f32.mrf.mxu1  ;;  %12819 = vst [vmem:[#allocation115_spill] sm:$0xff] %v9848_v43  ;;  %v3761_v27 = vadd.f32 %v3760_v37, %v12822_v38  ;;  %v5055_v33 = vmax.f32 %v3759_v22, 0.0  ;;  %v12823_v56 = vmax.f32 %v9768_v52, 0.0  ;;  %v12825_v29 = vmax.f32 %v9718_v7, 0.0 }
 0x38e   : > { %12818 = vst [vmem:[#allocation114_spill] sm:$0xff] %v9844_v31  ;;  %12821 = vst [vmem:[#allocation116_spill] sm:$0xff] %v9852_v26  ;;  %v3964_v24 = vadd.f32 %v3963_v44, %v12822_v38  ;;  %v3762_v48 = vpop.f32.mrf.mxu0  ;;  %v12826_v51 = vmax.f32 %v9736_v6, 0.0  ;;  %v12828_v10 = vmax.f32 %v9722_v0, 0.0  ;;  %v12829_v25 = vmax.f32 %v9753_v21, 0.0  ;;  %v12845_v26 = vld [vmem:[#allocation6_spill] sm:$0xff] }
 0x38f   : > { %v3965_v17 = vpop.f32.mrf.mxu1  ;;  %v9858_v42 = vpack.c.bf16 %v12823_v56, %v4929_v1  ;;  %v5070_v37 = vmax.f32 %v3761_v27, 0.0  ;;  %v3763_v44 = vadd.f32 %v3762_v48, %v12822_v38  ;;  %v5057_v1 = vmax.f32 %v3962_v61, 0.0  ;;  %v7530_v7 = vld [vmem:[%s12257_s3 + $0xd0] ss:$8 sps:$4 sm:$0xff]  }
 0x390   : > { %v9864_v63 = vpack.c.bf16 %v12826_v51, %v12825_v29  ;;  %v9870_v49 = vpack.c.bf16 %v12829_v25, %v12828_v10  ;;  %v5072_v22 = vmax.f32 %v3964_v24, 0.0  ;;  %v3966_v52 = vadd.f32 %v3965_v17, %v12822_v38  ;;  %v3766_v34 = vpop.f32.mrf.mxu0  ;;  %4241 = vmatmul.mubr.bf16.gmra.mxu0 %v7530_v7  ;;  %v7531_v17 = vld [vmem:[%s12257_s3 + $0xe4] ss:$8 sps:$4 sm:$0xff]  }
 0x391   : > { %12824 = vst [vmem:[#allocation117_spill] sm:$0xff] %v9858_v42  ;;  %v3969_v56 = vpop.f32.mrf.mxu1  ;;  %4444 = vmatmul.mubr.bf16.gmra.mxu1 %v7530_v7  ;;  %v9879_v0 = vmul.f32 %v9707_v47, %v9564_v13  ;;  %v9883_v6 = vmul.f32 %v9724_v20, %v9567_v4  ;;  %v12335_v21 = vsub.f32 1.0, %v9814_v59  ;;  %v9886_v27 = vpack.c.bf16 %v5070_v37, %v5054_v19  ;;  %v12835_v13 = vld [vmem:[#allocation3_spill] sm:$0xff] }
 0x392   : > { %12827 = vst [vmem:[#allocation118_spill] sm:$0xff] %v9864_v63  ;;  %12830 = vst [vmem:[#allocation119_spill] sm:$0xff] %v9870_v49  ;;  %v9888_v61 = vpack.c.bf16 %v5072_v22, %v5056_v45  ;;  %v5071_v24 = vmax.f32 %v3763_v44, 0.0  ;;  %v5073_v48 = vmax.f32 %v3966_v52, 0.0  ;;  %4250 = vmatprep.mubr.bf16.mxu0 %v7531_v17  ;;  %4453 = vmatprep.mubr.bf16.mxu1 %v7531_v17  ;;  %v3768_v4 = vpop.f32.mrf.mxu0  ;;  %v12838_v44 = vld [vmem:[#allocation7_spill] sm:$0xff] }
 0x393   : > { %12831 = vst [vmem:[#allocation120_spill] sm:$0xff] %v9879_v0  ;;  %12832 = vst [vmem:[#allocation121_spill] sm:$0xff] %v9883_v6  ;;  %v3767_v47 = vadd.f32 %v3766_v34, %v12835_v13  ;;  %v3970_v29 = vadd.f32 %v3969_v56, %v12835_v13  ;;  %v3971_v20 = vpop.f32.mrf.mxu1  ;;  %v3769_v45 = vadd.f32 %v3768_v4, %v12835_v13  ;;  %v6823_v22 = vsub.f32 1.0, %v12335_v21  ;;  %v7400_v0 = vpop.eup %7399 }
 0x394   : > { %12833 = vst [vmem:[#allocation122_spill] sm:$0xff] %v9886_v27  ;;  %12834 = vst [vmem:[#allocation123_spill] sm:$0xff] %v9888_v61  ;;  %v9895_v51 = vpack.c.bf16 %v5071_v24, %v5055_v33  ;;  %v9897_v19 = vpack.c.bf16 %v5073_v48, %v5057_v1  ;;  %v3972_v10 = vadd.f32 %v3971_v20, %v12835_v13  ;;  %v3770_v25 = vpop.f32.mrf.mxu0  ;;  %v6809_v1 = vsub.f32 1.0, %v9818_v50  ;;  %v12881_v27 = vld [vmem:[#allocation67_spill] sm:$0xff] }
 0x395   : > { %v3973_v37 = vpop.f32.mrf.mxu1  ;;  %v3771_v52 = vadd.f32 %v3770_v25, %v12838_v44  ;;  %v5086_v56 = vmax.f32 %v3767_v47, 0.0  ;;  %v5088_v7 = vmax.f32 %v3970_v29, 0.0  ;;  %v6837_v24 = vadd.f32 1e-10, %v6823_v22  ;;  %v7532_v47 = vld [vmem:[%s12257_s3 + $0xe0] ss:$8 sps:$4 sm:$0xff]  }
 0x396   : > { %12836 = vst [vmem:[#allocation124_spill] sm:$0xff] %v9895_v51  ;;  %12837 = vst [vmem:[#allocation125_spill] sm:$0xff] %v9897_v19  ;;  %v3974_v34 = vadd.f32 %v3973_v37, %v12838_v44  ;;  %v3772_v17 = vpop.f32.mrf.mxu0  ;;  %v5087_v59 = vmax.f32 %v3769_v45, 0.0  ;;  %v5089_v21 = vmax.f32 %v3972_v10, 0.0  ;;  %v12337_v50 = vsub.f32 1.0, %v9825_v8  ;;  %v12842_v10 = vld [vmem:[#allocation28_spill] sm:$0xff] }
 0x397   : > { %v3975_v33 = vpop.f32.mrf.mxu1  ;;  %v5102_v48 = vmax.f32 %v3771_v52, 0.0  ;;  %v3773_v20 = vadd.f32 %v3772_v17, %v12838_v44  ;;  %v9911_v29 = vmul.f32 %v6837_v24, %v6809_v1  ;;  %v7533_v45 = vld [vmem:[%s12257_s3 + $0xf4] ss:$8 sps:$4 sm:$0xff]   ;;  %v6825_v63 = vsub.f32 1.0, %v6809_v1 }
 0x398   : > { %v5104_v4 = vmax.f32 %v3974_v34, 0.0  ;;  %v3976_v6 = vadd.f32 %v3975_v33, %v12838_v44  ;;  %v3776_v49 = vpop.f32.mrf.mxu0  ;;  %4251 = vmatmul.mubr.bf16.gmra.mxu0 %v7532_v47 }
 0x399   : > { %v3979_v25 = vpop.f32.mrf.mxu1  ;;  %4454 = vmatmul.mubr.bf16.gmra.mxu1 %v7532_v47  ;;  %12839 = vst [vmem:[#allocation126_spill] sm:$0xff] %v9911_v29  ;;  %v9914_v37 = vpack.c.bf16 %v5102_v48, %v5086_v56  ;;  %v5103_v52 = vmax.f32 %v3773_v20, 0.0  ;;  %4260 = vmatprep.mubr.bf16.mxu0 %v7533_v45  ;;  %v3777_v17 = vadd.f32 %v3776_v49, %v12842_v10  ;;  %v6824_v56 = vsub.f32 1.0, %v12337_v50 }
 0x39a   : > { %v9916_v22 = vpack.c.bf16 %v5104_v4, %v5088_v7  ;;  %v5105_v34 = vmax.f32 %v3976_v6, 0.0  ;;  %4463 = vmatprep.mubr.bf16.mxu1 %v7533_v45  ;;  %v3980_v33 = vadd.f32 %v3979_v25, %v12842_v10  ;;  %v3778_v47 = vpop.f32.mrf.mxu0  ;;  %v6810_v50 = vsub.f32 1.0, %v7400_v0 }
 0x39b   : > { %12840 = vst [vmem:[#allocation127_spill] sm:$0xff] %v9914_v37  ;;  %v3981_v29 = vpop.f32.mrf.mxu1  ;;  %v3779_v7 = vadd.f32 %v3778_v47, %v12842_v10  ;;  %v9926_v48 = vpack.c.bf16 %v5103_v52, %v5087_v59  ;;  %v5118_v42 = vmax.f32 %v3777_v17, 0.0  ;;  %v6838_v60 = vadd.f32 1e-10, %v6824_v56  ;;  %v7535_v56 = vld [vmem:[%s12257_s3 + $0x104] ss:$8 sps:$4 sm:$0xff]  }
 0x39c   : > { %12841 = vst [vmem:[#allocation128_spill] sm:$0xff] %v9916_v22  ;;  %v9928_v6 = vpack.c.bf16 %v5105_v34, %v5089_v21  ;;  %v3982_v4 = vadd.f32 %v3981_v29, %v12842_v10  ;;  %v3780_v20 = vpop.f32.mrf.mxu0  ;;  %v5120_v49 = vmax.f32 %v3980_v33, 0.0  ;;  %v6839_v47 = vadd.f32 1e-10, %v6825_v63  ;;  %v7534_v33 = vld [vmem:[%s12257_s3 + $0xf0] ss:$8 sps:$4 sm:$0xff]  }
 0x39d   : > { %12843 = vst [vmem:[#allocation129_spill] sm:$0xff] %v9926_v48  ;;  %v3983_v45 = vpop.f32.mrf.mxu1  ;;  %v3781_v25 = vadd.f32 %v3780_v20, %v12845_v26  ;;  %v5119_v1 = vmax.f32 %v3779_v7, 0.0  ;;  %v6826_v7 = vsub.f32 1.0, %v6810_v50  ;;  %v9938_v20 = vmul.f32 %v6838_v60, %v6810_v50 }
 0x39e   : > { %12844 = vst [vmem:[#allocation130_spill] sm:$0xff] %v9928_v6  ;;  %v3984_v43 = vadd.f32 %v3983_v45, %v12845_v26  ;;  %v3782_v55 = vpop.f32.mrf.mxu0  ;;  %v5121_v34 = vmax.f32 %v3982_v4, 0.0  ;;  %v9940_v0 = vmul.f32 %v6839_v47, %v6837_v24  ;;  %v12847_v4 = vld [vmem:[#allocation96_spill] sm:$0xff] }
 0x39f   : > { %v3985_v8 = vpop.f32.mrf.mxu1  ;;  %v5134_v59 = vmax.f32 %v3781_v25, 0.0  ;;  %v3783_v21 = vadd.f32 %v3782_v55, %v12845_v26  ;;  %12846 = vst [vmem:[#allocation131_spill] sm:$0xff] %v9938_v20  ;;  %v6840_v24 = vadd.f32 1e-10, %v6826_v7 }
 0x3a0   : > { %v5136_v52 = vmax.f32 %v3984_v43, 0.0  ;;  %v3986_v29 = vadd.f32 %v3985_v8, %v12845_v26  ;;  %v3786_v11 = vpop.f32.mrf.mxu0  ;;  %4261 = vmatmul.mubr.bf16.gmra.mxu0 %v7534_v33 }
 0x3a1   : > { %v3989_v17 = vpop.f32.mrf.mxu1  ;;  %4464 = vmatmul.mubr.bf16.gmra.mxu1 %v7534_v33  ;;  %v9942_v63 = vpack.c.bf16 %v5134_v59, %v5118_v42  ;;  %v5135_v55 = vmax.f32 %v3783_v21, 0.0  ;;  %4270 = vmatprep.mubr.bf16.mxu0 %v7535_v56  ;;  %v3787_v45 = vadd.f32 %v3786_v11, %v12847_v4 }
 0x3a2   : > { %v9944_v43 = vpack.c.bf16 %v5136_v52, %v5120_v49  ;;  %v5137_v8 = vmax.f32 %v3986_v29, 0.0  ;;  %4473 = vmatprep.mubr.bf16.mxu1 %v7535_v56  ;;  %v3990_v25 = vadd.f32 %v3989_v17, %v12847_v4  ;;  %v3788_v50 = vpop.f32.mrf.mxu0  ;;  %v9957_v29 = vmul.f32 %v6840_v24, %v6838_v60  ;;  %v12848_v56 = vld [vmem:[#allocation99_spill] sm:$0xff] }
 0x3a3   : > { %v3991_v33 = vpop.f32.mrf.mxu1  ;;  %v9951_v47 = vpack.c.bf16 %v5135_v55, %v5119_v1  ;;  %v3789_v49 = vadd.f32 %v3788_v50, %v12847_v4  ;;  %v5150_v17 = vmax.f32 %v3787_v45, 0.0  ;;  %v7536_v60 = vld [vmem:[%s12257_s3 + $0x100] ss:$8 sps:$4 sm:$0xff]  }
 0x3a4   : > { %v9953_v42 = vpack.c.bf16 %v5137_v8, %v5121_v34  ;;  %v3992_v59 = vadd.f32 %v3991_v33, %v12847_v4  ;;  %v3790_v52 = vpop.f32.mrf.mxu0  ;;  %v5152_v57 = vmax.f32 %v3990_v25, 0.0 }
 0x3a5   : > { %v3993_v21 = vpop.f32.mrf.mxu1  ;;  %v3791_v20 = vadd.f32 %v3790_v52, %v12848_v56  ;;  %v5151_v50 = vmax.f32 %v3789_v49, 0.0 }
 0x3a6   : > { %v3994_v11 = vadd.f32 %v3993_v21, %v12848_v56  ;;  %v3792_v31 = vpop.f32.mrf.mxu0  ;;  %v5153_v33 = vmax.f32 %v3992_v59, 0.0 }
 0x3a7   : > { %v3995_v7 = vpop.f32.mrf.mxu1  ;;  %v5166_v1 = vmax.f32 %v3791_v20, 0.0  ;;  %v3793_v34 = vadd.f32 %v3792_v31, %v12848_v56  ;;  %v7537_v31 = vld [vmem:[%s12257_s3 + $0x4] ss:$8 sps:$4 sm:$0xff]  }
 0x3a8   : > { %v5168_v55 = vmax.f32 %v3994_v11, 0.0  ;;  %v3996_v8 = vadd.f32 %v3995_v7, %v12848_v56  ;;  %v3796_v40 = vpop.f32.mrf.mxu0  ;;  %4271 = vmatmul.mubr.bf16.gmra.mxu0 %v7536_v60 }
 0x3a9   : > { %v3999_v61 = vpop.f32.mrf.mxu1  ;;  %4474 = vmatmul.mubr.bf16.gmra.mxu1 %v7536_v60  ;;  %v9966_v45 = vpack.c.bf16 %v5166_v1, %v5150_v17  ;;  %v5167_v20 = vmax.f32 %v3793_v34, 0.0  ;;  %4516 = vmatprep.mubr.bf16.mxu0 %v7537_v31  ;;  %v3797_v49 = vadd.f32 %v3796_v40, %v9254_v16 }
 0x3aa   : > { %v9968_v25 = vpack.c.bf16 %v5168_v55, %v5152_v57  ;;  %v5169_v24 = vmax.f32 %v3996_v8, 0.0  ;;  %4719 = vmatprep.mubr.bf16.mxu1 %v7537_v31  ;;  %v4000_v59 = vadd.f32 %v3999_v61, %v9254_v16  ;;  %v3798_v52 = vpop.f32.mrf.mxu0 }
 0x3ab   : > { %12849 = vst [vmem:[#allocation132_spill] sm:$0xff] %v9966_v45  ;;  %v4001_v21 = vpop.f32.mrf.mxu1  ;;  %v9975_v11 = vpack.c.bf16 %v5167_v20, %v5151_v50  ;;  %v3799_v57 = vadd.f32 %v3798_v52, %v9254_v16  ;;  %v5182_v8 = vmax.f32 %v3797_v49, 0.0 }
 0x3ac   : > { %12850 = vst [vmem:[#allocation133_spill] sm:$0xff] %v9968_v25  ;;  %v9977_v17 = vpack.c.bf16 %v5169_v24, %v5153_v33  ;;  %v3800_v7 = vpop.f32.mrf.mxu0  ;;  %v5184_v60 = vmax.f32 %v4000_v59, 0.0  ;;  %v4002_v40 = vadd.f32 %v4001_v21, %v9254_v16 }
 0x3ad   : > { %12851 = vst [vmem:[#allocation134_spill] sm:$0xff] %v9975_v11  ;;  %v4003_v1 = vpop.f32.mrf.mxu1  ;;  %v3801_v55 = vadd.f32 %v3800_v7, %v9261_v12  ;;  %v5183_v20 = vmax.f32 %v3799_v57, 0.0  ;;  %v7538_v7 = vld [vmem:[%s12257_s3] ss:$8 sps:$4 sm:$0xff]  }
 0x3ae   : > { %12852 = vst [vmem:[#allocation135_spill] sm:$0xff] %v9977_v17  ;;  %v4004_v34 = vadd.f32 %v4003_v1, %v9261_v12  ;;  %v3802_v31 = vpop.f32.mrf.mxu0  ;;  %v12857_v17 = vld [vmem:[#allocation94_spill] sm:$0xff]  ;;  %v12858_v11 = vld [vmem:[#allocation95_spill] sm:$0xff] }
 0x3af   : > { %v4005_v61 = vpop.f32.mrf.mxu1  ;;  %v5198_v25 = vmax.f32 %v3801_v55, 0.0  ;;  %v3803_v50 = vadd.f32 %v3802_v31, %v9261_v12  ;;  %v12855_v55 = vld [vmem:[#allocation97_spill] sm:$0xff]  ;;  %v5185_v31 = vmax.f32 %v4002_v40, 0.0 }
 0x3b0   : > { %v5200_v45 = vmax.f32 %v4004_v34, 0.0  ;;  %v4006_v33 = vadd.f32 %v4005_v61, %v9261_v12  ;;  %v3806_v24 = vpop.f32.mrf.mxu0  ;;  %4517 = vmatmul.mubr.bf16.vlgmr.msra.gmra.mxu0 %v7538_v7  ;;  %v12856_v34 = vld [vmem:[#allocation98_spill] sm:$0xff] }
 0x3b1   : > { %v4009_v52 = vpop.f32.mrf.mxu1  ;;  %4720 = vmatmul.mubr.bf16.vlgmr.msra.gmra.mxu1 %v7538_v7  ;;  %v9988_v49 = vpack.c.bf16 %v5198_v25, %v5182_v8  ;;  %v5199_v21 = vmax.f32 %v3803_v50, 0.0  ;;  %5707 = vmatpush1.bf16.msra.mxu0 %v12855_v55  ;;  %v3807_v57 = vadd.f32 %v3806_v24, %v9233_v30  ;;  %v12861_v24 = vld [vmem:[#allocation90_spill] sm:$0xff] }
 0x3b2   : > { %v9990_v59 = vpack.c.bf16 %v5200_v45, %v5184_v60  ;;  %v5201_v1 = vmax.f32 %v4006_v33, 0.0  ;;  %5760 = vmatpush1.bf16.msra.mxu1 %v12856_v34  ;;  %v4010_v61 = vadd.f32 %v4009_v52, %v9233_v30  ;;  %5708 = vmatprep.subr.bf16.mxu0 %v12857_v17  ;;  %v3808_v7 = vpop.f32.mrf.mxu0  ;;  %v7539_v45 = vld [vmem:[%s12257_s3 + $0x14] ss:$8 sps:$4 sm:$0xff]   ;;  %v12862_v52 = vld [vmem:[#allocation91_spill] sm:$0xff] }
 0x3b3   : > { %12853 = vst [vmem:[#allocation136_spill] sm:$0xff] %v9988_v49  ;;  %5761 = vmatprep.subr.bf16.mxu1 %v12858_v11  ;;  %v4011_v25 = vpop.f32.mrf.mxu1  ;;  %4526 = vmatprep.mubr.bf16.mxu0 %v7539_v45  ;;  %v10001_v8 = vpack.c.bf16 %v5199_v21, %v5183_v20  ;;  %v3809_v60 = vadd.f32 %v3808_v7, %v9233_v30  ;;  %v5214_v55 = vmax.f32 %v3807_v57, 0.0  ;;  %v12863_v20 = vld [vmem:[#allocation87_spill] sm:$0xff]  ;;  %v12864_v21 = vld [vmem:[#allocation88_spill] sm:$0xff] }
 0x3b4   : > { %12854 = vst [vmem:[#allocation137_spill] sm:$0xff] %v9990_v59  ;;  %4729 = vmatprep.mubr.bf16.mxu1 %v7539_v45  ;;  %v3810_v40 = vpop.f32.mrf.mxu0  ;;  %v10004_v33 = vpack.c.bf16 %v5201_v1, %v5185_v31  ;;  %v5216_v34 = vmax.f32 %v4010_v61, 0.0  ;;  %v4012_v45 = vadd.f32 %v4011_v25, %v9233_v30  ;;  %v7540_v57 = vld [vmem:[%s12257_s3 + $0x10] ss:$8 sps:$4 sm:$0xff]  }
 0x3b5   : > { %12859 = vst [vmem:[#allocation97_spill] sm:$0xff] %v10001_v8  ;;  %v4013_v50 = vpop.f32.mrf.mxu1  ;;  %v3811_v17 = vadd.f32 %v3810_v40, %v9243_v58  ;;  %5709 = vmatpush1.bf16.msra.mxu0 %v12861_v24  ;;  %v5215_v49 = vmax.f32 %v3809_v60, 0.0  ;;  %v12870_v8 = vld [vmem:[#allocation81_spill] sm:$0xff] }
 0x3b6   : > { %12860 = vst [vmem:[#allocation98_spill] sm:$0xff] %v10004_v33  ;;  %v4014_v11 = vadd.f32 %v4013_v50, %v9243_v58  ;;  %5762 = vmatpush1.bf16.msra.mxu1 %v12862_v52  ;;  %5710 = vmatprep.subr.bf16.mxu0 %v12863_v20  ;;  %v3812_v7 = vpop.f32.mrf.mxu0  ;;  %v12867_v52 = vld [vmem:[#allocation84_spill] sm:$0xff]  ;;  %v12868_v20 = vld [vmem:[#allocation85_spill] sm:$0xff] }
 0x3b7   : > { %5763 = vmatprep.subr.bf16.mxu1 %v12864_v21  ;;  %v4015_v59 = vpop.f32.mrf.mxu1  ;;  %v5230_v1 = vmax.f32 %v3811_v17, 0.0  ;;  %v3813_v40 = vadd.f32 %v3812_v7, %v9243_v58  ;;  %v12869_v7 = vld [vmem:[#allocation80_spill] sm:$0xff] }
 0x3b8   : > { %v5232_v31 = vmax.f32 %v4014_v11, 0.0  ;;  %v4016_v50 = vadd.f32 %v4015_v59, %v9243_v58  ;;  %v3816_v24 = vpop.f32.mrf.mxu0  ;;  %4527 = vmatmul.mubr.bf16.gmra.mxu0 %v7540_v57  ;;  %v5217_v59 = vmax.f32 %v4012_v45, 0.0 }
 0x3b9   : > { %v4019_v33 = vpop.f32.mrf.mxu1  ;;  %4730 = vmatmul.mubr.bf16.gmra.mxu1 %v7540_v57  ;;  %v10018_v61 = vpack.c.bf16 %v5230_v1, %v5214_v55  ;;  %v5231_v17 = vmax.f32 %v3813_v40, 0.0  ;;  %5711 = vmatpush1.bf16.msra.mxu0 %v12867_v52  ;;  %v3817_v60 = vadd.f32 %v3816_v24, %v9215_v2  ;;  %v7542_v40 = vld [vmem:[%s7657_s30 + $0x20] sm:$0xff] }
 0x3ba   : > { %v10020_v25 = vpack.c.bf16 %v5232_v31, %v5216_v34  ;;  %v5233_v11 = vmax.f32 %v4016_v50, 0.0  ;;  %5764 = vmatpush1.bf16.msra.mxu1 %v12868_v20  ;;  %v4020_v21 = vadd.f32 %v4019_v33, %v9215_v2  ;;  %5712 = vmatprep.subr.bf16.mxu0 %v12869_v7  ;;  %v3818_v55 = vpop.f32.mrf.mxu0  ;;  %v7541_v34 = vld [vmem:[%s12257_s3 + $0x24] ss:$8 sps:$4 sm:$0xff]   ;;  %v6150_v45 = vand.u32 2147483647, %v7542_v40  ;;  %v12873_v20 = vld [vmem:[#allocation77_spill] sm:$0xff] }
 0x3bb   : > { %12865 = vst [vmem:[#allocation94_spill] sm:$0xff] %v10018_v61  ;;  %5765 = vmatprep.subr.bf16.mxu1 %v12870_v8  ;;  %v4021_v1 = vpop.f32.mrf.mxu1  ;;  %4536 = vmatprep.mubr.bf16.mxu0 %v7541_v34  ;;  %v10031_v31 = vpack.c.bf16 %v5231_v17, %v5215_v49  ;;  %v3819_v50 = vadd.f32 %v3818_v55, %v9215_v2  ;;  %v12874_v7 = vld [vmem:[#allocation78_spill] sm:$0xff]  ;;  %v12876_v55 = vld [vmem:[#allocation75_spill] sm:$0xff] }
 0x3bc   : > { %12866 = vst [vmem:[#allocation95_spill] sm:$0xff] %v10020_v25  ;;  %4739 = vmatprep.mubr.bf16.mxu1 %v7541_v34  ;;  %v3820_v24 = vpop.f32.mrf.mxu0  ;;  %v10035_v57 = vpack.c.bf16 %v5233_v11, %v5217_v59  ;;  %v5246_v34 = vmax.f32 %v3817_v60, 0.0  ;;  %v5248_v49 = vmax.f32 %v4020_v21, 0.0  ;;  %v4022_v17 = vadd.f32 %v4021_v1, %v9215_v2  ;;  %v12875_v40 = vld [vmem:[#allocation74_spill] sm:$0xff] }
 0x3bd   : > { %12871 = vst [vmem:[#allocation90_spill] sm:$0xff] %v10031_v31  ;;  %v4023_v33 = vpop.f32.mrf.mxu1  ;;  %v3821_v8 = vadd.f32 %v3820_v24, %v9219_v14  ;;  %5713 = vmatpush1.bf16.msra.mxu0 %v12873_v20  ;;  %v7543_v20 = vld [vmem:[%s7657_s30 + $0x30] sm:$0xff]  ;;  %v7544_v1 = vld [vmem:[%s12257_s3 + $0x20] ss:$8 sps:$4 sm:$0xff]  }
 0x3be   : > { %12872 = vst [vmem:[#allocation91_spill] sm:$0xff] %v10035_v57  ;;  %v4024_v52 = vadd.f32 %v4023_v33, %v9219_v14  ;;  %5766 = vmatpush1.bf16.msra.mxu1 %v12874_v7  ;;  %5714 = vmatprep.subr.bf16.mxu0 %v12875_v40  ;;  %v3822_v25 = vpop.f32.mrf.mxu0  ;;  %v6152_v57 = vand.u32 2147483647, %v7543_v20  ;;  %v5247_v7 = vmax.f32 %v3819_v50, 0.0  ;;  %v6191_v40 = vsel %vm6162_vm1, %v6150_v45, -inf  ;;  %v12880_v50 = vld [vmem:[#allocation71_spill] sm:$0xff] }
 0x3bf   : > { %5767 = vmatprep.subr.bf16.mxu1 %v12876_v55  ;;  %v4025_v11 = vpop.f32.mrf.mxu1  ;;  %v5262_v59 = vmax.f32 %v3821_v8, 0.0  ;;  %v3823_v24 = vadd.f32 %v3822_v25, %v9219_v14  ;;  %v7545_v20 = vld [vmem:[%s7657_s30 + $0x28] sm:$0xff]  ;;  %v12882_v45 = vld [vmem:[#allocation68_spill] sm:$0xff] }
 0x3c0   : > { %v5264_v61 = vmax.f32 %v4024_v52, 0.0  ;;  %v4026_v33 = vadd.f32 %v4025_v11, %v9219_v14  ;;  %v3826_v60 = vpop.f32.mrf.mxu0  ;;  %4537 = vmatmul.mubr.bf16.gmra.mxu0 %v7544_v1  ;;  %v12879_v11 = vld [vmem:[#allocation70_spill] sm:$0xff]  ;;  %v6151_v31 = vand.u32 2147483647, %v7545_v20  ;;  %v5249_v14 = vmax.f32 %v4022_v17, 0.0 }
 0x3c1   : > { %v4029_v21 = vpop.f32.mrf.mxu1  ;;  %4740 = vmatmul.mubr.bf16.gmra.mxu1 %v7544_v1  ;;  %v10051_v8 = vpack.c.bf16 %v5262_v59, %v5246_v34  ;;  %v5263_v25 = vmax.f32 %v3823_v24, 0.0  ;;  %5715 = vmatpush1.bf16.msra.mxu0 %v12879_v11  ;;  %v3827_v2 = vadd.f32 %v3826_v60, %v9191_v18  ;;  %v7547_v24 = vld [vmem:[%s7657_s30 + $0x38] sm:$0xff]  ;;  %v6192_v11 = vrot.slane %v6191_v40, 4 }
 0x3c2   : > { %v10053_v52 = vpack.c.bf16 %v5264_v61, %v5248_v49  ;;  %v5265_v55 = vmax.f32 %v4026_v33, 0.0  ;;  %5768 = vmatpush1.bf16.msra.mxu1 %v12880_v50  ;;  %v4030_v1 = vadd.f32 %v4029_v21, %v9191_v18  ;;  %5716 = vmatprep.subr.bf16.mxu0 %v12881_v27  ;;  %v3828_v61 = vpop.f32.mrf.mxu0  ;;  %v7546_v49 = vld [vmem:[%s12257_s3 + $0x34] ss:$8 sps:$4 sm:$0xff]   ;;  %v6153_v17 = vand.u32 2147483647, %v7547_v24 }
 0x3c3   : > { %12877 = vst [vmem:[#allocation87_spill] sm:$0xff] %v10051_v8  ;;  %5769 = vmatprep.subr.bf16.mxu1 %v12882_v45  ;;  %v4031_v34 = vpop.f32.mrf.mxu1  ;;  %4546 = vmatprep.mubr.bf16.mxu0 %v7546_v49  ;;  %v10065_v59 = vpack.c.bf16 %v5263_v25, %v5247_v7  ;;  %v3829_v33 = vadd.f32 %v3828_v61, %v9191_v18  ;;  %v12885_v45 = vld [vmem:[#allocation64_spill] sm:$0xff]  ;;  %v6205_v7 = vsel %vm6162_vm1, %v6152_v57, -inf  ;;  %v6198_v25 = vsel %vm6162_vm1, %v6151_v31, -inf  ;;  %v12887_v8 = vld [vmem:[#allocation53_spill] sm:$0xff] }
 0x3c4   : > { %12878 = vst [vmem:[#allocation88_spill] sm:$0xff] %v10053_v52  ;;  %4749 = vmatprep.mubr.bf16.mxu1 %v7546_v49  ;;  %v3830_v60 = vpop.f32.mrf.mxu0  ;;  %v10069_v27 = vpack.c.bf16 %v5265_v55, %v5249_v14  ;;  %v12886_v52 = vld [vmem:[#allocation65_spill] sm:$0xff]  ;;  %v5278_v49 = vmax.f32 %v3827_v2, 0.0  ;;  %v5280_v24 = vmax.f32 %v4030_v1, 0.0  ;;  %v4032_v61 = vadd.f32 %v4031_v34, %v9191_v18 }
 0x3c5   : > { %12883 = vst [vmem:[#allocation84_spill] sm:$0xff] %v10065_v59  ;;  %v4033_v21 = vpop.f32.mrf.mxu1  ;;  %v3831_v50 = vadd.f32 %v3830_v60, %v9203_v5  ;;  %5717 = vmatpush1.bf16.msra.mxu0 %v12885_v45  ;;  %v12888_v14 = vld [vmem:[#allocation61_spill] sm:$0xff]  ;;  %v6212_v57 = vsel %vm6162_vm1, %v6153_v17, -inf  ;;  %v5279_v59 = vmax.f32 %v3829_v33, 0.0  ;;  %v6206_v34 = vrot.slane %v6205_v7, 4  ;;  %v12892_v17 = vld [vmem:[#allocation48_spill] sm:$0xff] }
 0x3c6   : > { %12884 = vst [vmem:[#allocation85_spill] sm:$0xff] %v10069_v27  ;;  %v4034_v20 = vadd.f32 %v4033_v21, %v9203_v5  ;;  %5770 = vmatpush1.bf16.msra.mxu1 %v12886_v52  ;;  %5718 = vmatprep.subr.bf16.mxu0 %v12887_v8  ;;  %v3832_v55 = vpop.f32.mrf.mxu0  ;;  %v7548_v1 = vld [vmem:[%s12257_s3 + $0x30] ss:$8 sps:$4 sm:$0xff]   ;;  %v10086_v8 = vmax.f32 %v6191_v40, %v6192_v11  ;;  %v6199_v33 = vrot.slane %v6198_v25, 4  ;;  %v12894_v40 = vld [vmem:[#allocation51_spill] sm:$0xff] }
 0x3c7   : > { %5771 = vmatprep.subr.bf16.mxu1 %v12888_v14  ;;  %v4035_v60 = vpop.f32.mrf.mxu1  ;;  %v5294_v27 = vmax.f32 %v3831_v50, 0.0  ;;  %v3833_v45 = vadd.f32 %v3832_v55, %v9203_v5 }
 0x3c8   : > { %v5296_v21 = vmax.f32 %v4034_v20, 0.0  ;;  %v4036_v52 = vadd.f32 %v4035_v60, %v9203_v5  ;;  %v3836_v31 = vpop.f32.mrf.mxu0  ;;  %4547 = vmatmul.mubr.bf16.gmra.mxu0 %v7548_v1  ;;  %v12891_v60 = vld [vmem:[#allocation52_spill] sm:$0xff]  ;;  %v5281_v5 = vmax.f32 %v4032_v61, 0.0 }
 0x3c9   : > { %v4039_v2 = vpop.f32.mrf.mxu1  ;;  %4750 = vmatmul.mubr.bf16.gmra.mxu1 %v7548_v1  ;;  %v10088_v50 = vpack.c.bf16 %v5294_v27, %v5278_v49  ;;  %v5295_v14 = vmax.f32 %v3833_v45, 0.0  ;;  %5719 = vmatpush1.bf16.msra.mxu0 %v12891_v60  ;;  %v3837_v18 = vadd.f32 %v3836_v31, %v9175_v28  ;;  %v12893_v1 = vld [vmem:[#allocation50_spill] sm:$0xff]  ;;  %v6207_v31 = vmax.f32 %v6205_v7, %v6206_v34 }
 0x3ca   : > { %v10090_v20 = vpack.c.bf16 %v5296_v21, %v5280_v24  ;;  %v5297_v55 = vmax.f32 %v4036_v52, 0.0  ;;  %5772 = vmatpush1.bf16.msra.mxu1 %v12892_v17  ;;  %v4040_v19 = vadd.f32 %v4039_v2, %v9175_v28  ;;  %5720 = vmatprep.subr.bf16.mxu0 %v12893_v1  ;;  %v3838_v11 = vpop.f32.mrf.mxu0  ;;  %v7549_v49 = vld [vmem:[%s12257_s3 + $0x44] ss:$8 sps:$4 sm:$0xff]   ;;  %v6213_v21 = vrot.slane %v6212_v57, 4 }
 0x3cb   : > { %12889 = vst [vmem:[#allocation80_spill] sm:$0xff] %v10088_v50  ;;  %5773 = vmatprep.subr.bf16.mxu1 %v12894_v40  ;;  %v4041_v27 = vpop.f32.mrf.mxu1  ;;  %4556 = vmatprep.mubr.bf16.mxu0 %v7549_v49  ;;  %v10101_v24 = vpack.c.bf16 %v5295_v14, %v5279_v59  ;;  %v3839_v61 = vadd.f32 %v3838_v11, %v9175_v28  ;;  %v12897_v1 = vld [vmem:[#allocation47_spill] sm:$0xff]  ;;  %v12898_v40 = vld [vmem:[#allocation49_spill] sm:$0xff]  ;;  %v5310_v59 = vmax.f32 %v3837_v18, 0.0 }
 0x3cc   : > { %12890 = vst [vmem:[#allocation81_spill] sm:$0xff] %v10090_v20  ;;  %4759 = vmatprep.mubr.bf16.mxu1 %v7549_v49  ;;  %v3840_v45 = vpop.f32.mrf.mxu0  ;;  %v10104_v2 = vpack.c.bf16 %v5297_v55, %v5281_v5  ;;  %v6194_v49 = vrot.slane %v10086_v8, 2  ;;  %v5312_v14 = vmax.f32 %v4040_v19, 0.0  ;;  %v4042_v20 = vadd.f32 %v4041_v27, %v9175_v28  ;;  %v7550_v18 = vld [vmem:[%s12257_s3 + $0x40] ss:$8 sps:$4 sm:$0xff]  }
 0x3cd   : > { %12895 = vst [vmem:[#allocation77_spill] sm:$0xff] %v10101_v24  ;;  %v4043_v52 = vpop.f32.mrf.mxu1  ;;  %v3841_v60 = vadd.f32 %v3840_v45, %v9179_v54  ;;  %5721 = vmatpush1.bf16.msra.mxu0 %v12897_v1  ;;  %v6200_v34 = vmax.f32 %v6198_v25, %v6199_v33  ;;  %v5311_v1 = vmax.f32 %v3839_v61, 0.0  ;;  %v12914_v24 = vld [vmem:[#allocation32_spill] sm:$0xff] }
 0x3ce   : > { %12896 = vst [vmem:[#allocation78_spill] sm:$0xff] %v10104_v2  ;;  %v4044_v17 = vadd.f32 %v4043_v52, %v9179_v54  ;;  %5774 = vmatpush1.bf16.msra.mxu1 %v12898_v40  ;;  %5722 = vmatprep.subr.bf16.mxu0 %v9541_v3  ;;  %v3842_v5 = vpop.f32.mrf.mxu0  ;;  %v6208_v3 = vrot.slane %v6207_v31, 2  ;;  %v5313_v61 = vmax.f32 %v4042_v20, 0.0 }
 0x3cf   : > { %5775 = vmatprep.subr.bf16.mxu1 %v9543_v41  ;;  %v4045_v7 = vpop.f32.mrf.mxu1  ;;  %v5326_v55 = vmax.f32 %v3841_v60, 0.0  ;;  %v3843_v45 = vadd.f32 %v3842_v5, %v9179_v54  ;;  %v6214_v41 = vmax.f32 %v6212_v57, %v6213_v21  ;;  %v12901_v5 = vld [vmem:[#allocation42_spill] sm:$0xff] }
 0x3d0   : > { %v5328_v11 = vmax.f32 %v4044_v17, 0.0  ;;  %v4046_v52 = vadd.f32 %v4045_v7, %v9179_v54  ;;  %v3846_v40 = vpop.f32.mrf.mxu0  ;;  %4557 = vmatmul.mubr.bf16.gmra.mxu0 %v7550_v18 }
 0x3d1   : > { %v4049_v50 = vpop.f32.mrf.mxu1  ;;  %4760 = vmatmul.mubr.bf16.gmra.mxu1 %v7550_v18  ;;  %v10119_v19 = vpack.c.bf16 %v5326_v55, %v5310_v59  ;;  %v5327_v33 = vmax.f32 %v3843_v45, 0.0  ;;  %5723 = vmatpush2.bf16.msra.mxu0 %v9523_v36  ;;  %v3847_v60 = vadd.f32 %v3846_v40, %v9151_v32  ;;  %v6201_v59 = vrot.slane %v6200_v34, 2  ;;  %v12904_v45 = vld [vmem:[#allocation69_spill] sm:$0xff]  ;;  %v12905_v18 = vld [vmem:[#allocation40_spill] sm:$0xff] }
 0x3d2   : > { %v10121_v25 = vpack.c.bf16 %v5328_v11, %v5312_v14  ;;  %v5329_v27 = vmax.f32 %v4046_v52, 0.0  ;;  %5776 = vmatpush2.bf16.msra.mxu1 %v9525_v46  ;;  %v4050_v17 = vadd.f32 %v4049_v50, %v9151_v32  ;;  %5724 = vmatprep.subr.bf16.mxu0 %v9499_v15  ;;  %v3848_v57 = vpop.f32.mrf.mxu0  ;;  %v7551_v14 = vld [vmem:[%s12257_s3 + $0x54] ss:$8 sps:$4 sm:$0xff]   ;;  %v6195_v36 = vmax.f32 %v10086_v8, %v6194_v49 }
 0x3d3   : > { %12899 = vst [vmem:[#allocation74_spill] sm:$0xff] %v10119_v19  ;;  %5777 = vmatprep.subr.bf16.mxu1 %v12901_v5  ;;  %v4051_v21 = vpop.f32.mrf.mxu1  ;;  %4566 = vmatprep.mubr.bf16.mxu0 %v7551_v14  ;;  %v10133_v46 = vpack.c.bf16 %v5327_v33, %v5311_v1  ;;  %v3849_v20 = vadd.f32 %v3848_v57, %v9151_v32  ;;  %v6215_v55 = vrot.slane %v6214_v41, 2  ;;  %v12906_v5 = vld [vmem:[#allocation36_spill] sm:$0xff]  ;;  %v12907_v1 = vld [vmem:[#allocation37_spill] sm:$0xff]  ;;  %v12908_v33 = vld [vmem:[#allocation34_spill] sm:$0xff] }
 0x3d4   : > { %12900 = vst [vmem:[#allocation75_spill] sm:$0xff] %v10121_v25  ;;  %4769 = vmatprep.mubr.bf16.mxu1 %v7551_v14  ;;  %v3850_v50 = vpop.f32.mrf.mxu0  ;;  %v6209_v15 = vmax.f32 %v6207_v31, %v6208_v3  ;;  %v10136_v11 = vpack.c.bf16 %v5329_v27, %v5313_v61  ;;  %v5342_v14 = vmax.f32 %v3847_v60, 0.0  ;;  %v5344_v8 = vmax.f32 %v4050_v17, 0.0  ;;  %v7552_v60 = vld [vmem:[%s12257_s3 + $0x50] ss:$8 sps:$4 sm:$0xff]   ;;  %v12920_v25 = vld [vmem:[#allocation26_spill] sm:$0xff] }
 0x3d5   : > { %12902 = vst [vmem:[#allocation70_spill] sm:$0xff] %v10133_v46  ;;  %v4053_v7 = vpop.f32.mrf.mxu1  ;;  %v3851_v52 = vadd.f32 %v3850_v50, %v12904_v45  ;;  %5725 = vmatpush2.bf16.msra.mxu0 %v12905_v18  ;;  %v4052_v49 = vadd.f32 %v4051_v21, %v9151_v32  ;;  %v6202_v27 = vmax.f32 %v6200_v34, %v6201_v59  ;;  %v5343_v18 = vmax.f32 %v3849_v20, 0.0  ;;  %v12912_v20 = vld [vmem:[#allocation31_spill] sm:$0xff] }
 0x3d6   : > { %12903 = vst [vmem:[#allocation71_spill] sm:$0xff] %v10136_v11  ;;  %v4054_v40 = vadd.f32 %v4053_v7, %v12904_v45  ;;  %5778 = vmatpush2.bf16.msra.mxu1 %v12906_v5  ;;  %5726 = vmatprep.subr.bf16.mxu0 %v12907_v1  ;;  %v3852_v31 = vpop.f32.mrf.mxu0  ;;  %v6196_v17 = vrot.slane %v6195_v36, 1  ;;  %v6210_v21 = vrot.slane %v6209_v15, 1  ;;  %v6216_v1 = vmax.f32 %v6214_v41, %v6215_v55  ;;  %v12922_v11 = vld [vmem:[#allocation24_spill] sm:$0xff] }
 0x3d7   : > { %5779 = vmatprep.subr.bf16.mxu1 %v12908_v33  ;;  %v4055_v3 = vpop.f32.mrf.mxu1  ;;  %v5358_v61 = vmax.f32 %v3851_v52, 0.0  ;;  %v3853_v50 = vadd.f32 %v3852_v31, %v12904_v45  ;;  %v5345_v31 = vmax.f32 %v4052_v49, 0.0 }
 0x3d8   : > { %v5360_v57 = vmax.f32 %v4054_v40, 0.0  ;;  %v4056_v7 = vadd.f32 %v4055_v3, %v12904_v45  ;;  %v3856_v2 = vpop.f32.mrf.mxu0  ;;  %4567 = vmatmul.mubr.bf16.gmra.mxu0 %v7552_v60  ;;  %v12911_v40 = vld [vmem:[#allocation35_spill] sm:$0xff]  ;;  %v12913_v3 = vld [vmem:[#allocation62_spill] sm:$0xff]  ;;  %v6211_v19 = vmax.f32 %v6209_v15, %v6210_v21 }
 0x3d9   : > { %v4059_v5 = vpop.f32.mrf.mxu1  ;;  %4770 = vmatmul.mubr.bf16.gmra.mxu1 %v7552_v60  ;;  %v10150_v33 = vpack.c.bf16 %v5358_v61, %v5342_v14  ;;  %v5359_v59 = vmax.f32 %v3853_v50, 0.0  ;;  %5727 = vmatpush2.bf16.msra.mxu0 %v12911_v40  ;;  %v3857_v45 = vadd.f32 %v3856_v2, %v12913_v3  ;;  %v12915_v60 = vld [vmem:[#allocation29_spill] sm:$0xff]  ;;  %v6203_v14 = vrot.slane %v6202_v27, 1 }
 0x3da   : > { %v10152_v34 = vpack.c.bf16 %v5360_v57, %v5344_v8  ;;  %v5361_v52 = vmax.f32 %v4056_v7, 0.0  ;;  %5780 = vmatpush2.bf16.msra.mxu1 %v12912_v20  ;;  %v4060_v32 = vadd.f32 %v4059_v5, %v12913_v3  ;;  %5728 = vmatprep.subr.bf16.mxu0 %v12914_v24  ;;  %v3858_v41 = vpop.f32.mrf.mxu0  ;;  %v7553_v8 = vld [vmem:[%s12257_s3 + $0x64] ss:$8 sps:$4 sm:$0xff]   ;;  %v6197_v50 = vmax.f32 %v6195_v36, %v6196_v17 }
 0x3db   : > { %12909 = vst [vmem:[#allocation67_spill] sm:$0xff] %v10150_v33  ;;  %5781 = vmatprep.subr.bf16.mxu1 %v12915_v60  ;;  %v4061_v55 = vpop.f32.mrf.mxu1  ;;  %4576 = vmatprep.mubr.bf16.mxu0 %v7553_v8  ;;  %v10163_v61 = vpack.c.bf16 %v5359_v59, %v5343_v18  ;;  %v3859_v49 = vadd.f32 %v3858_v41, %v12913_v3  ;;  %v6217_v7 = vrot.slane %v6216_v1, 1  ;;  %v12918_v5 = vld [vmem:[#allocation63_spill] sm:$0xff]  ;;  %v12919_v60 = vld [vmem:[#allocation30_spill] sm:$0xff]  ;;  %vm6281_vm11 = vcmp.le.f32.partialorder %v6211_v19, 1.1 }
 0x3dc   : > { %12910 = vst [vmem:[#allocation68_spill] sm:$0xff] %v10152_v34  ;;  %4779 = vmatprep.mubr.bf16.mxu1 %v7553_v8  ;;  %v3860_v2 = vpop.f32.mrf.mxu0  ;;  %v10166_v24 = vpack.c.bf16 %v5361_v52, %v5345_v31  ;;  %v5374_v8 = vmax.f32 %v3857_v45, 0.0  ;;  %v5376_v18 = vmax.f32 %v4060_v32, 0.0  ;;  %v4062_v59 = vadd.f32 %v4061_v55, %v12913_v3  ;;  %v12921_v41 = vld [vmem:[#allocation27_spill] sm:$0xff] }
 0x3dd   : > { %12916 = vst [vmem:[#allocation64_spill] sm:$0xff] %v10163_v61  ;;  %v4063_v57 = vpop.f32.mrf.mxu1  ;;  %v3861_v40 = vadd.f32 %v3860_v2, %v12918_v5  ;;  %5729 = vmatpush2.bf16.msra.mxu0 %v12919_v60  ;;  %v6204_v52 = vmax.f32 %v6202_v27, %v6203_v14  ;;  %v5375_v46 = vmax.f32 %v3859_v49, 0.0  ;;  %vm6279_vm10 = vcmp.le.f32.partialorder %v6197_v50, 1.1  ;;  %v7554_v32 = vld [vmem:[%s12257_s3 + $0x60] ss:$8 sps:$4 sm:$0xff]  }
 0x3de   : > { %12917 = vst [vmem:[#allocation65_spill] sm:$0xff] %v10166_v24  ;;  %v4064_v20 = vadd.f32 %v4063_v57, %v12918_v5  ;;  %5782 = vmatpush2.bf16.msra.mxu1 %v12920_v25  ;;  %5730 = vmatprep.subr.bf16.mxu0 %v12921_v41  ;;  %v3862_v36 = vpop.f32.mrf.mxu0  ;;  %v12925_v14 = vld [vmem:[#allocation25_spill] sm:$0xff]  ;;  %v5377_v49 = vmax.f32 %v4062_v59, 0.0  ;;  %v7558_v33 = vld [vmem:[%s12257_s3 + $0x80] ss:$8 sps:$4 sm:$0xff]  }
 0x3df   : > { %5783 = vmatprep.subr.bf16.mxu1 %v12922_v11  ;;  %v4065_v17 = vpop.f32.mrf.mxu1  ;;  %v5390_v31 = vmax.f32 %v3861_v40, 0.0  ;;  %v3863_v57 = vadd.f32 %v3862_v36, %v12918_v5  ;;  %v6218_v11 = vmax.f32 %v6216_v1, %v6217_v7  ;;  %v12926_v40 = vld [vmem:[#allocation22_spill] sm:$0xff]  ;;  %vm6280_vm12 = vcmp.le.f32.partialorder %v6204_v52, 1.1  ;;  %v7555_v59 = vld [vmem:[%s12257_s3 + $0x74] ss:$8 sps:$4 sm:$0xff]  }
 0x3e0   : > { %v5392_v2 = vmax.f32 %v4064_v20, 0.0  ;;  %v4066_v60 = vadd.f32 %v4065_v17, %v12918_v5  ;;  %v3866_v25 = vpop.f32.mrf.mxu0  ;;  %4577 = vmatmul.mubr.bf16.gmra.mxu0 %v7554_v32  ;;  %v12927_v20 = vld [vmem:[#allocation39_spill] sm:$0xff]  ;;  %v12928_v17 = vld [vmem:[#allocation110_spill] sm:$0xff]  ;;  %v7556_v52 = vld [vmem:[%s12257_s3 + $0x70] ss:$8 sps:$4 sm:$0xff]  }
 0x3e1   : > { %v4069_v15 = vpop.f32.mrf.mxu1  ;;  %4780 = vmatmul.mubr.bf16.gmra.mxu1 %v7554_v32  ;;  %v10180_v45 = vpack.c.bf16 %v5390_v31, %v5374_v8  ;;  %v5391_v21 = vmax.f32 %v3863_v57, 0.0  ;;  %5731 = vmatpush2.bf16.msra.mxu0 %v12925_v14  ;;  %v3867_v41 = vadd.f32 %v3866_v25, %v12927_v20  ;;  %v12929_v32 = vld [vmem:[#allocation111_spill] sm:$0xff]  ;;  %vm6282_vm13 = vcmp.le.f32.partialorder %v6218_v11, 1.1  ;;  %v12941_v5 = vld [vmem:[#allocation100_spill] sm:$0xff]  ;;  %v7560_v24 = vld [vmem:[%s9611_s18] sm:$0xff] }
 0x3e2   : > { %v10182_v27 = vpack.c.bf16 %v5392_v2, %v5376_v18  ;;  %v5393_v55 = vmax.f32 %v4066_v60, 0.0  ;;  %5784 = vmatpush2.bf16.msra.mxu1 %v12926_v40  ;;  %v4070_v36 = vadd.f32 %v4069_v15, %v12927_v20  ;;  %5732 = vmatprep.subr.bf16.mxu0 %v12928_v17  ;;  %v3868_v1 = vpop.f32.mrf.mxu0  ;;  %v12932_v17 = vld [vmem:[#allocation45_spill] sm:$0xff] }
 0x3e3   : > { %12923 = vst [vmem:[#allocation53_spill] sm:$0xff] %v10180_v45  ;;  %5785 = vmatprep.subr.bf16.mxu1 %v12929_v32  ;;  %v4071_v7 = vpop.f32.mrf.mxu1  ;;  %v3869_v8 = vadd.f32 %v3868_v1, %v12927_v20  ;;  %4586 = vmatprep.mubr.bf16.mxu0 %v7555_v59  ;;  %v10195_v31 = vpack.c.bf16 %v5391_v21, %v5375_v46  ;;  %v6134_v2 = vmax.f32 %v3867_v41, 0.0 }
 0x3e4   : > { %12924 = vst [vmem:[#allocation61_spill] sm:$0xff] %v10182_v27  ;;  %v4072_v18 = vadd.f32 %v4071_v7, %v12927_v20  ;;  %4789 = vmatprep.mubr.bf16.mxu1 %v7555_v59  ;;  %v6136_v57 = vmax.f32 %v4070_v36, 0.0  ;;  %v3870_v60 = vpop.f32.mrf.mxu0  ;;  %v10197_v15 = vpack.c.bf16 %v5393_v55, %v5377_v49  ;;  %v12933_v7 = vld [vmem:[#allocation108_spill] sm:$0xff]  ;;  %v12934_v59 = vld [vmem:[#allocation109_spill] sm:$0xff]  ;;  %v12935_v55 = vld [vmem:[#allocation106_spill] sm:$0xff] }
 0x3e5   : > { %12930 = vst [vmem:[#allocation52_spill] sm:$0xff] %v10195_v31  ;;  %v4073_v25 = vpop.f32.mrf.mxu1  ;;  %v6135_v14 = vmax.f32 %v3869_v8, 0.0  ;;  %v10200_v32 = vadd.f32 %v3870_v60, %v12932_v17  ;;  %5733 = vmatpush2.bf16.msra.mxu0 %v12933_v7  ;;  %v10208_v46 = vsel %vm6279_vm10, %v6134_v2, 0.0  ;;  %v12936_v49 = vld [vmem:[#allocation107_spill] sm:$0xff] }
 0x3e6   : > { %12931 = vst [vmem:[#allocation48_spill] sm:$0xff] %v10197_v15  ;;  %v6137_v40 = vmax.f32 %v4072_v18, 0.0  ;;  %v10203_v1 = vadd.f32 %v4073_v25, %v12932_v17  ;;  %5786 = vmatpush2.bf16.msra.mxu1 %v12934_v59  ;;  %v10211_v21 = vsel %vm6281_vm11, %v6136_v57, 0.0  ;;  %5734 = vmatprep.subr.bf16.mxu0 %v12935_v55  ;;  %v3872_v41 = vpop.f32.mrf.mxu0  ;;  %v12938_v55 = vld [vmem:[#allocation105_spill] sm:$0xff] }
 0x3e7   : > { %5787 = vmatprep.subr.bf16.mxu1 %v12936_v49  ;;  %v4075_v36 = vpop.f32.mrf.mxu1  ;;  %v10216_v8 = vsel %vm6280_vm12, %v6135_v14, 0.0  ;;  %v12350_v60 = vmax.f32 %v10200_v32, 0.0  ;;  %v10224_v19 = vadd.f32 %v3872_v41, %v12932_v17  ;;  %v12939_v49 = vld [vmem:[#allocation102_spill] sm:$0xff] }
 0x3e8   : > { %v10219_v18 = vsel %vm6282_vm13, %v6137_v40, 0.0  ;;  %v12349_v50 = vmax.f32 %v10203_v1, 0.0  ;;  %v10227_v2 = vadd.f32 %v4075_v36, %v12932_v17  ;;  %v4112_v57 = vpop.f32.mrf.mxu0  ;;  %4587 = vmatmul.mubr.bf16.gmra.mxu0 %v7556_v52  ;;  %v12937_v40 = vld [vmem:[#allocation104_spill] sm:$0xff]  ;;  %v12942_v17 = vld [vmem:[#allocation101_spill] sm:$0xff] }
 0x3e9   : > { %v4315_v25 = vpop.f32.mrf.mxu1  ;;  %4790 = vmatmul.mubr.bf16.gmra.mxu1 %v7556_v52  ;;  %v10235_v11 = vadd.f32 %v12350_v60, %v10208_v46  ;;  %5735 = vmatpush2.bf16.msra.mxu0 %v12937_v40  ;;  %v12354_v7 = vmax.f32 %v10224_v19, 0.0  ;;  %v12940_v52 = vld [vmem:[#allocation103_spill] sm:$0xff] }
 0x3ea   : > { %v10240_v14 = vadd.f32 %v12349_v50, %v10211_v21  ;;  %v12356_v59 = vmax.f32 %v10227_v2, 0.0  ;;  %5788 = vmatpush2.bf16.msra.mxu1 %v12938_v55  ;;  %5736 = vmatprep.subr.bf16.mxu0 %v12939_v49  ;;  %v10247_v41 = vpop.f32.mrf.mxu0  ;;  %v7557_v40 = vld [vmem:[%s12257_s3 + $0x84] ss:$8 sps:$4 sm:$0xff]  }
 0x3eb   : > { %v10249_v36 = vpop.f32.mrf.mxu1  ;;  %vm6343_vm14 = vcmp.eq.f32.partialorder %v10235_v11, 0.0  ;;  %5789 = vmatprep.subr.bf16.mxu1 %v12940_v52  ;;  %4596 = vmatprep.mubr.bf16.mxu0 %v7557_v40  ;;  %v10262_v49 = vadd.f32 %v12354_v7, %v10216_v8  ;;  %v6663_v51 = vsub.f32 0.0, %v10235_v11 }
 0x3ec   : > { %vm6345_vm15 = vcmp.eq.f32.partialorder %v10240_v14, 0.0  ;;  %v6359_v50 = vsel %vm6343_vm14, 0.0001, %v10235_v11  ;;  %v10267_v60 = vadd.f32 %v12356_v59, %v10219_v18  ;;  %v4116_v52 = vpop.f32.mrf.mxu0  ;;  %4799 = vmatprep.mubr.bf16.mxu1 %v7557_v40  ;;  %v12943_v59 = vld [vmem:[#allocation41_spill] sm:$0xff]  ;;  %v4316_v40 = vadd.f32 %v4315_v25, %v12779_v39 }
 0x3ed   : > { %v6361_v55 = vsel %vm6345_vm15, 0.0001, %v10240_v14  ;;  %v4319_v3 = vpop.f32.mrf.mxu1  ;;  %7401 = vrcp.f32 %v6359_v50  ;;  %5737 = vmatpush2.bf16.msra.mxu0 %v12941_v5  ;;  %vm6344_vm0 = vcmp.eq.f32.partialorder %v10262_v49, 0.0  ;;  %v12944_v61 = vsub.s32 4, %v12943_v59 }
 0x3ee   : > { %7403 = vrcp.f32 %v6361_v55  ;;  %vm6346_vm2 = vcmp.eq.f32.partialorder %v10267_v60, 0.0  ;;  %5790 = vmatpush2.bf16.msra.mxu1 %v12942_v17  ;;  %5812 = vmatprep.subr.bf16.mxu0 %v9951_v47  ;;  %v10274_v7 = vpop.f32.mrf.mxu0  ;;  %v6360_v50 = vsel %vm6344_vm0, 0.0001, %v10262_v49  ;;  %v4113_v17 = vadd.f32 %v4112_v57, %v12779_v39 }
 0x3ef   : > { %v10276_v20 = vpop.f32.mrf.mxu1  ;;  %5865 = vmatprep.subr.bf16.mxu1 %v9953_v42  ;;  %7405 = vrcp.f32 %v6360_v50  ;;  %v6362_v5 = vsel %vm6346_vm2, 0.0001, %v10267_v60  ;;  %v7559_v42 = vld [vmem:[%s12257_s3 + $0x94] ss:$8 sps:$4 sm:$0xff]   ;;  %v4117_v50 = vadd.f32 %v4116_v52, %v12780_v9  ;;  %v6698_v27 = vrot.slane %v7560_v24, %v12944_v61 }
 0x3f0   : > { %v4122_v55 = vpop.f32.mrf.mxu0  ;;  %4597 = vmatmul.mubr.bf16.gmra.mxu0 %v7558_v33  ;;  %7407 = vrcp.f32 %v6362_v5  ;;  %v4320_v25 = vadd.f32 %v4319_v3, %v12780_v9  ;;  %v4898_v31 = vmax.f32 %v4113_v17, 0.0  ;;  %v6665_v22 = vsub.f32 0.0, %v10240_v14 }
 0x3f1   : > { %v4325_v47 = vpop.f32.mrf.mxu1  ;;  %4800 = vmatmul.mubr.bf16.gmra.mxu1 %v7558_v33  ;;  %4606 = vmatprep.mubr.bf16.mxu0 %v7559_v42  ;;  %v12945_v33 = vsub.s32 6, %v12943_v59  ;;  %v4914_v52 = vmax.f32 %v4117_v50, 0.0  ;;  %v4900_v37 = vmax.f32 %v4316_v40, 0.0  ;;  %v4123_v5 = vadd.f32 %v4122_v55, %v12784_v62  ;;  %v7561_v55 = vld [vmem:[%s12257_s3 + $0x90] ss:$8 sps:$4 sm:$0xff]  }
 0x3f2   : > { %4809 = vmatprep.mubr.bf16.mxu1 %v7559_v42  ;;  %v10292_v34 = vpop.f32.mrf.mxu0  ;;  %v4916_v61 = vmax.f32 %v4320_v25, 0.0  ;;  %v4326_v3 = vadd.f32 %v4325_v47, %v12784_v62  ;;  %v6664_v50 = vsub.f32 0.0, %v10262_v49  ;;  %v12948_v11 = vsub.s32 5, %v12943_v59 }
 0x3f3   : > { %v10294_v57 = vpop.f32.mrf.mxu1  ;;  %v6706_v45 = vrot.slane %v7560_v24, %v12945_v33  ;;  %v10306_v58 = vpack.c.bf16 %v4914_v52, %v4898_v31  ;;  %v6763_v47 = vmul.f32 %v6698_v27, %v6663_v51  ;;  %v6666_v52 = vsub.f32 0.0, %v10267_v60  ;;  %v12952_v27 = vld [vmem:[#allocation20_spill] sm:$0xff] }
 0x3f4   : > { %v4126_v54 = vpop.f32.mrf.mxu0  ;;  %v10314_v17 = vpack.c.bf16 %v4916_v61, %v4900_v37  ;;  %v6702_v42 = vrot.slane %v7560_v24, %v12948_v11  ;;  %v12949_v49 = vsub.s32 7, %v12943_v59  ;;  %v4930_v11 = vmax.f32 %v4123_v5, 0.0 }
 0x3f5   : > { %v4329_v28 = vpop.f32.mrf.mxu1  ;;  %12946 = vst [vmem:[#allocation50_spill] sm:$0xff] %v10306_v58  ;;  %v4127_v14 = vadd.f32 %v4126_v54, %v12786_v53  ;;  %v6765_v37 = vmul.f32 %v6706_v45, %v6665_v22  ;;  %v7562_v54 = vld [vmem:[%s12257_s3 + $0xa4] ss:$8 sps:$4 sm:$0xff]   ;;  %v12950_v45 = vmax.f32 %v10200_v32, 0.0 }
 0x3f6   : > { %v10310_v33 = vpop.f32.mrf.mxu0  ;;  %12947 = vst [vmem:[#allocation51_spill] sm:$0xff] %v10314_v17  ;;  %v4330_v31 = vadd.f32 %v4329_v28, %v12786_v53  ;;  %v6710_v61 = vrot.slane %v7560_v24, %v12949_v49  ;;  %v4932_v17 = vmax.f32 %v4326_v3, 0.0  ;;  %v6764_v3 = vmul.f32 %v6702_v42, %v6664_v50 }
 0x3f7   : > { %v10312_v15 = vpop.f32.mrf.mxu1  ;;  %v4946_v58 = vmax.f32 %v4127_v14, 0.0 }
 0x3f8   : > { %v4132_v40 = vpop.f32.mrf.mxu0  ;;  %4607 = vmatmul.mubr.bf16.gmra.mxu0 %v7561_v55  ;;  %v4948_v30 = vmax.f32 %v4330_v31, 0.0  ;;  %v6766_v42 = vmul.f32 %v6710_v61, %v6666_v52  ;;  %v7563_v61 = vld [vmem:[%s12257_s3 + $0xa0] ss:$8 sps:$4 sm:$0xff]  }
 0x3f9   : > { %v4335_v25 = vpop.f32.mrf.mxu1  ;;  %4810 = vmatmul.mubr.bf16.gmra.mxu1 %v7561_v55  ;;  %4616 = vmatprep.mubr.bf16.mxu0 %v7562_v54  ;;  %v4133_v60 = vadd.f32 %v4132_v40, %v12952_v27  ;;  %v10348_v14 = vpack.c.bf16 %v4946_v58, %v4930_v11 }
 0x3fa   : > { %4819 = vmatprep.mubr.bf16.mxu1 %v7562_v54  ;;  %v10330_v28 = vpop.eup %7401  ;;  %v4134_v55 = vpop.f32.mrf.mxu0  ;;  %v4336_v49 = vadd.f32 %v4335_v25, %v12952_v27  ;;  %v12953_v54 = vmax.f32 %v10203_v1, 0.0  ;;  %v10350_v31 = vpack.c.bf16 %v4948_v30, %v4932_v17  ;;  %v6787_v25 = vmul.f32 1.442695, %v6765_v37 }
 0x3fb   : > { %v10332_v51 = vpop.f32.mrf.mxu1  ;;  %v10334_v22 = vpop.eup %7403  ;;  %v10339_v24 = vmul.f32 %v10330_v28, %v12950_v45  ;;  %12955 = vst [vmem:[#allocation42_spill] sm:$0xff] %v10348_v14  ;;  %v6783_v45 = vmul.f32 1.442695, %v6763_v47  ;;  %v12958_v1 = vmax.f32 %v10224_v19, 0.0  ;;  %v10363_v30 = vadd.f32 %v10247_v41, %v12779_v39 }
 0x3fc   : > { %v10346_v5 = vmul.f32 %v10334_v22, %v12953_v54  ;;  %12956 = vst [vmem:[#allocation40_spill] sm:$0xff] %v10350_v31  ;;  %v4136_v59 = vpop.f32.mrf.mxu0  ;;  %v10352_v32 = vpop.eup %7405  ;;  %v4962_v50 = vmax.f32 %v4133_v60, 0.0  ;;  %v4964_v11 = vmax.f32 %v4336_v49, 0.0  ;;  %v10369_v19 = vadd.f32 %v10249_v36, %v12779_v39 }
 0x3fd   : > { %12951 = vst [vmem:[#allocation47_spill] sm:$0xff] %v10339_v24  ;;  %v4339_v6 = vpop.f32.mrf.mxu1  ;;  %v12957_v24 = vld [vmem:[#allocation21_spill] sm:$0xff]  ;;  %v10359_v54 = vmul.f32 %v10352_v32, %v12958_v1  ;;  %v10373_v37 = vadd.f32 %v10274_v7, %v12780_v9  ;;  %7409 = vpow2.f32 %v6783_v45  ;;  %v10400_v45 = vadd.f32 %v10292_v34, %v12784_v62 }
 0x3fe   : > { %12954 = vst [vmem:[#allocation49_spill] sm:$0xff] %v10346_v5  ;;  %v4137_v48 = vadd.f32 %v4136_v59, %v12957_v24  ;;  %v4340_v40 = vadd.f32 %v4339_v6, %v12957_v24  ;;  %v4138_v58 = vpop.f32.mrf.mxu0  ;;  %v10365_v59 = vpop.eup %7407  ;;  %v6785_v6 = vmul.f32 1.442695, %v6764_v3  ;;  %v7564_v7 = vld [vmem:[%s12257_s3 + $0xb4] ss:$8 sps:$4 sm:$0xff]   ;;  %7411 = vpow2.f32 %v6787_v25 }
 0x3ff   : > { %12959 = vst [vmem:[#allocation36_spill] sm:$0xff] %v10359_v54  ;;  %v4341_v17 = vpop.f32.mrf.mxu1  ;;  %v6789_v3 = vmul.f32 1.442695, %v6766_v42  ;;  %v10415_v34 = vadd.f32 %v10312_v15, %v12786_v53 }
 0x400   : > { %v4978_v47 = vmax.f32 %v4137_v48, 0.0  ;;  %v4980_v5 = vmax.f32 %v4340_v40, 0.0  ;;  %v4142_v52 = vpop.f32.mrf.mxu0  ;;  %4617 = vmatmul.mubr.bf16.gmra.mxu0 %v7563_v61  ;;  %v12960_v48 = vmax.f32 %v10227_v2, 0.0  ;;  %7413 = vpow2.f32 %v6785_v6 }
 0x401   : > { %v4345_v41 = vpop.f32.mrf.mxu1  ;;  %4820 = vmatmul.mubr.bf16.gmra.mxu1 %v7563_v61  ;;  %4626 = vmatprep.mubr.bf16.mxu0 %v7564_v7  ;;  %v12964_v61 = vld [vmem:[#allocation18_spill] sm:$0xff]  ;;  %7415 = vpow2.f32 %v6789_v3 }
 0x402   : > { %v10381_v60 = vmul.f32 %v10365_v59, %v12960_v48  ;;  %v10383_v49 = vpack.c.bf16 %v4978_v47, %v4962_v50  ;;  %v10385_v36 = vpack.c.bf16 %v4980_v5, %v4964_v11  ;;  %4829 = vmatprep.mubr.bf16.mxu1 %v7564_v7  ;;  %v4144_v40 = vpop.f32.mrf.mxu0  ;;  %v4143_v48 = vadd.f32 %v4142_v52, %v12964_v61 }
 0x403   : > { %v4347_v1 = vpop.f32.mrf.mxu1  ;;  %v4346_v50 = vadd.f32 %v4345_v41, %v12964_v61  ;;  %v10396_v11 = vadd.f32 %v10276_v20, %v12780_v9  ;;  %v10405_v52 = vadd.f32 %v10294_v57, %v12784_v62  ;;  %v12965_v41 = vld [vmem:[#allocation19_spill] sm:$0xff]  ;;  %v10411_v20 = vadd.f32 %v10310_v33, %v12786_v53 }
 0x404   : > { %12961 = vst [vmem:[#allocation37_spill] sm:$0xff] %v10381_v60  ;;  %12962 = vst [vmem:[#allocation34_spill] sm:$0xff] %v10383_v49  ;;  %v4146_v42 = vpop.f32.mrf.mxu0  ;;  %v10418_v5 = vadd.f32 %v4134_v55, %v12952_v27  ;;  %v4994_v57 = vmax.f32 %v4143_v48, 0.0  ;;  %v10423_v33 = vadd.f32 %v4138_v58, %v12957_v24  ;;  %v7565_v55 = vld [vmem:[%s12257_s3 + $0xb0] ss:$8 sps:$4 sm:$0xff]  }
 0x405   : > { %12963 = vst [vmem:[#allocation35_spill] sm:$0xff] %v10385_v36  ;;  %v4349_v47 = vpop.f32.mrf.mxu1  ;;  %v4147_v6 = vadd.f32 %v4146_v42, %v12965_v41  ;;  %v4996_v60 = vmax.f32 %v4346_v50, 0.0  ;;  %v10431_v50 = vadd.f32 %v4341_v17, %v12957_v24  ;;  %v7566_v58 = vld [vmem:[%s12257_s3 + $0xc4] ss:$8 sps:$4 sm:$0xff]  }
 0x406   : > { %v4350_v7 = vadd.f32 %v4349_v47, %v12965_v41  ;;  %v4148_v25 = vpop.f32.mrf.mxu0  ;;  %v4979_v49 = vmax.f32 %v10423_v33, 0.0 }
 0x407   : > { %v4351_v2 = vpop.f32.mrf.mxu1  ;;  %v5010_v54 = vmax.f32 %v4147_v6, 0.0  ;;  %v4149_v31 = vadd.f32 %v4148_v25, %v12965_v41  ;;  %v4145_v25 = vadd.f32 %v4144_v40, %v12964_v61 }
 0x408   : > { %v5012_v42 = vmax.f32 %v4350_v7, 0.0  ;;  %v4152_v15 = vpop.f32.mrf.mxu0  ;;  %4627 = vmatmul.mubr.bf16.gmra.mxu0 %v7565_v55  ;;  %v4352_v47 = vadd.f32 %v4351_v2, %v12965_v41 }
 0x409   : > { %v4355_v14 = vpop.f32.mrf.mxu1  ;;  %4830 = vmatmul.mubr.bf16.gmra.mxu1 %v7565_v55  ;;  %v10433_v6 = vpack.c.bf16 %v5010_v54, %v4994_v57  ;;  %4636 = vmatprep.mubr.bf16.mxu0 %v7566_v58  ;;  %v12968_v55 = vld [vmem:[#allocation16_spill] sm:$0xff]  ;;  %v4963_v57 = vmax.f32 %v10418_v5, 0.0  ;;  %v5011_v40 = vmax.f32 %v4149_v31, 0.0  ;;  %v4981_v54 = vmax.f32 %v10431_v50, 0.0 }
 0x40a   : > { %v10435_v7 = vpack.c.bf16 %v5012_v42, %v4996_v60  ;;  %4839 = vmatprep.mubr.bf16.mxu1 %v7566_v58  ;;  %v4153_v3 = vadd.f32 %v4152_v15, %v12968_v55  ;;  %v4356_v48 = vadd.f32 %v4355_v14, %v12968_v55  ;;  %v4154_v17 = vpop.f32.mrf.mxu0  ;;  %v4338_v42 = vadd.f32 %v10332_v51, %v12952_v27 }
 0x40b   : > { %12966 = vst [vmem:[#allocation31_spill] sm:$0xff] %v10433_v6  ;;  %v4357_v36 = vpop.f32.mrf.mxu1  ;;  %v4348_v58 = vadd.f32 %v4347_v1, %v12964_v61  ;;  %v4155_v2 = vadd.f32 %v4154_v17, %v12968_v55  ;;  %v5013_v6 = vmax.f32 %v4352_v47, 0.0  ;;  %v10456_v61 = vpop.eup %7409  ;;  %v7567_v47 = vld [vmem:[%s12257_s3 + $0xc0] ss:$8 sps:$4 sm:$0xff]  }
 0x40c   : > { %12967 = vst [vmem:[#allocation32_spill] sm:$0xff] %v10435_v7  ;;  %v4358_v15 = vadd.f32 %v4357_v36, %v12968_v55  ;;  %v4156_v41 = vpop.f32.mrf.mxu0  ;;  %v4995_v7 = vmax.f32 %v4145_v25, 0.0  ;;  %v5026_v51 = vmax.f32 %v4153_v3, 0.0  ;;  %v5028_v24 = vmax.f32 %v4356_v48, 0.0  ;;  %v10460_v27 = vpop.eup %7411 }
 0x40d   : > { %v4359_v14 = vpop.f32.mrf.mxu1  ;;  %v4157_v60 = vadd.f32 %v4156_v41, %v12808_v35  ;;  %v4997_v50 = vmax.f32 %v4348_v58, 0.0  ;;  %v5027_v41 = vmax.f32 %v4155_v2, 0.0  ;;  %v10467_v48 = vpop.eup %7413  ;;  %v7568_v2 = vld [vmem:[%s12257_s3 + $0xd4] ss:$8 sps:$4 sm:$0xff]  }
 0x40e   : > { %v4360_v5 = vadd.f32 %v4359_v14, %v12808_v35  ;;  %v4158_v1 = vpop.f32.mrf.mxu0  ;;  %v5029_v53 = vmax.f32 %v4358_v15, 0.0  ;;  %v10465_v3 = vpack.c.bf16 %v5011_v40, %v4995_v7  ;;  %v4965_v15 = vmax.f32 %v4338_v42, 0.0 }
 0x40f   : > { %v4361_v31 = vpop.f32.mrf.mxu1  ;;  %v5042_v17 = vmax.f32 %v4157_v60, 0.0  ;;  %v4159_v55 = vadd.f32 %v4158_v1, %v12808_v35 }
 0x410   : > { %v5044_v36 = vmax.f32 %v4360_v5, 0.0  ;;  %v4362_v33 = vadd.f32 %v4361_v31, %v12808_v35  ;;  %v4162_v14 = vpop.f32.mrf.mxu0  ;;  %4637 = vmatmul.mubr.bf16.gmra.mxu0 %v7567_v47  ;;  %12969 = vst [vmem:[#allocation29_spill] sm:$0xff] %v10465_v3  ;;  %v10478_v35 = vpack.c.bf16 %v5013_v6, %v4997_v50  ;;  %v10491_v3 = vpack.c.bf16 %v4981_v54, %v4965_v15 }
 0x411   : > { %v4365_v25 = vpop.f32.mrf.mxu1  ;;  %4840 = vmatmul.mubr.bf16.gmra.mxu1 %v7567_v47  ;;  %v10469_v60 = vpack.c.bf16 %v5042_v17, %v5026_v51  ;;  %v5043_v1 = vmax.f32 %v4159_v55, 0.0  ;;  %4646 = vmatprep.mubr.bf16.mxu0 %v7568_v2  ;;  %v4163_v31 = vadd.f32 %v4162_v14, %v12814_v23  ;;  %v10480_v51 = vpop.eup %7415  ;;  %v12984_v15 = vmax.f32 %v10373_v37, 0.0 }
 0x412   : > { %v10471_v5 = vpack.c.bf16 %v5044_v36, %v5028_v24  ;;  %v5045_v58 = vmax.f32 %v4362_v33, 0.0  ;;  %4849 = vmatprep.mubr.bf16.mxu1 %v7568_v2  ;;  %v4366_v7 = vadd.f32 %v4365_v25, %v12814_v23  ;;  %v4164_v40 = vpop.f32.mrf.mxu0  ;;  %12972 = vst [vmem:[#allocation27_spill] sm:$0xff] %v10478_v35  ;;  %v6811_v36 = vsub.f32 1.0, %v10456_v61  ;;  %12976 = vst [vmem:[#allocation110_spill] sm:$0xff] %v10491_v3 }
 0x413   : > { %12970 = vst [vmem:[#allocation30_spill] sm:$0xff] %v10469_v60  ;;  %v4367_v47 = vpop.f32.mrf.mxu1  ;;  %v4165_v24 = vadd.f32 %v4164_v40, %v12814_v23  ;;  %v10483_v55 = vpack.c.bf16 %v5043_v1, %v5027_v41  ;;  %v5058_v33 = vmax.f32 %v4163_v31, 0.0  ;;  %v10489_v25 = vpack.c.bf16 %v4979_v49, %v4963_v57  ;;  %v13031_v60 = vld [vmem:[#allocation55_spill] sm:$0xff] }
 0x414   : > { %12971 = vst [vmem:[#allocation26_spill] sm:$0xff] %v10471_v5  ;;  %v10485_v17 = vpack.c.bf16 %v5045_v58, %v5029_v53  ;;  %v4368_v42 = vadd.f32 %v4367_v47, %v12814_v23  ;;  %v4166_v14 = vpop.f32.mrf.mxu0  ;;  %v5060_v6 = vmax.f32 %v4366_v7, 0.0  ;;  %v12977_v58 = vmax.f32 %v10400_v45, 0.0 }
 0x415   : > { %12973 = vst [vmem:[#allocation24_spill] sm:$0xff] %v10483_v55  ;;  %v4369_v2 = vpop.f32.mrf.mxu1  ;;  %12975 = vst [vmem:[#allocation22_spill] sm:$0xff] %v10489_v25  ;;  %v5059_v50 = vmax.f32 %v4165_v24, 0.0  ;;  %v4167_v35 = vadd.f32 %v4166_v14, %v12822_v38  ;;  %v12978_v61 = vmax.f32 %v10411_v20, 0.0  ;;  %v12980_v40 = vmax.f32 %v10405_v52, 0.0 }
 0x416   : > { %12974 = vst [vmem:[#allocation25_spill] sm:$0xff] %v10485_v17  ;;  %v4370_v41 = vadd.f32 %v4369_v2, %v12822_v38  ;;  %v4168_v1 = vpop.f32.mrf.mxu0  ;;  %v12981_v49 = vmax.f32 %v10415_v34, 0.0  ;;  %v12983_v57 = vmax.f32 %v10363_v30, 0.0  ;;  %v12986_v47 = vmax.f32 %v10369_v19, 0.0  ;;  %v7569_v30 = vld [vmem:[%s12257_s3 + $0xd0] ss:$8 sps:$4 sm:$0xff]  }
 0x417   : > { %v4371_v53 = vpop.f32.mrf.mxu1  ;;  %v10499_v31 = vpack.c.bf16 %v12978_v61, %v12977_v58  ;;  %v12987_v45 = vmax.f32 %v10396_v11, 0.0  ;;  %v5074_v20 = vmax.f32 %v4167_v35, 0.0  ;;  %v4169_v52 = vadd.f32 %v4168_v1, %v12822_v38  ;;  %v13032_v17 = vld [vmem:[#allocation112_spill] sm:$0xff] }
 0x418   : > { %v10505_v54 = vpack.c.bf16 %v12981_v49, %v12980_v40  ;;  %v10511_v7 = vpack.c.bf16 %v12984_v15, %v12983_v57  ;;  %v5076_v14 = vmax.f32 %v4370_v41, 0.0  ;;  %v4372_v34 = vadd.f32 %v4371_v53, %v12822_v38  ;;  %v4172_v58 = vpop.f32.mrf.mxu0  ;;  %4647 = vmatmul.mubr.bf16.gmra.mxu0 %v7569_v30  ;;  %v7570_v53 = vld [vmem:[%s12257_s3 + $0xe4] ss:$8 sps:$4 sm:$0xff]  }
 0x419   : > { %12979 = vst [vmem:[#allocation111_spill] sm:$0xff] %v10499_v31  ;;  %v10517_v24 = vpack.c.bf16 %v12987_v45, %v12986_v47  ;;  %v5061_v2 = vmax.f32 %v4368_v42, 0.0  ;;  %v4375_v61 = vpop.f32.mrf.mxu1  ;;  %4850 = vmatmul.mubr.bf16.gmra.mxu1 %v7569_v30  ;;  %v10526_v19 = vmul.f32 %v10330_v28, %v10208_v46  ;;  %v10530_v35 = vmul.f32 %v10334_v22, %v10211_v21 }
 0x41a   : > { %12982 = vst [vmem:[#allocation108_spill] sm:$0xff] %v10505_v54  ;;  %12985 = vst [vmem:[#allocation109_spill] sm:$0xff] %v10511_v7  ;;  %v10534_v37 = vmul.f32 %v10352_v32, %v10216_v8  ;;  %v10536_v11 = vpack.c.bf16 %v5074_v20, %v5058_v33  ;;  %v10538_v42 = vpack.c.bf16 %v5076_v14, %v5060_v6  ;;  %v5075_v41 = vmax.f32 %v4169_v52, 0.0  ;;  %v4174_v28 = vpop.f32.mrf.mxu0 }
 0x41b   : > { %12988 = vst [vmem:[#allocation106_spill] sm:$0xff] %v10517_v24  ;;  %12989 = vst [vmem:[#allocation107_spill] sm:$0xff] %v10526_v19  ;;  %v5077_v1 = vmax.f32 %v4372_v34, 0.0  ;;  %4656 = vmatprep.mubr.bf16.mxu0 %v7570_v53  ;;  %4859 = vmatprep.mubr.bf16.mxu1 %v7570_v53  ;;  %v4173_v46 = vadd.f32 %v4172_v58, %v12835_v13  ;;  %v4376_v21 = vadd.f32 %v4375_v61, %v12835_v13  ;;  %v4377_v22 = vpop.f32.mrf.mxu1  ;;  %v7571_v53 = vld [vmem:[%s12257_s3 + $0xe0] ss:$8 sps:$4 sm:$0xff]  }
 0x41c   : > { %12990 = vst [vmem:[#allocation104_spill] sm:$0xff] %v10530_v35  ;;  %12991 = vst [vmem:[#allocation105_spill] sm:$0xff] %v10534_v37  ;;  %v10545_v8 = vpack.c.bf16 %v5075_v41, %v5059_v50  ;;  %v4175_v33 = vadd.f32 %v4174_v28, %v12835_v13  ;;  %v4378_v6 = vadd.f32 %v4377_v22, %v12835_v13  ;;  %v4176_v40 = vpop.f32.mrf.mxu0  ;;  %v6827_v15 = vsub.f32 1.0, %v6811_v36  ;;  %v13027_v24 = vld [vmem:[#allocation59_spill] sm:$0xff] }
 0x41d   : > { %12992 = vst [vmem:[#allocation102_spill] sm:$0xff] %v10536_v11  ;;  %12993 = vst [vmem:[#allocation103_spill] sm:$0xff] %v10538_v42  ;;  %v10547_v32 = vpack.c.bf16 %v5077_v1, %v5061_v2  ;;  %v4379_v49 = vpop.f32.mrf.mxu1  ;;  %v10553_v57 = vmul.f32 %v10365_v59, %v10219_v18  ;;  %v4177_v47 = vadd.f32 %v4176_v40, %v12838_v44  ;;  %v5090_v20 = vmax.f32 %v4173_v46, 0.0 }
 0x41e   : > { %v4380_v45 = vadd.f32 %v4379_v49, %v12838_v44  ;;  %v5092_v50 = vmax.f32 %v4376_v21, 0.0  ;;  %v4178_v14 = vpop.f32.mrf.mxu0  ;;  %v10558_v34 = vmul.f32 %v9940_v0, %v6811_v36  ;;  %v5091_v18 = vmax.f32 %v4175_v33, 0.0  ;;  %v7572_v33 = vld [vmem:[%s12257_s3 + $0xf4] ss:$8 sps:$4 sm:$0xff]  }
 0x41f   : > { %12994 = vst [vmem:[#allocation100_spill] sm:$0xff] %v10547_v32  ;;  %12995 = vst [vmem:[#allocation101_spill] sm:$0xff] %v10553_v57  ;;  %v4381_v52 = vpop.f32.mrf.mxu1  ;;  %v5106_v2 = vmax.f32 %v4177_v47, 0.0  ;;  %v4179_v61 = vadd.f32 %v4178_v14, %v12838_v44  ;;  %v5093_v59 = vmax.f32 %v4378_v6, 0.0  ;;  %v6813_v46 = vsub.f32 1.0, %v10460_v27  ;;  %v13048_v32 = vld [vmem:[#allocation118_spill] sm:$0xff] }
 0x420   : > { %12996 = vst [vmem:[#allocation138_spill] sm:$0xff] %v10558_v34  ;;  %v5108_v58 = vmax.f32 %v4380_v45, 0.0  ;;  %v4382_v30 = vadd.f32 %v4381_v52, %v12838_v44  ;;  %v4182_v41 = vpop.f32.mrf.mxu0  ;;  %4657 = vmatmul.mubr.bf16.gmra.mxu0 %v7571_v53  ;;  %v6841_v36 = vadd.f32 1e-10, %v6827_v15  ;;  %v6812_v15 = vsub.f32 1.0, %v10467_v48 }
 0x421   : > { %v4385_v1 = vpop.f32.mrf.mxu1  ;;  %4860 = vmatmul.mubr.bf16.gmra.mxu1 %v7571_v53  ;;  %v10566_v21 = vpack.c.bf16 %v5106_v2, %v5090_v20  ;;  %v5107_v22 = vmax.f32 %v4179_v61, 0.0  ;;  %4666 = vmatprep.mubr.bf16.mxu0 %v7572_v33  ;;  %v4183_v6 = vadd.f32 %v4182_v41, %v12842_v10  ;;  %v6829_v61 = vsub.f32 1.0, %v6813_v46 }
 0x422   : > { %v10568_v28 = vpack.c.bf16 %v5108_v58, %v5092_v50  ;;  %v5109_v40 = vmax.f32 %v4382_v30, 0.0  ;;  %4869 = vmatprep.mubr.bf16.mxu1 %v7572_v33  ;;  %v4386_v49 = vadd.f32 %v4385_v1, %v12842_v10  ;;  %v4184_v47 = vpop.f32.mrf.mxu0  ;;  %v6857_v27 = vmul.f32 %v9940_v0, %v6841_v36 }
 0x423   : > { %v4387_v45 = vpop.f32.mrf.mxu1  ;;  %v4185_v20 = vadd.f32 %v4184_v47, %v12842_v10  ;;  %v10578_v50 = vpack.c.bf16 %v5107_v22, %v5091_v18  ;;  %v6828_v41 = vsub.f32 1.0, %v6812_v15  ;;  %v5122_v1 = vmax.f32 %v4183_v6, 0.0 }
 0x424   : > { %v10580_v14 = vpack.c.bf16 %v5109_v40, %v5093_v59  ;;  %v4388_v52 = vadd.f32 %v4387_v45, %v12842_v10  ;;  %v4186_v2 = vpop.f32.mrf.mxu0  ;;  %v10583_v30 = vmul.f32 %v6857_v27, %v6813_v46  ;;  %v5124_v48 = vmax.f32 %v4386_v49, 0.0  ;;  %v7573_v49 = vld [vmem:[%s12257_s3 + $0xf0] ss:$8 sps:$4 sm:$0xff]  }
 0x425   : > { %v4389_v58 = vpop.f32.mrf.mxu1  ;;  %v4187_v53 = vadd.f32 %v4186_v2, %v12845_v26  ;;  %v5123_v36 = vmax.f32 %v4185_v20, 0.0  ;;  %v10588_v59 = vmul.f32 %v9957_v29, %v6812_v15  ;;  %v6814_v22 = vsub.f32 1.0, %v10480_v51 }
 0x426   : > { %12997 = vst [vmem:[#allocation139_spill] sm:$0xff] %v10583_v30  ;;  %v4390_v0 = vadd.f32 %v4389_v58, %v12845_v26  ;;  %v4188_v33 = vpop.f32.mrf.mxu0  ;;  %v5125_v6 = vmax.f32 %v4388_v52, 0.0  ;;  %v6842_v15 = vadd.f32 1e-10, %v6828_v41  ;;  %v6843_v58 = vadd.f32 1e-10, %v6829_v61 }
 0x427   : > { %v4391_v18 = vpop.f32.mrf.mxu1  ;;  %12998 = vst [vmem:[#allocation140_spill] sm:$0xff] %v10588_v59  ;;  %v5138_v40 = vmax.f32 %v4187_v53, 0.0  ;;  %v4189_v46 = vadd.f32 %v4188_v33, %v12845_v26  ;;  %v6830_v20 = vsub.f32 1.0, %v6814_v22  ;;  %v7574_v52 = vld [vmem:[%s12257_s3 + $0x104] ss:$8 sps:$4 sm:$0xff]  }
 0x428   : > { %v5140_v47 = vmax.f32 %v4390_v0, 0.0  ;;  %v4392_v45 = vadd.f32 %v4391_v18, %v12845_v26  ;;  %v4192_v30 = vpop.f32.mrf.mxu0  ;;  %4667 = vmatmul.mubr.bf16.gmra.mxu0 %v7573_v49  ;;  %v10608_v41 = vmul.f32 %v6857_v27, %v6843_v58 }
 0x429   : > { %v4395_v2 = vpop.f32.mrf.mxu1  ;;  %4870 = vmatmul.mubr.bf16.gmra.mxu1 %v7573_v49  ;;  %v10596_v59 = vpack.c.bf16 %v5138_v40, %v5122_v1  ;;  %v5139_v53 = vmax.f32 %v4189_v46, 0.0  ;;  %4676 = vmatprep.mubr.bf16.mxu0 %v7574_v52  ;;  %v6858_v49 = vmul.f32 %v9957_v29, %v6842_v15  ;;  %v4193_v61 = vadd.f32 %v4192_v30, %v12847_v4  ;;  %v10623_v29 = vld [vmem:[%s12258_s4 + $0x4] ss:$8 sps:$4 sm:$0xff]  }
 0x42a   : > { %v10598_v51 = vpack.c.bf16 %v5140_v47, %v5124_v48  ;;  %v5141_v0 = vmax.f32 %v4392_v45, 0.0  ;;  %4879 = vmatprep.mubr.bf16.mxu1 %v7574_v52  ;;  %v10603_v33 = vpop.f32.mrf.mxu0  ;;  %12999 = vst [vmem:[#allocation141_spill] sm:$0xff] %v10608_v41  ;;  %v4396_v1 = vadd.f32 %v4395_v2, %v12847_v4  ;;  %v6844_v52 = vadd.f32 1e-10, %v6830_v20  ;;  %13001 = vst [vmem:[#allocation143_spill] sm:$0xff] %v10623_v29 }
 0x42b   : > { %v10605_v18 = vpop.f32.mrf.mxu1  ;;  %v10612_v48 = vpack.c.bf16 %v5139_v53, %v5123_v36  ;;  %v10616_v45 = vmul.f32 %v6858_v49, %v6814_v22  ;;  %v7575_v53 = vld [vmem:[%s12257_s3 + $0x100] ss:$8 sps:$4 sm:$0xff]  }
 0x42c   : > { %v10614_v40 = vpack.c.bf16 %v5141_v0, %v5125_v6  ;;  %v4196_v47 = vpop.f32.mrf.mxu0  ;;  %v10629_v36 = vmul.f32 %v6858_v49, %v6844_v52  ;;  %v5154_v6 = vmax.f32 %v4193_v61, 0.0  ;;  %v5156_v2 = vmax.f32 %v4396_v1, 0.0  ;;  %v10649_v52 = vld [vmem:[%s12258_s4] ss:$8 sps:$4 sm:$0xff]  }
 0x42d   : > { %v4399_v46 = vpop.f32.mrf.mxu1  ;;  %13000 = vst [vmem:[#allocation142_spill] sm:$0xff] %v10616_v45  ;;  %v4197_v34 = vadd.f32 %v4196_v47, %v12848_v56 }
 0x42e   : > { %v4400_v57 = vadd.f32 %v4399_v46, %v12848_v56  ;;  %v10625_v27 = vpop.f32.mrf.mxu0  ;;  %13002 = vst [vmem:[#allocation144_spill] sm:$0xff] %v10629_v36 }
 0x42f   : > { %v10627_v30 = vpop.f32.mrf.mxu1  ;;  %v5170_v22 = vmax.f32 %v4197_v34, 0.0 }
 0x430   : > { %v5172_v15 = vmax.f32 %v4400_v57, 0.0  ;;  %v4202_v20 = vpop.f32.mrf.mxu0  ;;  %4677 = vmatmul.mubr.bf16.gmra.mxu0 %v7575_v53 }
 0x431   : > { %v4405_v58 = vpop.f32.mrf.mxu1  ;;  %4880 = vmatmul.mubr.bf16.gmra.mxu1 %v7575_v53  ;;  %v10634_v0 = vpack.c.bf16 %v5170_v22, %v5154_v6  ;;  %5738 = vmatprep.mubr.bf16.mxu0 %v10623_v29  ;;  %v4203_v57 = vadd.f32 %v4202_v20, %v9254_v16 }
 0x432   : > { %v10636_v47 = vpack.c.bf16 %v5172_v15, %v5156_v2  ;;  %5791 = vmatprep.mubr.bf16.mxu1 %v10623_v29  ;;  %v10640_v49 = vpop.f32.mrf.mxu0  ;;  %v4406_v61 = vadd.f32 %v4405_v58, %v9254_v16  ;;  %v10660_v58 = vld [vmem:[%s12258_s4 + $0x14] ss:$8 sps:$4 sm:$0xff]  }
 0x433   : > { %13003 = vst [vmem:[#allocation145_spill] sm:$0xff] %v10634_v0  ;;  %v10642_v34 = vpop.f32.mrf.mxu1  ;;  %v5186_v53 = vmax.f32 %v4203_v57, 0.0  ;;  %v13007_v57 = vld [vmem:[#allocation129_spill] sm:$0xff] }
 0x434   : > { %13004 = vst [vmem:[#allocation146_spill] sm:$0xff] %v10636_v47  ;;  %v4206_v1 = vpop.f32.mrf.mxu0  ;;  %v5188_v45 = vmax.f32 %v4406_v61, 0.0  ;;  %v13008_v61 = vld [vmem:[#allocation130_spill] sm:$0xff] }
 0x435   : > { %v4409_v46 = vpop.f32.mrf.mxu1  ;;  %v4207_v6 = vadd.f32 %v4206_v1, %v9261_v12  ;;  %v13009_v47 = vld [vmem:[#allocation86_spill] sm:$0xff] }
 0x436   : > { %v4410_v2 = vadd.f32 %v4409_v46, %v9261_v12  ;;  %v10653_v22 = vpop.f32.mrf.mxu0 }
 0x437   : > { %v10655_v15 = vpop.f32.mrf.mxu1  ;;  %v5202_v20 = vmax.f32 %v4207_v6, 0.0 }
 0x438   : > { %v5204_v37 = vmax.f32 %v4410_v2, 0.0  ;;  %v4212_v35 = vpop.f32.mrf.mxu0  ;;  %5739 = vmatmul.mubr.bf16.vlgmr.msra.gmra.mxu0 %v10649_v52 }
 0x439   : > { %v4415_v19 = vpop.f32.mrf.mxu1  ;;  %5792 = vmatmul.mubr.bf16.vlgmr.msra.gmra.mxu1 %v10649_v52  ;;  %v10664_v1 = vpack.c.bf16 %v5202_v20, %v5186_v53  ;;  %5813 = vmatpush1.bf16.msra.mxu0 %v9942_v63  ;;  %v4213_v0 = vadd.f32 %v4212_v35, %v13009_v47  ;;  %v13013_v35 = vld [vmem:[#allocation128_spill] sm:$0xff] }
 0x43a   : > { %v10666_v46 = vpack.c.bf16 %v5204_v37, %v5188_v45  ;;  %5866 = vmatpush1.bf16.msra.mxu1 %v9944_v43  ;;  %5814 = vmatprep.subr.bf16.mxu0 %v13007_v57  ;;  %v10672_v6 = vpop.f32.mrf.mxu0  ;;  %v4416_v36 = vadd.f32 %v4415_v19, %v13009_v47  ;;  %v10683_v43 = vld [vmem:[%s12258_s4 + $0x10] ss:$8 sps:$4 sm:$0xff]   ;;  %v13012_v57 = vld [vmem:[#allocation127_spill] sm:$0xff] }
 0x43b   : > { %13005 = vst [vmem:[#allocation147_spill] sm:$0xff] %v10664_v1  ;;  %5867 = vmatprep.subr.bf16.mxu1 %v13008_v61  ;;  %v10674_v2 = vpop.f32.mrf.mxu1  ;;  %5748 = vmatprep.mubr.bf16.mxu0 %v10660_v58  ;;  %13010 = vst [vmem:[#allocation129_spill] sm:$0xff] %v10683_v43  ;;  %v13011_v45 = vld [vmem:[#allocation89_spill] sm:$0xff]  ;;  %v13014_v19 = vld [vmem:[#allocation124_spill] sm:$0xff]  ;;  %v5218_v26 = vmax.f32 %v4213_v0, 0.0 }
 0x43c   : > { %13006 = vst [vmem:[#allocation148_spill] sm:$0xff] %v10666_v46  ;;  %5801 = vmatprep.mubr.bf16.mxu1 %v10660_v58  ;;  %v4216_v37 = vpop.f32.mrf.mxu0  ;;  %v13015_v61 = vld [vmem:[#allocation125_spill] sm:$0xff]  ;;  %v5220_v10 = vmax.f32 %v4416_v36, 0.0  ;;  %v13021_v36 = vld [vmem:[#allocation114_spill] sm:$0xff] }
 0x43d   : > { %v4419_v63 = vpop.f32.mrf.mxu1  ;;  %v4217_v53 = vadd.f32 %v4216_v37, %v13011_v45  ;;  %5815 = vmatpush1.bf16.msra.mxu0 %v13012_v57 }
 0x43e   : > { %v4420_v20 = vadd.f32 %v4419_v63, %v13011_v45  ;;  %5868 = vmatpush1.bf16.msra.mxu1 %v13013_v35  ;;  %5816 = vmatprep.subr.bf16.mxu0 %v13014_v19  ;;  %v10691_v46 = vpop.f32.mrf.mxu0  ;;  %v13018_v35 = vld [vmem:[#allocation122_spill] sm:$0xff]  ;;  %v13019_v19 = vld [vmem:[#allocation123_spill] sm:$0xff] }
 0x43f   : > { %5869 = vmatprep.subr.bf16.mxu1 %v13015_v61  ;;  %v10693_v1 = vpop.f32.mrf.mxu1  ;;  %v5234_v44 = vmax.f32 %v4217_v53, 0.0  ;;  %v13020_v61 = vld [vmem:[#allocation113_spill] sm:$0xff] }
 0x440   : > { %v5236_v13 = vmax.f32 %v4420_v20, 0.0  ;;  %v4222_v41 = vpop.f32.mrf.mxu0  ;;  %5749 = vmatmul.mubr.bf16.gmra.mxu0 %v10683_v43  ;;  %v13022_v20 = vld [vmem:[#allocation82_spill] sm:$0xff] }
 0x441   : > { %v4425_v37 = vpop.f32.mrf.mxu1  ;;  %5802 = vmatmul.mubr.bf16.gmra.mxu1 %v10683_v43  ;;  %v10697_v63 = vpack.c.bf16 %v5234_v44, %v5218_v26  ;;  %5817 = vmatpush1.bf16.msra.mxu0 %v13018_v35  ;;  %v4223_v38 = vadd.f32 %v4222_v41, %v13022_v20  ;;  %v7577_v41 = vld [vmem:[%s7657_s30 + $0x40] sm:$0xff] }
 0x442   : > { %v10699_v57 = vpack.c.bf16 %v5236_v13, %v5220_v10  ;;  %5870 = vmatpush1.bf16.msra.mxu1 %v13019_v19  ;;  %5818 = vmatprep.subr.bf16.mxu0 %v13020_v61  ;;  %v10705_v0 = vpop.f32.mrf.mxu0  ;;  %v4426_v26 = vadd.f32 %v4425_v37, %v13022_v20  ;;  %v13023_v10 = vld [vmem:[#allocation83_spill] sm:$0xff]  ;;  %v13024_v61 = vld [vmem:[#allocation44_spill] sm:$0xff]  ;;  %v6154_v23 = vand.u32 2147483647, %v7577_v41 }
 0x443   : > { %13016 = vst [vmem:[#allocation130_spill] sm:$0xff] %v10697_v63  ;;  %5871 = vmatprep.subr.bf16.mxu1 %v13021_v36  ;;  %v10707_v53 = vpop.f32.mrf.mxu1  ;;  %5844 = vmatprep.mubr.bf16.mxu0 %v10623_v29  ;;  %v13025_v36 = vld [vmem:[#allocation46_spill] sm:$0xff]  ;;  %v13026_v37 = vld [vmem:[#allocation23_spill] sm:$0xff] }
 0x444   : > { %13017 = vst [vmem:[#allocation127_spill] sm:$0xff] %v10699_v57  ;;  %5897 = vmatprep.mubr.bf16.mxu1 %v10623_v29  ;;  %v4226_v13 = vpop.f32.mrf.mxu0  ;;  %v7576_v57 = vld [vmem:[%s7657_s30 + $0x48] sm:$0xff] }
 0x445   : > { %v4429_v44 = vpop.f32.mrf.mxu1  ;;  %v4227_v35 = vadd.f32 %v4226_v13, %v13023_v10  ;;  %5819 = vmatpush1.bf16.msra.mxu0 %v13024_v61  ;;  %v6155_v63 = vand.u32 2147483647, %v7576_v57  ;;  %v5250_v13 = vmax.f32 %v4223_v38, 0.0  ;;  %v13033_v38 = vld [vmem:[#allocation115_spill] sm:$0xff] }
 0x446   : > { %v4430_v19 = vadd.f32 %v4429_v44, %v13023_v10  ;;  %5872 = vmatpush1.bf16.msra.mxu1 %v13025_v36  ;;  %5820 = vmatprep.subr.bf16.mxu0 %v13026_v37  ;;  %v10721_v7 = vpop.f32.mrf.mxu0  ;;  %v5252_v44 = vmax.f32 %v4426_v26, 0.0  ;;  %v7578_v36 = vld [vmem:[%s7657_s30 + $0x50] sm:$0xff]  ;;  %v13030_v37 = vld [vmem:[#allocation43_spill] sm:$0xff] }
 0x447   : > { %5873 = vmatprep.subr.bf16.mxu1 %v13027_v24  ;;  %v10723_v54 = vpop.f32.mrf.mxu1  ;;  %v5266_v31 = vmax.f32 %v4227_v35, 0.0  ;;  %v6156_v5 = vand.u32 2147483647, %v7578_v36  ;;  %v7579_v24 = vld [vmem:[%s7657_s30 + $0x58] sm:$0xff] }
 0x448   : > { %v5268_v61 = vmax.f32 %v4430_v19, 0.0  ;;  %v4232_v3 = vpop.f32.mrf.mxu0  ;;  %v6157_v29 = vand.u32 2147483647, %v7579_v24  ;;  %v6226_v19 = vsel %vm6162_vm1, %v6155_v63, -inf }
 0x449   : > { %v4435_v25 = vpop.f32.mrf.mxu1  ;;  %v10726_v57 = vpack.c.bf16 %v5266_v31, %v5250_v13  ;;  %5821 = vmatpush1.bf16.msra.mxu0 %v13030_v37  ;;  %v13036_v31 = vld [vmem:[#allocation76_spill] sm:$0xff]  ;;  %v13037_v37 = vld [vmem:[#allocation79_spill] sm:$0xff] }
 0x44a   : > { %v10728_v41 = vpack.c.bf16 %v5268_v61, %v5252_v44  ;;  %5874 = vmatpush1.bf16.msra.mxu1 %v13031_v60  ;;  %5822 = vmatprep.subr.bf16.mxu0 %v13032_v17  ;;  %v10735_v26 = vpop.f32.mrf.mxu0  ;;  %v4233_v13 = vadd.f32 %v4232_v3, %v13036_v31  ;;  %v4436_v44 = vadd.f32 %v4435_v25, %v13036_v31  ;;  %v6219_v61 = vsel %vm6162_vm1, %v6154_v23, -inf  ;;  %v13040_v3 = vld [vmem:[#allocation116_spill] sm:$0xff]  ;;  %v13041_v25 = vld [vmem:[#allocation117_spill] sm:$0xff] }
 0x44b   : > { %13028 = vst [vmem:[#allocation128_spill] sm:$0xff] %v10726_v57  ;;  %5875 = vmatprep.subr.bf16.mxu1 %v13033_v38  ;;  %13034 = vst [vmem:[#allocation125_spill] sm:$0xff] %v10735_v26  ;;  %v10737_v35 = vpop.f32.mrf.mxu1  ;;  %v13039_v38 = vld [vmem:[#allocation38_spill] sm:$0xff]  ;;  %v6233_v57 = vsel %vm6162_vm1, %v6156_v5, -inf  ;;  %v6240_v63 = vsel %vm6162_vm1, %v6157_v29, -inf }
 0x44c   : > { %13029 = vst [vmem:[#allocation124_spill] sm:$0xff] %v10728_v41  ;;  %13035 = vst [vmem:[#allocation122_spill] sm:$0xff] %v10737_v35  ;;  %v4236_v36 = vpop.f32.mrf.mxu0  ;;  %v13038_v41 = vld [vmem:[#allocation58_spill] sm:$0xff]  ;;  %v6227_v35 = vrot.slane %v6226_v19, 4  ;;  %v5282_v31 = vmax.f32 %v4233_v13, 0.0  ;;  %v6234_v11 = vrot.slane %v6233_v57, 4 }
 0x44d   : > { %v4439_v60 = vpop.f32.mrf.mxu1  ;;  %v4237_v24 = vadd.f32 %v4236_v36, %v13037_v37  ;;  %5823 = vmatpush1.bf16.msra.mxu0 %v13038_v41  ;;  %v6220_v36 = vrot.slane %v6219_v61, 4  ;;  %v6241_v5 = vrot.slane %v6240_v63, 4 }
 0x44e   : > { %v4440_v17 = vadd.f32 %v4439_v60, %v13037_v37  ;;  %5876 = vmatpush1.bf16.msra.mxu1 %v13039_v38  ;;  %5824 = vmatprep.subr.bf16.mxu0 %v13040_v3  ;;  %v10751_v23 = vpop.f32.mrf.mxu0  ;;  %v5284_v60 = vmax.f32 %v4436_v44, 0.0  ;;  %v13046_v3 = vld [vmem:[#allocation5_spill] sm:$0xff] }
 0x44f   : > { %5877 = vmatprep.subr.bf16.mxu1 %v13041_v25  ;;  %13042 = vst [vmem:[#allocation123_spill] sm:$0xff] %v10751_v23  ;;  %v10753_v26 = vpop.f32.mrf.mxu1  ;;  %v5298_v55 = vmax.f32 %v4237_v24, 0.0  ;;  %v13047_v25 = vld [vmem:[#allocation33_spill] sm:$0xff]  ;;  %v6221_v24 = vmax.f32 %v6219_v61, %v6220_v36  ;;  %v13051_v23 = vld [vmem:[#allocation72_spill] sm:$0xff] }
 0x450   : > { %13043 = vst [vmem:[#allocation113_spill] sm:$0xff] %v10753_v26  ;;  %v5300_v41 = vmax.f32 %v4440_v17, 0.0  ;;  %v4242_v42 = vpop.f32.mrf.mxu0  ;;  %v13049_v26 = vld [vmem:[#allocation119_spill] sm:$0xff]  ;;  %v6228_v17 = vmax.f32 %v6226_v19, %v6227_v35  ;;  %v13056_v61 = vld [vmem:[#allocation48_spill] sm:$0xff] }
 0x451   : > { %v4445_v38 = vpop.f32.mrf.mxu1  ;;  %v10755_v43 = vpack.c.bf16 %v5298_v55, %v5282_v31  ;;  %5825 = vmatpush1.bf16.msra.mxu0 %v13046_v3  ;;  %v4243_v37 = vadd.f32 %v4242_v42, %v13051_v23  ;;  %v13052_v3 = vld [vmem:[#allocation73_spill] sm:$0xff]  ;;  %v6222_v19 = vrot.slane %v6221_v24, 2 }
 0x452   : > { %v10757_v29 = vpack.c.bf16 %v5300_v41, %v5284_v60  ;;  %5878 = vmatpush1.bf16.msra.mxu1 %v13047_v25  ;;  %5826 = vmatprep.subr.bf16.mxu0 %v13048_v32  ;;  %v10763_v13 = vpop.f32.mrf.mxu0  ;;  %v4446_v55 = vadd.f32 %v4445_v38, %v13051_v23  ;;  %v6235_v41 = vmax.f32 %v6233_v57, %v6234_v11  ;;  %v13053_v32 = vld [vmem:[#allocation15_spill] sm:$0xff]  ;;  %v6229_v36 = vrot.slane %v6228_v17, 2 }
 0x453   : > { %13044 = vst [vmem:[#allocation114_spill] sm:$0xff] %v10755_v43  ;;  %5879 = vmatprep.subr.bf16.mxu1 %v13049_v26  ;;  %13050 = vst [vmem:[#allocation46_spill] sm:$0xff] %v10763_v13  ;;  %v10765_v44 = vpop.f32.mrf.mxu1  ;;  %v13054_v26 = vld [vmem:[#allocation10_spill] sm:$0xff]  ;;  %v6242_v43 = vmax.f32 %v6240_v63, %v6241_v5  ;;  %v13055_v13 = vld [vmem:[#allocation52_spill] sm:$0xff]  ;;  %v5314_v11 = vmax.f32 %v4243_v37, 0.0 }
 0x454   : > { %13045 = vst [vmem:[#allocation44_spill] sm:$0xff] %v10757_v29  ;;  %v4246_v31 = vpop.f32.mrf.mxu0  ;;  %v5316_v57 = vmax.f32 %v4446_v55, 0.0  ;;  %v13066_v37 = vld [vmem:[#allocation65_spill] sm:$0xff] }
 0x455   : > { %v4449_v60 = vpop.f32.mrf.mxu1  ;;  %v4247_v29 = vadd.f32 %v4246_v31, %v13052_v3  ;;  %5827 = vmatpush1.bf16.msra.mxu0 %v13053_v32 }
 0x456   : > { %v4450_v25 = vadd.f32 %v4449_v60, %v13052_v3  ;;  %5880 = vmatpush1.bf16.msra.mxu1 %v13054_v26  ;;  %5828 = vmatprep.subr.bf16.mxu0 %v13055_v13  ;;  %v10775_v35 = vpop.f32.mrf.mxu0  ;;  %v6236_v26 = vrot.slane %v6235_v41, 2  ;;  %v13063_v13 = vld [vmem:[#allocation53_spill] sm:$0xff] }
 0x457   : > { %5881 = vmatprep.subr.bf16.mxu1 %v13056_v61  ;;  %13057 = vst [vmem:[#allocation23_spill] sm:$0xff] %v10775_v35  ;;  %v10777_v42 = vpop.f32.mrf.mxu1  ;;  %v5330_v38 = vmax.f32 %v4247_v29, 0.0  ;;  %v13064_v61 = vld [vmem:[#allocation61_spill] sm:$0xff]  ;;  %v13065_v35 = vld [vmem:[#allocation64_spill] sm:$0xff] }
 0x458   : > { %13058 = vst [vmem:[#allocation59_spill] sm:$0xff] %v10777_v42  ;;  %v5332_v31 = vmax.f32 %v4450_v25, 0.0  ;;  %v10779_v60 = vpop.f32.mrf.mxu0  ;;  %v6243_v42 = vrot.slane %v6242_v43, 2  ;;  %v6223_v25 = vmax.f32 %v6221_v24, %v6222_v19 }
 0x459   : > { %13059 = vst [vmem:[#allocation43_spill] sm:$0xff] %v10779_v60  ;;  %v10781_v32 = vpop.f32.mrf.mxu1  ;;  %v10783_v63 = vpack.c.bf16 %v5330_v38, %v5314_v11  ;;  %5829 = vmatpush2.bf16.msra.mxu0 %v13063_v13  ;;  %v13071_v38 = vld [vmem:[#allocation67_spill] sm:$0xff]  ;;  %v13073_v13 = vld [vmem:[#allocation70_spill] sm:$0xff] }
 0x45a   : > { %13060 = vst [vmem:[#allocation55_spill] sm:$0xff] %v10781_v32  ;;  %v10785_v5 = vpack.c.bf16 %v5332_v31, %v5316_v57  ;;  %5882 = vmatpush2.bf16.msra.mxu1 %v13064_v61  ;;  %5830 = vmatprep.subr.bf16.mxu0 %v13065_v35  ;;  %v10791_v29 = vpop.f32.mrf.mxu0  ;;  %v6230_v32 = vmax.f32 %v6228_v17, %v6229_v36  ;;  %v13072_v31 = vld [vmem:[#allocation68_spill] sm:$0xff]  ;;  %v13074_v61 = vld [vmem:[#allocation71_spill] sm:$0xff]  ;;  %v6224_v17 = vrot.slane %v6223_v25, 1 }
 0x45b   : > { %13061 = vst [vmem:[#allocation112_spill] sm:$0xff] %v10783_v63  ;;  %5883 = vmatprep.subr.bf16.mxu1 %v13066_v37  ;;  %13067 = vst [vmem:[#allocation58_spill] sm:$0xff] %v10791_v29  ;;  %v10793_v55 = vpop.f32.mrf.mxu1  ;;  %v6237_v57 = vmax.f32 %v6235_v41, %v6236_v26  ;;  %v6244_v35 = vmax.f32 %v6242_v43, %v6243_v42  ;;  %v7580_v42 = vld [vmem:[%s7657_s30 + $0x68] sm:$0xff]  ;;  %v13081_v63 = vld [vmem:[#allocation77_spill] sm:$0xff] }
 0x45c   : > { %13062 = vst [vmem:[#allocation115_spill] sm:$0xff] %v10785_v5  ;;  %13068 = vst [vmem:[#allocation38_spill] sm:$0xff] %v10793_v55  ;;  %v10795_v60 = vpop.f32.mrf.mxu0  ;;  %v6231_v19 = vrot.slane %v6230_v32, 1  ;;  %v13082_v55 = vld [vmem:[#allocation78_spill] sm:$0xff] }
 0x45d   : > { %13069 = vst [vmem:[#allocation116_spill] sm:$0xff] %v10795_v60  ;;  %v10797_v11 = vpop.f32.mrf.mxu1  ;;  %5831 = vmatpush2.bf16.msra.mxu0 %v13071_v38  ;;  %v6238_v26 = vrot.slane %v6237_v57, 1  ;;  %v13079_v38 = vld [vmem:[#allocation74_spill] sm:$0xff]  ;;  %v6245_v43 = vrot.slane %v6244_v35, 1 }
 0x45e   : > { %13070 = vst [vmem:[#allocation117_spill] sm:$0xff] %v10797_v11  ;;  %5884 = vmatpush2.bf16.msra.mxu1 %v13072_v31  ;;  %5832 = vmatprep.subr.bf16.mxu0 %v13073_v13  ;;  %v10803_v37 = vpop.f32.mrf.mxu0  ;;  %v13080_v31 = vld [vmem:[#allocation75_spill] sm:$0xff]  ;;  %v6159_v13 = vand.u32 2147483647, %v7580_v42 }
 0x45f   : > { %5885 = vmatprep.subr.bf16.mxu1 %v13074_v61  ;;  %13075 = vst [vmem:[#allocation5_spill] sm:$0xff] %v10803_v37  ;;  %v10805_v24 = vpop.f32.mrf.mxu1  ;;  %v7581_v61 = vld [vmem:[%s7657_s30 + $0x78] sm:$0xff]  ;;  %v10854_v37 = vadd.f32 %v10605_v18, %v12847_v4 }
 0x460   : > { %13076 = vst [vmem:[#allocation33_spill] sm:$0xff] %v10805_v24  ;;  %v10807_v36 = vpop.f32.mrf.mxu0  ;;  %v6161_v5 = vand.u32 2147483647, %v7581_v61  ;;  %v6239_v61 = vmax.f32 %v6237_v57, %v6238_v26  ;;  %v10849_v57 = vld [vmem:[%s7657_s30 + $0x70] sm:$0xff] }
 0x461   : > { %13077 = vst [vmem:[#allocation118_spill] sm:$0xff] %v10807_v36  ;;  %v10809_v41 = vpop.f32.mrf.mxu1  ;;  %5833 = vmatpush2.bf16.msra.mxu0 %v13079_v38  ;;  %v10823_v38 = vmax.f32 %v6230_v32, %v6231_v19  ;;  %v13089_v32 = vld [vmem:[#allocation81_spill] sm:$0xff]  ;;  %v6246_v19 = vmax.f32 %v6244_v35, %v6245_v43  ;;  %13092 = vst [vmem:[#allocation65_spill] sm:$0xff] %v10849_v57  ;;  %v13095_v43 = vld [vmem:[#allocation14_spill] sm:$0xff]  ;;  %v10880_v57 = vadd.f32 %v10653_v22, %v9261_v12 }
 0x462   : > { %13078 = vst [vmem:[#allocation119_spill] sm:$0xff] %v10809_v41  ;;  %5886 = vmatpush2.bf16.msra.mxu1 %v13080_v31  ;;  %5834 = vmatprep.subr.bf16.mxu0 %v13081_v63  ;;  %v10817_v11 = vpop.f32.mrf.mxu0  ;;  %v10821_v41 = vmax.f32 %v6223_v25, %v6224_v17  ;;  %v4199_v31 = vadd.f32 %v10625_v27, %v12848_v56  ;;  %v10832_v63 = vld [vmem:[%s9611_s18 + $0x8] sm:$0xff]  ;;  %v13088_v17 = vld [vmem:[#allocation80_spill] sm:$0xff]  ;;  %v10843_v27 = vsel %vm6162_vm1, %v6159_v13, -inf  ;;  %vm6285_vm5 = vcmp.le.f32.partialorder %v6239_v61, 1.1 }
 0x463   : > { %5887 = vmatprep.subr.bf16.mxu1 %v13082_v55  ;;  %13083 = vst [vmem:[#allocation15_spill] sm:$0xff] %v10817_v11  ;;  %v10819_v36 = vpop.f32.mrf.mxu1  ;;  %v10835_v55 = vld [vmem:[%s7657_s30 + $0x60] sm:$0xff]  ;;  %v4195_v25 = vadd.f32 %v10603_v33, %v12847_v4  ;;  %13090 = vst [vmem:[#allocation61_spill] sm:$0xff] %v10843_v27  ;;  %v13093_v33 = vld [vmem:[#allocation84_spill] sm:$0xff]  ;;  %vm6284_vm4 = vcmp.le.f32.partialorder %v10823_v38, 1.1 }
 0x464   : > { %13084 = vst [vmem:[#allocation10_spill] sm:$0xff] %v10819_v36  ;;  %v10827_v24 = vpop.f32.mrf.mxu0  ;;  %13087 = vst [vmem:[#allocation53_spill] sm:$0xff] %v10835_v55  ;;  %vm6283_vm3 = vcmp.le.f32.partialorder %v10821_v41, 1.1  ;;  %v5171_v18 = vmax.f32 %v4199_v31, 0.0  ;;  %v13101_v13 = vld [vmem:[#allocation87_spill] sm:$0xff] }
 0x465   : > { %13085 = vst [vmem:[#allocation52_spill] sm:$0xff] %v10827_v24  ;;  %v10829_v42 = vpop.f32.mrf.mxu1  ;;  %5835 = vmatpush2.bf16.msra.mxu0 %v13088_v17  ;;  %v13094_v17 = vld [vmem:[#allocation85_spill] sm:$0xff]  ;;  %v13102_v31 = vld [vmem:[#allocation88_spill] sm:$0xff]  ;;  %vm6286_vm6 = vcmp.le.f32.partialorder %v6246_v19, 1.1  ;;  %v5157_v60 = vmax.f32 %v10854_v37, 0.0 }
 0x466   : > { %13086 = vst [vmem:[#allocation48_spill] sm:$0xff] %v10829_v42  ;;  %5888 = vmatpush2.bf16.msra.mxu1 %v13089_v32  ;;  %v10846_v42 = vsel %vm6162_vm1, %v6161_v5, -inf  ;;  %5836 = vmatprep.subr.bf16.mxu0 %v13093_v33  ;;  %v10858_v32 = vpop.f32.mrf.mxu0  ;;  %v4402_v5 = vadd.f32 %v10627_v30, %v12848_v56  ;;  %v13096_v33 = vld [vmem:[#allocation41_spill] sm:$0xff]  ;;  %v5155_v56 = vmax.f32 %v4195_v25, 0.0  ;;  %v13105_v25 = vld [vmem:[#allocation39_spill] sm:$0xff] }
 0x467   : > { %13091 = vst [vmem:[#allocation64_spill] sm:$0xff] %v10846_v42  ;;  %5889 = vmatprep.subr.bf16.mxu1 %v13094_v17  ;;  %v10860_v35 = vpop.f32.mrf.mxu1  ;;  %v13097_v17 = vsub.s32 2, %v13096_v33  ;;  %v13099_v4 = vsub.s32 1, %v13096_v33  ;;  %v13103_v55 = vsub.s32 3, %v13096_v33  ;;  %v13109_v11 = vld [vmem:[#allocation45_spill] sm:$0xff] }
 0x468   : > { %v4272_v26 = vpop.f32.mrf.mxu0  ;;  %v5173_v36 = vmax.f32 %v4402_v5, 0.0 }
 0x469   : > { %v4475_v42 = vpop.f32.mrf.mxu1  ;;  %v10871_v27 = vrot.slane %v10832_v63, %v13097_v17  ;;  %v10876_v30 = vrot.slane %v10832_v63, %v13099_v4  ;;  %5837 = vmatpush2.bf16.msra.mxu0 %v13101_v13  ;;  %v10887_v17 = vrot.slane %v10832_v63, %v13103_v55  ;;  %v4412_v4 = vadd.f32 %v10655_v15, %v9261_v12  ;;  %v13107_v13 = vld [vmem:[#allocation91_spill] sm:$0xff] }
 0x46a   : > { %5890 = vmatpush2.bf16.msra.mxu1 %v13102_v31  ;;  %v4476_v22 = vadd.f32 %v4475_v42, %v13105_v25  ;;  %v4274_v31 = vpop.f32.mrf.mxu0  ;;  %v4205_v55 = vadd.f32 %v10640_v49, %v9254_v16  ;;  %v4408_v15 = vadd.f32 %v10642_v34, %v9254_v16  ;;  %v5203_v34 = vmax.f32 %v10880_v57, 0.0 }
 0x46b   : > { %13098 = vst [vmem:[#allocation67_spill] sm:$0xff] %v10871_v27  ;;  %13100 = vst [vmem:[#allocation68_spill] sm:$0xff] %v10876_v30  ;;  %v4273_v30 = vadd.f32 %v4272_v26, %v13105_v25  ;;  %v13106_v27 = vld [vmem:[#allocation90_spill] sm:$0xff]  ;;  %5891 = vmatprep.subr.bf16.mxu1 %v13107_v13  ;;  %v4477_v24 = vpop.f32.mrf.mxu1  ;;  %v4275_v33 = vadd.f32 %v4274_v31, %v13105_v25 }
 0x46c   : > { %13104 = vst [vmem:[#allocation70_spill] sm:$0xff] %v10887_v17  ;;  %5838 = vmatprep.subr.bf16.mxu0 %v13106_v27  ;;  %v4478_v37 = vadd.f32 %v4477_v24, %v13105_v25  ;;  %v6140_v12 = vmax.f32 %v4476_v22, 0.0  ;;  %v4276_v42 = vpop.f32.mrf.mxu0  ;;  %v10902_v27 = vpack.c.bf16 %v5171_v18, %v5155_v56  ;;  %v13110_v31 = vld [vmem:[#allocation94_spill] sm:$0xff]  ;;  %v13111_v24 = vld [vmem:[#allocation95_spill] sm:$0xff]  ;;  %v13112_v18 = vld [vmem:[#allocation97_spill] sm:$0xff]  ;;  %v5187_v61 = vmax.f32 %v4205_v55, 0.0 }
 0x46d   : > { %v6138_v26 = vmax.f32 %v4273_v30, 0.0  ;;  %v4479_v17 = vpop.f32.mrf.mxu1  ;;  %v6139_v13 = vmax.f32 %v4275_v33, 0.0  ;;  %v10905_v5 = vadd.f32 %v4276_v42, %v13109_v11  ;;  %5839 = vmatpush2.bf16.msra.mxu0 %v13110_v31  ;;  %v5205_v30 = vmax.f32 %v4412_v4, 0.0  ;;  %v13113_v33 = vld [vmem:[#allocation98_spill] sm:$0xff]  ;;  %v13201_v16 = vld [vmem:[#allocation48_spill] sm:$0xff] }
 0x46e   : > { %13108 = vst [vmem:[#allocation71_spill] sm:$0xff] %v10902_v27  ;;  %v6141_v29 = vmax.f32 %v4478_v37, 0.0  ;;  %v10908_v49 = vadd.f32 %v4479_v17, %v13109_v11  ;;  %5892 = vmatpush2.bf16.msra.mxu1 %v13111_v24  ;;  %v10918_v56 = vsel %vm6285_vm5, %v6140_v12, 0.0  ;;  %5840 = vmatprep.subr.bf16.mxu0 %v13112_v18  ;;  %v4278_v17 = vpop.f32.mrf.mxu0  ;;  %v10937_v18 = vpack.c.bf16 %v5173_v36, %v5157_v60 }
 0x46f   : > { %v10915_v22 = vsel %vm6283_vm3, %v6138_v26, 0.0  ;;  %5893 = vmatprep.subr.bf16.mxu1 %v13113_v33  ;;  %v4481_v37 = vpop.f32.mrf.mxu1  ;;  %v10924_v42 = vsel %vm6284_vm4, %v6139_v13, 0.0  ;;  %v12397_v41 = vmax.f32 %v10905_v5, 0.0  ;;  %v10932_v12 = vadd.f32 %v4278_v17, %v13109_v11  ;;  %v13116_v13 = vld [vmem:[#allocation136_spill] sm:$0xff]  ;;  %v13117_v33 = vld [vmem:[#allocation137_spill] sm:$0xff]  ;;  %v13118_v17 = vld [vmem:[#allocation134_spill] sm:$0xff] }
 0x470   : > { %v10927_v57 = vsel %vm6286_vm6, %v6141_v29, 0.0  ;;  %v12396_v4 = vmax.f32 %v10908_v49, 0.0  ;;  %v10935_v26 = vadd.f32 %v4481_v37, %v13109_v11  ;;  %v4518_v31 = vpop.f32.mrf.mxu0  ;;  %13115 = vst [vmem:[#allocation75_spill] sm:$0xff] %v10937_v18  ;;  %v5189_v38 = vmax.f32 %v4408_v15, 0.0 }
 0x471   : > { %13114 = vst [vmem:[#allocation74_spill] sm:$0xff] %v10927_v57  ;;  %v4721_v24 = vpop.f32.mrf.mxu1  ;;  %v4219_v29 = vadd.f32 %v10691_v46, %v13011_v45  ;;  %v10944_v19 = vadd.f32 %v12397_v41, %v10915_v22  ;;  %5841 = vmatpush2.bf16.msra.mxu0 %v13116_v13  ;;  %v4215_v60 = vadd.f32 %v10672_v6, %v13009_v47  ;;  %v12400_v46 = vmax.f32 %v10932_v12, 0.0  ;;  %v13119_v13 = vld [vmem:[#allocation135_spill] sm:$0xff] }
 0x472   : > { %v10949_v55 = vadd.f32 %v12396_v4, %v10918_v56  ;;  %v10956_v36 = vadd.f32 %v10674_v2, %v13009_v47  ;;  %5894 = vmatpush2.bf16.msra.mxu1 %v13117_v33  ;;  %5842 = vmatprep.subr.bf16.mxu0 %v13118_v17  ;;  %v4520_v37 = vpop.f32.mrf.mxu0  ;;  %v10965_v6 = vpack.c.bf16 %v5203_v34, %v5187_v61  ;;  %v13122_v17 = vmax.f32 %v10935_v26, 0.0  ;;  %v13200_v47 = vld [vmem:[#allocation5_spill] sm:$0xff] }
 0x473   : > { %v4723_v4 = vpop.f32.mrf.mxu1  ;;  %vm6347_vm7 = vcmp.eq.f32.partialorder %v10944_v19, 0.0  ;;  %5895 = vmatprep.subr.bf16.mxu1 %v13119_v13  ;;  %v10967_v2 = vpack.c.bf16 %v5205_v30, %v5189_v38  ;;  %v10974_v33 = vadd.f32 %v12400_v46, %v10924_v42  ;;  %v5235_v34 = vmax.f32 %v4219_v29, 0.0  ;;  %v13123_v38 = vld [vmem:[#allocation132_spill] sm:$0xff]  ;;  %v13124_v29 = vld [vmem:[#allocation133_spill] sm:$0xff] }
 0x474   : > { %vm6349_vm8 = vcmp.eq.f32.partialorder %v10949_v55, 0.0  ;;  %13120 = vst [vmem:[#allocation77_spill] sm:$0xff] %v10965_v6  ;;  %v6363_v41 = vsel %vm6347_vm7, 0.0001, %v10944_v19  ;;  %v10979_v11 = vadd.f32 %v13122_v17, %v10927_v57  ;;  %v4522_v25 = vpop.f32.mrf.mxu0  ;;  %v10983_v30 = vadd.f32 %v10693_v1, %v13011_v45 }
 0x475   : > { %13121 = vst [vmem:[#allocation78_spill] sm:$0xff] %v10967_v2  ;;  %v6365_v15 = vsel %vm6349_vm8, 0.0001, %v10949_v55  ;;  %v4725_v13 = vpop.f32.mrf.mxu1  ;;  %v10987_v61 = vadd.f32 %v10705_v0, %v13022_v20  ;;  %7417 = vrcp.f32 %v6363_v41  ;;  %5843 = vmatpush2.bf16.msra.mxu0 %v13123_v38  ;;  %v10992_v46 = vadd.f32 %v10707_v53, %v13022_v20  ;;  %v13204_v2 = vld [vmem:[#allocation68_spill] sm:$0xff] }
 0x476   : > { %7419 = vrcp.f32 %v6365_v15  ;;  %vm6348_vm9 = vcmp.eq.f32.partialorder %v10974_v33, 0.0  ;;  %vm6350_vm10 = vcmp.eq.f32.partialorder %v10979_v11, 0.0  ;;  %5896 = vmatpush2.bf16.msra.mxu1 %v13124_v29  ;;  %5918 = vmatprep.subr.bf16.mxu0 %v10612_v48  ;;  %v4524_v1 = vpop.f32.mrf.mxu0  ;;  %v5219_v0 = vmax.f32 %v4215_v60, 0.0 }
 0x477   : > { %v4727_v17 = vpop.f32.mrf.mxu1  ;;  %v6364_v38 = vsel %vm6348_vm9, 0.0001, %v10974_v33  ;;  %v4519_v45 = vadd.f32 %v4518_v31, %v12779_v39  ;;  %5971 = vmatprep.subr.bf16.mxu1 %v10614_v40  ;;  %v6366_v53 = vsel %vm6350_vm10, 0.0001, %v10979_v11  ;;  %v4722_v15 = vadd.f32 %v4721_v24, %v12779_v39 }
 0x478   : > { %7421 = vrcp.f32 %v6364_v38  ;;  %v4521_v29 = vadd.f32 %v4520_v37, %v12779_v39  ;;  %5845 = vmatmul.mubr.bf16.vlgmr.msra.gmra.mxu0 %v10649_v52  ;;  %v4528_v48 = vpop.f32.mrf.mxu0  ;;  %v11010_v31 = vadd.f32 %v10721_v7, %v13023_v10  ;;  %v11014_v40 = vpack.c.bf16 %v5235_v34, %v5219_v0 }
 0x479   : > { %v4731_v20 = vpop.f32.mrf.mxu1  ;;  %5898 = vmatmul.mubr.bf16.vlgmr.msra.gmra.mxu1 %v10649_v52  ;;  %5919 = vmatpush1.bf16.msra.mxu0 %v10596_v59  ;;  %v11019_v37 = vadd.f32 %v10723_v54, %v13023_v10  ;;  %v4724_v38 = vadd.f32 %v4723_v4, %v12779_v39  ;;  %v4523_v60 = vadd.f32 %v4522_v25, %v12780_v9  ;;  %7423 = vrcp.f32 %v6366_v53 }
 0x47a   : > { %13125 = vst [vmem:[#allocation80_spill] sm:$0xff] %v11014_v40  ;;  %5972 = vmatpush1.bf16.msra.mxu1 %v10598_v51  ;;  %5920 = vmatprep.subr.bf16.mxu0 %v10578_v50  ;;  %v4530_v7 = vpop.f32.mrf.mxu0  ;;  %v4902_v59 = vmax.f32 %v4519_v45, 0.0  ;;  %v4726_v34 = vadd.f32 %v4725_v13, %v12780_v9  ;;  %v4525_v0 = vadd.f32 %v4524_v1, %v12780_v9  ;;  %v4904_v54 = vmax.f32 %v4722_v15, 0.0 }
 0x47b   : > { %v4733_v52 = vpop.f32.mrf.mxu1  ;;  %5973 = vmatprep.subr.bf16.mxu1 %v10580_v14  ;;  %5854 = vmatprep.mubr.bf16.mxu0 %v10660_v58  ;;  %v4903_v39 = vmax.f32 %v4521_v29, 0.0  ;;  %v4918_v4 = vmax.f32 %v4523_v60, 0.0  ;;  %v4728_v25 = vadd.f32 %v4727_v17, %v12780_v9  ;;  %v4529_v45 = vadd.f32 %v4528_v48, %v12784_v62  ;;  %v13127_v17 = vld [vmem:[#allocation79_spill] sm:$0xff] }
 0x47c   : > { %v4532_v51 = vpop.f32.mrf.mxu0  ;;  %5907 = vmatprep.mubr.bf16.mxu1 %v10660_v58  ;;  %v4920_v50 = vmax.f32 %v4726_v34, 0.0  ;;  %v4919_v53 = vmax.f32 %v4525_v0, 0.0  ;;  %v4732_v13 = vadd.f32 %v4731_v20, %v12784_v62  ;;  %v4905_v14 = vmax.f32 %v4724_v38, 0.0  ;;  %v13128_v60 = vld [vmem:[#allocation123_spill] sm:$0xff]  ;;  %v13131_v38 = vld [vmem:[#allocation100_spill] sm:$0xff] }
 0x47d   : > { %v4735_v24 = vpop.f32.mrf.mxu1  ;;  %5921 = vmatpush1.bf16.msra.mxu0 %v10566_v21  ;;  %v11034_v1 = vpack.c.bf16 %v4918_v4, %v4902_v59  ;;  %v4921_v15 = vmax.f32 %v4728_v25, 0.0  ;;  %v4531_v29 = vadd.f32 %v4530_v7, %v12784_v62  ;;  %v11041_v34 = vadd.f32 %v13128_v60, %v13127_v17  ;;  %v13134_v4 = vld [vmem:[#allocation129_spill] sm:$0xff] }
 0x47e   : > { %5974 = vmatpush1.bf16.msra.mxu1 %v10568_v28  ;;  %5922 = vmatprep.subr.bf16.mxu0 %v10545_v8  ;;  %v4534_v9 = vpop.f32.mrf.mxu0  ;;  %v6667_v20 = vsub.f32 0.0, %v10944_v19  ;;  %v11044_v48 = vpack.c.bf16 %v4920_v50, %v4904_v54  ;;  %v11046_v21 = vpack.c.bf16 %v4919_v53, %v4903_v39  ;;  %v4934_v7 = vmax.f32 %v4529_v45, 0.0  ;;  %v13133_v8 = vld [vmem:[#allocation60_spill] sm:$0xff] }
 0x47f   : > { %13126 = vst [vmem:[#allocation81_spill] sm:$0xff] %v11034_v1  ;;  %v4737_v58 = vpop.f32.mrf.mxu1  ;;  %5975 = vmatprep.subr.bf16.mxu1 %v13131_v38  ;;  %v11049_v59 = vpack.c.bf16 %v4921_v15, %v4905_v14  ;;  %v4734_v28 = vadd.f32 %v4733_v52, %v12784_v62  ;;  %v4533_v0 = vadd.f32 %v4532_v51, %v13133_v8  ;;  %v4936_v41 = vmax.f32 %v4732_v13, 0.0  ;;  %v13135_v52 = vld [vmem:[#allocation20_spill] sm:$0xff]  ;;  %v13136_v14 = vld [vmem:[#allocation102_spill] sm:$0xff]  ;;  %v13137_v15 = vld [vmem:[#allocation103_spill] sm:$0xff] }
 0x480   : > { %13129 = vst [vmem:[#allocation84_spill] sm:$0xff] %v11044_v48  ;;  %13130 = vst [vmem:[#allocation85_spill] sm:$0xff] %v11046_v21  ;;  %5855 = vmatmul.mubr.bf16.gmra.mxu0 %v13134_v4  ;;  %v4538_v25 = vpop.f32.mrf.mxu0  ;;  %v4736_v19 = vadd.f32 %v4735_v24, %v13133_v8  ;;  %v4535_v54 = vadd.f32 %v4534_v9, %v13133_v8  ;;  %v4738_v39 = vadd.f32 %v4737_v58, %v13133_v8  ;;  %v13154_v1 = vld [vmem:[#allocation30_spill] sm:$0xff]  ;;  %v13189_v21 = vld [vmem:[#allocation35_spill] sm:$0xff] }
 0x481   : > { %13132 = vst [vmem:[#allocation87_spill] sm:$0xff] %v11049_v59  ;;  %v4741_v60 = vpop.f32.mrf.mxu1  ;;  %5908 = vmatmul.mubr.bf16.gmra.mxu1 %v13134_v4  ;;  %v4935_v53 = vmax.f32 %v4531_v29, 0.0  ;;  %v4937_v45 = vmax.f32 %v4734_v28, 0.0  ;;  %v4950_v62 = vmax.f32 %v4533_v0, 0.0  ;;  %v4539_v51 = vadd.f32 %v4538_v25, %v13135_v52  ;;  %5923 = vmatpush1.bf16.msra.mxu0 %v13136_v14  ;;  %v13140_v0 = vld [vmem:[#allocation24_spill] sm:$0xff]  ;;  %v13141_v4 = vld [vmem:[#allocation25_spill] sm:$0xff] }
 0x482   : > { %v11058_v50 = vpop.eup %7417  ;;  %5976 = vmatpush1.bf16.msra.mxu1 %v13137_v15  ;;  %v11063_v13 = vpop.f32.mrf.mxu0  ;;  %v13138_v58 = vmax.f32 %v10905_v5, 0.0  ;;  %v4952_v29 = vmax.f32 %v4736_v19, 0.0  ;;  %v4951_v28 = vmax.f32 %v4535_v54, 0.0  ;;  %v4953_v8 = vmax.f32 %v4738_v39, 0.0  ;;  %5924 = vmatprep.subr.bf16.mxu0 %v13140_v0  ;;  %v13145_v19 = vld [vmem:[#allocation143_spill] sm:$0xff] }
 0x483   : > { %v11065_v24 = vpop.f32.mrf.mxu1  ;;  %v11067_v9 = vpop.eup %7419  ;;  %5977 = vmatprep.subr.bf16.mxu1 %v13141_v4  ;;  %v5267_v25 = vmax.f32 %v11010_v31, 0.0  ;;  %v13142_v14 = vmax.f32 %v10908_v49, 0.0  ;;  %v11082_v10 = vpack.c.bf16 %v4950_v62, %v4934_v7  ;;  %v4742_v5 = vadd.f32 %v4741_v60, %v13135_v52  ;;  %5950 = vmatprep.mubr.bf16.mxu0 %v13145_v19  ;;  %v13149_v7 = vld [vmem:[#allocation76_spill] sm:$0xff]  ;;  %v13150_v62 = vld [vmem:[#allocation125_spill] sm:$0xff]  ;;  %v13161_v59 = vld [vmem:[#allocation27_spill] sm:$0xff] }
 0x484   : > { %v11072_v38 = vmul.f32 %v11058_v50, %v13138_v58  ;;  %v4542_v58 = vpop.f32.mrf.mxu0  ;;  %6003 = vmatprep.mubr.bf16.mxu1 %v13145_v19  ;;  %v5269_v39 = vmax.f32 %v11019_v37, 0.0  ;;  %v11090_v31 = vpack.c.bf16 %v4952_v29, %v4936_v41  ;;  %v11092_v49 = vpack.c.bf16 %v4951_v28, %v4935_v53  ;;  %v13155_v53 = vld [vmem:[#allocation122_spill] sm:$0xff] }
 0x485   : > { %v11080_v15 = vmul.f32 %v11067_v9, %v13142_v14  ;;  %13144 = vst [vmem:[#allocation91_spill] sm:$0xff] %v11082_v10  ;;  %v11087_v54 = vpop.eup %7421  ;;  %v11094_v0 = vpack.c.bf16 %v4953_v8, %v4937_v45  ;;  %v4235_v4 = vadd.f32 %v13150_v62, %v13149_v7  ;;  %v13151_v60 = vmax.f32 %v10932_v12, 0.0  ;;  %5925 = vmatpush1.bf16.msra.mxu0 %v13154_v1  ;;  %v13156_v12 = vld [vmem:[#allocation113_spill] sm:$0xff] }
 0x486   : > { %13139 = vst [vmem:[#allocation88_spill] sm:$0xff] %v11072_v38  ;;  %v4745_v38 = vpop.f32.mrf.mxu1  ;;  %13146 = vst [vmem:[#allocation94_spill] sm:$0xff] %v11090_v31  ;;  %v11106_v41 = vpop.f32.mrf.mxu0  ;;  %v11112_v45 = vadd.f32 %v13155_v53, %v13149_v7  ;;  %v5299_v29 = vmax.f32 %v11041_v34, 0.0  ;;  %v11117_v28 = vadd.f32 %v13156_v12, %v13127_v17  ;;  %v13157_v8 = vrot.slane %v10832_v63, %v13095_v43  ;;  %v13159_v1 = vld [vmem:[#allocation29_spill] sm:$0xff]  ;;  %v13162_v17 = vld [vmem:[#allocation46_spill] sm:$0xff] }
 0x487   : > { %13143 = vst [vmem:[#allocation90_spill] sm:$0xff] %v11080_v15  ;;  %13147 = vst [vmem:[#allocation95_spill] sm:$0xff] %v11092_v49  ;;  %v11101_v14 = vmul.f32 %v11087_v54, %v13151_v60  ;;  %v13153_v15 = vld [vmem:[#allocation21_spill] sm:$0xff]  ;;  %5926 = vmatprep.subr.bf16.mxu0 %v13159_v1  ;;  %v11124_v62 = vpop.eup %7423  ;;  %v4966_v60 = vmax.f32 %v4539_v51, 0.0  ;;  %v11133_v63 = vadd.f32 %v13162_v17, %v13051_v23  ;;  %v13192_v31 = vld [vmem:[#allocation10_spill] sm:$0xff] }
 0x488   : > { %13148 = vst [vmem:[#allocation97_spill] sm:$0xff] %v11094_v0  ;;  %v4543_v19 = vadd.f32 %v4542_v58, %v13153_v15  ;;  %v4746_v48 = vadd.f32 %v4745_v38, %v13153_v15  ;;  %v11108_v37 = vpop.f32.mrf.mxu1  ;;  %v6767_v38 = vmul.f32 %v13157_v8, %v6667_v20  ;;  %v13158_v58 = vld [vmem:[#allocation26_spill] sm:$0xff]  ;;  %13160 = vst [vmem:[#allocation136_spill] sm:$0xff] %v11124_v62  ;;  %v11127_v34 = vpop.f32.mrf.mxu0  ;;  %v13163_v8 = vld [vmem:[#allocation23_spill] sm:$0xff] }
 0x489   : > { %13152 = vst [vmem:[#allocation98_spill] sm:$0xff] %v11101_v14  ;;  %5978 = vmatpush1.bf16.msra.mxu1 %v13158_v58  ;;  %v4968_v14 = vmax.f32 %v4742_v5, 0.0  ;;  %v11137_v20 = vadd.f32 %v10765_v44, %v13051_v23  ;;  %v11141_v51 = vadd.f32 %v13163_v8, %v13052_v3  ;;  %v5283_v5 = vmax.f32 %v4235_v4, 0.0  ;;  %v13169_v44 = vld [vmem:[#allocation31_spill] sm:$0xff]  ;;  %v13193_v0 = vld [vmem:[#allocation52_spill] sm:$0xff] }
 0x48a   : > { %v4982_v53 = vmax.f32 %v4543_v19, 0.0  ;;  %v4984_v7 = vmax.f32 %v4746_v48, 0.0  ;;  %5979 = vmatprep.subr.bf16.mxu1 %v13161_v59  ;;  %v11129_v12 = vpop.f32.mrf.mxu1  ;;  %v13164_v48 = vmax.f32 %v10935_v26, 0.0  ;;  %v13166_v19 = vld [vmem:[#allocation59_spill] sm:$0xff]  ;;  %5927 = vmatpush1.bf16.msra.mxu0 %v13169_v44  ;;  %v11157_v23 = vpop.f32.mrf.mxu0  ;;  %v6791_v43 = vmul.f32 1.442695, %v6767_v38 }
 0x48b   : > { %v11150_v58 = vadd.f32 %v13166_v19, %v13052_v3  ;;  %v13170_v26 = vld [vmem:[#allocation32_spill] sm:$0xff]  ;;  %v13172_v4 = vmax.f32 %v10987_v61, 0.0  ;;  %v13194_v49 = vld [vmem:[#allocation67_spill] sm:$0xff] }
 0x48c   : > { %v11146_v59 = vmul.f32 %v11124_v62, %v13164_v48  ;;  %v11152_v17 = vpack.c.bf16 %v4982_v53, %v4966_v60  ;;  %v11154_v1 = vpack.c.bf16 %v4984_v7, %v4968_v14  ;;  %v11159_v8 = vpop.f32.mrf.mxu1  ;;  %v13171_v48 = vld [vmem:[#allocation22_spill] sm:$0xff]  ;;  %v13174_v60 = vmax.f32 %v10992_v46, 0.0  ;;  %v11181_v61 = vpop.f32.mrf.mxu0  ;;  %v13209_v62 = vld [vmem:[#allocation40_spill] sm:$0xff] }
 0x48d   : > { %5980 = vmatpush1.bf16.msra.mxu1 %v13170_v26  ;;  %5928 = vmatprep.subr.bf16.mxu0 %v13171_v48  ;;  %v13176_v7 = vmax.f32 %v10956_v36, 0.0  ;;  %v13177_v14 = vmax.f32 %v10983_v30, 0.0  ;;  %v6669_v26 = vsub.f32 0.0, %v10949_v55  ;;  %v13179_v48 = vld [vmem:[#allocation110_spill] sm:$0xff]  ;;  %v11185_v46 = vpack.c.bf16 %v5299_v29, %v5283_v5  ;;  %v13188_v36 = vld [vmem:[#allocation15_spill] sm:$0xff] }
 0x48e   : > { %13165 = vst [vmem:[#allocation137_spill] sm:$0xff] %v11146_v59  ;;  %13167 = vst [vmem:[#allocation134_spill] sm:$0xff] %v11152_v17  ;;  %v11165_v59 = vpack.c.bf16 %v5267_v25, %v13172_v4  ;;  %v11169_v53 = vpack.c.bf16 %v5269_v39, %v13174_v60  ;;  %5981 = vmatprep.subr.bf16.mxu1 %v13179_v48  ;;  %v11183_v25 = vpop.f32.mrf.mxu1  ;;  %v13181_v4 = vld [vmem:[#allocation63_spill] sm:$0xff]  ;;  %v13182_v55 = vld [vmem:[#allocation66_spill] sm:$0xff]  ;;  %v6668_v29 = vsub.f32 0.0, %v10974_v33  ;;  %v11201_v38 = vpop.f32.mrf.mxu0  ;;  %7425 = vpow2.f32 %v6791_v43 }
 0x48f   : > { %13168 = vst [vmem:[#allocation135_spill] sm:$0xff] %v11154_v1  ;;  %v11175_v19 = vpack.c.bf16 %v13177_v14, %v13176_v7  ;;  %13180 = vst [vmem:[#allocation100_spill] sm:$0xff] %v11185_v46  ;;  %v4269_v60 = vadd.f32 %v10858_v32, %v13181_v4  ;;  %v13183_v14 = vld [vmem:[#allocation43_spill] sm:$0xff]  ;;  %v4472_v44 = vadd.f32 %v10860_v35, %v13181_v4  ;;  %v13184_v5 = vld [vmem:[#allocation34_spill] sm:$0xff] }
 0x490   : > { %13173 = vst [vmem:[#allocation132_spill] sm:$0xff] %v11165_v59  ;;  %13175 = vst [vmem:[#allocation133_spill] sm:$0xff] %v11169_v53  ;;  %v11195_v48 = vadd.f32 %v13183_v14, %v13182_v55  ;;  %5929 = vmatpush1.bf16.msra.mxu0 %v13184_v5  ;;  %v11203_v30 = vpop.f32.mrf.mxu1  ;;  %v13186_v39 = vld [vmem:[#allocation55_spill] sm:$0xff]  ;;  %v13187_v7 = vld [vmem:[#allocation62_spill] sm:$0xff]  ;;  %v6670_v14 = vsub.f32 0.0, %v10979_v11  ;;  %v6769_v1 = vmul.f32 %v13194_v49, %v6669_v26  ;;  %v11222_v43 = vpop.f32.mrf.mxu0 }
 0x491   : > { %13178 = vst [vmem:[#allocation123_spill] sm:$0xff] %v11175_v19  ;;  %13185 = vst [vmem:[#allocation60_spill] sm:$0xff] %v11203_v30  ;;  %v11207_v32 = vadd.f32 %v13186_v39, %v13182_v55  ;;  %v4265_v3 = vadd.f32 %v13188_v36, %v13187_v7  ;;  %5982 = vmatpush1.bf16.msra.mxu1 %v13189_v21  ;;  %v13190_v35 = vld [vmem:[#allocation111_spill] sm:$0xff]  ;;  %v13191_v33 = vld [vmem:[#allocation58_spill] sm:$0xff]  ;;  %v4468_v10 = vadd.f32 %v13192_v31, %v13187_v7 }
 0x492   : > { %5930 = vmatprep.subr.bf16.mxu0 %v13190_v35  ;;  %v4255_v5 = vadd.f32 %v13191_v33, %v13182_v55  ;;  %v4267_v39 = vadd.f32 %v13193_v0, %v13181_v4  ;;  %v13195_v17 = vld [vmem:[#allocation108_spill] sm:$0xff]  ;;  %13196 = vst [vmem:[#allocation129_spill] sm:$0xff] %v11222_v43  ;;  %v11224_v11 = vpop.f32.mrf.mxu1  ;;  %v13198_v21 = vld [vmem:[#allocation69_spill] sm:$0xff]  ;;  %v4470_v31 = vadd.f32 %v13201_v16, %v13181_v4  ;;  %v5395_v18 = vmax.f32 %v4269_v60, 0.0  ;;  %v13203_v49 = vld [vmem:[#allocation118_spill] sm:$0xff]  ;;  %v11238_v40 = vpop.f32.mrf.mxu0 }
 0x493   : > { %5983 = vmatprep.subr.bf16.mxu1 %v13195_v17  ;;  %13197 = vst [vmem:[#allocation20_spill] sm:$0xff] %v11224_v11  ;;  %v13199_v36 = vld [vmem:[#allocation116_spill] sm:$0xff]  ;;  %v4259_v33 = vadd.f32 %v13200_v47, %v13198_v21  ;;  %v13202_v0 = vld [vmem:[#allocation33_spill] sm:$0xff]  ;;  %v4263_v17 = vadd.f32 %v13203_v49, %v13187_v7  ;;  %v5397_v26 = vmax.f32 %v4472_v44, 0.0  ;;  %v6768_v6 = vmul.f32 %v13204_v2, %v6668_v29  ;;  %v13205_v19 = vld [vmem:[#allocation42_spill] sm:$0xff] }
 0x494   : > { %v4257_v35 = vadd.f32 %v13199_v36, %v13198_v21  ;;  %v4462_v27 = vadd.f32 %v13202_v0, %v13198_v21  ;;  %5931 = vmatpush1.bf16.msra.mxu0 %v13205_v19  ;;  %v11240_v36 = vpop.f32.mrf.mxu1  ;;  %v13206_v47 = vld [vmem:[#allocation117_spill] sm:$0xff]  ;;  %v13207_v16 = vld [vmem:[#allocation119_spill] sm:$0xff]  ;;  %v5379_v4 = vmax.f32 %v4265_v3, 0.0  ;;  %v13208_v0 = vld [vmem:[#allocation70_spill] sm:$0xff]  ;;  %v5381_v29 = vmax.f32 %v4468_v10, 0.0  ;;  %v11252_v11 = vpop.f32.mrf.mxu0 }
 0x495   : > { %v4460_v53 = vadd.f32 %v13206_v47, %v13198_v21  ;;  %v4466_v60 = vadd.f32 %v13207_v16, %v13187_v7  ;;  %v6770_v59 = vmul.f32 %v13208_v0, %v6670_v14  ;;  %5984 = vmatpush1.bf16.msra.mxu1 %v13209_v62  ;;  %v13210_v44 = vld [vmem:[#allocation109_spill] sm:$0xff]  ;;  %v13211_v2 = vld [vmem:[#allocation38_spill] sm:$0xff]  ;;  %v5394_v49 = vmax.f32 %v4267_v39, 0.0  ;;  %v13214_v30 = vld [vmem:[#allocation51_spill] sm:$0xff] }
 0x496   : > { %5932 = vmatprep.subr.bf16.mxu0 %v13210_v44  ;;  %v4458_v19 = vadd.f32 %v13211_v2, %v13182_v55  ;;  %v6795_v57 = vmul.f32 1.442695, %v6769_v1  ;;  %v13212_v46 = vld [vmem:[#allocation106_spill] sm:$0xff]  ;;  %v11254_v47 = vpop.f32.mrf.mxu1  ;;  %v5347_v16 = vmax.f32 %v4255_v5, 0.0  ;;  %v5363_v3 = vmax.f32 %v4259_v33, 0.0  ;;  %v4564_v2 = vpop.f32.mrf.mxu0 }
 0x497   : > { %5985 = vmatprep.subr.bf16.mxu1 %v13212_v46  ;;  %v5396_v7 = vmax.f32 %v4470_v31, 0.0  ;;  %v5655_v14 = vpack.c.bf16 %v5395_v18, %v5379_v4  ;;  %v5365_v0 = vmax.f32 %v4462_v27, 0.0  ;;  %v5378_v62 = vmax.f32 %v4263_v17, 0.0  ;;  %v13213_v43 = vld [vmem:[#allocation50_spill] sm:$0xff] }
 0x498   : > { %v5657_v21 = vpack.c.bf16 %v5397_v26, %v5381_v29  ;;  %v6793_v44 = vmul.f32 1.442695, %v6768_v6  ;;  %5933 = vmatpush1.bf16.msra.mxu0 %v13213_v43  ;;  %v11257_v10 = vpop.f32.mrf.mxu1  ;;  %v5362_v1 = vmax.f32 %v4257_v35, 0.0  ;;  %v5364_v39 = vmax.f32 %v4460_v53, 0.0  ;;  %v4568_v18 = vpop.f32.mrf.mxu0 }
 0x499   : > { %v5380_v46 = vmax.f32 %v4466_v60, 0.0  ;;  %v6797_v55 = vmul.f32 1.442695, %v6770_v59  ;;  %5986 = vmatpush1.bf16.msra.mxu1 %v13214_v30  ;;  %5934 = vmatprep.subr.bf16.mxu0 %v5655_v14  ;;  %v5349_v5 = vmax.f32 %v4458_v19, 0.0  ;;  %v5654_v33 = vpack.c.bf16 %v5394_v49, %v5378_v62  ;;  %v13229_v14 = vld [vmem:[#allocation65_spill] sm:$0xff] }
 0x49a   : > { %7427 = vpow2.f32 %v6795_v57  ;;  %v11262_v27 = vadd.f32 %v11063_v13, %v13135_v52  ;;  %5987 = vmatprep.subr.bf16.mxu1 %v5657_v21  ;;  %v11264_v6 = vpop.f32.mrf.mxu1  ;;  %v5346_v4 = vmax.f32 %v11195_v48, 0.0  ;;  %v5348_v53 = vmax.f32 %v11207_v32, 0.0  ;;  %v4570_v30 = vpop.f32.mrf.mxu0 }
 0x49b   : > { %v5639_v43 = vpack.c.bf16 %v5363_v3, %v5347_v16  ;;  %v5656_v59 = vpack.c.bf16 %v5396_v7, %v5380_v46  ;;  %v5641_v35 = vpack.c.bf16 %v5365_v0, %v5349_v5  ;;  %7429 = vpow2.f32 %v6793_v44  ;;  %v11282_v49 = vpop.eup %7425 }
 0x49c   : > { %13215 = vst [vmem:[#allocation102_spill] sm:$0xff] %v11262_v27  ;;  %5935 = vmatpush2.bf16.msra.mxu0 %v5654_v33  ;;  %v11268_v31 = vpop.f32.mrf.mxu1  ;;  %v13216_v57 = vmax.f32 %v11133_v63, 0.0  ;;  %v13217_v13 = vmax.f32 %v11141_v51, 0.0  ;;  %v13218_v17 = vmax.f32 %v11112_v45, 0.0  ;;  %v13219_v26 = vmax.f32 %v11117_v28, 0.0  ;;  %v11293_v51 = vpop.f32.mrf.mxu0  ;;  %v13235_v33 = vld [vmem:[#allocation16_spill] sm:$0xff] }
 0x49d   : > { %v5638_v60 = vpack.c.bf16 %v5362_v1, %v5346_v4  ;;  %v5640_v32 = vpack.c.bf16 %v5364_v39, %v5348_v53  ;;  %7431 = vpow2.f32 %v6797_v55  ;;  %5988 = vmatpush2.bf16.msra.mxu1 %v5656_v59  ;;  %5936 = vmatprep.subr.bf16.mxu0 %v5639_v43  ;;  %v13220_v7 = vmax.f32 %v11137_v20, 0.0  ;;  %v13223_v20 = vld [vmem:[#allocation53_spill] sm:$0xff]  ;;  %v13232_v1 = vld [vmem:[#allocation19_spill] sm:$0xff]  ;;  %v13238_v53 = vld [vmem:[#allocation60_spill] sm:$0xff] }
 0x49e   : > { %v5623_v21 = vpack.c.bf16 %v13217_v13, %v13216_v57  ;;  %v5609_v48 = vpack.c.bf16 %v13219_v26, %v13218_v17  ;;  %v13221_v19 = vmax.f32 %v11150_v58, 0.0  ;;  %v11287_v45 = vadd.f32 %v11065_v24, %v13135_v52  ;;  %5989 = vmatprep.subr.bf16.mxu1 %v5641_v35  ;;  %v11295_v55 = vpop.f32.mrf.mxu1  ;;  %v13226_v52 = vld [vmem:[#allocation18_spill] sm:$0xff]  ;;  %v4574_v39 = vpop.f32.mrf.mxu0  ;;  %v13240_v59 = vld [vmem:[#allocation12_spill] sm:$0xff] }
 0x49f   : > { %v11291_v28 = vadd.f32 %v11106_v41, %v13153_v15  ;;  %v13224_v58 = vand.u32 2147483647, %v13223_v20  ;;  %v11304_v3 = vadd.f32 %v11108_v37, %v13153_v15  ;;  %v11308_v24 = vadd.f32 %v11127_v34, %v13226_v52  ;;  %v13233_v37 = vld [vmem:[#allocation17_spill] sm:$0xff]  ;;  %v13245_v20 = vld [vmem:[#allocation74_spill] sm:$0xff] }
 0x4a0   : > { %v5625_v29 = vpack.c.bf16 %v13221_v19, %v13220_v7  ;;  %13222 = vst [vmem:[#allocation103_spill] sm:$0xff] %v11287_v45  ;;  %v11312_v41 = vadd.f32 %v11129_v12, %v13226_v52  ;;  %v13230_v0 = vand.u32 2147483647, %v13229_v14  ;;  %v11321_v44 = vadd.f32 %v11157_v23, %v13226_v52  ;;  %5937 = vmatpush2.bf16.msra.mxu0 %v5638_v60  ;;  %v4777_v46 = vpop.f32.mrf.mxu1  ;;  %v13244_v7 = vld [vmem:[#allocation100_spill] sm:$0xff] }
 0x4a1   : > { %v11300_v16 = vsel %vm6162_vm1, %v13224_v58, -inf  ;;  %13227 = vst [vmem:[#allocation25_spill] sm:$0xff] %v11308_v24  ;;  %v11325_v15 = vadd.f32 %v11201_v38, %v13232_v1  ;;  %v4565_v34 = vadd.f32 %v4564_v2, %v13233_v37  ;;  %v11330_v12 = vmul.f32 %v11058_v50, %v10915_v22  ;;  %5990 = vmatpush2.bf16.msra.mxu1 %v5640_v32  ;;  %v4578_v50 = vpop.f32.mrf.mxu0  ;;  %v13243_v32 = vld [vmem:[#allocation115_spill] sm:$0xff]  ;;  %v13246_v58 = vld [vmem:[#allocation136_spill] sm:$0xff] }
 0x4a2   : > { %13225 = vst [vmem:[#allocation24_spill] sm:$0xff] %v11300_v16  ;;  %13228 = vst [vmem:[#allocation143_spill] sm:$0xff] %v11312_v41  ;;  %v11317_v62 = vsel %vm6162_vm1, %v13230_v0, -inf  ;;  %v11334_v5 = vadd.f32 %v11159_v8, %v13226_v52  ;;  %v4561_v23 = vadd.f32 %v11238_v40, %v13235_v33  ;;  %v11340_v38 = vadd.f32 %v11240_v36, %v13235_v33  ;;  %v11351_v8 = vpop.f32.mrf.mxu1 }
 0x4a3   : > { %13231 = vst [vmem:[#allocation125_spill] sm:$0xff] %v11317_v62  ;;  %13234 = vst [vmem:[#allocation21_spill] sm:$0xff] %v11330_v12  ;;  %5938 = vmatprep.subr.bf16.mxu0 %v5623_v21  ;;  %v6815_v2 = vsub.f32 1.0, %v11282_v49  ;;  %v11345_v4 = vadd.f32 %v11252_v11, %v13233_v37  ;;  %v11349_v22 = vadd.f32 %v11254_v47, %v13233_v37  ;;  %5991 = vmatprep.subr.bf16.mxu1 %v5625_v29  ;;  %v4580_v57 = vpop.f32.mrf.mxu0  ;;  %v13242_v21 = vld [vmem:[#allocation20_spill] sm:$0xff] }
 0x4a4   : > { %v11355_v40 = vmul.f32 %v11067_v9, %v10918_v56  ;;  %v11359_v36 = vmul.f32 %v11087_v54, %v10924_v42  ;;  %v11363_v11 = vadd.f32 %v11181_v61, %v13232_v1  ;;  %v11367_v47 = vadd.f32 %v11183_v25, %v13232_v1  ;;  %v13239_v42 = vld [vmem:[#allocation129_spill] sm:$0xff]  ;;  %v13241_v25 = vld [vmem:[#allocation112_spill] sm:$0xff]  ;;  %v4783_v13 = vpop.f32.mrf.mxu1 }
 0x4a5   : > { %v11371_v43 = vadd.f32 %v13238_v53, %v13232_v1  ;;  %v11375_v56 = vadd.f32 %v11257_v10, %v13233_v37  ;;  %v11380_v54 = vadd.f32 %v13239_v42, %v13235_v33  ;;  %v5047_v61 = vmax.f32 %v4565_v34, 0.0  ;;  %5939 = vmatpush2.bf16.msra.mxu0 %v13241_v25  ;;  %5992 = vmatpush2.bf16.msra.mxu1 %v13243_v32  ;;  %v4582_v29 = vpop.f32.mrf.mxu0  ;;  %v13248_v37 = vld [vmem:[#allocation13_spill] sm:$0xff]  ;;  %v13249_v42 = vld [vmem:[#allocation114_spill] sm:$0xff] }
 0x4a6   : > { %13236 = vst [vmem:[#allocation30_spill] sm:$0xff] %v11355_v40  ;;  %13237 = vst [vmem:[#allocation122_spill] sm:$0xff] %v11359_v36  ;;  %v11383_v35 = vadd.f32 %v4568_v18, %v13240_v59  ;;  %v11388_v17 = vadd.f32 %v13242_v21, %v13235_v33  ;;  %v5031_v10 = vmax.f32 %v4561_v23, 0.0  ;;  %v11392_v60 = vadd.f32 %v4570_v30, %v13240_v59  ;;  %v4785_v49 = vpop.f32.mrf.mxu1  ;;  %v13259_v18 = vld [vmem:[#allocation80_spill] sm:$0xff] }
 0x4a7   : > { %5940 = vmatprep.subr.bf16.mxu0 %v13244_v7  ;;  %5993 = vmatprep.subr.bf16.mxu1 %v5609_v48  ;;  %v11400_v52 = vmul.f32 %v13246_v58, %v13245_v20  ;;  %v6831_v14 = vsub.f32 1.0, %v6815_v2  ;;  %v7428_v0 = vpop.eup %7427  ;;  %v11405_v1 = vadd.f32 %v11268_v31, %v13240_v59  ;;  %v11408_v34 = vadd.f32 %v4574_v39, %v13248_v37  ;;  %v4584_v25 = vpop.f32.mrf.mxu0  ;;  %v13250_v31 = vld [vmem:[#allocation141_spill] sm:$0xff]  ;;  %v13254_v20 = vld [vmem:[#allocation132_spill] sm:$0xff] }
 0x4a8   : > { %v11411_v33 = vadd.f32 %v4777_v46, %v13248_v37  ;;  %v11413_v48 = vpack.c.bf16 %v5047_v61, %v5031_v10  ;;  %v11418_v53 = vadd.f32 %v11264_v6, %v13240_v59  ;;  %v4787_v21 = vpop.f32.mrf.mxu1  ;;  %v11422_v32 = vmul.f32 %v13250_v31, %v6815_v2  ;;  %v7430_v39 = vpop.eup %7429  ;;  %v13252_v61 = vld [vmem:[#allocation3_spill] sm:$0xff]  ;;  %v13253_v59 = vld [vmem:[#allocation44_spill] sm:$0xff] }
 0x4a9   : > { %13247 = vst [vmem:[#allocation113_spill] sm:$0xff] %v11400_v52  ;;  %5941 = vmatpush2.bf16.msra.mxu0 %v13249_v42  ;;  %v11427_v46 = vadd.f32 %v11293_v51, %v13248_v37  ;;  %v11430_v10 = vadd.f32 %v4580_v57, %v13252_v61  ;;  %v11433_v6 = vadd.f32 %v4783_v13, %v13252_v61  ;;  %v13255_v42 = vld [vmem:[#allocation7_spill] sm:$0xff]  ;;  %v13256_v51 = vld [vmem:[#allocation133_spill] sm:$0xff]  ;;  %v4588_v57 = vpop.f32.mrf.mxu0  ;;  %v6817_v9 = vsub.f32 1.0, %v7428_v0  ;;  %v13262_v7 = vld [vmem:[#allocation28_spill] sm:$0xff] }
 0x4aa   : > { %13251 = vst [vmem:[#allocation26_spill] sm:$0xff] %v11422_v32  ;;  %5994 = vmatpush2.bf16.msra.mxu1 %v13253_v59  ;;  %5942 = vmatprep.subr.bf16.mxu0 %v13254_v20  ;;  %v11437_v58 = vpop.eup %7431  ;;  %v11441_v2 = vadd.f32 %v11295_v55, %v13248_v37  ;;  %v11444_v63 = vadd.f32 %v4582_v29, %v13255_v42  ;;  %v4791_v19 = vpop.f32.mrf.mxu1  ;;  %v6845_v13 = vadd.f32 1e-10, %v6831_v14  ;;  %v13257_v37 = vld [vmem:[#allocation128_spill] sm:$0xff]  ;;  %v6816_v26 = vsub.f32 1.0, %v7430_v39  ;;  %v13260_v59 = vld [vmem:[#allocation123_spill] sm:$0xff] }
 0x4ab   : > { %5995 = vmatprep.subr.bf16.mxu1 %v13256_v51  ;;  %v11451_v30 = vadd.f32 %v4785_v49, %v13255_v42  ;;  %v11454_v55 = vadd.f32 %v4578_v50, %v13252_v61  ;;  %v11457_v29 = vadd.f32 %v4584_v25, %v13255_v42  ;;  %v4590_v51 = vpop.f32.mrf.mxu0  ;;  %v11463_v23 = vadd.f32 %v11351_v8, %v13252_v61  ;;  %v13258_v25 = vld [vmem:[#allocation124_spill] sm:$0xff]  ;;  %v13263_v20 = vld [vmem:[#allocation6_spill] sm:$0xff] }
 0x4ac   : > { %v4793_v0 = vpop.f32.mrf.mxu1  ;;  %v6865_v14 = vmul.f32 %v13250_v31, %v6845_v13  ;;  %v5095_v49 = vmax.f32 %v11430_v10, 0.0  ;;  %v11468_v50 = vadd.f32 %v4787_v21, %v13255_v42  ;;  %v6833_v13 = vsub.f32 1.0, %v6817_v9  ;;  %v13264_v32 = vld [vmem:[#allocation130_spill] sm:$0xff]  ;;  %v13267_v10 = vld [vmem:[#allocation127_spill] sm:$0xff] }
 0x4ad   : > { %5943 = vmatpush2.bf16.msra.mxu0 %v13257_v37  ;;  %v4592_v31 = vpop.f32.mrf.mxu0  ;;  %v6818_v61 = vsub.f32 1.0, %v11437_v58  ;;  %v4591_v21 = vadd.f32 %v4590_v51, %v13262_v7  ;;  %v4794_v42 = vadd.f32 %v4793_v0, %v13262_v7  ;;  %v4589_v37 = vadd.f32 %v4588_v57, %v13262_v7  ;;  %v13268_v0 = vld [vmem:[#allocation77_spill] sm:$0xff] }
 0x4ae   : > { %5996 = vmatpush2.bf16.msra.mxu1 %v13258_v25  ;;  %5944 = vmatprep.subr.bf16.mxu0 %v13259_v18  ;;  %v4795_v39 = vpop.f32.mrf.mxu1  ;;  %v11474_v8 = vmul.f32 %v6865_v14, %v6817_v9  ;;  %v6832_v25 = vsub.f32 1.0, %v6816_v26  ;;  %v5111_v18 = vmax.f32 %v11457_v29, 0.0  ;;  %v6847_v27 = vadd.f32 1e-10, %v6833_v13  ;;  %v13273_v13 = vld [vmem:[#allocation148_spill] sm:$0xff] }
 0x4af   : > { %5997 = vmatprep.subr.bf16.mxu1 %v13260_v59  ;;  %v4593_v59 = vadd.f32 %v4592_v31, %v13263_v20  ;;  %v4594_v52 = vpop.f32.mrf.mxu0  ;;  %v4796_v51 = vadd.f32 %v4795_v39, %v13263_v20  ;;  %v4792_v31 = vadd.f32 %v4791_v19, %v13262_v7  ;;  %v5127_v58 = vmax.f32 %v4591_v21, 0.0  ;;  %v13274_v21 = vld [vmem:[#allocation71_spill] sm:$0xff] }
 0x4b0   : > { %13261 = vst [vmem:[#allocation29_spill] sm:$0xff] %v11474_v8  ;;  %v4797_v9 = vpop.f32.mrf.mxu1  ;;  %v13265_v8 = vld [vmem:[#allocation144_spill] sm:$0xff]  ;;  %v4595_v29 = vadd.f32 %v4594_v52, %v13263_v20  ;;  %v5129_v45 = vmax.f32 %v4794_v42, 0.0  ;;  %v13271_v52 = vld [vmem:[#allocation147_spill] sm:$0xff]  ;;  %v11499_v7 = vmul.f32 %v6865_v14, %v6847_v27  ;;  %v5515_v27 = vpack.c.bf16 %v5111_v18, %v5095_v49 }
 0x4b1   : > { %5945 = vmatpush2.bf16.msra.mxu0 %v13264_v32  ;;  %v11485_v36 = vmul.f32 %v13265_v8, %v6816_v26  ;;  %v4798_v57 = vadd.f32 %v4797_v9, %v13263_v20  ;;  %v13269_v32 = vld [vmem:[#allocation78_spill] sm:$0xff]  ;;  %v4598_v40 = vpop.f32.mrf.mxu0  ;;  %v6834_v26 = vsub.f32 1.0, %v6818_v61  ;;  %v5144_v16 = vmax.f32 %v4796_v51, 0.0  ;;  %v13277_v14 = vld [vmem:[#allocation99_spill] sm:$0xff] }
 0x4b2   : > { %5998 = vmatpush2.bf16.msra.mxu1 %v13267_v10  ;;  %5946 = vmatprep.subr.bf16.mxu0 %v13268_v0  ;;  %v4801_v12 = vpop.f32.mrf.mxu1  ;;  %v5143_v39 = vmax.f32 %v4595_v29, 0.0  ;;  %v13270_v10 = vld [vmem:[#allocation96_spill] sm:$0xff]  ;;  %13272 = vst [vmem:[#allocation46_spill] sm:$0xff] %v11499_v7  ;;  %v5126_v51 = vmax.f32 %v4589_v37, 0.0 }
 0x4b3   : > { %13266 = vst [vmem:[#allocation27_spill] sm:$0xff] %v11485_v36  ;;  %5999 = vmatprep.subr.bf16.mxu1 %v13269_v32  ;;  %v6846_v36 = vadd.f32 1e-10, %v6832_v25  ;;  %v5145_v62 = vmax.f32 %v4798_v57, 0.0  ;;  %v4599_v41 = vadd.f32 %v4598_v40, %v13270_v10  ;;  %v4802_v0 = vadd.f32 %v4801_v12, %v13270_v10  ;;  %v4600_v20 = vpop.f32.mrf.mxu0  ;;  %v13275_v40 = vld [vmem:[#allocation75_spill] sm:$0xff] }
 0x4b4   : > { %v4803_v9 = vpop.f32.mrf.mxu1  ;;  %v5142_v32 = vmax.f32 %v4593_v59, 0.0  ;;  %v5531_v25 = vpack.c.bf16 %v5143_v39, %v5127_v58  ;;  %v6848_v42 = vadd.f32 1e-10, %v6834_v26  ;;  %v4601_v12 = vadd.f32 %v4600_v20, %v13270_v10  ;;  %v13279_v39 = vld [vmem:[#allocation145_spill] sm:$0xff] }
 0x4b5   : > { %5947 = vmatpush2.bf16.msra.mxu0 %v13271_v52  ;;  %v6866_v19 = vmul.f32 %v13265_v8, %v6846_v36  ;;  %v5533_v29 = vpack.c.bf16 %v5145_v62, %v5129_v45  ;;  %v4804_v57 = vadd.f32 %v4803_v9, %v13270_v10  ;;  %v4602_v52 = vpop.f32.mrf.mxu0  ;;  %v5128_v26 = vmax.f32 %v4792_v31, 0.0 }
 0x4b6   : > { %6000 = vmatpush2.bf16.msra.mxu1 %v13273_v13  ;;  %5948 = vmatprep.subr.bf16.mxu0 %v13274_v21  ;;  %v4805_v24 = vpop.f32.mrf.mxu1  ;;  %v4603_v8 = vadd.f32 %v4602_v52, %v13277_v14  ;;  %v5158_v45 = vmax.f32 %v4599_v41, 0.0  ;;  %v5160_v62 = vmax.f32 %v4802_v0, 0.0  ;;  %v13280_v21 = vld [vmem:[#allocation146_spill] sm:$0xff] }
 0x4b7   : > { %6001 = vmatprep.subr.bf16.mxu1 %v13275_v40  ;;  %v11506_v36 = vmul.f32 %v6866_v19, %v6818_v61  ;;  %v4806_v59 = vadd.f32 %v4805_v24, %v13277_v14  ;;  %v11510_v58 = vmul.f32 %v6866_v19, %v6848_v42  ;;  %v4604_v20 = vpop.f32.mrf.mxu0  ;;  %v5530_v24 = vpack.c.bf16 %v5142_v32, %v5126_v51 }
 0x4b8   : > { %v4807_v13 = vpop.f32.mrf.mxu1  ;;  %v5174_v10 = vmax.f32 %v4603_v8, 0.0  ;;  %v4605_v49 = vadd.f32 %v4604_v20, %v13277_v14  ;;  %v5532_v18 = vpack.c.bf16 %v5144_v16, %v5128_v26  ;;  %v5159_v19 = vmax.f32 %v4601_v12, 0.0 }
 0x4b9   : > { %13276 = vst [vmem:[#allocation23_spill] sm:$0xff] %v11506_v36  ;;  %13278 = vst [vmem:[#allocation59_spill] sm:$0xff] %v11510_v58  ;;  %5949 = vmatpush2.bf16.msra.mxu0 %v13279_v39  ;;  %v5176_v9 = vmax.f32 %v4806_v59, 0.0  ;;  %v4808_v61 = vadd.f32 %v4807_v13, %v13277_v14  ;;  %v5161_v37 = vmax.f32 %v4804_v57, 0.0  ;;  %v4608_v41 = vpop.f32.mrf.mxu0  ;;  %v5094_v16 = vmax.f32 %v11454_v55, 0.0  ;;  %v13286_v57 = vld [vmem:[#allocation92_spill] sm:$0xff] }
 0x4ba   : > { %6002 = vmatpush2.bf16.msra.mxu1 %v13280_v21  ;;  %6024 = vmatprep.subr.bf16.mxu0 %v5531_v25  ;;  %v4811_v31 = vpop.f32.mrf.mxu1  ;;  %v11516_v0 = vpack.c.bf16 %v5174_v10, %v5158_v45  ;;  %v5175_v40 = vmax.f32 %v4605_v49, 0.0  ;;  %v11523_v25 = vld [vmem:[%s12258_s4] ss:$8 sps:$4 sm:$0xff]   ;;  %v13284_v32 = vmax.f32 %v11433_v6, 0.0  ;;  %v4609_v14 = vadd.f32 %v4608_v41, %v13286_v57  ;;  %v13294_v49 = vld [vmem:[#allocation93_spill] sm:$0xff] }
 0x4bb   : > { %6077 = vmatprep.subr.bf16.mxu1 %v5533_v29  ;;  %v11518_v42 = vpack.c.bf16 %v5176_v9, %v5160_v62  ;;  %v5177_v52 = vmax.f32 %v4808_v61, 0.0  ;;  %13283 = vst [vmem:[#allocation22_spill] sm:$0xff] %v11523_v25  ;;  %v13285_v29 = vmax.f32 %v11468_v50, 0.0  ;;  %v4812_v8 = vadd.f32 %v4811_v31, %v13286_v57  ;;  %v4610_v59 = vpop.f32.mrf.mxu0 }
 0x4bc   : > { %13281 = vst [vmem:[#allocation31_spill] sm:$0xff] %v11516_v0  ;;  %5951 = vmatmul.mubr.bf16.vlgmr.msra.gmra.mxu0 %v11523_v25  ;;  %v4813_v51 = vpop.f32.mrf.mxu1  ;;  %v5078_v26 = vmax.f32 %v11427_v46, 0.0  ;;  %v5096_v45 = vmax.f32 %v11463_v23, 0.0  ;;  %v11536_v62 = vpack.c.bf16 %v5175_v40, %v5159_v19  ;;  %v5080_v6 = vmax.f32 %v11441_v2, 0.0  ;;  %v11548_v23 = vld [vmem:[%s12258_s4 + $0x14] ss:$8 sps:$4 sm:$0xff]  }
 0x4bd   : > { %13282 = vst [vmem:[#allocation32_spill] sm:$0xff] %v11518_v42  ;;  %v5517_v12 = vpack.c.bf16 %v13285_v29, %v13284_v32  ;;  %6004 = vmatmul.mubr.bf16.vlgmr.msra.gmra.mxu1 %v11523_v25  ;;  %6025 = vmatpush1.bf16.msra.mxu0 %v5530_v24  ;;  %v11538_v55 = vpack.c.bf16 %v5177_v52, %v5161_v37  ;;  %v13289_v50 = vmax.f32 %v11444_v63, 0.0  ;;  %v4612_v10 = vpop.f32.mrf.mxu0  ;;  %13290 = vst [vmem:[#allocation34_spill] sm:$0xff] %v11548_v23 }
 0x4be   : > { %13287 = vst [vmem:[#allocation110_spill] sm:$0xff] %v11536_v62  ;;  %6078 = vmatpush1.bf16.msra.mxu1 %v5532_v18  ;;  %6026 = vmatprep.subr.bf16.mxu0 %v5515_v27  ;;  %v4611_v20 = vadd.f32 %v4610_v59, %v13286_v57  ;;  %v4814_v13 = vadd.f32 %v4813_v51, %v13286_v57  ;;  %v4815_v46 = vpop.f32.mrf.mxu1  ;;  %v13291_v27 = vmax.f32 %v11392_v60, 0.0  ;;  %v13292_v2 = vmax.f32 %v11408_v34, 0.0  ;;  %v13357_v62 = vld [vmem:[#allocation83_spill] sm:$0xff] }
 0x4bf   : > { %13288 = vst [vmem:[#allocation43_spill] sm:$0xff] %v11538_v55  ;;  %v5514_v39 = vpack.c.bf16 %v13289_v50, %v5094_v16  ;;  %6079 = vmatprep.subr.bf16.mxu1 %v5517_v12  ;;  %5960 = vmatprep.mubr.bf16.mxu0 %v11548_v23  ;;  %v13293_v9 = vmax.f32 %v11451_v30, 0.0  ;;  %v4613_v61 = vadd.f32 %v4612_v10, %v13294_v49  ;;  %v5064_v18 = vmax.f32 %v11418_v53, 0.0  ;;  %v4614_v34 = vpop.f32.mrf.mxu0  ;;  %v11578_v50 = vld [vmem:[%s12258_s4 + $0x10] ss:$8 sps:$4 sm:$0xff]  }
 0x4c0   : > { %v5499_v63 = vpack.c.bf16 %v13292_v2, %v13291_v27  ;;  %v4816_v24 = vadd.f32 %v4815_v46, %v13294_v49  ;;  %6013 = vmatprep.mubr.bf16.mxu1 %v11548_v23  ;;  %v13295_v19 = vmax.f32 %v11405_v1, 0.0  ;;  %v13296_v37 = vmax.f32 %v11411_v33, 0.0  ;;  %v4817_v40 = vpop.f32.mrf.mxu1  ;;  %13300 = vst [vmem:[#allocation35_spill] sm:$0xff] %v11578_v50 }
 0x4c1   : > { %v5516_v21 = vpack.c.bf16 %v13293_v9, %v5096_v45  ;;  %v5190_v60 = vmax.f32 %v4609_v14, 0.0  ;;  %v5192_v31 = vmax.f32 %v4812_v8, 0.0  ;;  %6027 = vmatpush1.bf16.msra.mxu0 %v5514_v39  ;;  %v5206_v30 = vmax.f32 %v4613_v61, 0.0  ;;  %v11569_v57 = vpop.f32.mrf.mxu0  ;;  %v7587_v61 = vld [vmem:[%s12258_s4 + $0x4] ss:$8 sps:$4 sm:$0xff]  }
 0x4c2   : > { %v5501_v41 = vpack.c.bf16 %v13296_v37, %v13295_v19  ;;  %v5208_v52 = vmax.f32 %v4816_v24, 0.0  ;;  %6028 = vmatprep.subr.bf16.mxu0 %v5499_v63  ;;  %v4615_v16 = vadd.f32 %v4614_v34, %v13294_v49  ;;  %v4818_v32 = vadd.f32 %v4817_v40, %v13294_v49  ;;  %v4821_v14 = vpop.f32.mrf.mxu1  ;;  %v13310_v37 = vld [vmem:[#allocation25_spill] sm:$0xff] }
 0x4c3   : > { %6080 = vmatpush1.bf16.msra.mxu1 %v5516_v21  ;;  %v13297_v53 = vmax.f32 %v11383_v35, 0.0  ;;  %v5500_v1 = vpack.c.bf16 %v5080_v6, %v5064_v18  ;;  %v5191_v12 = vmax.f32 %v4611_v20, 0.0  ;;  %v5193_v33 = vmax.f32 %v4814_v13, 0.0  ;;  %v11589_v10 = vpop.f32.mrf.mxu0  ;;  %v13309_v18 = vld [vmem:[#allocation89_spill] sm:$0xff] }
 0x4c4   : > { %6081 = vmatprep.subr.bf16.mxu1 %v5501_v41  ;;  %v11571_v8 = vpack.c.bf16 %v5206_v30, %v5190_v60  ;;  %v11573_v59 = vpack.c.bf16 %v5208_v52, %v5192_v31  ;;  %v5207_v51 = vmax.f32 %v4615_v16, 0.0  ;;  %v5209_v45 = vmax.f32 %v4818_v32, 0.0  ;;  %5961 = vmatmul.mubr.bf16.gmra.mxu0 %v11578_v50  ;;  %v11591_v46 = vpop.f32.mrf.mxu1  ;;  %v13313_v16 = vld [vmem:[#allocation125_spill] sm:$0xff] }
 0x4c5   : > { %v5498_v29 = vpack.c.bf16 %v5078_v26, %v13297_v53  ;;  %v4999_v35 = vmax.f32 %v11321_v44, 0.0  ;;  %v5017_v26 = vmax.f32 %v11371_v43, 0.0  ;;  %v5030_v6 = vmax.f32 %v11380_v54, 0.0  ;;  %6014 = vmatmul.mubr.bf16.gmra.mxu1 %v11578_v50  ;;  %v13305_v43 = vld [vmem:[#allocation86_spill] sm:$0xff]  ;;  %6056 = vmatprep.mubr.bf16.mxu0 %v7587_v61  ;;  %v13314_v53 = vld [vmem:[#allocation61_spill] sm:$0xff] }
 0x4c6   : > { %13298 = vst [vmem:[#allocation55_spill] sm:$0xff] %v11571_v8  ;;  %13299 = vst [vmem:[#allocation15_spill] sm:$0xff] %v11573_v59  ;;  %v13301_v39 = vmax.f32 %v11340_v38, 0.0  ;;  %v13302_v20 = vmax.f32 %v11375_v56, 0.0  ;;  %v5032_v27 = vmax.f32 %v11388_v17, 0.0  ;;  %v11594_v2 = vpack.c.bf16 %v5207_v51, %v5191_v12  ;;  %v11605_v17 = vpop.f32.mrf.mxu0  ;;  %v4825_v49 = vpop.f32.mrf.mxu1  ;;  %6109 = vmatprep.mubr.bf16.mxu1 %v7587_v61  ;;  %v13316_v51 = vld [vmem:[#allocation64_spill] sm:$0xff] }
 0x4c7   : > { %6029 = vmatpush1.bf16.msra.mxu0 %v5498_v29  ;;  %v11596_v44 = vpack.c.bf16 %v5209_v45, %v5193_v33  ;;  %v4822_v54 = vadd.f32 %v4821_v14, %v13305_v43  ;;  %6082 = vmatpush1.bf16.msra.mxu1 %v5500_v1  ;;  %v4983_v38 = vmax.f32 %v11291_v28, 0.0  ;;  %v5001_v56 = vmax.f32 %v11334_v5, 0.0  ;;  %v13315_v29 = vld [vmem:[#allocation103_spill] sm:$0xff]  ;;  %v13320_v61 = vld [vmem:[#allocation134_spill] sm:$0xff]  ;;  %v13350_v50 = vld [vmem:[#allocation57_spill] sm:$0xff] }
 0x4c8   : > { %v5485_v13 = vpack.c.bf16 %v13302_v20, %v13301_v39  ;;  %13303 = vst [vmem:[#allocation111_spill] sm:$0xff] %v11594_v2  ;;  %6030 = vmatprep.subr.bf16.mxu0 %v11413_v48  ;;  %v5014_v63 = vmax.f32 %v11363_v11, 0.0  ;;  %v13306_v9 = vmax.f32 %v11345_v4, 0.0  ;;  %v5016_v48 = vmax.f32 %v11367_v47, 0.0  ;;  %v11618_v31 = vpop.f32.mrf.mxu0  ;;  %v11620_v34 = vpop.f32.mrf.mxu1  ;;  %v13311_v47 = vld [vmem:[#allocation24_spill] sm:$0xff] }
 0x4c9   : > { %13304 = vst [vmem:[#allocation58_spill] sm:$0xff] %v11596_v44  ;;  %v13307_v28 = vmax.f32 %v11325_v15, 0.0  ;;  %v13308_v5 = vmax.f32 %v11349_v22, 0.0  ;;  %v4826_v4 = vadd.f32 %v4825_v49, %v13309_v18  ;;  %v4985_v19 = vmax.f32 %v11304_v3, 0.0  ;;  %v13312_v15 = vld [vmem:[#allocation143_spill] sm:$0xff] }
 0x4ca   : > { %v5482_v21 = vpack.c.bf16 %v13306_v9, %v5030_v6  ;;  %6083 = vmatprep.subr.bf16.mxu1 %v5485_v13  ;;  %v4998_v41 = vmax.f32 %v13310_v37, 0.0  ;;  %v5469_v60 = vpack.c.bf16 %v5017_v26, %v5001_v56  ;;  %v6248_v40 = vrot.slane %v13311_v47, 4  ;;  %v11627_v33 = vpop.f32.mrf.mxu0  ;;  %v11629_v14 = vpop.f32.mrf.mxu1 }
 0x4cb   : > { %v5467_v24 = vpack.c.bf16 %v13307_v28, %v4999_v35  ;;  %v5484_v11 = vpack.c.bf16 %v13308_v5, %v5032_v27  ;;  %v5000_v30 = vmax.f32 %v13312_v15, 0.0  ;;  %v5224_v52 = vmax.f32 %v4822_v54, 0.0  ;;  %v13317_v35 = vld [vmem:[#allocation102_spill] sm:$0xff]  ;;  %v13321_v5 = vld [vmem:[#allocation135_spill] sm:$0xff] }
 0x4cc   : > { %6031 = vmatpush1.bf16.msra.mxu0 %v5482_v21  ;;  %v5240_v22 = vmax.f32 %v4826_v4, 0.0  ;;  %v6262_v32 = vrot.slane %v13313_v16, 4  ;;  %v6255_v3 = vrot.slane %v13314_v53, 4  ;;  %v4969_v1 = vmax.f32 %v13315_v29, 0.0  ;;  %v11636_v27 = vpop.f32.mrf.mxu0  ;;  %v11638_v54 = vpop.f32.mrf.mxu1 }
 0x4cd   : > { %6084 = vmatpush1.bf16.msra.mxu1 %v5484_v11  ;;  %6032 = vmatprep.subr.bf16.mxu0 %v5467_v24  ;;  %v5466_v12 = vpack.c.bf16 %v5014_v63, %v4998_v41  ;;  %v6269_v45 = vrot.slane %v13316_v51, 4  ;;  %v13318_v26 = vmax.f32 %v13317_v35, 0.0  ;;  %v5468_v39 = vpack.c.bf16 %v5016_v48, %v5000_v30  ;;  %v13322_v11 = vld [vmem:[#allocation95_spill] sm:$0xff] }
 0x4ce   : > { %6085 = vmatprep.subr.bf16.mxu1 %v5469_v60  ;;  %v11634_v20 = vpack.c.bf16 %v5240_v22, %v5224_v52  ;;  %v5453_v13 = vpack.c.bf16 %v4985_v19, %v4969_v1  ;;  %v6249_v56 = vmax.f32 %v13311_v47, %v6248_v40  ;;  %v6263_v63 = vmax.f32 %v13313_v16, %v6262_v32  ;;  %v11642_v9 = vpop.f32.mrf.mxu0  ;;  %v11644_v21 = vpop.f32.mrf.mxu1  ;;  %v13323_v19 = vld [vmem:[#allocation97_spill] sm:$0xff]  ;;  %v13324_v40 = vld [vmem:[#allocation91_spill] sm:$0xff]  ;;  %v13325_v22 = vld [vmem:[#allocation94_spill] sm:$0xff] }
 0x4cf   : > { %v5451_v6 = vpack.c.bf16 %v4983_v38, %v13318_v26  ;;  %v6256_v38 = vmax.f32 %v13314_v53, %v6255_v3  ;;  %v6270_v49 = vmax.f32 %v13316_v51, %v6269_v45  ;;  %v13326_v16 = vld [vmem:[#allocation85_spill] sm:$0xff]  ;;  %v13327_v53 = vld [vmem:[#allocation87_spill] sm:$0xff]  ;;  %v13328_v51 = vld [vmem:[#allocation14_spill] sm:$0xff] }
 0x4d0   : > { %13319 = vst [vmem:[#allocation10_spill] sm:$0xff] %v11634_v20  ;;  %6033 = vmatpush1.bf16.msra.mxu0 %v5466_v12  ;;  %v11649_v48 = vpop.f32.mrf.mxu0  ;;  %v11651_v28 = vpop.f32.mrf.mxu1  ;;  %v6250_v24 = vrot.slane %v6249_v56, 2  ;;  %v6264_v4 = vrot.slane %v6263_v63, 2  ;;  %v13329_v45 = vld [vmem:[#allocation11_spill] sm:$0xff]  ;;  %v13330_v26 = vld [vmem:[#allocation9_spill] sm:$0xff]  ;;  %v11732_v58 = vrot.slane %v13350_v50, %v13328_v51  ;;  %v4621_v50 = vadd.f32 %v11589_v10, %v13305_v43 }
 0x4d1   : > { %6086 = vmatpush1.bf16.msra.mxu1 %v5468_v39  ;;  %6034 = vmatprep.subr.bf16.mxu0 %v5451_v6  ;;  %v6257_v60 = vrot.slane %v6256_v38, 2  ;;  %v6271_v47 = vrot.slane %v6270_v49, 2  ;;  %v11674_v35 = vrot.slane %v13329_v45, %v13328_v51  ;;  %v11678_v6 = vrot.slane %v13330_v26, %v13328_v51  ;;  %v13331_v39 = vld [vmem:[#allocation81_spill] sm:$0xff] }
 0x4d2   : > { %6087 = vmatprep.subr.bf16.mxu1 %v5453_v13  ;;  %v11656_v37 = vpop.f32.mrf.mxu0  ;;  %v11658_v41 = vpop.f32.mrf.mxu1  ;;  %v6251_v52 = vmax.f32 %v6249_v56, %v6250_v24  ;;  %v6265_v32 = vmax.f32 %v6263_v63, %v6264_v4  ;;  %v13337_v4 = vld [vmem:[#allocation84_spill] sm:$0xff]  ;;  %v4623_v26 = vadd.f32 %v11605_v17, %v13309_v18  ;;  %v4828_v17 = vadd.f32 %v11620_v34, %v13309_v18 }
 0x4d3   : > { %v6258_v1 = vmax.f32 %v6256_v38, %v6257_v60  ;;  %v6272_v12 = vmax.f32 %v6270_v49, %v6271_v47  ;;  %v13333_v38 = vld [vmem:[#allocation121_spill] sm:$0xff]  ;;  %v13338_v60 = vld [vmem:[#allocation56_spill] sm:$0xff]  ;;  %13351 = vst [vmem:[#allocation118_spill] sm:$0xff] %v11732_v58  ;;  %v4824_v34 = vadd.f32 %v11591_v46, %v13305_v43  ;;  %v13374_v58 = vld [vmem:[#allocation63_spill] sm:$0xff] }
 0x4d4   : > { %6035 = vmatpush1.bf16.msra.mxu0 %v13320_v61  ;;  %v11661_v15 = vpop.f32.mrf.mxu0  ;;  %v11663_v30 = vpop.f32.mrf.mxu1  ;;  %v6252_v63 = vrot.slane %v6251_v52, 1  ;;  %v13332_v61 = vld [vmem:[#allocation120_spill] sm:$0xff]  ;;  %v11691_v49 = vrot.slane %v13333_v38, %v13328_v51  ;;  %v13339_v47 = vsub.f32 1.0, %v13338_v60  ;;  %v13347_v60 = vld [vmem:[#allocation54_spill] sm:$0xff]  ;;  %v5238_v55 = vmax.f32 %v4623_v26, 0.0 }
 0x4d5   : > { %6088 = vmatpush1.bf16.msra.mxu1 %v13321_v5  ;;  %6036 = vmatprep.subr.bf16.mxu0 %v13322_v11  ;;  %v11687_v24 = vrot.slane %v13332_v61, %v13328_v51  ;;  %v13335_v5 = vld [vmem:[#allocation8_spill] sm:$0xff]  ;;  %v6259_v38 = vrot.slane %v6258_v1, 1  ;;  %v6273_v36 = vrot.slane %v6272_v12, 1 }
 0x4d6   : > { %6089 = vmatprep.subr.bf16.mxu1 %v13323_v19  ;;  %v11668_v3 = vpop.f32.mrf.mxu0  ;;  %v11670_v29 = vpop.f32.mrf.mxu1  ;;  %13334 = vst [vmem:[#allocation52_spill] sm:$0xff] %v11691_v49  ;;  %v11695_v11 = vrot.slane %v13335_v5, %v13328_v51  ;;  %v6266_v19 = vrot.slane %v6265_v32, 1  ;;  %v13345_v5 = vld [vmem:[#allocation126_spill] sm:$0xff]  ;;  %v11736_v42 = vmax.f32 %v6251_v52, %v6252_v63 }
 0x4d7   : > { %v11765_v10 = vmax.f32 %v6258_v1, %v6259_v38 }
 0x4d8   : > { %6037 = vmatpush1.bf16.msra.mxu0 %v13324_v40  ;;  %v11681_v13 = vpop.f32.mrf.mxu0  ;;  %v11683_v56 = vpop.f32.mrf.mxu1  ;;  %13336 = vst [vmem:[#allocation67_spill] sm:$0xff] %v11695_v11  ;;  %v11701_v40 = vrot.slane %v13339_v47, %v13328_v51  ;;  %v13348_v47 = vsub.f32 1.0, %v13347_v60  ;;  %v7588_v60 = vld [vmem:[%s9611_s18 + $0x8] sm:$0xff]  ;;  %vm6287_vm1 = vcmp.le.f32.partialorder %v11736_v42, 1.1  ;;  %s7299_s18 = sshll.u32 %s13449_s25, 5 }
 0x4d9   : > { %6090 = vmatpush1.bf16.msra.mxu1 %v13325_v22  ;;  %6038 = vmatprep.subr.bf16.mxu0 %v13326_v16  ;;  %v13341_v22 = vld [vmem:[#allocation4_spill] sm:$0xff]  ;;  %vm6288_vm12 = vcmp.le.f32.partialorder %v11765_v10, 1.1  ;;  %s335_s25 = scalar_lea.vmem %s12261_s7, %s7299_s18 }
 0x4da   : > { %6091 = vmatprep.subr.bf16.mxu1 %v13327_v53  ;;  %13340 = vst [vmem:[#allocation108_spill] sm:$0xff] %v11701_v40  ;;  %v11705_v16 = vrot.slane %v13341_v22, %v13328_v51  ;;  %v13343_v53 = vld [vmem:[#allocation2_spill] sm:$0xff]  ;;  %v11715_v61 = vpop.f32.mrf.mxu1  ;;  %v11724_v22 = vrot.slane %v13348_v47, %v13328_v51  ;;  %v13352_v47 = vld [vmem:[#allocation41_spill] sm:$0xff] }
 0x4db   : > { %v11709_v45 = vrot.slane %v13343_v53, %v13328_v51  ;;  %v4625_v53 = vadd.f32 %v11618_v31, %v13309_v18  ;;  %v13353_v7 = vsub.s32 4, %v13352_v47  ;;  %v13354_v31 = vld [vmem:[#allocation131_spill] sm:$0xff]  ;;  %v13356_v52 = vsub.s32 6, %v13352_v47 }
 0x4dc   : > { %6039 = vmatpush1.bf16.msra.mxu0 %v13331_v39  ;;  %13342 = vst [vmem:[#allocation116_spill] sm:$0xff] %v11705_v16  ;;  %v11713_v39 = vpop.f32.mrf.mxu0  ;;  %13349 = vst [vmem:[#allocation33_spill] sm:$0xff] %v11724_v22  ;;  %v4853_v25 = vpop.f32.mrf.mxu1  ;;  %v11745_v18 = vrot.slane %v13354_v31, %v13328_v51  ;;  %v4836_v31 = vadd.f32 %v11644_v21, %v13357_v62  ;;  %v4635_v21 = vadd.f32 %v11649_v48, %v13357_v62 }
 0x4dd   : > { %6092 = vmatpush1.bf16.msra.mxu1 %v13337_v4  ;;  %13344 = vst [vmem:[#allocation5_spill] sm:$0xff] %v11709_v45  ;;  %v11719_v4 = vrot.slane %v13345_v5, %v13328_v51  ;;  %v4619_v5 = vadd.f32 %v11569_v57, %v13305_v43  ;;  %v11741_v0 = vrot.slane %v7588_v60, %v13353_v7  ;;  %v5239_v46 = vmax.f32 %v4625_v53, 0.0 }
 0x4de   : > { %v4650_v23 = vpop.f32.mrf.mxu0  ;;  %13355 = vst [vmem:[#allocation68_spill] sm:$0xff] %v11745_v18  ;;  %v11751_v57 = vmax.f32 %v6265_v32, %v6266_v19  ;;  %v11755_v63 = vrot.slane %v7588_v60, %v13356_v52  ;;  %v4633_v7 = vadd.f32 %v11642_v9, %v13357_v62  ;;  %v11763_v59 = vpop.f32.mrf.mxu1  ;;  %v5241_v43 = vmax.f32 %v4828_v17, 0.0  ;;  %v13358_v32 = vld [vmem:[#allocation82_spill] sm:$0xff] }
 0x4df   : > { %13346 = vst [vmem:[#allocation48_spill] sm:$0xff] %v11719_v4  ;;  %v4629_v19 = vadd.f32 %v11627_v33, %v13358_v32  ;;  %v11769_v52 = vmax.f32 %v6272_v12, %v6273_v36  ;;  %v5222_v26 = vmax.f32 %v4619_v5, 0.0  ;;  %v4832_v9 = vadd.f32 %v11629_v14, %v13358_v32 }
 0x4e0   : > { %v11761_v51 = vpop.f32.mrf.mxu0  ;;  %v11775_v44 = vpop.f32.mrf.mxu1  ;;  %v13359_v1 = vsub.s32 5, %v13352_v47  ;;  %v5223_v53 = vmax.f32 %v4621_v50, 0.0  ;;  %v5225_v17 = vmax.f32 %v4824_v34, 0.0  ;;  %v4631_v36 = vadd.f32 %v11636_v27, %v13358_v32 }
 0x4e1   : > { %v13360_v33 = vsub.s32 7, %v13352_v47  ;;  %v11787_v14 = vpack.c.bf16 %v5238_v55, %v5222_v26  ;;  %v11791_v48 = vadd.f32 %v11638_v54, %v13358_v32  ;;  %v5270_v5 = vmax.f32 %v4633_v7, 0.0  ;;  %v13364_v47 = vld [vmem:[#allocation76_spill] sm:$0xff] }
 0x4e2   : > { %v4654_v8 = vpop.f32.mrf.mxu0  ;;  %v11779_v38 = vrot.slane %v7588_v60, %v13359_v1  ;;  %v5272_v2 = vmax.f32 %v4836_v31, 0.0  ;;  %v4861_v1 = vpop.f32.mrf.mxu1  ;;  %v11793_v20 = vpack.c.bf16 %v5239_v46, %v5223_v53  ;;  %v11795_v50 = vpack.c.bf16 %v5241_v43, %v5225_v17  ;;  %v13365_v43 = vld [vmem:[#allocation79_spill] sm:$0xff] }
 0x4e3   : > { %v11785_v12 = vrot.slane %v7588_v60, %v13360_v33  ;;  %13361 = vst [vmem:[#allocation42_spill] sm:$0xff] %v11787_v14  ;;  %v5254_v34 = vmax.f32 %v4629_v19, 0.0  ;;  %v11799_v27 = vadd.f32 %v11651_v28, %v13357_v62  ;;  %v5256_v60 = vmax.f32 %v4832_v9, 0.0  ;;  %v13373_v14 = vld [vmem:[#allocation62_spill] sm:$0xff] }
 0x4e4   : > { %v4658_v18 = vpop.f32.mrf.mxu0  ;;  %13362 = vst [vmem:[#allocation117_spill] sm:$0xff] %v11793_v20  ;;  %13363 = vst [vmem:[#allocation119_spill] sm:$0xff] %v11795_v50  ;;  %v5271_v55 = vmax.f32 %v4635_v21, 0.0  ;;  %v11803_v26 = vadd.f32 %v11661_v15, %v13364_v47  ;;  %v11807_v54 = vadd.f32 %v11663_v30, %v13364_v47  ;;  %v4863_v31 = vpop.f32.mrf.mxu1  ;;  %v5255_v46 = vmax.f32 %v4631_v36, 0.0  ;;  %v13372_v15 = vld [vmem:[#allocation69_spill] sm:$0xff] }
 0x4e5   : > { %v11811_v32 = vadd.f32 %v11668_v3, %v13365_v43  ;;  %v11815_v62 = vadd.f32 %v11670_v29, %v13365_v43  ;;  %v11819_v28 = vadd.f32 %v11681_v13, %v13365_v43  ;;  %v11822_v19 = vpack.c.bf16 %v5270_v5, %v5254_v34  ;;  %v13368_v13 = vld [vmem:[#allocation72_spill] sm:$0xff] }
 0x4e6   : > { %v4660_v7 = vpop.f32.mrf.mxu0  ;;  %v11824_v30 = vpack.c.bf16 %v5272_v2, %v5256_v60  ;;  %v11828_v9 = vadd.f32 %v11683_v56, %v13365_v43  ;;  %v4865_v21 = vpop.f32.mrf.mxu1  ;;  %v11833_v29 = vadd.f32 %v11656_v37, %v13364_v47  ;;  %v11836_v17 = vadd.f32 %v4650_v23, %v13368_v13 }
 0x4e7   : > { %13366 = vst [vmem:[#allocation70_spill] sm:$0xff] %v11822_v19  ;;  %v11839_v36 = vadd.f32 %v4853_v25, %v13368_v13  ;;  %v11841_v2 = vpack.c.bf16 %v5271_v55, %v5255_v46  ;;  %v11845_v56 = vadd.f32 %v11658_v41, %v13364_v47  ;;  %v13370_v25 = vld [vmem:[#allocation73_spill] sm:$0xff]  ;;  %v13371_v46 = vld [vmem:[#allocation66_spill] sm:$0xff]  ;;  %v11865_v23 = vadd.f32 %v11713_v39, %v13368_v13 }
 0x4e8   : > { %13367 = vst [vmem:[#allocation40_spill] sm:$0xff] %v11824_v30  ;;  %v4662_v3 = vpop.f32.mrf.mxu0  ;;  %v4867_v60 = vpop.f32.mrf.mxu1  ;;  %v11853_v53 = vadd.f32 %v4654_v8, %v13370_v25  ;;  %v11857_v41 = vadd.f32 %v4658_v18, %v13371_v46  ;;  %v11860_v47 = vadd.f32 %v4861_v1, %v13371_v46  ;;  %v11869_v8 = vadd.f32 %v11715_v61, %v13368_v13 }
 0x4e9   : > { %13369 = vst [vmem:[#allocation109_spill] sm:$0xff] %v11841_v2  ;;  %v11875_v1 = vadd.f32 %v11761_v51, %v13370_v25  ;;  %v4661_v55 = vadd.f32 %v4660_v7, %v13371_v46  ;;  %v4864_v39 = vadd.f32 %v4863_v31, %v13371_v46  ;;  %v11886_v13 = vadd.f32 %v11775_v44, %v13370_v25 }
 0x4ea   : > { %v4664_v34 = vpop.f32.mrf.mxu0  ;;  %v4871_v22 = vpop.f32.mrf.mxu1  ;;  %v4663_v18 = vadd.f32 %v4662_v3, %v13372_v15  ;;  %v4866_v51 = vadd.f32 %v4865_v21, %v13372_v15  ;;  %v5350_v37 = vmax.f32 %v11857_v41, 0.0  ;;  %v4868_v7 = vadd.f32 %v4867_v60, %v13372_v15 }
 0x4eb   : > { %v4665_v5 = vadd.f32 %v4664_v34, %v13372_v15  ;;  %v11879_v34 = vadd.f32 %v11763_v59, %v13370_v25  ;;  %v5352_v59 = vmax.f32 %v11860_v47, 0.0  ;;  %vm6289_vm11 = vcmp.le.f32.partialorder %v11751_v57, 1.1 }
 0x4ec   : > { %v4668_v33 = vpop.f32.mrf.mxu0  ;;  %v4873_v4 = vpop.f32.mrf.mxu1  ;;  %v5351_v3 = vmax.f32 %v4661_v55, 0.0  ;;  %v5353_v21 = vmax.f32 %v4864_v39, 0.0  ;;  %v4872_v15 = vadd.f32 %v4871_v22, %v13373_v14  ;;  %v5366_v47 = vmax.f32 %v4663_v18, 0.0 }
 0x4ed   : > { %v5367_v40 = vmax.f32 %v4665_v5, 0.0  ;;  %v4874_v61 = vadd.f32 %v4873_v4, %v13373_v14  ;;  %v4669_v5 = vadd.f32 %v4668_v33, %v13373_v14  ;;  %vm6290_vm13 = vcmp.le.f32.partialorder %v11769_v52, 1.1 }
 0x4ee   : > { %v4670_v43 = vpop.f32.mrf.mxu0  ;;  %v4875_v46 = vpop.f32.mrf.mxu1  ;;  %v5384_v39 = vmax.f32 %v4872_v15, 0.0  ;;  %v13379_v42 = vmax.f32 %v11839_v36, 0.0 }
 0x4ef   : > { %v4671_v50 = vadd.f32 %v4670_v43, %v13373_v14  ;;  %v4876_v25 = vadd.f32 %v4875_v46, %v13374_v58  ;;  %v5368_v43 = vmax.f32 %v4866_v51, 0.0  ;;  %v5643_v20 = vpack.c.bf16 %v5367_v40, %v5351_v3  ;;  %v13375_v51 = vld [vmem:[#allocation39_spill] sm:$0xff] }
 0x4f0   : > { %v4672_v31 = vpop.f32.mrf.mxu0  ;;  %v4877_v41 = vpop.f32.mrf.mxu1  ;;  %v5369_v46 = vmax.f32 %v4868_v7, 0.0  ;;  %v5385_v22 = vmax.f32 %v4874_v61, 0.0  ;;  %v5382_v18 = vmax.f32 %v4669_v5, 0.0  ;;  %v5337_v5 = vmax.f32 %v11886_v13, 0.0 }
 0x4f1   : > { %v4673_v44 = vadd.f32 %v4672_v31, %v13374_v58  ;;  %v4878_v31 = vadd.f32 %v4877_v41, %v13374_v58  ;;  %v5400_v16 = vmax.f32 %v4876_v25, 0.0  ;;  %v5383_v33 = vmax.f32 %v4671_v50, 0.0 }
 0x4f2   : > { %v4674_v60 = vpop.f32.mrf.mxu0  ;;  %v4881_v30 = vpop.f32.mrf.mxu1  ;;  %v5645_v15 = vpack.c.bf16 %v5369_v46, %v5353_v21 }
 0x4f3   : > { %v4675_v4 = vadd.f32 %v4674_v60, %v13374_v58  ;;  %v5398_v45 = vmax.f32 %v4673_v44, 0.0  ;;  %v5401_v55 = vmax.f32 %v4878_v31, 0.0  ;;  %v4882_v58 = vadd.f32 %v4881_v30, %v13375_v51 }
 0x4f4   : > { %v4678_v11 = vpop.f32.mrf.mxu0  ;;  %v4883_v7 = vpop.f32.mrf.mxu1  ;;  %v5660_v2 = vpack.c.bf16 %v5400_v16, %v5384_v39  ;;  %v5642_v16 = vpack.c.bf16 %v5366_v47, %v5350_v37 }
 0x4f5   : > { %v5399_v14 = vmax.f32 %v4675_v4, 0.0  ;;  %v4679_v60 = vadd.f32 %v4678_v11, %v13375_v51  ;;  %v5661_v25 = vpack.c.bf16 %v5401_v55, %v5385_v22  ;;  %v4884_v41 = vadd.f32 %v4883_v7, %v13375_v51  ;;  %v13376_v11 = vld [vmem:[#allocation45_spill] sm:$0xff] }
 0x4f6   : > { %v4680_v40 = vpop.f32.mrf.mxu0  ;;  %v5658_v19 = vpack.c.bf16 %v5398_v45, %v5382_v18  ;;  %v6144_v61 = vmax.f32 %v4882_v58, 0.0  ;;  %v4885_v31 = vpop.f32.mrf.mxu1  ;;  %v5336_v45 = vmax.f32 %v11879_v34, 0.0  ;;  %v5644_v22 = vpack.c.bf16 %v5368_v43, %v5352_v59 }
 0x4f7   : > { %v5659_v44 = vpack.c.bf16 %v5399_v14, %v5383_v33  ;;  %v4681_v3 = vadd.f32 %v4680_v40, %v13375_v51  ;;  %v6142_v50 = vmax.f32 %v4679_v60, 0.0  ;;  %v11914_v30 = vadd.f32 %v4885_v31, %v13376_v11  ;;  %6093 = vmatprep.subr.bf16.mxu1 %v5661_v25 }
 0x4f8   : > { %v4682_v4 = vpop.f32.mrf.mxu0  ;;  %v5334_v33 = vmax.f32 %v11875_v1, 0.0  ;;  %v4887_v55 = vpop.f32.mrf.mxu1  ;;  %6094 = vmatpush2.bf16.msra.mxu1 %v5660_v2  ;;  %v6145_v21 = vmax.f32 %v4884_v41, 0.0  ;;  %v11926_v37 = vsel %vm6289_vm11, %v6144_v61, 0.0  ;;  %v13377_v59 = vmax.f32 %v11836_v17, 0.0 }
 0x4f9   : > { %v11911_v49 = vadd.f32 %v4682_v4, %v13376_v11  ;;  %6040 = vmatprep.subr.bf16.mxu0 %v5659_v44  ;;  %v6143_v13 = vmax.f32 %v4681_v3, 0.0  ;;  %v12441_v18 = vmax.f32 %v11914_v30, 0.0  ;;  %6095 = vmatprep.subr.bf16.mxu1 %v5645_v15  ;;  %v11922_v39 = vsel %vm6287_vm1, %v6142_v50, 0.0  ;;  %v11974_v61 = vpop.permute.xlu0 %5668 }
 0x4fa   : > { %v4684_v14 = vpop.f32.mrf.mxu0  ;;  %6041 = vmatpush2.bf16.msra.mxu0 %v5658_v19  ;;  %v11932_v19 = vadd.f32 %v4887_v55, %v13376_v11  ;;  %v5793_v34 = vpop.f32.mrf.mxu1  ;;  %v5629_v43 = vpack.c.bf16 %v5337_v5, %v13379_v42  ;;  %v5318_v60 = vmax.f32 %v11865_v23, 0.0  ;;  %v5320_v17 = vmax.f32 %v11869_v8, 0.0 }
 0x4fb   : > { %v12442_v46 = vmax.f32 %v11911_v49, 0.0  ;;  %6042 = vmatprep.subr.bf16.mxu0 %v5643_v20  ;;  %v11929_v1 = vadd.f32 %v4684_v14, %v13376_v11  ;;  %v13378_v20 = vmax.f32 %v11853_v53, 0.0  ;;  %v11948_v51 = vadd.f32 %v12441_v18, %v11926_v37 }
 0x4fc   : > { %v5740_v2 = vpop.f32.mrf.mxu0  ;;  %v12439_v58 = vmax.f32 %v11932_v19, 0.0  ;;  %v5795_v40 = vpop.f32.mrf.mxu1  ;;  %6096 = vmatpush2.bf16.msra.mxu1 %v5644_v22  ;;  %v11956_v7 = vsel %vm6288_vm12, %v6143_v13, 0.0  ;;  %v11960_v44 = vsel %vm6290_vm13, %v6145_v21, 0.0  ;;  %v5626_v25 = vpack.c.bf16 %v5334_v33, %v5318_v60 }
 0x4fd   : > { %v5627_v47 = vpack.c.bf16 %v13378_v20, %v13377_v59  ;;  %v11943_v57 = vadd.f32 %v12442_v46, %v11922_v39  ;;  %v12440_v53 = vmax.f32 %v11929_v1, 0.0  ;;  %v6673_v8 = vsub.f32 0.0, %v11948_v51  ;;  %6097 = vmatprep.subr.bf16.mxu1 %v5629_v43 }
 0x4fe   : > { %v5742_v36 = vpop.f32.mrf.mxu0  ;;  %6043 = vmatpush2.bf16.msra.mxu0 %v5642_v16  ;;  %v5628_v3 = vpack.c.bf16 %v5336_v45, %v5320_v17  ;;  %v11972_v10 = vadd.f32 %v12439_v58, %v11960_v44  ;;  %v5797_v50 = vpop.f32.mrf.mxu1  ;;  %v13380_v4 = vmax.f32 %v11803_v26, 0.0  ;;  %v13381_v31 = vmax.f32 %v11819_v28, 0.0 }
 0x4ff   : > { %v6671_v23 = vsub.f32 0.0, %v11943_v57  ;;  %6044 = vmatprep.subr.bf16.mxu0 %v5627_v47  ;;  %v11967_v41 = vadd.f32 %v12440_v53, %v11956_v7  ;;  %v13382_v15 = vmax.f32 %v11807_v54, 0.0  ;;  %v13383_v11 = vmax.f32 %v11828_v9, 0.0  ;;  %v11990_v54 = vpop.permute.xlu1 %5673 }
 0x500   : > { %v5744_v52 = vpop.f32.mrf.mxu0  ;;  %v5611_v5 = vpack.c.bf16 %v13381_v31, %v13380_v4  ;;  %v6773_v16 = vmul.f32 %v11755_v63, %v6673_v8  ;;  %v5286_v22 = vmax.f32 %v11833_v29, 0.0  ;;  %v5288_v14 = vmax.f32 %v11845_v56, 0.0  ;;  %v5799_v28 = vpop.f32.mrf.mxu1  ;;  %6098 = vmatpush2.bf16.msra.mxu1 %v5628_v3  ;;  %v13388_v4 = vld [vmem:[#allocation52_spill] sm:$0xff]  ;;  %v13389_v31 = vld [vmem:[#allocation109_spill] sm:$0xff] }
 0x501   : > { %v5613_v33 = vpack.c.bf16 %v13383_v11, %v13382_v15  ;;  %v6771_v45 = vmul.f32 %v11741_v0, %v6671_v23  ;;  %v6672_v55 = vsub.f32 0.0, %v11967_v41  ;;  %v5741_v26 = vadd.f32 %v5740_v2, %v11974_v61  ;;  %v12009_v3 = vpop.permute.xlu0 %5678 }
 0x502   : > { %v5746_v13 = vpop.f32.mrf.mxu0  ;;  %6045 = vmatpush2.bf16.msra.mxu0 %v5626_v25  ;;  %v13384_v9 = vmax.f32 %v11791_v48, 0.0  ;;  %v13385_v0 = vmax.f32 %v11799_v27, 0.0  ;;  %v6803_v59 = vmul.f32 1.442695, %v6773_v16  ;;  %v5794_v29 = vadd.f32 %v5793_v34, %v11974_v61  ;;  %v5803_v60 = vpop.f32.mrf.mxu1 }
 0x503   : > { %v6799_v63 = vmul.f32 1.442695, %v6771_v45  ;;  %6046 = vmatprep.subr.bf16.mxu0 %v5611_v5  ;;  %6099 = vmatprep.subr.bf16.mxu1 %v5613_v33  ;;  %v13386_v56 = vmax.f32 %v11811_v32, 0.0  ;;  %v13387_v20 = vmax.f32 %v11815_v62, 0.0  ;;  %v6772_v42 = vmul.f32 %v11779_v38, %v6672_v55  ;;  %v12017_v33 = vpop.permute.xlu1 %5683 }
 0x504   : > { %v5597_v21 = vpack.c.bf16 %v13385_v0, %v13384_v9  ;;  %v6674_v43 = vsub.f32 0.0, %v11972_v10  ;;  %v5750_v48 = vpop.f32.mrf.mxu0  ;;  %v5743_v27 = vadd.f32 %v5742_v36, %v11974_v61  ;;  %v5796_v17 = vadd.f32 %v5795_v40, %v11974_v61  ;;  %v5805_v38 = vpop.f32.mrf.mxu1  ;;  %v13390_v0 = vld [vmem:[#allocation70_spill] sm:$0xff] }
 0x505   : > { %v5610_v2 = vpack.c.bf16 %v13386_v56, %v5286_v22  ;;  %v5612_v47 = vpack.c.bf16 %v13387_v20, %v5288_v14  ;;  %7433 = vpow2.f32 %v6799_v63  ;;  %v5745_v34 = vadd.f32 %v5744_v52, %v11990_v54  ;;  %v13394_v56 = vld [vmem:[#allocation5_spill] sm:$0xff] }
 0x506   : > { %v6801_v23 = vmul.f32 1.442695, %v6772_v42  ;;  %v6774_v32 = vmul.f32 %v11785_v12, %v6674_v43  ;;  %v6483_v8 = vmul.f32 %v11674_v35, %v5741_v26  ;;  %v5798_v62 = vadd.f32 %v5797_v50, %v11990_v54  ;;  %v5752_v25 = vpop.f32.mrf.mxu0  ;;  %v5807_v11 = vpop.f32.mrf.mxu1  ;;  %v13395_v20 = vld [vmem:[#allocation117_spill] sm:$0xff] }
 0x507   : > { %6047 = vmatpush2.bf16.msra.mxu0 %v5610_v2  ;;  %6100 = vmatpush2.bf16.msra.mxu1 %v5612_v47  ;;  %7435 = vpow2.f32 %v6803_v59  ;;  %v6485_v36 = vmul.f32 %v11678_v6, %v5794_v29  ;;  %v6484_v40 = vmul.f32 %v11687_v24, %v5743_v27  ;;  %v6486_v52 = vmul.f32 %v13388_v4, %v5796_v17  ;;  %v13393_v59 = vld [vmem:[#allocation116_spill] sm:$0xff] }
 0x508   : > { %6048 = vmatprep.subr.bf16.mxu0 %v13389_v31  ;;  %6101 = vmatprep.subr.bf16.mxu1 %v5597_v21  ;;  %7437 = vpow2.f32 %v6801_v23  ;;  %v6805_v12 = vmul.f32 1.442695, %v6774_v32  ;;  %v6499_v50 = vmul.f32 %v11674_v35, %v5745_v34  ;;  %v6501_v5 = vmul.f32 %v11678_v6, %v5798_v62  ;;  %v5754_v15 = vpop.f32.mrf.mxu0  ;;  %v5809_v6 = vpop.f32.mrf.mxu1  ;;  %v13391_v21 = vld [vmem:[#allocation40_spill] sm:$0xff]  ;;  %v13398_v31 = vld [vmem:[#allocation42_spill] sm:$0xff] }
 0x509   : > { %v5747_v45 = vadd.f32 %v5746_v13, %v11990_v54  ;;  %v5751_v16 = vadd.f32 %v5750_v48, %v12009_v3  ;;  %v5804_v22 = vadd.f32 %v5803_v60, %v12009_v3  ;;  %v5753_v14 = vadd.f32 %v5752_v25, %v12009_v3  ;;  %v13392_v13 = vld [vmem:[#allocation67_spill] sm:$0xff] }
 0x50a   : > { %v5800_v55 = vadd.f32 %v5799_v28, %v11990_v54  ;;  %v5806_v26 = vadd.f32 %v5805_v38, %v12009_v3  ;;  %v5755_v35 = vadd.f32 %v5754_v15, %v12017_v33  ;;  %v5756_v9 = vpop.f32.mrf.mxu0  ;;  %7439 = vpow2.f32 %v6805_v12  ;;  %v13396_v28 = vld [vmem:[#allocation118_spill] sm:$0xff]  ;;  %v13397_v60 = vld [vmem:[#allocation119_spill] sm:$0xff]  ;;  %v13399_v15 = vld [vmem:[#allocation108_spill] sm:$0xff] }
 0x50b   : > { %6049 = vmatpush2.bf16.msra.mxu0 %v13390_v0  ;;  %6102 = vmatpush2.bf16.msra.mxu1 %v13391_v21  ;;  %v6595_v63 = vmul.f32 %v13392_v13, %v5751_v16  ;;  %v6597_v29 = vmul.f32 %v13393_v59, %v5804_v22  ;;  %v6596_v2 = vmul.f32 %v13394_v56, %v5753_v14  ;;  %v13400_v16 = vld [vmem:[#allocation48_spill] sm:$0xff]  ;;  %v13401_v14 = vld [vmem:[#allocation33_spill] sm:$0xff]  ;;  %v13405_v0 = vld [vmem:[#allocation58_spill] sm:$0xff]  ;;  %vm6351_vm14 = vcmp.eq.f32.partialorder %v11943_v57, 0.0 }
 0x50c   : > { %6050 = vmatprep.subr.bf16.mxu0 %v13395_v20  ;;  %v6598_v47 = vmul.f32 %v13396_v28, %v5806_v26  ;;  %v6611_v42 = vmul.f32 %v13392_v13, %v5755_v35  ;;  %v5808_v43 = vadd.f32 %v5807_v11, %v12017_v33  ;;  %v5757_v48 = vadd.f32 %v5756_v9, %v12017_v33  ;;  %v13404_v35 = vld [vmem:[#allocation111_spill] sm:$0xff] }
 0x50d   : > { %6103 = vmatprep.subr.bf16.mxu1 %v13397_v60  ;;  %v6627_v27 = vadd.f32 %v6595_v63, %v6483_v8  ;;  %v6629_v17 = vadd.f32 %v6597_v29, %v6485_v36  ;;  %v6628_v34 = vadd.f32 %v6596_v2, %v6484_v40  ;;  %v5810_v23 = vadd.f32 %v5809_v6, %v12017_v33  ;;  %v13402_v36 = vld [vmem:[#allocation10_spill] sm:$0xff]  ;;  %v13403_v40 = vld [vmem:[#allocation68_spill] sm:$0xff] }
 0x50e   : > { %v6630_v32 = vadd.f32 %v6598_v47, %v6486_v52  ;;  %v6643_v62 = vadd.f32 %v6611_v42, %v6499_v50  ;;  %v6613_v25 = vmul.f32 %v13393_v59, %v5808_v43  ;;  %v6612_v38 = vmul.f32 %v13394_v56, %v5757_v48  ;;  %v13406_v59 = vld [vmem:[#allocation55_spill] sm:$0xff]  ;;  %v13411_v60 = vld [vmem:[#allocation46_spill] sm:$0xff] }
 0x50f   : > { %6051 = vmatpush2.bf16.msra.mxu0 %v13398_v31  ;;  %v6500_v12 = vmul.f32 %v11687_v24, %v5747_v45  ;;  %v6885_v11 = vmul.f32 %v13399_v15, %v6627_v27  ;;  %v6901_v22 = vmul.f32 %v13400_v16, %v6629_v17  ;;  %v6886_v8 = vmul.f32 %v13401_v14, %v6628_v34  ;;  %v13407_v56 = vld [vmem:[#allocation15_spill] sm:$0xff]  ;;  %v13412_v34 = vld [vmem:[#allocation32_spill] sm:$0xff] }
 0x510   : > { %6104 = vmatpush2.bf16.msra.mxu1 %v13402_v36  ;;  %v6902_v26 = vmul.f32 %v13403_v40, %v6630_v32  ;;  %v6887_v52 = vmul.f32 %v13399_v15, %v6643_v62  ;;  %v6645_v50 = vadd.f32 %v6613_v25, %v6501_v5  ;;  %6052 = vmatprep.subr.bf16.mxu0 %v13404_v35  ;;  %v13410_v48 = vld [vmem:[#allocation31_spill] sm:$0xff]  ;;  %v13413_v25 = vld [vmem:[#allocation22_spill] sm:$0xff]  ;;  %vm6353_vm15 = vcmp.eq.f32.partialorder %v11948_v51, 0.0 }
 0x511   : > { %v6502_v9 = vmul.f32 %v13388_v4, %v5800_v55  ;;  %v12050_v6 = vadd.f32 %v6901_v22, %v6885_v11  ;;  %v6644_v24 = vadd.f32 %v6612_v38, %v6500_v12  ;;  %v6614_v45 = vmul.f32 %v13396_v28, %v5810_v23  ;;  %6105 = vmatprep.subr.bf16.mxu1 %v13405_v0  ;;  %v13408_v4 = vld [vmem:[#allocation110_spill] sm:$0xff]  ;;  %v13409_v28 = vld [vmem:[#allocation43_spill] sm:$0xff] }
 0x512   : > { %v7434_v21 = vpop.eup %7433  ;;  %v12054_v13 = vadd.f32 %v6902_v26, %v6886_v8  ;;  %v6903_v63 = vmul.f32 %v13400_v16, %v6645_v50  ;;  %v13414_v12 = vld [vmem:[#allocation34_spill] sm:$0xff]  ;;  %v13415_v11 = vld [vmem:[#allocation59_spill] sm:$0xff]  ;;  %vm6352_vm0 = vcmp.eq.f32.partialorder %v11967_v41, 0.0  ;;  %vm6354_vm2 = vcmp.eq.f32.partialorder %v11972_v10, 0.0 }
 0x513   : > { %6053 = vmatpush2.bf16.msra.mxu0 %v13406_v59  ;;  %v6888_v5 = vmul.f32 %v13401_v14, %v6644_v24  ;;  %v6646_v29 = vadd.f32 %v6614_v45, %v6502_v9  ;;  %v6819_v55 = vsub.f32 1.0, %v7434_v21  ;;  %v13417_v26 = vld [vmem:[#allocation35_spill] sm:$0xff]  ;;  %v13418_v45 = vld [vmem:[#allocation14_spill] sm:$0xff] }
 0x514   : > { %6106 = vmatpush2.bf16.msra.mxu1 %v13407_v56  ;;  %6054 = vmatprep.subr.bf16.mxu0 %v13408_v4  ;;  %v7436_v2 = vpop.eup %7435  ;;  %v12061_v20 = vadd.f32 %v6903_v63, %v6887_v52  ;;  %v13419_v0 = vld [vmem:[#allocation107_spill] sm:$0xff]  ;;  %v13420_v63 = vld [vmem:[#allocation104_spill] sm:$0xff] }
 0x515   : > { %6107 = vmatprep.subr.bf16.mxu1 %v13409_v28  ;;  %v7438_v47 = vpop.eup %7437  ;;  %v6904_v42 = vmul.f32 %v13403_v40, %v6646_v29  ;;  %v6835_v43 = vsub.f32 1.0, %v6819_v55  ;;  %v12067_v27 = vmul.f32 %v13411_v60, %v6819_v55  ;;  %v6821_v38 = vsub.f32 1.0, %v7436_v2  ;;  %v13422_v2 = vld [vmem:[#allocation101_spill] sm:$0xff] }
 0x516   : > { %v6820_v62 = vsub.f32 1.0, %v7438_v47  ;;  %v6438_v21 = vrot.slane %v13419_v0, %v13418_v45  ;;  %v6446_v59 = vrot.slane %v13420_v63, %v13418_v45  ;;  %v6450_v28 = vrot.slane %v13422_v2, %v13418_v45 }
 0x517   : > { %6055 = vmatpush2.bf16.msra.mxu0 %v13410_v48  ;;  %v12069_v17 = vadd.f32 %v6904_v42, %v6888_v5  ;;  %v6849_v23 = vadd.f32 1e-10, %v6835_v43  ;;  %v7440_v32 = vpop.eup %7439  ;;  %v13421_v5 = vld [vmem:[#allocation105_spill] sm:$0xff]  ;;  %v13423_v42 = vld [vmem:[#allocation47_spill] sm:$0xff] }
 0x518   : > { %6108 = vmatpush2.bf16.msra.mxu1 %v13412_v34  ;;  %v6836_v15 = vsub.f32 1.0, %v6820_v62  ;;  %v12077_v16 = vmul.f32 %v13415_v11, %v6820_v62  ;;  %v6822_v8 = vsub.f32 1.0, %v7440_v32  ;;  %v6442_v29 = vrot.slane %v13421_v5, %v13418_v45  ;;  %v13425_v62 = vld [vmem:[#allocation49_spill] sm:$0xff] }
 0x519   : > { %v6873_v31 = vmul.f32 %v13411_v60, %v6849_v23  ;;  %v6550_v43 = vrot.slane %v13423_v42, %v13418_v45  ;;  %v13424_v23 = vld [vmem:[#allocation138_spill] sm:$0xff] }
 0x51a   : > { %6057 = vmatmul.mubr.bf16.vlgmr.msra.gmra.mxu0 %v13413_v25  ;;  %v6850_v14 = vadd.f32 1e-10, %v6836_v15  ;;  %v6912_v32 = vrot.slane %v13424_v23, %v13418_v45  ;;  %v13426_v15 = vld [vmem:[#allocation139_spill] sm:$0xff] }
 0x51b   : > { %6110 = vmatmul.mubr.bf16.vlgmr.msra.gmra.mxu1 %v13413_v25  ;;  %6066 = vmatprep.mubr.bf16.mxu0 %v13414_v12  ;;  %v12080_v22 = vmul.f32 %v6873_v31, %v6821_v38  ;;  %v6558_v25 = vrot.slane %v13425_v62, %v13418_v45 }
 0x51c   : > { %6119 = vmatprep.mubr.bf16.mxu1 %v13414_v12  ;;  %v6874_v36 = vmul.f32 %v13415_v11, %v6850_v14  ;;  %v6928_v11 = vrot.slane %v13426_v15, %v13418_v45  ;;  %v13427_v14 = vld [vmem:[#allocation36_spill] sm:$0xff] }
 0x51e   : > { %v12083_v40 = vmul.f32 %v6874_v36, %v6822_v8  ;;  %v6554_v8 = vrot.slane %v13427_v14, %v13418_v45 }
 0x520   : > { %13416 = vst [vmem:[#allocation38_spill] sm:$0xff] %v12083_v40 }
 0x522   : > { %6067 = vmatmul.mubr.bf16.gmra.mxu0 %v13417_v26 }
 0x523   : > { %6120 = vmatmul.mubr.bf16.gmra.mxu1 %v13417_v26 }
 0x538   : > { %v5846_v52 = vpop.f32.mrf.mxu0 }
 0x539   : > { %v5899_v50 = vpop.f32.mrf.mxu1  ;;  %v5847_v4 = vadd.f32 %v5846_v52, %v11974_v61  ;;  %v13428_v52 = vld [vmem:[#allocation140_spill] sm:$0xff] }
 0x53a   : > { %v5848_v35 = vpop.f32.mrf.mxu0  ;;  %v5900_v55 = vadd.f32 %v5899_v50, %v11974_v61  ;;  %v6916_v50 = vrot.slane %v13428_v52, %v13418_v45 }
 0x53b   : > { %v5901_v9 = vpop.f32.mrf.mxu1  ;;  %v5849_v48 = vadd.f32 %v5848_v35, %v11974_v61  ;;  %v13429_v35 = vld [vmem:[#allocation37_spill] sm:$0xff]  ;;  %v6487_v63 = vmul.f32 %v6438_v21, %v5847_v4 }
 0x53c   : > { %v5850_v24 = vpop.f32.mrf.mxu0  ;;  %v5902_v60 = vadd.f32 %v5901_v9, %v11974_v61  ;;  %v6562_v9 = vrot.slane %v13429_v35, %v13418_v45  ;;  %v6489_v5 = vmul.f32 %v6446_v59, %v5900_v55 }
 0x53d   : > { %v5903_v56 = vpop.f32.mrf.mxu1  ;;  %v5851_v38 = vadd.f32 %v5850_v24, %v11990_v54  ;;  %v13430_v24 = vld [vmem:[#allocation142_spill] sm:$0xff]  ;;  %v6488_v23 = vmul.f32 %v6442_v29, %v5849_v48 }
 0x53e   : > { %v5852_v47 = vpop.f32.mrf.mxu0  ;;  %v5904_v31 = vadd.f32 %v5903_v56, %v11990_v54  ;;  %v6932_v0 = vrot.slane %v13430_v24, %v13418_v45  ;;  %v6490_v62 = vmul.f32 %v6450_v28, %v5902_v60 }
 0x53f   : > { %v5905_v34 = vpop.f32.mrf.mxu1  ;;  %v5853_v56 = vadd.f32 %v5852_v47, %v11990_v54  ;;  %v6503_v52 = vmul.f32 %v6438_v21, %v5851_v38 }
 0x540   : > { %v5856_v12 = vpop.f32.mrf.mxu0  ;;  %v6505_v58 = vmul.f32 %v6446_v59, %v5904_v31  ;;  %v5906_v4 = vadd.f32 %v5905_v34, %v11990_v54 }
 0x541   : > { %v5857_v36 = vadd.f32 %v5856_v12, %v12009_v3  ;;  %v5909_v26 = vpop.f32.mrf.mxu1  ;;  %v6504_v46 = vmul.f32 %v6442_v29, %v5853_v56 }
 0x542   : > { %v5910_v2 = vadd.f32 %v5909_v26, %v12009_v3  ;;  %v5858_v42 = vpop.f32.mrf.mxu0 }
 0x543   : > { %v6599_v12 = vmul.f32 %v6550_v43, %v5857_v36  ;;  %v5859_v15 = vadd.f32 %v5858_v42, %v12009_v3  ;;  %v5911_v14 = vpop.f32.mrf.mxu1 }
 0x544   : > { %v6601_v53 = vmul.f32 %v6558_v25, %v5910_v2  ;;  %v5912_v35 = vadd.f32 %v5911_v14, %v12009_v3  ;;  %v5860_v18 = vpop.f32.mrf.mxu0 }
 0x545   : > { %v6631_v55 = vadd.f32 %v6599_v12, %v6487_v63  ;;  %v6600_v24 = vmul.f32 %v6554_v8, %v5859_v15  ;;  %v5861_v47 = vadd.f32 %v5860_v18, %v12017_v33  ;;  %v5913_v26 = vpop.f32.mrf.mxu1 }
 0x546   : > { %v6633_v48 = vadd.f32 %v6601_v53, %v6489_v5  ;;  %v6602_v60 = vmul.f32 %v6562_v9, %v5912_v35  ;;  %v5914_v36 = vadd.f32 %v5913_v26, %v12017_v33  ;;  %v5862_v42 = vpop.f32.mrf.mxu0  ;;  %v6506_v5 = vmul.f32 %v6450_v28, %v5906_v4 }
 0x547   : > { %v6917_v40 = vmul.f32 %v6912_v32, %v6631_v55  ;;  %v6632_v21 = vadd.f32 %v6600_v24, %v6488_v23  ;;  %v6615_v59 = vmul.f32 %v6550_v43, %v5861_v47  ;;  %v5863_v38 = vadd.f32 %v5862_v42, %v12017_v33  ;;  %v5915_v31 = vpop.f32.mrf.mxu1  ;;  %v13434_v42 = vld [vmem:[#allocation113_spill] sm:$0xff] }
 0x548   : > { %v6933_v2 = vmul.f32 %v6928_v11, %v6633_v48  ;;  %v6634_v14 = vadd.f32 %v6602_v60, %v6490_v62  ;;  %v6617_v34 = vmul.f32 %v6558_v25, %v5914_v36  ;;  %v5916_v63 = vadd.f32 %v5915_v31, %v12017_v33  ;;  %v13432_v48 = vld [vmem:[#allocation30_spill] sm:$0xff] }
 0x549   : > { %v6921_v18 = vadd.f32 %v6917_v40, %v12050_v6  ;;  %v6918_v12 = vmul.f32 %v6916_v50, %v6632_v21  ;;  %v6647_v29 = vadd.f32 %v6615_v59, %v6503_v52  ;;  %v6616_v53 = vmul.f32 %v6554_v8, %v5863_v38  ;;  %v13435_v38 = vld [vmem:[#allocation88_spill] sm:$0xff] }
 0x54a   : > { %v6934_v56 = vmul.f32 %v6932_v0, %v6634_v14  ;;  %v6649_v15 = vadd.f32 %v6617_v34, %v6505_v58  ;;  %v6618_v35 = vmul.f32 %v6562_v9, %v5916_v63  ;;  %v6462_v60 = vrot.slane %v13432_v48, %v13418_v45  ;;  %v13436_v63 = vld [vmem:[#allocation26_spill] sm:$0xff] }
 0x54b   : > { %v12128_v55 = vadd.f32 %v6933_v2, %v6921_v18  ;;  %v6922_v43 = vadd.f32 %v6918_v12, %v12054_v13  ;;  %v6919_v23 = vmul.f32 %v6912_v32, %v6647_v29  ;;  %v6648_v24 = vadd.f32 %v6616_v53, %v6504_v46  ;;  %v13431_v46 = vld [vmem:[#allocation21_spill] sm:$0xff]  ;;  %v13437_v12 = vld [vmem:[#allocation90_spill] sm:$0xff] }
 0x54c   : > { %v6935_v47 = vmul.f32 %v6928_v11, %v6649_v15  ;;  %v6650_v62 = vadd.f32 %v6618_v35, %v6506_v5  ;;  %v6454_v11 = vrot.slane %v13431_v46, %v13418_v45  ;;  %v6466_v21 = vrot.slane %v13434_v42, %v13418_v45  ;;  %v13438_v15 = vld [vmem:[#allocation29_spill] sm:$0xff] }
 0x54d   : > { %v12131_v25 = vadd.f32 %v6934_v56, %v6922_v43  ;;  %v6923_v26 = vadd.f32 %v6919_v23, %v12061_v20  ;;  %v6920_v6 = vmul.f32 %v6916_v50, %v6648_v24  ;;  %v13433_v20 = vld [vmem:[#allocation122_spill] sm:$0xff]  ;;  %v6566_v31 = vrot.slane %v13435_v38, %v13418_v45 }
 0x54e   : > { %v6936_v40 = vmul.f32 %v6932_v0, %v6650_v62  ;;  %v6458_v50 = vrot.slane %v13433_v20, %v13418_v45  ;;  %v6944_v18 = vrot.slane %v13436_v63, %v13418_v45  ;;  %v6574_v29 = vrot.slane %v13437_v12, %v13418_v45  ;;  %v13439_v43 = vld [vmem:[#allocation98_spill] sm:$0xff]  ;;  %v13440_v62 = vld [vmem:[#allocation27_spill] sm:$0xff] }
 0x54f   : > { %v12134_v52 = vadd.f32 %v6935_v47, %v6923_v26  ;;  %v6924_v28 = vadd.f32 %v6920_v6, %v12069_v17  ;;  %v6960_v35 = vrot.slane %v13438_v15, %v13418_v45  ;;  %v6570_v23 = vrot.slane %v13439_v43, %v13418_v45  ;;  %v13441_v6 = vld [vmem:[#allocation137_spill] sm:$0xff] }
 0x550   : > { %v6948_v26 = vrot.slane %v13440_v62, %v13418_v45 }
 0x551   : > { %v12137_v58 = vadd.f32 %v6936_v40, %v6924_v28  ;;  %v6578_v40 = vrot.slane %v13441_v6, %v13418_v45  ;;  %v13442_v28 = vld [vmem:[#allocation23_spill] sm:$0xff] }
 0x57c   : > { %v5952_v8 = vpop.f32.mrf.mxu0 }
 0x57d   : > { %v6005_v9 = vpop.f32.mrf.mxu1  ;;  %v5953_v36 = vadd.f32 %v5952_v8, %v11974_v61  ;;  %v6964_v8 = vrot.slane %v13442_v28, %v13418_v45 }
 0x57e   : > { %v5954_v4 = vpop.f32.mrf.mxu0  ;;  %v6006_v17 = vadd.f32 %v6005_v9, %v11974_v61 }
 0x57f   : > { %v6007_v13 = vpop.f32.mrf.mxu1  ;;  %v5955_v2 = vadd.f32 %v5954_v4, %v11974_v61  ;;  %v6491_v9 = vmul.f32 %v6454_v11, %v5953_v36 }
 0x580   : > { %v5956_v32 = vpop.f32.mrf.mxu0  ;;  %v6008_v14 = vadd.f32 %v6007_v13, %v11974_v61  ;;  %v6493_v4 = vmul.f32 %v6462_v60, %v6006_v17 }
 0x581   : > { %v6009_v0 = vpop.f32.mrf.mxu1  ;;  %v5957_v53 = vadd.f32 %v5956_v32, %v11990_v54  ;;  %v6492_v48 = vmul.f32 %v6458_v50, %v5955_v2 }
 0x582   : > { %v5958_v59 = vpop.f32.mrf.mxu0  ;;  %v6010_v5 = vadd.f32 %v6009_v0, %v11990_v54  ;;  %v6494_v20 = vmul.f32 %v6466_v21, %v6008_v14 }
 0x583   : > { %v6011_v34 = vpop.f32.mrf.mxu1  ;;  %v5959_v13 = vadd.f32 %v5958_v59, %v11990_v54  ;;  %v6507_v63 = vmul.f32 %v6454_v11, %v5957_v53 }
 0x584   : > { %v5962_v56 = vpop.f32.mrf.mxu0  ;;  %v6509_v12 = vmul.f32 %v6462_v60, %v6010_v5  ;;  %v6012_v36 = vadd.f32 %v6011_v34, %v11990_v54 }
 0x585   : > { %v5963_v24 = vadd.f32 %v5962_v56, %v12009_v3  ;;  %v6015_v47 = vpop.f32.mrf.mxu1  ;;  %v6508_v6 = vmul.f32 %v6458_v50, %v5959_v13 }
 0x586   : > { %v6016_v32 = vadd.f32 %v6015_v47, %v12009_v3  ;;  %v5964_v46 = vpop.f32.mrf.mxu0  ;;  %v6510_v13 = vmul.f32 %v6466_v21, %v6012_v36  ;;  %v13443_v36 = vmax.f32 %v11911_v49, 0.0  ;;  %v13446_v49 = vmax.f32 %v11932_v19, 0.0 }
 0x587   : > { %v6603_v0 = vmul.f32 %v6566_v31, %v5963_v24  ;;  %v5965_v42 = vadd.f32 %v5964_v46, %v12009_v3  ;;  %v6017_v38 = vpop.f32.mrf.mxu1 }
 0x588   : > { %v6605_v56 = vmul.f32 %v6574_v29, %v6016_v32  ;;  %v6018_v15 = vadd.f32 %v6017_v38, %v12009_v3  ;;  %v5966_v43 = vpop.f32.mrf.mxu0 }
 0x589   : > { %v6635_v17 = vadd.f32 %v6603_v0, %v6491_v9  ;;  %v6604_v62 = vmul.f32 %v6570_v23, %v5965_v42  ;;  %v5967_v59 = vadd.f32 %v5966_v43, %v12017_v33  ;;  %v6019_v47 = vpop.f32.mrf.mxu1 }
 0x58a   : > { %v6637_v2 = vadd.f32 %v6605_v56, %v6493_v4  ;;  %v6606_v14 = vmul.f32 %v6578_v40, %v6018_v15  ;;  %v6020_v24 = vadd.f32 %v6019_v47, %v12017_v33  ;;  %v5968_v28 = vpop.f32.mrf.mxu0 }
 0x58b   : > { %v6949_v46 = vmul.f32 %v6944_v18, %v6635_v17  ;;  %v6636_v11 = vadd.f32 %v6604_v62, %v6492_v48  ;;  %v6619_v60 = vmul.f32 %v6566_v31, %v5967_v59  ;;  %v5969_v53 = vadd.f32 %v5968_v28, %v12017_v33  ;;  %v6021_v5 = vpop.f32.mrf.mxu1 }
 0x58c   : > { %v6965_v32 = vmul.f32 %v6960_v35, %v6637_v2  ;;  %v6638_v38 = vadd.f32 %v6606_v14, %v6494_v20  ;;  %v6621_v34 = vmul.f32 %v6574_v29, %v6020_v24  ;;  %v6022_v9 = vadd.f32 %v6021_v5, %v12017_v33 }
 0x58d   : > { %v6953_v0 = vadd.f32 %v6949_v46, %v12128_v55  ;;  %v6950_v42 = vmul.f32 %v6948_v26, %v6636_v11  ;;  %v6651_v50 = vadd.f32 %v6619_v60, %v6507_v63  ;;  %v6620_v4 = vmul.f32 %v6570_v23, %v5969_v53 }
 0x58e   : > { %v6966_v56 = vmul.f32 %v6964_v8, %v6638_v38  ;;  %v6653_v15 = vadd.f32 %v6621_v34, %v6509_v12  ;;  %v6622_v43 = vmul.f32 %v6578_v40, %v6022_v9  ;;  %v13445_v46 = vmax.f32 %v11929_v1, 0.0 }
 0x58f   : > { %v12180_v17 = vadd.f32 %v6965_v32, %v6953_v0  ;;  %v6954_v31 = vadd.f32 %v6950_v42, %v12131_v25  ;;  %v6951_v48 = vmul.f32 %v6944_v18, %v6651_v50  ;;  %v6652_v62 = vadd.f32 %v6620_v4, %v6508_v6 }
 0x590   : > { %v6967_v59 = vmul.f32 %v6960_v35, %v6653_v15  ;;  %v6654_v20 = vadd.f32 %v6622_v43, %v6510_v13  ;;  %v6367_v25 = vsel %vm6351_vm14, 0.0001, %v11943_v57  ;;  %v6368_v18 = vsel %vm6352_vm0, 0.0001, %v11967_v41 }
 0x591   : > { %v12183_v29 = vadd.f32 %v6966_v56, %v6954_v31  ;;  %v6955_v47 = vadd.f32 %v6951_v48, %v12134_v52  ;;  %v6952_v55 = vmul.f32 %v6948_v26, %v6652_v62  ;;  %v6369_v52 = vsel %vm6353_vm15, 0.0001, %v11948_v51 }
 0x592   : > { %v6968_v2 = vmul.f32 %v6964_v8, %v6654_v20  ;;  %7441 = vrcp.f32 %v6367_v25  ;;  %v6370_v35 = vsel %vm6354_vm2, 0.0001, %v11972_v10  ;;  %v13444_v41 = vmax.f32 %v11914_v30, 0.0  ;;  %v13447_v20 = vld [vmem:[#allocation38_spill] sm:$0xff] }
 0x593   : > { %v12186_v63 = vadd.f32 %v6967_v59, %v6955_v47  ;;  %v6956_v21 = vadd.f32 %v6952_v55, %v12137_v58  ;;  %7443 = vrcp.f32 %v6369_v52  ;;  %v6976_v43 = vrot.slane %v12067_v27, %v13418_v45 }
 0x594   : > { %7445 = vrcp.f32 %v6368_v18  ;;  %v6980_v59 = vrot.slane %v12077_v16, %v13418_v45  ;;  %v6996_v47 = vrot.slane %v13447_v20, %v13418_v45 }
 0x595   : > { %v12189_v23 = vadd.f32 %v6968_v2, %v6956_v21  ;;  %7447 = vrcp.f32 %v6370_v35 }
 0x59f   : > { %v7442_v58 = vpop.eup %7441 }
 0x5a0   : > { %v7444_v26 = vpop.eup %7443  ;;  %v6527_v57 = vmul.f32 %v7442_v58, %v13443_v36  ;;  %v6415_v6 = vmul.f32 %v7442_v58, %v11922_v39 }
 0x5a1   : > { %v7446_v40 = vpop.eup %7445  ;;  %v6417_v51 = vmul.f32 %v7444_v26, %v11926_v37  ;;  %v6529_v24 = vmul.f32 %v7444_v26, %v13444_v41 }
 0x5a2   : > { %v7448_v8 = vpop.eup %7447  ;;  %v6416_v28 = vmul.f32 %v7446_v40, %v11956_v7  ;;  %v6528_v11 = vmul.f32 %v7446_v40, %v13445_v46  ;;  %v6470_v39 = vrot.slane %v6415_v6, %v13418_v45  ;;  %v6582_v30 = vrot.slane %v6527_v57, %v13418_v45 }
 0x5a3   : > { %v6418_v53 = vmul.f32 %v7448_v8, %v11960_v44  ;;  %v6530_v5 = vmul.f32 %v7448_v8, %v13446_v49  ;;  %v6478_v37 = vrot.slane %v6417_v51, %v13418_v45  ;;  %v6590_v44 = vrot.slane %v6529_v24, %v13418_v45 }
 0x5a4   : > { %v6474_v1 = vrot.slane %v6416_v28, %v13418_v45  ;;  %v6586_v4 = vrot.slane %v6528_v11, %v13418_v45 }
 0x5a5   : > { %v6482_v42 = vrot.slane %v6418_v53, %v13418_v45  ;;  %v6594_v31 = vrot.slane %v6530_v5, %v13418_v45 }
 0x5da   : > { %v6058_v12 = vpop.f32.mrf.mxu0 }
 0x5db   : > { %v6111_v14 = vpop.f32.mrf.mxu1  ;;  %v6059_v34 = vadd.f32 %v6058_v12, %v11974_v61 }
 0x5dc   : > { %v6060_v10 = vpop.f32.mrf.mxu0  ;;  %v6112_v7 = vadd.f32 %v6111_v14, %v11974_v61 }
 0x5dd   : > { %v6113_v60 = vpop.f32.mrf.mxu1  ;;  %v6061_v19 = vadd.f32 %v6060_v10, %v11974_v61  ;;  %v6495_v55 = vmul.f32 %v6470_v39, %v6059_v34 }
 0x5de   : > { %v6062_v32 = vpop.f32.mrf.mxu0  ;;  %v6114_v0 = vadd.f32 %v6113_v60, %v11974_v61  ;;  %v6992_v61 = vrot.slane %v12080_v22, %v13418_v45  ;;  %v6497_v2 = vmul.f32 %v6478_v37, %v6112_v7 }
 0x5df   : > { %v6115_v38 = vpop.f32.mrf.mxu1  ;;  %v6063_v13 = vadd.f32 %v6062_v32, %v11990_v54  ;;  %v6496_v52 = vmul.f32 %v6474_v1, %v6061_v19 }
 0x5e0   : > { %v6064_v9 = vpop.f32.mrf.mxu0  ;;  %v6116_v56 = vadd.f32 %v6115_v38, %v11990_v54  ;;  %v6498_v18 = vmul.f32 %v6482_v42, %v6114_v0 }
 0x5e1   : > { %v6117_v50 = vpop.f32.mrf.mxu1  ;;  %v6065_v21 = vadd.f32 %v6064_v9, %v11990_v54  ;;  %v6511_v22 = vmul.f32 %v6470_v39, %v6063_v13 }
 0x5e2   : > { %v6068_v15 = vpop.f32.mrf.mxu0  ;;  %v6513_v40 = vmul.f32 %v6478_v37, %v6116_v56  ;;  %v6118_v12 = vadd.f32 %v6117_v50, %v11990_v54 }
 0x5e3   : > { %v6069_v48 = vadd.f32 %v6068_v15, %v12009_v3  ;;  %v6121_v62 = vpop.f32.mrf.mxu1  ;;  %v6512_v51 = vmul.f32 %v6474_v1, %v6065_v21 }
 0x5e4   : > { %v6122_v27 = vadd.f32 %v6121_v62, %v12009_v3  ;;  %v6070_v25 = vpop.f32.mrf.mxu0  ;;  %v6514_v7 = vmul.f32 %v6482_v42, %v6118_v12 }
 0x5e5   : > { %v6607_v35 = vmul.f32 %v6582_v30, %v6069_v48  ;;  %v6071_v58 = vadd.f32 %v6070_v25, %v12009_v3  ;;  %v6123_v26 = vpop.f32.mrf.mxu1 }
 0x5e6   : > { %v6609_v16 = vmul.f32 %v6590_v44, %v6122_v27  ;;  %v6124_v8 = vadd.f32 %v6123_v26, %v12009_v3  ;;  %v6072_v45 = vpop.f32.mrf.mxu0 }
 0x5e7   : > { %v6639_v36 = vadd.f32 %v6607_v35, %v6495_v55  ;;  %v6608_v57 = vmul.f32 %v6586_v4, %v6071_v58  ;;  %v6073_v6 = vadd.f32 %v6072_v45, %v12017_v33  ;;  %v6125_v14 = vpop.f32.mrf.mxu1 }
 0x5e8   : > { %v6641_v41 = vadd.f32 %v6609_v16, %v6497_v2  ;;  %v6610_v24 = vmul.f32 %v6594_v31, %v6124_v8  ;;  %v6126_v10 = vadd.f32 %v6125_v14, %v12017_v33  ;;  %v6074_v28 = vpop.f32.mrf.mxu0 }
 0x5e9   : > { %v6981_v46 = vmul.f32 %v6976_v43, %v6639_v36  ;;  %v6640_v11 = vadd.f32 %v6608_v57, %v6496_v52  ;;  %v6623_v60 = vmul.f32 %v6582_v30, %v6073_v6  ;;  %v6075_v3 = vadd.f32 %v6074_v28, %v12017_v33  ;;  %v6127_v53 = vpop.f32.mrf.mxu1 }
 0x5ea   : > { %v6997_v49 = vmul.f32 %v6992_v61, %v6641_v41  ;;  %v6642_v54 = vadd.f32 %v6610_v24, %v6498_v18  ;;  %v6625_v5 = vmul.f32 %v6590_v44, %v6126_v10  ;;  %v6128_v32 = vadd.f32 %v6127_v53, %v12017_v33 }
 0x5eb   : > { %v6985_v39 = vadd.f32 %v6981_v46, %v12180_v17  ;;  %v6982_v37 = vmul.f32 %v6980_v59, %v6640_v11  ;;  %v6655_v38 = vadd.f32 %v6623_v60, %v6511_v22  ;;  %v6624_v34 = vmul.f32 %v6586_v4, %v6075_v3 }
 0x5ec   : > { %v6998_v1 = vmul.f32 %v6996_v47, %v6642_v54  ;;  %v6657_v30 = vadd.f32 %v6625_v5, %v6513_v40  ;;  %v6626_v9 = vmul.f32 %v6594_v31, %v6128_v32 }
 0x5ed   : > { %v7001_v19 = vadd.f32 %v6997_v49, %v6985_v39  ;;  %v6986_v0 = vadd.f32 %v6982_v37, %v12183_v29  ;;  %v6983_v50 = vmul.f32 %v6976_v43, %v6655_v38  ;;  %v6656_v44 = vadd.f32 %v6624_v34, %v6512_v51 }
 0x5ee   : > { %v6999_v13 = vmul.f32 %v6992_v61, %v6657_v30  ;;  %v6658_v33 = vadd.f32 %v6626_v9, %v6514_v7 }
 0x5ef   : > { %7005 = vst [vmem:[%s335_s25] sm:$0xff] %v7001_v19  ;;  %v7002_v17 = vadd.f32 %v6998_v1, %v6986_v0  ;;  %v6987_v56 = vadd.f32 %v6983_v50, %v12186_v63  ;;  %v6984_v4 = vmul.f32 %v6980_v59, %v6656_v44 }
 0x5f0   : > { %v7000_v42 = vmul.f32 %v6996_v47, %v6658_v33 }
 0x5f1   : > { %7006 = vst [vmem:[%s335_s25 + $0x8] sm:$0xff] %v7002_v17  ;;  %v7003_v15 = vadd.f32 %v6999_v13, %v6987_v56  ;;  %v6988_v48 = vadd.f32 %v6984_v4, %v12189_v23 }
 0x5f3   : > { %7007 = vst [vmem:[%s335_s25 + $0x10] sm:$0xff] %v7003_v15  ;;  %v7004_v62 = vadd.f32 %v7000_v42, %v6988_v48 }
 0x5f5   : > { %7008 = vst [vmem:[%s335_s25 + $0x18] sm:$0xff] %v7004_v62 }
 0x5f6 PF: > { %s17_s24 = sadd.s32 1, %s7595_s24  }
 0x5f7   : > { %p14_p4 = scmp.ge.s32.totalorder %s17_s24, 4  }
 0x5f9   :  { %16 = sbr.rel (!%p14_p4) target bundleno = 1 (0x1), region = 87 }

</bundles_post_ra>
